<compile_context>
chip_gen: v5e
topology: v5e:2x2
jax: 0.10.0
libtpu: 0.0.40
codegen_flags: <defaults>
</compile_context>

<pallas_src>
import functools

import jax
import jax.numpy as jnp
from jax.experimental import pallas as pl
from jax.experimental.pallas import tpu as pltpu

_LANE = 128      # vreg lane width
_TILE_M = 512    # output-row tile (parallel grid axis)
_TILE_K = 1024   # reduction tile over source nodes (arbitrary, LAST grid axis)
_N_ALIGN = 1024  # lcm(_TILE_M, _TILE_K); == 2*_TILE_M -> >=2 even row tiles (v7x megacore)


def _round_up(v, m):
    return -(-v // m) * m


def _sage_layer_kernel(a_ref, xk_ref, xr_ref, inv_deg_ref, wl_ref, wr_ref, b_ref,
                       o_ref, acc_ref, *, fuse_relu):
    """One (TM, TK) step of:  out = (inv_deg * (A_bin @ x)) @ W_l + x @ W_r + b."""
    k = pl.program_id(1)

    @pl.when(k == 0)
    def _init():
        acc_ref[...] = jnp.zeros_like(acc_ref)

    # Binary int8 adjacency tile -> bf16 on the VPU (free filler under the HBM
    # bound), MXU matmul against bf16 neighbor features, f32 accumulation.
    acc_ref[...] += jnp.dot(a_ref[...].astype(jnp.bfloat16), xk_ref[...],
                            preferred_element_type=jnp.float32)

    @pl.when(k == pl.num_programs(1) - 1)
    def _finalize():
        # Exact mean normalization with the f32 per-row 1/deg column, then two
        # small MXU projections + bias (+ optional fused ReLU).
        agg = (inv_deg_ref[...] * acc_ref[...]).astype(jnp.bfloat16)
        out = jnp.dot(agg, wl_ref[...], preferred_element_type=jnp.float32)
        out = out + jnp.dot(xr_ref[...], wr_ref[...],
                            preferred_element_type=jnp.float32)
        out = out + b_ref[...]
        if fuse_relu:
            out = jnp.maximum(out, 0.0)
        o_ref[...] = out.astype(o_ref.dtype)


def sage_conv_pallas(adj_p, inv_deg_p, x_p, w_l, w_r, b, *, fuse_relu, out_dtype):
    """One SAGEConv layer on padded inputs.

    adj_p     : (Np, Np)      int8 binary adjacency (zero-padded)
    inv_deg_p : (Np, 1)       f32 1/deg_in (1.0 for isolated / padded rows)
    x_p       : (Np, Fp_in)   bf16 zero-padded node features
    returns (Np, Fp_out) in `out_dtype` (zero in padded columns).
    """
    n_p = adj_p.shape[0]
    f_in, f_out = w_l.shape
    f_in_p = _round_up(f_in, _LANE)
    f_out_p = _round_up(f_out, _LANE)
    assert x_p.shape == (n_p, f_in_p) and x_p.dtype == jnp.bfloat16
    assert n_p % _TILE_M == 0 and n_p % _TILE_K == 0

    tm, tk = _TILE_M, _TILE_K
    grid = (n_p // tm, n_p // tk)

    # Pad weights / bias once outside the kernel (lane-dense 128-multiples).
    wl_p = (jnp.zeros((f_in_p, f_out_p), jnp.float32)
            .at[:f_in, :f_out].set(w_l).astype(jnp.bfloat16))
    wr_p = (jnp.zeros((f_in_p, f_out_p), jnp.float32)
            .at[:f_in, :f_out].set(w_r).astype(jnp.bfloat16))
    b_p = jnp.zeros((1, f_out_p), jnp.float32).at[0, :f_out].set(b)

    kernel = functools.partial(_sage_layer_kernel, fuse_relu=fuse_relu)

    return pl.pallas_call(
        kernel,
        out_shape=jax.ShapeDtypeStruct((n_p, f_out_p), out_dtype),
        grid_spec=pltpu.PrefetchScalarGridSpec(
            num_scalar_prefetch=0,
            grid=grid,
            in_specs=[
                pl.BlockSpec((tm, tk), lambda i, k: (i, k)),           # A (int8 binary)
                pl.BlockSpec((tk, f_in_p), lambda i, k: (k, 0)),       # x (neighbors)
                pl.BlockSpec((tm, f_in_p), lambda i, k: (i, 0)),       # x (root rows)
                pl.BlockSpec((tm, 1), lambda i, k: (i, 0)),            # 1/deg (f32)
                pl.BlockSpec((f_in_p, f_out_p), lambda i, k: (0, 0)),  # W_l
                pl.BlockSpec((f_in_p, f_out_p), lambda i, k: (0, 0)),  # W_r
                pl.BlockSpec((1, f_out_p), lambda i, k: (0, 0)),       # bias
            ],
            out_specs=pl.BlockSpec((tm, f_out_p), lambda i, k: (i, 0)),
            scratch_shapes=[
                pltpu.VMEM((tm, f_in_p), jnp.float32),   # f32 aggregation accumulator
            ],
        ),
        compiler_params=pltpu.CompilerParams(
            dimension_semantics=("parallel", "arbitrary"),
            vmem_limit_bytes=32 * 1024 * 1024,   # stay well under v7x's 64 MiB VMEM
        ),
    )(adj_p, x_p, x_p, inv_deg_p, wl_p, wr_p, b_p)


def build_binary_adjacency(edge_index, num_nodes, n_padded):
    """Binary int8 adjacency A[t, s] += 1 per edge s->t, plus f32 (Np,1) 1/deg_in.

    Built directly in int8 — no dense f32 intermediate / cast pass over N^2.
    """
    src, dst = edge_index[0], edge_index[1]
    # TODO(synk): int8 overflows at >127 parallel duplicate edges; use a CSR /
    #             scalar-prefetch gather formulation for real (large) graphs.
    adj = jnp.zeros((n_padded, n_padded), dtype=jnp.int8)
    adj = adj.at[dst, src].add(jnp.ones_like(src, dtype=jnp.int8))
    deg = jnp.zeros((n_padded,), jnp.float32).at[dst].add(1.0)
    inv_deg = 1.0 / jnp.maximum(deg, 1.0)     # isolated / padded rows -> 1.0 (agg stays 0)
    return adj, inv_deg.reshape(n_padded, 1)


def init_sage_params(key, in_channels, out_channels, hidden, num_layers=3):
    """Deterministic glorot-ish init matching SAGEConv parameter shapes."""
    dims = []
    for i in range(num_layers):
        f_in = in_channels if i == 0 else hidden
        f_out = out_channels if i + 1 == num_layers else hidden
        dims.append((f_in, f_out))
    params = []
    for (f_in, f_out) in dims:
        key, k1, k2 = jax.random.split(key, 3)
        scale = (2.0 / (f_in + f_out)) ** 0.5
        w_l = scale * jax.random.normal(k1, (f_in, f_out), dtype=jnp.float32)
        w_r = scale * jax.random.normal(k2, (f_in, f_out), dtype=jnp.float32)
        b = jnp.zeros((f_out,), dtype=jnp.float32)  # lin_l bias; lin_r has no bias
        params.append((w_l, w_r, b))
    return params


def sage_batch_forward(params, x, edge_index, dropout=0.0):
    """Mirrors SAGEBATCH.forward: returns {'logits': ..., 'feature': ...}."""
    num_nodes, in_channels = x.shape
    num_layers = len(params)
    n_p = _round_up(max(num_nodes, 1), _N_ALIGN)

    # TODO(synk): for a static graph, hoist the adjacency build out of the forward.
    adj, inv_deg = build_binary_adjacency(edge_index, num_nodes, n_p)

    f_in_p = _round_up(in_channels, _LANE)
    h = (jnp.zeros((n_p, f_in_p), jnp.float32)
         .at[:num_nodes, :in_channels].set(x)
         .astype(jnp.bfloat16))

    features = []
    for i, (w_l, w_r, b) in enumerate(params):
        is_last = i + 1 == num_layers
        is_feature_tap = (i == num_layers - 2)
        # Fuse the inter-layer ReLU into the kernel epilogue, except for the
        # penultimate layer whose PRE-ReLU output is the 'feature' tap.
        fuse_relu = (not is_last) and (not is_feature_tap)
        # Intermediate layers emit bf16 directly; feature-tap / logits stay f32.
        out_dtype = jnp.float32 if (is_last or is_feature_tap) else jnp.bfloat16
        h = sage_conv_pallas(adj, inv_deg, h, w_l, w_r, b,
                             fuse_relu=fuse_relu, out_dtype=out_dtype)
        features.append(h)
        if is_last:
            break
        if not fuse_relu:
            h = jnp.maximum(h, 0.0)      # ReLU kept outside so 'feature' stays pre-ReLU
        if h.dtype != jnp.bfloat16:
            h = h.astype(jnp.bfloat16)   # only on the feature-tap -> final transition
        # dropout p=0.0 -> identity (glue)

    out_channels = params[-1][0].shape[1]
    hidden = params[-2][0].shape[1]
    logits = h[:num_nodes, :out_channels]
    feature = features[-2][:num_nodes, :hidden]
    return {"logits": logits, "feature": feature}


def _reference_forward(params, x, edge_index):
    """Pure-JAX f32 reference (dense, unpadded) for a loose numerical check."""
    n = x.shape[0]
    src, dst = edge_index[0], edge_index[1]
    adj = jnp.zeros((n, n), jnp.float32).at[dst, src].add(1.0)
    deg = adj.sum(axis=1, keepdims=True)
    adj = adj / jnp.maximum(deg, 1.0)
    feats = []
    h = x
    for i, (w_l, w_r, b) in enumerate(params):
        h = (adj @ h) @ w_l + h @ w_r + b
        feats.append(h)
        if i + 1 == len(params):
            break
        h = jnp.maximum(h, 0.0)
    return {"logits": h, "feature": feats[-2]}


if __name__ == "__main__":
    key = jax.random.PRNGKey(0)
    num_nodes = 16
    in_channels = 8
    hidden = 32
    out_channels = 8

    key, k_x = jax.random.split(key)
    x = jax.random.normal(k_x, (num_nodes, in_channels), dtype=jnp.float32)

    # deterministic ring graph (both directions) as edge_index [2, E]
    idx = jnp.arange(num_nodes)
    src = jnp.concatenate([idx, (idx + 1) % num_nodes])
    dst = jnp.concatenate([(idx + 1) % num_nodes, idx])
    edge_index = jnp.stack([src, dst], axis=0).astype(jnp.int32)

    params = init_sage_params(key, in_channels, out_channels, hidden, num_layers=3)

    fwd = jax.jit(functools.partial(sage_batch_forward, params))
    out = fwd(x, edge_index)
    jax.block_until_ready(out)

    assert out["logits"].shape == (num_nodes, out_channels)
    assert out["feature"].shape == (num_nodes, hidden)
    assert jnp.all(jnp.isfinite(out["logits"]))
    assert jnp.all(jnp.isfinite(out["feature"]))

    # Comparison vs a pure-JAX f32 reference (bf16 features/weights in the
    # kernel -> generous tolerance; normalization itself is now exact f32).
    ref = _reference_forward(params, x, edge_index)
    assert jnp.allclose(out["logits"], ref["logits"], rtol=1e-1, atol=1e-1)
    assert jnp.allclose(out["feature"], ref["feature"], rtol=1e-1, atol=1e-1)

    print("KERNEL_OK")
</pallas_src>

<mosaic_0001>
module attributes {stable_mosaic.version = 11 : i64} {
  func.func @_sage_layer_kernel(%arg0: i32, %arg1: i32, %arg2: memref<512x1024xi8, #tpu.memory_space<vmem>>, %arg3: memref<1024x128xbf16, #tpu.memory_space<vmem>>, %arg4: memref<512x128xbf16, #tpu.memory_space<vmem>>, %arg5: memref<512x1xf32, #tpu.memory_space<vmem>>, %arg6: memref<128x128xbf16, #tpu.memory_space<vmem>>, %arg7: memref<128x128xbf16, #tpu.memory_space<vmem>>, %arg8: memref<1x128xf32, #tpu.memory_space<vmem>>, %arg9: memref<512x128xbf16, #tpu.memory_space<vmem>>, %arg10: memref<512x128xf32, #tpu.memory_space<vmem>>) attributes {dimension_semantics = [#tpu.dimension_semantics<parallel>, #tpu.dimension_semantics<arbitrary>], iteration_bounds = array<i64: 2, 1>, scalar_prefetch = 0 : i64, scratch_operands = 1 : i64, tpu.core_type = #tpu.core_type<tc>, window_params = [{transform_indices = @transform_0, window_bounds = array<i64: 512, 1024>}, {transform_indices = @transform_1, window_bounds = array<i64: 1024, 128>}, {transform_indices = @transform_2, window_bounds = array<i64: 512, 128>}, {transform_indices = @transform_3, window_bounds = array<i64: 512, 1>}, {pipeline_mode = #tpu.pipeline_mode<synchronous>, transform_indices = @transform_4, window_bounds = array<i64: 128, 128>}, {pipeline_mode = #tpu.pipeline_mode<synchronous>, transform_indices = @transform_5, window_bounds = array<i64: 128, 128>}, {pipeline_mode = #tpu.pipeline_mode<synchronous>, transform_indices = @transform_6, window_bounds = array<i64: 1, 128>}, {transform_indices = @transform_7, window_bounds = array<i64: 512, 128>}]} {
    %c0_i32 = arith.constant 0 : i32
    %0 = arith.cmpi eq, %arg1, %c0_i32 : i32
    %1 = arith.extui %0 : i1 to i32
    %c0_i32_0 = arith.constant 0 : i32
    %2 = arith.cmpi ne, %1, %c0_i32_0 : i32
    scf.if %2 {
      %cst_10 = arith.constant 0.000000e+00 : f32
      %13 = vector.broadcast %cst_10 : f32 to vector<512x128xf32>
      %c0_11 = arith.constant 0 : index
      %c0_12 = arith.constant 0 : index
      %14 = vector.load %arg10[%c0_11, %c0_12] : memref<512x128xf32, #tpu.memory_space<vmem>>, vector<512x128xf32>
      tpu.vector_store %arg10[%c0_11, %c0_12], %13 {strides = array<i32>} : memref<512x128xf32, #tpu.memory_space<vmem>>, vector<512x128xf32>,
    } else {
    }
    %c0 = arith.constant 0 : index
    %c0_1 = arith.constant 0 : index
    %3 = vector.load %arg10[%c0, %c0_1] : memref<512x128xf32, #tpu.memory_space<vmem>>, vector<512x128xf32>
    %c0_2 = arith.constant 0 : index
    %c0_3 = arith.constant 0 : index
    %4 = vector.load %arg2[%c0_2, %c0_3] : memref<512x1024xi8, #tpu.memory_space<vmem>>, vector<512x1024xi8>
    %5 = arith.sitofp %4 : vector<512x1024xi8> to vector<512x1024xbf16>
    %c0_4 = arith.constant 0 : index
    %c0_5 = arith.constant 0 : index
    %6 = vector.load %arg3[%c0_4, %c0_5] : memref<1024x128xbf16, #tpu.memory_space<vmem>>, vector<1024x128xbf16>
    %cst = arith.constant dense<0.000000e+00> : vector<512x128xf32>
    %7 = tpu.matmul %5, %6, %cst {dimension_numbers = #tpu.dot_dimension_numbers<[1], [0], [0], [1], [0, 0, 1, 1], [], []>} : vector<512x1024xbf16>, vector<1024x128xbf16>, vector<512x128xf32> -> vector<512x128xf32>
    %8 = arith.addf %3, %7 : vector<512x128xf32>
    %c0_6 = arith.constant 0 : index
    %c0_7 = arith.constant 0 : index
    %9 = vector.load %arg10[%c0_6, %c0_7] : memref<512x128xf32, #tpu.memory_space<vmem>>, vector<512x128xf32>
    tpu.vector_store %arg10[%c0_6, %c0_7], %8 {strides = array<i32>} : memref<512x128xf32, #tpu.memory_space<vmem>>, vector<512x128xf32>,
    %c0_i32_8 = arith.constant 0 : i32
    %10 = arith.cmpi eq, %arg1, %c0_i32_8 : i32
    %11 = arith.extui %10 : i1 to i32
    %c0_i32_9 = arith.constant 0 : i32
    %12 = arith.cmpi ne, %11, %c0_i32_9 : i32
    scf.if %12 {
      %c0_10 = arith.constant 0 : index
      %c0_11 = arith.constant 0 : index
      %13 = vector.load %arg5[%c0_10, %c0_11] : memref<512x1xf32, #tpu.memory_space<vmem>>, vector<512x1xf32>
      %c0_12 = arith.constant 0 : index
      %c0_13 = arith.constant 0 : index
      %14 = vector.load %arg10[%c0_12, %c0_13] : memref<512x128xf32, #tpu.memory_space<vmem>>, vector<512x128xf32>
      %15 = vector.broadcast %13 : vector<512x1xf32> to vector<512x128xf32>
      %16 = arith.mulf %15, %14 : vector<512x128xf32>
      %17 = arith.truncf %16 : vector<512x128xf32> to vector<512x128xbf16>
      %c0_14 = arith.constant 0 : index
      %c0_15 = arith.constant 0 : index
      %18 = vector.load %arg6[%c0_14, %c0_15] : memref<128x128xbf16, #tpu.memory_space<vmem>>, vector<128x128xbf16>
      %cst_16 = arith.constant dense<0.000000e+00> : vector<512x128xf32>
      %19 = tpu.matmul %17, %18, %cst_16 {dimension_numbers = #tpu.dot_dimension_numbers<[1], [0], [0], [1], [0, 0, 1, 1], [], []>} : vector<512x128xbf16>, vector<128x128xbf16>, vector<512x128xf32> -> vector<512x128xf32>
      %c0_17 = arith.constant 0 : index
      %c0_18 = arith.constant 0 : index
      %20 = vector.load %arg4[%c0_17, %c0_18] : memref<512x128xbf16, #tpu.memory_space<vmem>>, vector<512x128xbf16>
      %c0_19 = arith.constant 0 : index
      %c0_20 = arith.constant 0 : index
      %21 = vector.load %arg7[%c0_19, %c0_20] : memref<128x128xbf16, #tpu.memory_space<vmem>>, vector<128x128xbf16>
      %cst_21 = arith.constant dense<0.000000e+00> : vector<512x128xf32>
      %22 = tpu.matmul %20, %21, %cst_21 {dimension_numbers = #tpu.dot_dimension_numbers<[1], [0], [0], [1], [0, 0, 1, 1], [], []>} : vector<512x128xbf16>, vector<128x128xbf16>, vector<512x128xf32> -> vector<512x128xf32>
      %23 = arith.addf %19, %22 : vector<512x128xf32>
      %c0_22 = arith.constant 0 : index
      %c0_23 = arith.constant 0 : index
      %24 = vector.load %arg8[%c0_22, %c0_23] : memref<1x128xf32, #tpu.memory_space<vmem>>, vector<1x128xf32>
      %25 = vector.broadcast %24 : vector<1x128xf32> to vector<512x128xf32>
      %26 = arith.addf %23, %25 : vector<512x128xf32>
      %cst_24 = arith.constant 0.000000e+00 : f32
      %27 = vector.broadcast %cst_24 : f32 to vector<512x128xf32>
      %28 = arith.maximumf %26, %27 : vector<512x128xf32>
      %29 = arith.truncf %28 : vector<512x128xf32> to vector<512x128xbf16>
      %c0_25 = arith.constant 0 : index
      %c0_26 = arith.constant 0 : index
      %30 = vector.load %arg9[%c0_25, %c0_26] : memref<512x128xbf16, #tpu.memory_space<vmem>>, vector<512x128xbf16>
      tpu.vector_store %arg9[%c0_25, %c0_26], %29 {strides = array<i32>} : memref<512x128xbf16, #tpu.memory_space<vmem>>, vector<512x128xbf16>,
    } else {
    }
    return
  }
  func.func @transform_0(%arg0: i32, %arg1: i32) -> (i32, i32) {
    %c0_i32 = arith.constant 0 : i32
    return %arg0, %arg1 : i32, i32
  }
  func.func @transform_1(%arg0: i32, %arg1: i32) -> (i32, i32) {
    %c0_i32 = arith.constant 0 : i32
    %c0_i32_0 = arith.constant 0 : i32
    return %arg1, %c0_i32 : i32, i32
  }
  func.func @transform_2(%arg0: i32, %arg1: i32) -> (i32, i32) {
    %c0_i32 = arith.constant 0 : i32
    %c0_i32_0 = arith.constant 0 : i32
    return %arg0, %c0_i32 : i32, i32
  }
  func.func @transform_3(%arg0: i32, %arg1: i32) -> (i32, i32) {
    %c0_i32 = arith.constant 0 : i32
    %c0_i32_0 = arith.constant 0 : i32
    return %arg0, %c0_i32 : i32, i32
  }
  func.func @transform_4(%arg0: i32, %arg1: i32) -> (i32, i32) {
    %c0_i32 = arith.constant 0 : i32
    %c0_i32_0 = arith.constant 0 : i32
    %c0_i32_1 = arith.constant 0 : i32
    return %c0_i32, %c0_i32_0 : i32, i32
  }
  func.func @transform_5(%arg0: i32, %arg1: i32) -> (i32, i32) {
    %c0_i32 = arith.constant 0 : i32
    %c0_i32_0 = arith.constant 0 : i32
    %c0_i32_1 = arith.constant 0 : i32
    return %c0_i32, %c0_i32_0 : i32, i32
  }
  func.func @transform_6(%arg0: i32, %arg1: i32) -> (i32, i32) {
    %c0_i32 = arith.constant 0 : i32
    %c0_i32_0 = arith.constant 0 : i32
    %c0_i32_1 = arith.constant 0 : i32
    return %c0_i32, %c0_i32_0 : i32, i32
  }
  func.func @transform_7(%arg0: i32, %arg1: i32) -> (i32, i32) {
    %c0_i32 = arith.constant 0 : i32
    %c0_i32_0 = arith.constant 0 : i32
    return %arg0, %c0_i32 : i32, i32
  }
}

module attributes {stable_mosaic.version = 11 : i64} {
  func.func @_sage_layer_kernel(%arg0: i32, %arg1: i32, %arg2: memref<512x1024xi8, #tpu.memory_space<vmem>>, %arg3: memref<1024x128xbf16, #tpu.memory_space<vmem>>, %arg4: memref<512x128xbf16, #tpu.memory_space<vmem>>, %arg5: memref<512x1xf32, #tpu.memory_space<vmem>>, %arg6: memref<128x128xbf16, #tpu.memory_space<vmem>>, %arg7: memref<128x128xbf16, #tpu.memory_space<vmem>>, %arg8: memref<1x128xf32, #tpu.memory_space<vmem>>, %arg9: memref<512x128xf32, #tpu.memory_space<vmem>>, %arg10: memref<512x128xf32, #tpu.memory_space<vmem>>) attributes {dimension_semantics = [#tpu.dimension_semantics<parallel>, #tpu.dimension_semantics<arbitrary>], iteration_bounds = array<i64: 2, 1>, scalar_prefetch = 0 : i64, scratch_operands = 1 : i64, tpu.core_type = #tpu.core_type<tc>, window_params = [{transform_indices = @transform_0, window_bounds = array<i64: 512, 1024>}, {transform_indices = @transform_1, window_bounds = array<i64: 1024, 128>}, {transform_indices = @transform_2, window_bounds = array<i64: 512, 128>}, {transform_indices = @transform_3, window_bounds = array<i64: 512, 1>}, {pipeline_mode = #tpu.pipeline_mode<synchronous>, transform_indices = @transform_4, window_bounds = array<i64: 128, 128>}, {pipeline_mode = #tpu.pipeline_mode<synchronous>, transform_indices = @transform_5, window_bounds = array<i64: 128, 128>}, {pipeline_mode = #tpu.pipeline_mode<synchronous>, transform_indices = @transform_6, window_bounds = array<i64: 1, 128>}, {transform_indices = @transform_7, window_bounds = array<i64: 512, 128>}]} {
    %c0_i32 = arith.constant 0 : i32
    %0 = arith.cmpi eq, %arg1, %c0_i32 : i32
    %1 = arith.extui %0 : i1 to i32
    %c0_i32_0 = arith.constant 0 : i32
    %2 = arith.cmpi ne, %1, %c0_i32_0 : i32
    scf.if %2 {
      %cst_10 = arith.constant 0.000000e+00 : f32
      %13 = vector.broadcast %cst_10 : f32 to vector<512x128xf32>
      %c0_11 = arith.constant 0 : index
      %c0_12 = arith.constant 0 : index
      %14 = vector.load %arg10[%c0_11, %c0_12] : memref<512x128xf32, #tpu.memory_space<vmem>>, vector<512x128xf32>
      tpu.vector_store %arg10[%c0_11, %c0_12], %13 {strides = array<i32>} : memref<512x128xf32, #tpu.memory_space<vmem>>, vector<512x128xf32>,
    } else {
    }
    %c0 = arith.constant 0 : index
    %c0_1 = arith.constant 0 : index
    %3 = vector.load %arg10[%c0, %c0_1] : memref<512x128xf32, #tpu.memory_space<vmem>>, vector<512x128xf32>
    %c0_2 = arith.constant 0 : index
    %c0_3 = arith.constant 0 : index
    %4 = vector.load %arg2[%c0_2, %c0_3] : memref<512x1024xi8, #tpu.memory_space<vmem>>, vector<512x1024xi8>
    %5 = arith.sitofp %4 : vector<512x1024xi8> to vector<512x1024xbf16>
    %c0_4 = arith.constant 0 : index
    %c0_5 = arith.constant 0 : index
    %6 = vector.load %arg3[%c0_4, %c0_5] : memref<1024x128xbf16, #tpu.memory_space<vmem>>, vector<1024x128xbf16>
    %cst = arith.constant dense<0.000000e+00> : vector<512x128xf32>
    %7 = tpu.matmul %5, %6, %cst {dimension_numbers = #tpu.dot_dimension_numbers<[1], [0], [0], [1], [0, 0, 1, 1], [], []>} : vector<512x1024xbf16>, vector<1024x128xbf16>, vector<512x128xf32> -> vector<512x128xf32>
    %8 = arith.addf %3, %7 : vector<512x128xf32>
    %c0_6 = arith.constant 0 : index
    %c0_7 = arith.constant 0 : index
    %9 = vector.load %arg10[%c0_6, %c0_7] : memref<512x128xf32, #tpu.memory_space<vmem>>, vector<512x128xf32>
    tpu.vector_store %arg10[%c0_6, %c0_7], %8 {strides = array<i32>} : memref<512x128xf32, #tpu.memory_space<vmem>>, vector<512x128xf32>,
    %c0_i32_8 = arith.constant 0 : i32
    %10 = arith.cmpi eq, %arg1, %c0_i32_8 : i32
    %11 = arith.extui %10 : i1 to i32
    %c0_i32_9 = arith.constant 0 : i32
    %12 = arith.cmpi ne, %11, %c0_i32_9 : i32
    scf.if %12 {
      %c0_10 = arith.constant 0 : index
      %c0_11 = arith.constant 0 : index
      %13 = vector.load %arg5[%c0_10, %c0_11] : memref<512x1xf32, #tpu.memory_space<vmem>>, vector<512x1xf32>
      %c0_12 = arith.constant 0 : index
      %c0_13 = arith.constant 0 : index
      %14 = vector.load %arg10[%c0_12, %c0_13] : memref<512x128xf32, #tpu.memory_space<vmem>>, vector<512x128xf32>
      %15 = vector.broadcast %13 : vector<512x1xf32> to vector<512x128xf32>
      %16 = arith.mulf %15, %14 : vector<512x128xf32>
      %17 = arith.truncf %16 : vector<512x128xf32> to vector<512x128xbf16>
      %c0_14 = arith.constant 0 : index
      %c0_15 = arith.constant 0 : index
      %18 = vector.load %arg6[%c0_14, %c0_15] : memref<128x128xbf16, #tpu.memory_space<vmem>>, vector<128x128xbf16>
      %cst_16 = arith.constant dense<0.000000e+00> : vector<512x128xf32>
      %19 = tpu.matmul %17, %18, %cst_16 {dimension_numbers = #tpu.dot_dimension_numbers<[1], [0], [0], [1], [0, 0, 1, 1], [], []>} : vector<512x128xbf16>, vector<128x128xbf16>, vector<512x128xf32> -> vector<512x128xf32>
      %c0_17 = arith.constant 0 : index
      %c0_18 = arith.constant 0 : index
      %20 = vector.load %arg4[%c0_17, %c0_18] : memref<512x128xbf16, #tpu.memory_space<vmem>>, vector<512x128xbf16>
      %c0_19 = arith.constant 0 : index
      %c0_20 = arith.constant 0 : index
      %21 = vector.load %arg7[%c0_19, %c0_20] : memref<128x128xbf16, #tpu.memory_space<vmem>>, vector<128x128xbf16>
      %cst_21 = arith.constant dense<0.000000e+00> : vector<512x128xf32>
      %22 = tpu.matmul %20, %21, %cst_21 {dimension_numbers = #tpu.dot_dimension_numbers<[1], [0], [0], [1], [0, 0, 1, 1], [], []>} : vector<512x128xbf16>, vector<128x128xbf16>, vector<512x128xf32> -> vector<512x128xf32>
      %23 = arith.addf %19, %22 : vector<512x128xf32>
      %c0_22 = arith.constant 0 : index
      %c0_23 = arith.constant 0 : index
      %24 = vector.load %arg8[%c0_22, %c0_23] : memref<1x128xf32, #tpu.memory_space<vmem>>, vector<1x128xf32>
      %25 = vector.broadcast %24 : vector<1x128xf32> to vector<512x128xf32>
      %26 = arith.addf %23, %25 : vector<512x128xf32>
      %c0_24 = arith.constant 0 : index
      %c0_25 = arith.constant 0 : index
      %27 = vector.load %arg9[%c0_24, %c0_25] : memref<512x128xf32, #tpu.memory_space<vmem>>, vector<512x128xf32>
      tpu.vector_store %arg9[%c0_24, %c0_25], %26 {strides = array<i32>} : memref<512x128xf32, #tpu.memory_space<vmem>>, vector<512x128xf32>,
    } else {
    }
    return
  }
  func.func @transform_0(%arg0: i32, %arg1: i32) -> (i32, i32) {
    %c0_i32 = arith.constant 0 : i32
    return %arg0, %arg1 : i32, i32
  }
  func.func @transform_1(%arg0: i32, %arg1: i32) -> (i32, i32) {
    %c0_i32 = arith.constant 0 : i32
    %c0_i32_0 = arith.constant 0 : i32
    return %arg1, %c0_i32 : i32, i32
  }
  func.func @transform_2(%arg0: i32, %arg1: i32) -> (i32, i32) {
    %c0_i32 = arith.constant 0 : i32
    %c0_i32_0 = arith.constant 0 : i32
    return %arg0, %c0_i32 : i32, i32
  }
  func.func @transform_3(%arg0: i32, %arg1: i32) -> (i32, i32) {
    %c0_i32 = arith.constant 0 : i32
    %c0_i32_0 = arith.constant 0 : i32
    return %arg0, %c0_i32 : i32, i32
  }
  func.func @transform_4(%arg0: i32, %arg1: i32) -> (i32, i32) {
    %c0_i32 = arith.constant 0 : i32
    %c0_i32_0 = arith.constant 0 : i32
    %c0_i32_1 = arith.constant 0 : i32
    return %c0_i32, %c0_i32_0 : i32, i32
  }
  func.func @transform_5(%arg0: i32, %arg1: i32) -> (i32, i32) {
    %c0_i32 = arith.constant 0 : i32
    %c0_i32_0 = arith.constant 0 : i32
    %c0_i32_1 = arith.constant 0 : i32
    return %c0_i32, %c0_i32_0 : i32, i32
  }
  func.func @transform_6(%arg0: i32, %arg1: i32) -> (i32, i32) {
    %c0_i32 = arith.constant 0 : i32
    %c0_i32_0 = arith.constant 0 : i32
    %c0_i32_1 = arith.constant 0 : i32
    return %c0_i32, %c0_i32_0 : i32, i32
  }
  func.func @transform_7(%arg0: i32, %arg1: i32) -> (i32, i32) {
    %c0_i32 = arith.constant 0 : i32
    %c0_i32_0 = arith.constant 0 : i32
    return %arg0, %c0_i32 : i32, i32
  }
}

</mosaic_0001>

<bundles_post_ra>
// kernel: sage_batch_forward.4
= control target key start
LH: loop header
LB: loop body
LE: loop exit
PB: predicated region body
PF: predicated region fallthrough
CT: control target
= control target key end

     0   :  { %s6239_s24 = smov 0   ;;  %s6241_s25 = smov 0   ;;  %s7616_s0 = inlined_call_operand.vmem [shape: s8[1024,1024], index: 0, kind: input, shape index: {}]   ;;  %s7617_s1 = inlined_call_operand.vmem [shape: bf16[1024,128], index: 1, kind: input, shape index: {}, may-alias: {1,2}]   ;;  %s7618_s2 = inlined_call_operand.vmem [shape: bf16[1024,128], index: 2, kind: input, shape index: {}, may-alias: {1,2}]   ;;  %s7619_s3 = inlined_call_operand.vmem [shape: f32[1024,1], index: 3, kind: input, shape index: {}]   ;;  %s7620_s4 = inlined_call_operand.vmem [shape: bf16[128,128], index: 4, kind: input, shape index: {}]   ;;  %s7621_s5 = inlined_call_operand.vmem [shape: bf16[128,128], index: 5, kind: input, shape index: {}]   ;;  %s7622_s6 = inlined_call_operand.vmem [shape: f32[1,128], index: 6, kind: input, shape index: {}]   ;;  %s7623_s7 = inlined_call_operand.vmem [shape: f32[1024,128], index: 7, kind: output, shape index: {}]  }
   0x1   :  { %s6243_s26 = smov 0  }
   0x2 LB: > { %s29_s27 = sadd.s32 1, %s6192_s25  ;;  %p5427_p0 = scmp.ge.s32.totalorder %s6196_s26, 1  ;;  %s6196_s26 = sphi %s6243_s26, %s17_s26   ;;  %s6192_s25 = sphi %s6241_s25, %s7769_s25   ;;  %s6188_s24 = sphi %s6239_s24, %s7768_s24  }
   0x3   : > { %p31_p1 = scmp.ge.s32.totalorder %s29_s27, 2  ;;  %p291_p2 = scmp.lt.s32.totalorder %s6196_s26, 3 }
   0x5   : > { %s7771_s27 = smov (%p31_p1, %s29_s27), 0  ;;  %p292_p3 = pnand %p5427_p0, %p291_p2 }
   0x7   : > { %295 = sbr.rel (%p292_p3) target bundleno = 1595 (0x63b), region = 48 }
   0xc   : > { %v5895_v0 = vld [vmem:[%s7617_s1 + $0x38] sm:$0xff]  ;;  %s5428_s9 = sshll.u32 %s6188_s24, 6  ;;  %v5894_v2 = vld [vmem:[%s7617_s1 + $0x30] sm:$0xff]  ;;  %v5893_v4 = vld [vmem:[%s7617_s1 + $0x28] sm:$0xff] }
   0xd   : > { %v5903_v1 = vld [vmem:[%s7617_s1 + $0x78] sm:$0xff]  ;;  %6000 = vmatpush.bf16.msra.mxu2 %v5895_v0  ;;  %v5902_v3 = vld [vmem:[%s7617_s1 + $0x70] sm:$0xff]  ;;  %2431 = vmatpush.bf16.msra.mxu0 %v5895_v0  ;;  %p345_p4 = scmp.lt.s32.totalorder %s5428_s9, 127  ;;  %v5901_v5 = vld [vmem:[%s7617_s1 + $0x68] sm:$0xff] }
   0xe   : > { %6008 = vmatpush.bf16.msra.mxu3 %v5903_v1  ;;  %2600 = vmatpush.bf16.msra.mxu1 %v5903_v1  ;;  %v5892_v6 = vld [vmem:[%s7617_s1 + $0x20] sm:$0xff]  ;;  %v5891_v8 = vld [vmem:[%s7617_s1 + $0x18] sm:$0xff]  ;;  %v5890_v10 = vld [vmem:[%s7617_s1 + $0x10] sm:$0xff] }
   0xf   : > { %s7773_s9 = smov (!%p345_p4, %s5428_s9), 127  ;;  %v5900_v7 = vld [vmem:[%s7617_s1 + $0x60] sm:$0xff]  ;;  %v5899_v9 = vld [vmem:[%s7617_s1 + $0x58] sm:$0xff]  ;;  %v5898_v11 = vld [vmem:[%s7617_s1 + $0x50] sm:$0xff] }
  0x10   : > { %s5887_s22 = sshll.u32 %s7773_s9, 4  ;;  %v5889_v20 = vld [vmem:[%s7617_s1 + $0x8] sm:$0xff]  ;;  %v5888_v30 = vld [vmem:[%s7617_s1] sm:$0xff]  ;;  %v5911_v32 = vld [vmem:[%s7617_s1 + $0xb8] sm:$0xff]  ;;  %s5434_s19 = sshll.u32 %s7773_s9, 3 }
  0x11   : > { %6001 = vmatpush.bf16.msra.mxu2 %v5894_v2  ;;  %2432 = vmatpush.bf16.msra.mxu0 %v5894_v2  ;;  %s6293_s10 = scalar_lea.vmem %s7616_s0, %s5887_s22  ;;  %v5897_v21 = vld [vmem:[%s7617_s1 + $0x48] sm:$0xff]  ;;  %v5896_v31 = vld [vmem:[%s7617_s1 + $0x40] sm:$0xff]  ;;  %v5919_v33 = vld [vmem:[%s7617_s1 + $0xf8] sm:$0xff]  ;;  %s6828_s22 = scalar_lea.vmem %s7619_s3, %s5434_s19 }
  0x12   : > { %6009 = vmatpush.bf16.msra.mxu3 %v5902_v3  ;;  %2601 = vmatpush.bf16.msra.mxu1 %v5902_v3  ;;  %v575_v12 = vld [vmem:[%s6293_s10 + $0x200] sm:$0xff]  ;;  %v577_v13 = vld [vmem:[%s6293_s10 + $0x210] sm:$0xff]  ;;  %s5432_s12 = sshll.u32 %s7773_s9, 2  ;;  %s7231_s21 = scalar_lea.vmem %s7623_s7, %s5434_s19 }
  0x13   : > { %v511_v14 = vld [vmem:[%s6293_s10] sm:$0xff]  ;;  %v513_v15 = vld [vmem:[%s6293_s10 + $0x10] sm:$0xff]  ;;  %v895_v16 = vunpack.c.0.s8 %v575_v12  ;;  %v903_v17 = vunpack.c.0.s8 %v577_v13  ;;  %v896_v18 = vunpack.c.1.s8 %v575_v12  ;;  %v904_v19 = vunpack.c.1.s8 %v577_v13  ;;  %s7138_s15 = scalar_lea.vmem %s7618_s2, %s5432_s12 }
  0x14   : > { %v639_v22 = vunpack.c.0.s8 %v511_v14  ;;  %v647_v23 = vunpack.c.0.s8 %v513_v15  ;;  %v640_v24 = vunpack.c.1.s8 %v511_v14  ;;  %v648_v25 = vunpack.c.1.s8 %v513_v15  ;;  %v5910_v42 = vld [vmem:[%s7617_s1 + $0xb0] sm:$0xff]  ;;  %v579_v44 = vld [vmem:[%s6293_s10 + $0x220] sm:$0xff] }
  0x15   : > { %6002 = vmatpush.bf16.msra.mxu2 %v5893_v4  ;;  %2433 = vmatpush.bf16.msra.mxu0 %v5893_v4  ;;  %v1407_v26 = vcvt.s32.f32 %v895_v16  ;;  %v1415_v27 = vcvt.s32.f32 %v903_v17  ;;  %v1408_v28 = vcvt.s32.f32 %v896_v18  ;;  %v1416_v29 = vcvt.s32.f32 %v904_v19  ;;  %v5918_v43 = vld [vmem:[%s7617_s1 + $0xf0] sm:$0xff]  ;;  %v515_v46 = vld [vmem:[%s6293_s10 + $0x20] sm:$0xff] }
  0x16   : > { %6010 = vmatpush.bf16.msra.mxu3 %v5901_v5  ;;  %2602 = vmatpush.bf16.msra.mxu1 %v5901_v5  ;;  %v1151_v34 = vcvt.s32.f32 %v639_v22  ;;  %v1159_v35 = vcvt.s32.f32 %v647_v23  ;;  %v1152_v36 = vcvt.s32.f32 %v640_v24  ;;  %v1160_v37 = vcvt.s32.f32 %v648_v25  ;;  %v581_v45 = vld [vmem:[%s6293_s10 + $0x230] sm:$0xff]  ;;  %v583_v4 = vld [vmem:[%s6293_s10 + $0x240] sm:$0xff] }
  0x17   : > { %v1791_v38 = vpack.c.bf16 %v1415_v27, %v1407_v26  ;;  %v1792_v39 = vpack.c.bf16 %v1416_v29, %v1408_v28  ;;  %v517_v47 = vld [vmem:[%s6293_s10 + $0x30] sm:$0xff]  ;;  %v911_v48 = vunpack.c.0.s8 %v579_v44  ;;  %v919_v49 = vunpack.c.0.s8 %v581_v45  ;;  %v5909_v28 = vld [vmem:[%s7617_s1 + $0xa8] sm:$0xff] }
  0x18   : > { %v1663_v40 = vpack.c.bf16 %v1159_v35, %v1151_v34  ;;  %v1664_v41 = vpack.c.bf16 %v1160_v37, %v1152_v36  ;;  %v912_v50 = vunpack.c.1.s8 %v579_v44  ;;  %v920_v51 = vunpack.c.1.s8 %v581_v45  ;;  %v585_v5 = vld [vmem:[%s6293_s10 + $0x250] sm:$0xff]  ;;  %v5917_v29 = vld [vmem:[%s7617_s1 + $0xe8] sm:$0xff] }
  0x19   : > { %6003 = vmatpush.bf16.msra.mxu2 %v5892_v6  ;;  %2434 = vmatpush.bf16.msra.mxu0 %v5892_v6  ;;  %v655_v52 = vunpack.c.0.s8 %v515_v46  ;;  %v663_v53 = vunpack.c.0.s8 %v517_v47  ;;  %v656_v54 = vunpack.c.1.s8 %v515_v46  ;;  %v664_v55 = vunpack.c.1.s8 %v517_v47  ;;  %v519_v6 = vld [vmem:[%s6293_s10 + $0x40] sm:$0xff] }
  0x1a   : > { %6011 = vmatpush.bf16.msra.mxu3 %v5900_v7  ;;  %2603 = vmatpush.bf16.msra.mxu1 %v5900_v7  ;;  %v1423_v56 = vcvt.s32.f32 %v911_v48  ;;  %v1431_v57 = vcvt.s32.f32 %v919_v49  ;;  %v1424_v58 = vcvt.s32.f32 %v912_v50  ;;  %v1432_v59 = vcvt.s32.f32 %v920_v51  ;;  %v521_v7 = vld [vmem:[%s6293_s10 + $0x50] sm:$0xff] }
  0x1b   : > { %v1167_v60 = vcvt.s32.f32 %v655_v52  ;;  %v1175_v61 = vcvt.s32.f32 %v663_v53  ;;  %v1168_v62 = vcvt.s32.f32 %v656_v54  ;;  %v1176_v63 = vcvt.s32.f32 %v664_v55  ;;  %v591_v54 = vld [vmem:[%s6293_s10 + $0x280] sm:$0xff]  ;;  %v593_v55 = vld [vmem:[%s6293_s10 + $0x290] sm:$0xff] }
  0x1c   : > { %v1799_v0 = vpack.c.bf16 %v1431_v57, %v1423_v56  ;;  %v1800_v1 = vpack.c.bf16 %v1432_v59, %v1424_v58  ;;  %v671_v12 = vunpack.c.0.s8 %v519_v6  ;;  %v679_v13 = vunpack.c.0.s8 %v521_v7  ;;  %v527_v56 = vld [vmem:[%s6293_s10 + $0x80] sm:$0xff]  ;;  %v529_v57 = vld [vmem:[%s6293_s10 + $0x90] sm:$0xff] }
  0x1d   : > { %6004 = vmatpush.bf16.msra.mxu2 %v5891_v8  ;;  %2435 = vmatpush.bf16.msra.mxu0 %v5891_v8  ;;  %v1671_v2 = vpack.c.bf16 %v1175_v61, %v1167_v60  ;;  %v1672_v3 = vpack.c.bf16 %v1176_v63, %v1168_v62  ;;  %v927_v8 = vunpack.c.0.s8 %v583_v4  ;;  %v672_v14 = vunpack.c.1.s8 %v519_v6 }
  0x1e   : > { %6012 = vmatpush.bf16.msra.mxu3 %v5899_v9  ;;  %2604 = vmatpush.bf16.msra.mxu1 %v5899_v9  ;;  %v935_v9 = vunpack.c.0.s8 %v585_v5  ;;  %v680_v15 = vunpack.c.1.s8 %v521_v7  ;;  %v959_v58 = vunpack.c.0.s8 %v591_v54  ;;  %v967_v59 = vunpack.c.0.s8 %v593_v55 }
  0x1f   : > { %v1439_v16 = vcvt.s32.f32 %v927_v8  ;;  %v1184_v22 = vcvt.s32.f32 %v672_v14  ;;  %v960_v60 = vunpack.c.1.s8 %v591_v54  ;;  %v968_v61 = vunpack.c.1.s8 %v593_v55  ;;  %v5908_v14 = vld [vmem:[%s7617_s1 + $0xa0] sm:$0xff] }
  0x20   : > { %v1447_v17 = vcvt.s32.f32 %v935_v9  ;;  %v1192_v23 = vcvt.s32.f32 %v680_v15  ;;  %v703_v62 = vunpack.c.0.s8 %v527_v56  ;;  %v711_v63 = vunpack.c.0.s8 %v529_v57  ;;  %v5916_v15 = vld [vmem:[%s7617_s1 + $0xe0] sm:$0xff] }
  0x21   : > { %6005 = vmatpush.bf16.msra.mxu2 %v5890_v10  ;;  %2436 = vmatpush.bf16.msra.mxu0 %v5890_v10  ;;  %v928_v10 = vunpack.c.1.s8 %v583_v4  ;;  %v1472_v4 = vcvt.s32.f32 %v960_v60 }
  0x22   : > { %6013 = vmatpush.bf16.msra.mxu3 %v5898_v11  ;;  %2605 = vmatpush.bf16.msra.mxu1 %v5898_v11  ;;  %v936_v11 = vunpack.c.1.s8 %v585_v5  ;;  %v1807_v24 = vpack.c.bf16 %v1447_v17, %v1439_v16  ;;  %v1680_v27 = vpack.c.bf16 %v1192_v23, %v1184_v22  ;;  %v1480_v5 = vcvt.s32.f32 %v968_v61  ;;  %v595_v16 = vld [vmem:[%s6293_s10 + $0x2a0] sm:$0xff]  ;;  %v597_v17 = vld [vmem:[%s6293_s10 + $0x2b0] sm:$0xff] }
  0x23   : > { %v1440_v18 = vcvt.s32.f32 %v928_v10  ;;  %v1215_v6 = vcvt.s32.f32 %v703_v62  ;;  %v1223_v7 = vcvt.s32.f32 %v711_v63  ;;  %v976_v22 = vunpack.c.1.s8 %v595_v16 }
  0x24   : > { %v1448_v19 = vcvt.s32.f32 %v936_v11  ;;  %v1824_v11 = vpack.c.bf16 %v1480_v5, %v1472_v4  ;;  %v984_v23 = vunpack.c.1.s8 %v597_v17  ;;  %v539_v4 = vld [vmem:[%s6293_s10 + $0xe0] sm:$0xff]  ;;  %v541_v5 = vld [vmem:[%s6293_s10 + $0xf0] sm:$0xff] }
  0x25   : > { %6006 = vmatpush.bf16.msra.mxu2 %v5889_v20  ;;  %2437 = vmatpush.bf16.msra.mxu0 %v5889_v20  ;;  %v1183_v20 = vcvt.s32.f32 %v671_v12  ;;  %v1695_v12 = vpack.c.bf16 %v1223_v7, %v1215_v6 }
  0x26   : > { %6014 = vmatpush.bf16.msra.mxu3 %v5897_v21  ;;  %2606 = vmatpush.bf16.msra.mxu1 %v5897_v21  ;;  %v1191_v21 = vcvt.s32.f32 %v679_v13  ;;  %v1808_v25 = vpack.c.bf16 %v1448_v19, %v1440_v18  ;;  %v531_v18 = vld [vmem:[%s6293_s10 + $0xa0] sm:$0xff]  ;;  %v533_v19 = vld [vmem:[%s6293_s10 + $0xb0] sm:$0xff] }
  0x28   : > { %v1679_v26 = vpack.c.bf16 %v1191_v21, %v1183_v20  ;;  %v975_v20 = vunpack.c.0.s8 %v595_v16  ;;  %v983_v21 = vunpack.c.0.s8 %v597_v17 }
  0x29   : > { %6007 = vmatpush.bf16.msra.mxu2 %v5888_v30  ;;  %2438 = vmatpush.bf16.msra.mxu0 %v5888_v30  ;;  %v587_v30 = vld [vmem:[%s6293_s10 + $0x260] sm:$0xff] }
  0x2a   : > { %6015 = vmatpush.bf16.msra.mxu3 %v5896_v31  ;;  %2607 = vmatpush.bf16.msra.mxu1 %v5896_v31  ;;  %v589_v31 = vld [vmem:[%s6293_s10 + $0x270] sm:$0xff]  ;;  %v943_v34 = vunpack.c.0.s8 %v587_v30  ;;  %v944_v36 = vunpack.c.1.s8 %v587_v30  ;;  %v1488_v30 = vcvt.s32.f32 %v976_v22 }
  0x2b   : > { %v951_v35 = vunpack.c.0.s8 %v589_v31  ;;  %v952_v37 = vunpack.c.1.s8 %v589_v31  ;;  %v1496_v31 = vcvt.s32.f32 %v984_v23 }
  0x2c   : > { %2519 = vmatmul.bf16.vlgmr.msra.gmra.mxu2 %v1791_v38  ;;  %2439 = vmatmul.bf16.vlgmr.msra.gmra.mxu0 %v1663_v40  ;;  %v1456_v44 = vcvt.s32.f32 %v944_v36 }
  0x2d   : > { %2769 = vmatpush.bf16.msrb.mxu2 %v5911_v32  ;;  %2688 = vmatmul.bf16.vlgmr.msra.gmra.mxu3 %v1792_v39  ;;  %v523_v32 = vld [vmem:[%s6293_s10 + $0x60] sm:$0xff]  ;;  %v1464_v45 = vcvt.s32.f32 %v952_v37  ;;  %v1832_v37 = vpack.c.bf16 %v1496_v31, %v1488_v30 }
  0x2e   : > { %2938 = vmatpush.bf16.msrb.mxu3 %v5919_v33  ;;  %2608 = vmatmul.bf16.vlgmr.msra.gmra.mxu1 %v1664_v41  ;;  %v525_v33 = vld [vmem:[%s6293_s10 + $0x70] sm:$0xff]  ;;  %v687_v38 = vunpack.c.0.s8 %v523_v32  ;;  %v688_v40 = vunpack.c.1.s8 %v523_v32 }
  0x2f   : > { %v695_v39 = vunpack.c.0.s8 %v525_v33  ;;  %v696_v41 = vunpack.c.1.s8 %v525_v33  ;;  %v1816_v51 = vpack.c.bf16 %v1464_v45, %v1456_v44 }
  0x30   : > { %v1199_v46 = vcvt.s32.f32 %v687_v38  ;;  %v1200_v48 = vcvt.s32.f32 %v688_v40  ;;  %v599_v40 = vld [vmem:[%s6293_s10 + $0x2c0] sm:$0xff] }
  0x31   : > { %2770 = vmatpush.bf16.msrb.mxu2 %v5910_v42  ;;  %v1455_v42 = vcvt.s32.f32 %v943_v34  ;;  %v1207_v47 = vcvt.s32.f32 %v695_v39  ;;  %v1208_v49 = vcvt.s32.f32 %v696_v41  ;;  %v601_v41 = vld [vmem:[%s6293_s10 + $0x2d0] sm:$0xff]  ;;  %v991_v44 = vunpack.c.0.s8 %v599_v40 }
  0x32   : > { %2939 = vmatpush.bf16.msrb.mxu3 %v5918_v43  ;;  %v1463_v43 = vcvt.s32.f32 %v951_v35  ;;  %v999_v45 = vunpack.c.0.s8 %v601_v41 }
  0x33   : > { %v1687_v52 = vpack.c.bf16 %v1207_v47, %v1199_v46  ;;  %v1688_v53 = vpack.c.bf16 %v1208_v49, %v1200_v48  ;;  %v992_v46 = vunpack.c.1.s8 %v599_v40  ;;  %v1000_v47 = vunpack.c.1.s8 %v601_v41 }
  0x34   : > { %v1815_v50 = vpack.c.bf16 %v1463_v43, %v1455_v42  ;;  %v535_v42 = vld [vmem:[%s6293_s10 + $0xc0] sm:$0xff]  ;;  %v537_v43 = vld [vmem:[%s6293_s10 + $0xd0] sm:$0xff] }
  0x35   : > { %2771 = vmatpush.bf16.msrb.mxu2 %v5909_v28  ;;  %v1487_v28 = vcvt.s32.f32 %v975_v20  ;;  %v735_v48 = vunpack.c.0.s8 %v535_v42  ;;  %v743_v49 = vunpack.c.0.s8 %v537_v43  ;;  %v1504_v54 = vcvt.s32.f32 %v992_v46 }
  0x36   : > { %2940 = vmatpush.bf16.msrb.mxu3 %v5917_v29  ;;  %v1495_v29 = vcvt.s32.f32 %v983_v21  ;;  %v1512_v55 = vcvt.s32.f32 %v1000_v47 }
  0x38   : > { %v1831_v36 = vpack.c.bf16 %v1495_v29, %v1487_v28  ;;  %v1840_v61 = vpack.c.bf16 %v1512_v55, %v1504_v54  ;;  %v543_v28 = vld [vmem:[%s6293_s10 + $0x100] sm:$0xff]  ;;  %v545_v29 = vld [vmem:[%s6293_s10 + $0x110] sm:$0xff] }
  0x39   : > { %2772 = vmatpush.bf16.msrb.mxu2 %v5908_v14  ;;  %v611_v55 = vld [vmem:[%s6293_s10 + $0x320] sm:$0xff] }
  0x3a   : > { %2941 = vmatpush.bf16.msrb.mxu3 %v5916_v15 }
  0x3c   : > { %2524 = vmatmul.bf16.gmra.mxu2 %v1799_v0  ;;  %2444 = vmatmul.bf16.gmra.mxu0 %v1671_v2  ;;  %v704_v0 = vunpack.c.1.s8 %v527_v56  ;;  %v1471_v2 = vcvt.s32.f32 %v959_v58  ;;  %v1247_v56 = vcvt.s32.f32 %v735_v48 }
  0x3d   : > { %2693 = vmatmul.bf16.gmra.mxu3 %v1800_v1  ;;  %v712_v1 = vunpack.c.1.s8 %v529_v57  ;;  %v1255_v57 = vcvt.s32.f32 %v743_v49 }
  0x3e   : > { %2613 = vmatmul.bf16.gmra.mxu1 %v1672_v3  ;;  %v1479_v3 = vcvt.s32.f32 %v967_v59  ;;  %v1216_v8 = vcvt.s32.f32 %v704_v0  ;;  %v5907_v0 = vld [vmem:[%s7617_s1 + $0x98] sm:$0xff] }
  0x3f   : > { %v1224_v9 = vcvt.s32.f32 %v712_v1  ;;  %v1711_v62 = vpack.c.bf16 %v1255_v57, %v1247_v56  ;;  %v5915_v1 = vld [vmem:[%s7617_s1 + $0xd8] sm:$0xff]  ;;  %2773 = vmatpush.bf16.msrb.mxu2 %v5907_v0  ;;  %v5906_v56 = vld [vmem:[%s7617_s1 + $0x90] sm:$0xff] }
  0x40   : > { %v1823_v10 = vpack.c.bf16 %v1479_v3, %v1471_v2  ;;  %v603_v2 = vld [vmem:[%s6293_s10 + $0x2e0] sm:$0xff]  ;;  %v605_v3 = vld [vmem:[%s6293_s10 + $0x2f0] sm:$0xff]  ;;  %2942 = vmatpush.bf16.msrb.mxu3 %v5915_v1 }
  0x41   : > { %v1696_v13 = vpack.c.bf16 %v1224_v9, %v1216_v8  ;;  %v1007_v6 = vunpack.c.0.s8 %v603_v2  ;;  %v1015_v7 = vunpack.c.0.s8 %v605_v3  ;;  %v1008_v8 = vunpack.c.1.s8 %v603_v2  ;;  %v5914_v57 = vld [vmem:[%s7617_s1 + $0xd0] sm:$0xff] }
  0x42   : > { %v1016_v9 = vunpack.c.1.s8 %v605_v3  ;;  %v1040_v2 = vunpack.c.1.s8 %v611_v55 }
  0x43   : > { %v1519_v14 = vcvt.s32.f32 %v1007_v6  ;;  %v1527_v15 = vcvt.s32.f32 %v1015_v7  ;;  %v1520_v16 = vcvt.s32.f32 %v1008_v8  ;;  %2774 = vmatpush.bf16.msrb.mxu2 %v5906_v56 }
  0x44   : > { %v1528_v17 = vcvt.s32.f32 %v1016_v9  ;;  %2943 = vmatpush.bf16.msrb.mxu3 %v5914_v57 }
  0x45   : > { %v1847_v22 = vpack.c.bf16 %v1527_v15, %v1519_v14 }
  0x46   : > { %v1848_v23 = vpack.c.bf16 %v1528_v17, %v1520_v16 }
  0x4c   : > { %2529 = vmatmul.bf16.gmra.mxu2 %v1807_v24  ;;  %2449 = vmatmul.bf16.gmra.mxu0 %v1679_v26  ;;  %v719_v24 = vunpack.c.0.s8 %v531_v18  ;;  %v720_v26 = vunpack.c.1.s8 %v531_v18 }
  0x4d   : > { %2698 = vmatmul.bf16.gmra.mxu3 %v1808_v25  ;;  %v727_v25 = vunpack.c.0.s8 %v533_v19 }
  0x4e   : > { %2618 = vmatmul.bf16.gmra.mxu1 %v1680_v27  ;;  %v728_v27 = vunpack.c.1.s8 %v533_v19  ;;  %v1231_v32 = vcvt.s32.f32 %v719_v24  ;;  %v1232_v34 = vcvt.s32.f32 %v720_v26  ;;  %v607_v26 = vld [vmem:[%s6293_s10 + $0x300] sm:$0xff] }
  0x4f   : > { %v1239_v33 = vcvt.s32.f32 %v727_v25  ;;  %v1023_v30 = vunpack.c.0.s8 %v607_v26 }
  0x50   : > { %v1240_v35 = vcvt.s32.f32 %v728_v27  ;;  %v609_v27 = vld [vmem:[%s6293_s10 + $0x310] sm:$0xff] }
  0x51   : > { %v1703_v38 = vpack.c.bf16 %v1239_v33, %v1231_v32  ;;  %v1031_v31 = vunpack.c.0.s8 %v609_v27  ;;  %v1024_v32 = vunpack.c.1.s8 %v607_v26  ;;  %v1032_v33 = vunpack.c.1.s8 %v609_v27 }
  0x52   : > { %v1704_v39 = vpack.c.bf16 %v1240_v35, %v1232_v34  ;;  %v5927_v34 = vld [vmem:[%s7617_s1 + $0x138] sm:$0xff]  ;;  %v1535_v40 = vcvt.s32.f32 %v1023_v30  ;;  %v617_v30 = vld [vmem:[%s6293_s10 + $0x350] sm:$0xff] }
  0x53   : > { %v5935_v35 = vld [vmem:[%s7617_s1 + $0x178] sm:$0xff]  ;;  %3107 = vmatpush.bf16.msrb.mxu0 %v5927_v34  ;;  %v1543_v41 = vcvt.s32.f32 %v1031_v31  ;;  %v551_v34 = vld [vmem:[%s6293_s10 + $0x140] sm:$0xff] }
  0x54   : > { %3276 = vmatpush.bf16.msrb.mxu1 %v5935_v35  ;;  %v553_v35 = vld [vmem:[%s6293_s10 + $0x150] sm:$0xff] }
  0x55   : > { %v1855_v48 = vpack.c.bf16 %v1543_v41, %v1535_v40  ;;  %v5926_v40 = vld [vmem:[%s7617_s1 + $0x130] sm:$0xff] }
  0x56   : > { %v5934_v41 = vld [vmem:[%s7617_s1 + $0x170] sm:$0xff] }
  0x57   : > { %3108 = vmatpush.bf16.msrb.mxu0 %v5926_v40 }
  0x58   : > { %3277 = vmatpush.bf16.msrb.mxu1 %v5934_v41 }
  0x5c   : > { %2534 = vmatmul.bf16.gmra.mxu2 %v1815_v50  ;;  %2454 = vmatmul.bf16.gmra.mxu0 %v1687_v52  ;;  %v736_v50 = vunpack.c.1.s8 %v535_v42  ;;  %v1503_v52 = vcvt.s32.f32 %v991_v44  ;;  %v1536_v42 = vcvt.s32.f32 %v1024_v32 }
  0x5d   : > { %2703 = vmatmul.bf16.gmra.mxu3 %v1816_v51  ;;  %v744_v51 = vunpack.c.1.s8 %v537_v43  ;;  %v1544_v43 = vcvt.s32.f32 %v1032_v33 }
  0x5e   : > { %2623 = vmatmul.bf16.gmra.mxu1 %v1688_v53  ;;  %v1511_v53 = vcvt.s32.f32 %v999_v45  ;;  %v1248_v58 = vcvt.s32.f32 %v736_v50 }
  0x5f   : > { %v1256_v59 = vcvt.s32.f32 %v744_v51  ;;  %v1856_v49 = vpack.c.bf16 %v1544_v43, %v1536_v42  ;;  %v799_v42 = vunpack.c.0.s8 %v551_v34  ;;  %v807_v43 = vunpack.c.0.s8 %v553_v35 }
  0x60   : > { %v1839_v60 = vpack.c.bf16 %v1511_v53, %v1503_v52 }
  0x61   : > { %v1712_v63 = vpack.c.bf16 %v1256_v59, %v1248_v58  ;;  %v613_v58 = vld [vmem:[%s6293_s10 + $0x330] sm:$0xff] }
  0x62   : > { %v1047_v1 = vunpack.c.0.s8 %v613_v58  ;;  %v1048_v3 = vunpack.c.1.s8 %v613_v58 }
  0x6c   : > { %2539 = vmatmul.bf16.gmra.mxu2 %v1823_v10  ;;  %2459 = vmatmul.bf16.gmra.mxu0 %v1695_v12  ;;  %v751_v10 = vunpack.c.0.s8 %v539_v4  ;;  %v752_v12 = vunpack.c.1.s8 %v539_v4 }
  0x6d   : > { %2708 = vmatmul.bf16.gmra.mxu3 %v1824_v11  ;;  %v759_v11 = vunpack.c.0.s8 %v541_v5 }
  0x6e   : > { %2628 = vmatmul.bf16.gmra.mxu1 %v1696_v13  ;;  %v760_v13 = vunpack.c.1.s8 %v541_v5  ;;  %v1263_v18 = vcvt.s32.f32 %v751_v10  ;;  %v1264_v20 = vcvt.s32.f32 %v752_v12  ;;  %v1552_v12 = vcvt.s32.f32 %v1040_v2 }
  0x6f   : > { %v1271_v19 = vcvt.s32.f32 %v759_v11  ;;  %v1559_v11 = vcvt.s32.f32 %v1047_v1 }
  0x70   : > { %v1272_v21 = vcvt.s32.f32 %v760_v13  ;;  %v1560_v13 = vcvt.s32.f32 %v1048_v3 }
  0x71   : > { %v1719_v24 = vpack.c.bf16 %v1271_v19, %v1263_v18 }
  0x72   : > { %v1720_v25 = vpack.c.bf16 %v1272_v21, %v1264_v20 }
  0x7c   : > { %2544 = vmatmul.bf16.gmra.mxu2 %v1831_v36  ;;  %2464 = vmatmul.bf16.gmra.mxu0 %v1703_v38  ;;  %v767_v36 = vunpack.c.0.s8 %v543_v28  ;;  %v768_v38 = vunpack.c.1.s8 %v543_v28 }
  0x7d   : > { %2713 = vmatmul.bf16.gmra.mxu3 %v1832_v37  ;;  %v775_v37 = vunpack.c.0.s8 %v545_v29 }
  0x7e   : > { %2633 = vmatmul.bf16.gmra.mxu1 %v1704_v39  ;;  %v776_v39 = vunpack.c.1.s8 %v545_v29  ;;  %v1279_v44 = vcvt.s32.f32 %v767_v36  ;;  %v1280_v46 = vcvt.s32.f32 %v768_v38  ;;  %v615_v29 = vld [vmem:[%s6293_s10 + $0x340] sm:$0xff] }
  0x7f   : > { %v1287_v45 = vcvt.s32.f32 %v775_v37  ;;  %v1055_v33 = vunpack.c.0.s8 %v615_v29  ;;  %v1063_v37 = vunpack.c.0.s8 %v617_v30  ;;  %v1056_v38 = vunpack.c.1.s8 %v615_v29 }
  0x80   : > { %v1288_v47 = vcvt.s32.f32 %v776_v39  ;;  %v1064_v39 = vunpack.c.1.s8 %v617_v30 }
  0x81   : > { %v1727_v50 = vpack.c.bf16 %v1287_v45, %v1279_v44  ;;  %v800_v44 = vunpack.c.1.s8 %v551_v34  ;;  %v808_v45 = vunpack.c.1.s8 %v553_v35 }
  0x82   : > { %v1728_v51 = vpack.c.bf16 %v1288_v47, %v1280_v46  ;;  %v1567_v47 = vcvt.s32.f32 %v1055_v33 }
  0x83   : > { %v1312_v56 = vcvt.s32.f32 %v800_v44  ;;  %v1320_v57 = vcvt.s32.f32 %v808_v45 }
  0x85   : > { %v1744_v1 = vpack.c.bf16 %v1320_v57, %v1312_v56 }
  0x8c   : > { %2549 = vmatmul.bf16.gmra.mxu2 %v1839_v60  ;;  %2469 = vmatmul.bf16.gmra.mxu0 %v1711_v62  ;;  %v547_v62 = vld [vmem:[%s6293_s10 + $0x120] sm:$0xff] }
  0x8d   : > { %2718 = vmatmul.bf16.gmra.mxu3 %v1840_v61  ;;  %v1039_v61 = vunpack.c.0.s8 %v611_v55  ;;  %v783_v4 = vunpack.c.0.s8 %v547_v62  ;;  %v784_v6 = vunpack.c.1.s8 %v547_v62  ;;  %v1319_v55 = vcvt.s32.f32 %v807_v43 }
  0x8e   : > { %2638 = vmatmul.bf16.gmra.mxu1 %v1712_v63  ;;  %v549_v63 = vld [vmem:[%s6293_s10 + $0x130] sm:$0xff] }
  0x8f   : > { %v791_v5 = vunpack.c.0.s8 %v549_v63  ;;  %v792_v7 = vunpack.c.1.s8 %v549_v63  ;;  %v1551_v9 = vcvt.s32.f32 %v1039_v61  ;;  %v1295_v15 = vcvt.s32.f32 %v783_v4 }
  0x90   : > { %v1296_v17 = vcvt.s32.f32 %v784_v6  ;;  %v5905_v6 = vld [vmem:[%s7617_s1 + $0x88] sm:$0xff] }
  0x91   : > { %v1303_v16 = vcvt.s32.f32 %v791_v5  ;;  %v1304_v18 = vcvt.s32.f32 %v792_v7  ;;  %v619_v5 = vld [vmem:[%s6293_s10 + $0x360] sm:$0xff]  ;;  %v5913_v7 = vld [vmem:[%s7617_s1 + $0xc8] sm:$0xff]  ;;  %2775 = vmatpush.bf16.msrb.mxu2 %v5905_v6 }
  0x92   : > { %2944 = vmatpush.bf16.msrb.mxu3 %v5913_v7 }
  0x9c   : > { %2554 = vmatmul.bf16.gmra.mxu2 %v1847_v22  ;;  %2474 = vmatmul.bf16.gmra.mxu0 %v1719_v24  ;;  %v1863_v22 = vpack.c.bf16 %v1559_v11, %v1551_v9  ;;  %v1735_v24 = vpack.c.bf16 %v1303_v16, %v1295_v15  ;;  %v1071_v11 = vunpack.c.0.s8 %v619_v5 }
  0x9d   : > { %2723 = vmatmul.bf16.gmra.mxu3 %v1848_v23  ;;  %v1864_v23 = vpack.c.bf16 %v1560_v13, %v1552_v12  ;;  %v555_v12 = vld [vmem:[%s6293_s10 + $0x160] sm:$0xff]  ;;  %v557_v13 = vld [vmem:[%s6293_s10 + $0x170] sm:$0xff] }
  0x9e   : > { %2643 = vmatmul.bf16.gmra.mxu1 %v1720_v25  ;;  %v1736_v25 = vpack.c.bf16 %v1304_v18, %v1296_v17  ;;  %v1072_v17 = vunpack.c.1.s8 %v619_v5 }
  0xa0   : > { %v1584_v29 = vcvt.s32.f32 %v1072_v17 }
  0xa9   : > { %v2440_v52 = vpop.f32.mrf.mxu0 }
  0xab   : > { %v2609_v53 = vpop.f32.mrf.mxu1 }
  0xac   : > { %2559 = vmatmul.bf16.gmra.mxu2 %v1855_v48  ;;  %v6385_v54 = vadd.f32 %v2609_v53, %v2440_v52  ;;  %2479 = vmatmul.bf16.gmra.mxu0 %v1727_v50  ;;  %v1568_v50 = vcvt.s32.f32 %v1056_v38  ;;  %v1311_v53 = vcvt.s32.f32 %v799_v42 }
  0xad   : > { %2728 = vmatmul.bf16.gmra.mxu3 %v1856_v49  ;;  %v1575_v49 = vcvt.s32.f32 %v1063_v37 }
  0xae   : > { %2648 = vmatmul.bf16.gmra.mxu1 %v1728_v51  ;;  %v1576_v51 = vcvt.s32.f32 %v1064_v39  ;;  %v1743_v63 = vpack.c.bf16 %v1319_v55, %v1311_v53  ;;  %v559_v53 = vld [vmem:[%s6293_s10 + $0x180] sm:$0xff]  ;;  %v561_v55 = vld [vmem:[%s6293_s10 + $0x190] sm:$0xff] }
  0xaf   : > { %v2520_v59 = vpop.f32.mrf.mxu2  ;;  %v1871_v61 = vpack.c.bf16 %v1575_v49, %v1567_v47  ;;  %v623_v47 = vld [vmem:[%s6293_s10 + $0x380] sm:$0xff] }
  0xb0   : > { %v2689_v60 = vpop.f32.mrf.mxu3  ;;  %v1872_v62 = vpack.c.bf16 %v1576_v51, %v1568_v50  ;;  %v1087_v51 = vunpack.c.0.s8 %v623_v47 }
  0xb1   : > { %v6397_v0 = vadd.f32 %v2689_v60, %v2520_v59  ;;  %v2442_v8 = vpop.f32.mrf.mxu0 }
  0xb2   : > { %v1599_v6 = vcvt.s32.f32 %v1087_v51 }
  0xb3   : > { %v2611_v10 = vpop.f32.mrf.mxu1 }
  0xb4   : > { %v6399_v14 = vadd.f32 %v2611_v10, %v2442_v8  ;;  %v621_v8 = vld [vmem:[%s6293_s10 + $0x370] sm:$0xff] }
  0xb5   : > { %v1079_v16 = vunpack.c.0.s8 %v621_v8  ;;  %v1080_v18 = vunpack.c.1.s8 %v621_v8 }
  0xb7   : > { %v2522_v19 = vpop.f32.mrf.mxu2  ;;  %v1592_v30 = vcvt.s32.f32 %v1080_v18 }
  0xb8   : > { %v2691_v20 = vpop.f32.mrf.mxu3 }
  0xb9   : > { %v6401_v21 = vadd.f32 %v2691_v20, %v2522_v19  ;;  %v2445_v26 = vpop.f32.mrf.mxu0  ;;  %v815_v19 = vunpack.c.0.s8 %v555_v12  ;;  %v823_v20 = vunpack.c.0.s8 %v557_v13  ;;  %v1880_v41 = vpack.c.bf16 %v1592_v30, %v1584_v29  ;;  %v627_v30 = vld [vmem:[%s6293_s10 + $0x3a0] sm:$0xff] }
  0xbb   : > { %v2614_v27 = vpop.f32.mrf.mxu1  ;;  %v1335_v33 = vcvt.s32.f32 %v823_v20 }
  0xbc   : > { %2564 = vmatmul.bf16.gmra.mxu2 %v1863_v22  ;;  %v6403_v28 = vadd.f32 %v2614_v27, %v2445_v26  ;;  %2484 = vmatmul.bf16.gmra.mxu0 %v1735_v24  ;;  %v816_v22 = vunpack.c.1.s8 %v555_v12  ;;  %v1591_v27 = vcvt.s32.f32 %v1079_v16 }
  0xbd   : > { %2733 = vmatmul.bf16.gmra.mxu3 %v1864_v23  ;;  %v824_v23 = vunpack.c.1.s8 %v557_v13 }
  0xbe   : > { %2653 = vmatmul.bf16.gmra.mxu1 %v1736_v25  ;;  %v1583_v25 = vcvt.s32.f32 %v1071_v11  ;;  %v1328_v34 = vcvt.s32.f32 %v816_v22 }
  0xbf   : > { %v2525_v31 = vpop.f32.mrf.mxu2  ;;  %v1336_v35 = vcvt.s32.f32 %v824_v23 }
  0xc0   : > { %v2694_v32 = vpop.f32.mrf.mxu3  ;;  %v1879_v40 = vpack.c.bf16 %v1591_v27, %v1583_v25 }
  0xc1   : > { %v6409_v36 = vadd.f32 %v2694_v32, %v2525_v31  ;;  %v2447_v46 = vpop.f32.mrf.mxu0  ;;  %v1327_v32 = vcvt.s32.f32 %v815_v19  ;;  %v1752_v43 = vpack.c.bf16 %v1336_v35, %v1328_v34  ;;  %v629_v34 = vld [vmem:[%s6293_s10 + $0x3b0] sm:$0xff] }
  0xc3   : > { %v2616_v48 = vpop.f32.mrf.mxu1  ;;  %v1751_v42 = vpack.c.bf16 %v1335_v33, %v1327_v32  ;;  %v5904_v32 = vld [vmem:[%s7617_s1 + $0x80] sm:$0xff] }
  0xc4   : > { %v6417_v52 = vadd.f32 %v2616_v48, %v2447_v46  ;;  %v625_v48 = vld [vmem:[%s6293_s10 + $0x390] sm:$0xff]  ;;  %v5912_v33 = vld [vmem:[%s7617_s1 + $0xc0] sm:$0xff]  ;;  %2776 = vmatpush.bf16.msrb.mxu2 %v5904_v32 }
  0xc5   : > { %v1095_v57 = vunpack.c.0.s8 %v625_v48  ;;  %2945 = vmatpush.bf16.msrb.mxu3 %v5912_v33  ;;  %v5924_v33 = vld [vmem:[%s7617_s1 + $0x120] sm:$0xff] }
  0xc7   : > { %v2527_v58 = vpop.f32.mrf.mxu2  ;;  %v1607_v8 = vcvt.s32.f32 %v1095_v57 }
  0xc8   : > { %v2696_v59 = vpop.f32.mrf.mxu3 }
  0xc9   : > { %v6419_v60 = vadd.f32 %v2696_v59, %v2527_v58  ;;  %v2450_v2 = vpop.f32.mrf.mxu0  ;;  %v1088_v58 = vunpack.c.1.s8 %v623_v47  ;;  %v1096_v59 = vunpack.c.1.s8 %v625_v48  ;;  %v1887_v22 = vpack.c.bf16 %v1607_v8, %v1599_v6 }
  0xcb   : > { %v2619_v3 = vpop.f32.mrf.mxu1 }
  0xcc   : > { %2569 = vmatmul.bf16.gmra.mxu2 %v1871_v61  ;;  %v6421_v4 = vadd.f32 %v2619_v3, %v2450_v2  ;;  %2489 = vmatmul.bf16.gmra.mxu0 %v1743_v63  ;;  %v5925_v61 = vld [vmem:[%s7617_s1 + $0x128] sm:$0xff]  ;;  %v831_v63 = vunpack.c.0.s8 %v559_v53  ;;  %v832_v2 = vunpack.c.1.s8 %v559_v53  ;;  %v840_v3 = vunpack.c.1.s8 %v561_v55 }
  0xcd   : > { %2738 = vmatmul.bf16.gmra.mxu3 %v1872_v62  ;;  %v5933_v62 = vld [vmem:[%s7617_s1 + $0x168] sm:$0xff]  ;;  %3109 = vmatpush.bf16.msrb.mxu0 %v5925_v61 }
  0xce   : > { %2658 = vmatmul.bf16.gmra.mxu1 %v1744_v1  ;;  %v839_v1 = vunpack.c.0.s8 %v561_v55  ;;  %v1343_v12 = vcvt.s32.f32 %v831_v63  ;;  %v1344_v16 = vcvt.s32.f32 %v832_v2  ;;  %v1352_v17 = vcvt.s32.f32 %v840_v3 }
  0xcf   : > { %v2530_v9 = vpop.f32.mrf.mxu2  ;;  %3278 = vmatpush.bf16.msrb.mxu1 %v5933_v62 }
  0xd0   : > { %v2699_v10 = vpop.f32.mrf.mxu3  ;;  %v1351_v13 = vcvt.s32.f32 %v839_v1  ;;  %v1760_v25 = vpack.c.bf16 %v1352_v17, %v1344_v16  ;;  %v631_v17 = vld [vmem:[%s6293_s10 + $0x3c0] sm:$0xff] }
  0xd1   : > { %v6433_v15 = vadd.f32 %v2699_v10, %v2530_v9  ;;  %v2452_v24 = vpop.f32.mrf.mxu0  ;;  %v1600_v9 = vcvt.s32.f32 %v1088_v58  ;;  %v1608_v10 = vcvt.s32.f32 %v1096_v59  ;;  %3110 = vmatpush.bf16.msrb.mxu0 %v5924_v33 }
  0xd3   : > { %7624 = vst [vmem:[#allocation3_spill] sm:$0xff] %v6433_v15  ;;  %v2621_v26 = vpop.f32.mrf.mxu1  ;;  %v1888_v23 = vpack.c.bf16 %v1608_v10, %v1600_v9 }
  0xd4   : > { %v6435_v31 = vadd.f32 %v2621_v26, %v2452_v24  ;;  %v1759_v24 = vpack.c.bf16 %v1351_v13, %v1343_v12 }
  0xd7   : > { %v2532_v37 = vpop.f32.mrf.mxu2 }
  0xd8   : > { %v2701_v38 = vpop.f32.mrf.mxu3 }
  0xd9   : > { %v6437_v39 = vadd.f32 %v2701_v38, %v2532_v37  ;;  %v2455_v44 = vpop.f32.mrf.mxu0  ;;  %v1103_v38 = vunpack.c.0.s8 %v627_v30 }
  0xdb   : > { %7625 = vst [vmem:[#allocation4_spill] sm:$0xff] %v6437_v39  ;;  %v2624_v45 = vpop.f32.mrf.mxu1  ;;  %v1615_v53 = vcvt.s32.f32 %v1103_v38 }
  0xdc   : > { %2574 = vmatmul.bf16.gmra.mxu2 %v1879_v40  ;;  %v6439_v46 = vadd.f32 %v2624_v45, %v2455_v44  ;;  %2494 = vmatmul.bf16.gmra.mxu0 %v1751_v42  ;;  %v563_v40 = vld [vmem:[%s6293_s10 + $0x1a0] sm:$0xff]  ;;  %v1104_v44 = vunpack.c.1.s8 %v627_v30  ;;  %v1112_v45 = vunpack.c.1.s8 %v629_v34  ;;  %v1120_v30 = vunpack.c.1.s8 %v631_v17 }
  0xdd   : > { %2743 = vmatmul.bf16.gmra.mxu3 %v1880_v41  ;;  %v565_v41 = vld [vmem:[%s6293_s10 + $0x1b0] sm:$0xff]  ;;  %v847_v47 = vunpack.c.0.s8 %v563_v40 }
  0xde   : > { %2663 = vmatmul.bf16.gmra.mxu1 %v1752_v43  ;;  %v1111_v43 = vunpack.c.0.s8 %v629_v34  ;;  %v855_v48 = vunpack.c.0.s8 %v565_v41  ;;  %v1616_v58 = vcvt.s32.f32 %v1104_v44  ;;  %v1624_v59 = vcvt.s32.f32 %v1112_v45  ;;  %v5932_v34 = vld [vmem:[%s7617_s1 + $0x160] sm:$0xff] }
  0xdf   : > { %v2535_v49 = vpop.f32.mrf.mxu2  ;;  %v1359_v62 = vcvt.s32.f32 %v847_v47  ;;  %3279 = vmatpush.bf16.msrb.mxu1 %v5932_v34  ;;  %v1632_v47 = vcvt.s32.f32 %v1120_v30  ;;  %v573_v30 = vld [vmem:[%s6293_s10 + $0x1f0] sm:$0xff] }
  0xe0   : > { %v2704_v50 = vpop.f32.mrf.mxu3  ;;  %v1623_v57 = vcvt.s32.f32 %v1111_v43  ;;  %v1367_v63 = vcvt.s32.f32 %v855_v48  ;;  %v1896_v8 = vpack.c.bf16 %v1624_v59, %v1616_v58 }
  0xe1   : > { %v6445_v56 = vadd.f32 %v2704_v50, %v2535_v49  ;;  %v2457_v5 = vpop.f32.mrf.mxu0  ;;  %v848_v49 = vunpack.c.1.s8 %v563_v40  ;;  %v856_v50 = vunpack.c.1.s8 %v565_v41 }
  0xe2   : > { %v1767_v9 = vpack.c.bf16 %v1367_v63, %v1359_v62  ;;  %v5931_v62 = vld [vmem:[%s7617_s1 + $0x158] sm:$0xff] }
  0xe3   : > { %7626 = vst [vmem:[#allocation5_spill] sm:$0xff] %v6445_v56  ;;  %v2626_v7 = vpop.f32.mrf.mxu1  ;;  %v1360_v1 = vcvt.s32.f32 %v848_v49  ;;  %v1368_v2 = vcvt.s32.f32 %v856_v50  ;;  %v5923_v50 = vld [vmem:[%s7617_s1 + $0x118] sm:$0xff]  ;;  %3280 = vmatpush.bf16.msrb.mxu1 %v5931_v62 }
  0xe4   : > { %v6453_v11 = vadd.f32 %v2626_v7, %v2457_v5  ;;  %v1895_v7 = vpack.c.bf16 %v1623_v57, %v1615_v53  ;;  %3111 = vmatpush.bf16.msrb.mxu0 %v5923_v50 }
  0xe5   : > { %v1768_v10 = vpack.c.bf16 %v1368_v2, %v1360_v1 }
  0xe7   : > { %v2537_v18 = vpop.f32.mrf.mxu2 }
  0xe8   : > { %v2706_v19 = vpop.f32.mrf.mxu3 }
  0xe9   : > { %v6455_v20 = vadd.f32 %v2706_v19, %v2537_v18  ;;  %v2460_v26 = vpop.f32.mrf.mxu0  ;;  %v633_v18 = vld [vmem:[%s6293_s10 + $0x3d0] sm:$0xff] }
  0xea   : > { %v1128_v32 = vunpack.c.1.s8 %v633_v18 }
  0xeb   : > { %7627 = vst [vmem:[#allocation6_spill] sm:$0xff] %v6455_v20  ;;  %v2629_v27 = vpop.f32.mrf.mxu1 }
  0xec   : > { %2579 = vmatmul.bf16.gmra.mxu2 %v1887_v22  ;;  %v6457_v29 = vadd.f32 %v2629_v27, %v2460_v26  ;;  %2499 = vmatmul.bf16.gmra.mxu0 %v1759_v24  ;;  %v567_v24 = vld [vmem:[%s6293_s10 + $0x1c0] sm:$0xff]  ;;  %v1127_v27 = vunpack.c.0.s8 %v633_v18  ;;  %v1640_v48 = vcvt.s32.f32 %v1128_v32  ;;  %v5951_v18 = vld [vmem:[%s7617_s1 + $0x1f8] sm:$0xff]  ;;  %v5929_v32 = vld [vmem:[%s7617_s1 + $0x148] sm:$0xff] }
  0xed   : > { %2748 = vmatmul.bf16.gmra.mxu3 %v1888_v23  ;;  %v1119_v23 = vunpack.c.0.s8 %v631_v17  ;;  %v864_v38 = vunpack.c.1.s8 %v567_v24  ;;  %v5943_v17 = vld [vmem:[%s7617_s1 + $0x1b8] sm:$0xff] }
  0xee   : > { %2668 = vmatmul.bf16.gmra.mxu1 %v1760_v25  ;;  %v569_v25 = vld [vmem:[%s6293_s10 + $0x1d0] sm:$0xff]  ;;  %v1639_v45 = vcvt.s32.f32 %v1127_v27  ;;  %v1904_v2 = vpack.c.bf16 %v1640_v48, %v1632_v47  ;;  %v571_v27 = vld [vmem:[%s6293_s10 + $0x1e0] sm:$0xff]  ;;  %3445 = vmatpush.bf16.msra.mxu2 %v5943_v17 }
  0xef   : > { %v2540_v35 = vpop.f32.mrf.mxu2  ;;  %v872_v40 = vunpack.c.1.s8 %v569_v25  ;;  %v1631_v43 = vcvt.s32.f32 %v1119_v23  ;;  %3614 = vmatpush.bf16.msra.mxu3 %v5951_v18 }
  0xf0   : > { %v2709_v37 = vpop.f32.mrf.mxu3 }
  0xf1   : > { %v6469_v42 = vadd.f32 %v2709_v37, %v2540_v35  ;;  %v2462_v51 = vpop.f32.mrf.mxu0  ;;  %v863_v35 = vunpack.c.0.s8 %v567_v24  ;;  %v871_v37 = vunpack.c.0.s8 %v569_v25  ;;  %v1384_v57 = vcvt.s32.f32 %v872_v40  ;;  %v5928_v40 = vld [vmem:[%s7617_s1 + $0x140] sm:$0xff] }
  0xf2   : > { %v1903_v1 = vpack.c.bf16 %v1639_v45, %v1631_v43  ;;  %v887_v43 = vunpack.c.0.s8 %v573_v30  ;;  %v888_v45 = vunpack.c.1.s8 %v573_v30 }
  0xf3   : > { %7628 = vst [vmem:[#allocation7_spill] sm:$0xff] %v6469_v42  ;;  %v2631_v55 = vpop.f32.mrf.mxu1  ;;  %v1383_v53 = vcvt.s32.f32 %v871_v37 }
  0xf4   : > { %v6471_v61 = vadd.f32 %v2631_v55, %v2462_v51  ;;  %v1375_v51 = vcvt.s32.f32 %v863_v35  ;;  %v1376_v55 = vcvt.s32.f32 %v864_v38  ;;  %v5920_v38 = vld [vmem:[%s7617_s1 + $0x100] sm:$0xff] }
  0xf7   : > { %v2542_v3 = vpop.f32.mrf.mxu2 }
  0xf8   : > { %v2711_v5 = vpop.f32.mrf.mxu3 }
  0xf9   : > { %v6473_v6 = vadd.f32 %v2711_v5, %v2542_v3  ;;  %v2465_v12 = vpop.f32.mrf.mxu0  ;;  %v5922_v3 = vld [vmem:[%s7617_s1 + $0x110] sm:$0xff]  ;;  %v1775_v5 = vpack.c.bf16 %v1383_v53, %v1375_v51 }
  0xfa   : > { %3112 = vmatpush.bf16.msrb.mxu0 %v5922_v3 }
  0xfb   : > { %7629 = vst [vmem:[#allocation8_spill] sm:$0xff] %v6473_v6  ;;  %v2634_v13 = vpop.f32.mrf.mxu1 }
  0xfc   : > { %2584 = vmatmul.bf16.gmra.mxu2 %v1895_v7  ;;  %v6475_v16 = vadd.f32 %v2634_v13, %v2465_v12  ;;  %2504 = vmatmul.bf16.gmra.mxu0 %v1767_v9  ;;  %v1776_v7 = vpack.c.bf16 %v1384_v57, %v1376_v55  ;;  %v635_v13 = vld [vmem:[%s6293_s10 + $0x3e0] sm:$0xff] }
  0xfd   : > { %2753 = vmatmul.bf16.gmra.mxu3 %v1896_v8  ;;  %v1135_v25 = vunpack.c.0.s8 %v635_v13  ;;  %v1136_v35 = vunpack.c.1.s8 %v635_v13 }
  0xfe   : > { %2673 = vmatmul.bf16.gmra.mxu1 %v1768_v10  ;;  %v5930_v10 = vld [vmem:[%s7617_s1 + $0x150] sm:$0xff] }
  0xff   : > { %v2545_v19 = vpop.f32.mrf.mxu2  ;;  %3281 = vmatpush.bf16.msrb.mxu1 %v5930_v10  ;;  %v1647_v48 = vcvt.s32.f32 %v1135_v25  ;;  %v1648_v53 = vcvt.s32.f32 %v1136_v35  ;;  %v512_v25 = vld [vmem:[%s6293_s10 + $0x8] sm:$0xff] }
 0x100   : > { %v2714_v22 = vpop.f32.mrf.mxu3 }
 0x101   : > { %v6481_v26 = vadd.f32 %v2714_v22, %v2545_v19  ;;  %v2467_v41 = vpop.f32.mrf.mxu0  ;;  %v637_v19 = vld [vmem:[%s6293_s10 + $0x3f0] sm:$0xff]  ;;  %v5921_v22 = vld [vmem:[%s7617_s1 + $0x108] sm:$0xff] }
 0x102   : > { %v1143_v34 = vunpack.c.0.s8 %v637_v19  ;;  %v1144_v37 = vunpack.c.1.s8 %v637_v19  ;;  %3113 = vmatpush.bf16.msrb.mxu0 %v5921_v22 }
 0x103   : > { %7630 = vst [vmem:[#allocation9_spill] sm:$0xff] %v6481_v26  ;;  %v2636_v44 = vpop.f32.mrf.mxu1  ;;  %3282 = vmatpush.bf16.msrb.mxu1 %v5929_v32  ;;  %v6046_v32 = vld [vmem:[%s6293_s10 + $0x10] sm:$0xff] }
 0x104   : > { %v6489_v49 = vadd.f32 %v2636_v44, %v2467_v41  ;;  %v879_v41 = vunpack.c.0.s8 %v571_v27  ;;  %v880_v44 = vunpack.c.1.s8 %v571_v27  ;;  %v1655_v51 = vcvt.s32.f32 %v1143_v34  ;;  %v514_v27 = vld [vmem:[%s6293_s10 + $0x18] sm:$0xff] }
 0x105   : > { %v1656_v55 = vcvt.s32.f32 %v1144_v37  ;;  %v649_v34 = vunpack.c.2.s8 %v6046_v32  ;;  %v650_v37 = vunpack.c.3.s8 %v6046_v32  ;;  %v518_v32 = vld [vmem:[%s6293_s10 + $0x38] sm:$0xff] }
 0x106   : > { %3114 = vmatpush.bf16.msrb.mxu0 %v5920_v38  ;;  %v1392_v62 = vcvt.s32.f32 %v880_v44  ;;  %v643_v38 = vunpack.c.0.s8 %v512_v25 }
 0x107   : > { %v2547_v58 = vpop.f32.mrf.mxu2  ;;  %3283 = vmatpush.bf16.msrb.mxu1 %v5928_v40  ;;  %v651_v40 = vunpack.c.0.s8 %v514_v27 }
 0x108   : > { %v2716_v59 = vpop.f32.mrf.mxu3 }
 0x109   : > { %v6497_v63 = vadd.f32 %v2716_v59, %v2547_v58  ;;  %v2470_v8 = vpop.f32.mrf.mxu0  ;;  %v1391_v58 = vcvt.s32.f32 %v879_v41  ;;  %v1399_v59 = vcvt.s32.f32 %v887_v43  ;;  %v644_v41 = vunpack.c.1.s8 %v512_v25 }
 0x10a   : > { %v652_v43 = vunpack.c.1.s8 %v514_v27  ;;  %v516_v27 = vld [vmem:[%s6293_s10 + $0x28] sm:$0xff] }
 0x10b   : > { %7631 = vst [vmem:[#allocation10_spill] sm:$0xff] %v6497_v63  ;;  %v2639_v9 = vpop.f32.mrf.mxu1 }
 0x10c   : > { %2589 = vmatmul.bf16.gmra.mxu2 %v1903_v1  ;;  %v6505_v12 = vadd.f32 %v2639_v9, %v2470_v8  ;;  %2509 = vmatmul.bf16.gmra.mxu0 %v1775_v5  ;;  %v1400_v1 = vcvt.s32.f32 %v888_v45  ;;  %v1912_v8 = vpack.c.bf16 %v1656_v55, %v1648_v53  ;;  %v1783_v9 = vpack.c.bf16 %v1399_v59, %v1391_v58 }
 0x10d   : > { %2758 = vmatmul.bf16.gmra.mxu3 %v1904_v2  ;;  %v1155_v55 = vcvt.s32.f32 %v643_v38  ;;  %v1163_v58 = vcvt.s32.f32 %v651_v40  ;;  %v1156_v59 = vcvt.s32.f32 %v644_v41  ;;  %v659_v41 = vunpack.c.0.s8 %v516_v27 }
 0x10e   : > { %2678 = vmatmul.bf16.gmra.mxu1 %v1776_v7  ;;  %v1911_v7 = vpack.c.bf16 %v1655_v51, %v1647_v48  ;;  %v1784_v10 = vpack.c.bf16 %v1400_v1, %v1392_v62  ;;  %v1161_v48 = vcvt.s32.f32 %v649_v34  ;;  %v1162_v51 = vcvt.s32.f32 %v650_v37 }
 0x10f   : > { %v2550_v23 = vpop.f32.mrf.mxu2  ;;  %v1164_v62 = vcvt.s32.f32 %v652_v43  ;;  %v667_v43 = vunpack.c.0.s8 %v518_v32 }
 0x110   : > { %v2719_v24 = vpop.f32.mrf.mxu3 }
 0x111   : > { %v6523_v33 = vadd.f32 %v2719_v24, %v2550_v23  ;;  %v2472_v47 = vpop.f32.mrf.mxu0  ;;  %v6045_v23 = vld [vmem:[%s6293_s10] sm:$0xff] }
 0x112   : > { %v641_v24 = vunpack.c.2.s8 %v6045_v23  ;;  %v642_v35 = vunpack.c.3.s8 %v6045_v23 }
 0x113   : > { %7632 = vst [vmem:[#allocation11_spill] sm:$0xff] %v6523_v33  ;;  %v2641_v50 = vpop.f32.mrf.mxu1 }
 0x114   : > { %v6531_v57 = vadd.f32 %v2641_v50, %v2472_v47  ;;  %v1153_v45 = vcvt.s32.f32 %v641_v24  ;;  %v1154_v50 = vcvt.s32.f32 %v642_v35  ;;  %v6047_v24 = vld [vmem:[%s6293_s10 + $0x20] sm:$0xff]  ;;  %v6048_v35 = vld [vmem:[%s6293_s10 + $0x30] sm:$0xff] }
 0x115   : > { %v657_v25 = vunpack.c.2.s8 %v6047_v24  ;;  %v665_v37 = vunpack.c.2.s8 %v6048_v35  ;;  %v658_v38 = vunpack.c.3.s8 %v6047_v24  ;;  %v666_v40 = vunpack.c.3.s8 %v6048_v35 }
 0x117   : > { %v2552_v2 = vpop.f32.mrf.mxu2 }
 0x118   : > { %v2721_v3 = vpop.f32.mrf.mxu3 }
 0x119   : > { %v6533_v5 = vadd.f32 %v2721_v3, %v2552_v2  ;;  %v2475_v13 = vpop.f32.mrf.mxu0 }
 0x11b   : > { %7633 = vst [vmem:[#allocation12_spill] sm:$0xff] %v6533_v5  ;;  %v2644_v17 = vpop.f32.mrf.mxu1 }
 0x11c   : > { %2594 = vmatmul.bf16.gmra.mxu2 %v1911_v7  ;;  %v6535_v18 = vadd.f32 %v2644_v17, %v2475_v13  ;;  %2514 = vmatmul.bf16.gmra.mxu0 %v1783_v9  ;;  %v1665_v7 = vpack.c.bf16 %v1161_v48, %v1153_v45  ;;  %v1667_v9 = vpack.c.bf16 %v1163_v58, %v1155_v55  ;;  %v668_v45 = vunpack.c.1.s8 %v518_v32 }
 0x11d   : > { %2763 = vmatmul.bf16.gmra.mxu3 %v1912_v8  ;;  %v1666_v8 = vpack.c.bf16 %v1162_v51, %v1154_v50  ;;  %v1169_v48 = vcvt.s32.f32 %v657_v25  ;;  %v1177_v51 = vcvt.s32.f32 %v665_v37  ;;  %v1170_v55 = vcvt.s32.f32 %v658_v38  ;;  %v6049_v37 = vld [vmem:[%s6293_s10 + $0x40] sm:$0xff] }
 0x11e   : > { %2683 = vmatmul.bf16.gmra.mxu1 %v1784_v10  ;;  %v1668_v10 = vpack.c.bf16 %v1164_v62, %v1156_v59  ;;  %v1178_v58 = vcvt.s32.f32 %v666_v40  ;;  %v1171_v62 = vcvt.s32.f32 %v659_v41  ;;  %v673_v38 = vunpack.c.2.s8 %v6049_v37  ;;  %v520_v40 = vld [vmem:[%s6293_s10 + $0x48] sm:$0xff]  ;;  %v522_v41 = vld [vmem:[%s6293_s10 + $0x58] sm:$0xff] }
 0x11f   : > { %v2555_v19 = vpop.f32.mrf.mxu2 }
 0x120   : > { %v2724_v22 = vpop.f32.mrf.mxu3 }
 0x121   : > { %v6540_v30 = vadd.f32 %v2724_v22, %v2555_v19  ;;  %v2477_v44 = vpop.f32.mrf.mxu0 }
 0x123   : > { %7634 = vst [vmem:[#allocation13_spill] sm:$0xff] %v6540_v30  ;;  %v2646_v47 = vpop.f32.mrf.mxu1 }
 0x124   : > { %v6543_v53 = vadd.f32 %v2646_v47, %v2477_v44  ;;  %v660_v44 = vunpack.c.1.s8 %v516_v27 }
 0x127   : > { %v2557_v1 = vpop.f32.mrf.mxu2 }
 0x128   : > { %v2726_v2 = vpop.f32.mrf.mxu3 }
 0x129   : > { %v6545_v3 = vadd.f32 %v2726_v2, %v2557_v1  ;;  %v2480_v13 = vpop.f32.mrf.mxu0  ;;  %v1179_v1 = vcvt.s32.f32 %v667_v43  ;;  %v1172_v2 = vcvt.s32.f32 %v660_v44  ;;  %v6050_v44 = vld [vmem:[%s6293_s10 + $0x50] sm:$0xff] }
 0x12b   : > { %7635 = vst [vmem:[#allocation14_spill] sm:$0xff] %v6545_v3  ;;  %v2649_v17 = vpop.f32.mrf.mxu1 }
 0x12c   : > { %2777 = vmatmul.bf16.vlgmr.msrb.gmra.mxu2 %v1665_v7  ;;  %v6547_v19 = vadd.f32 %v2649_v17, %v2480_v13  ;;  %3115 = vmatmul.bf16.vlgmr.msrb.gmra.mxu0 %v1667_v9  ;;  %v1180_v7 = vcvt.s32.f32 %v668_v45  ;;  %v1673_v13 = vpack.c.bf16 %v1177_v51, %v1169_v48  ;;  %v1674_v17 = vpack.c.bf16 %v1178_v58, %v1170_v55 }
 0x12d   : > { %2946 = vmatmul.bf16.vlgmr.msrb.gmra.mxu3 %v1666_v8  ;;  %v681_v45 = vunpack.c.2.s8 %v6050_v44  ;;  %v682_v48 = vunpack.c.3.s8 %v6050_v44  ;;  %v683_v51 = vunpack.c.0.s8 %v522_v41  ;;  %v676_v55 = vunpack.c.1.s8 %v520_v40 }
 0x12e   : > { %3284 = vmatmul.bf16.vlgmr.msrb.gmra.mxu1 %v1668_v10  ;;  %v684_v58 = vunpack.c.1.s8 %v522_v41 }
 0x12f   : > { %v2560_v22 = vpop.f32.mrf.mxu2 }
 0x130   : > { %v2729_v23 = vpop.f32.mrf.mxu3 }
 0x131   : > { %v6552_v34 = vadd.f32 %v2729_v23, %v2560_v22  ;;  %v2482_v47 = vpop.f32.mrf.mxu0  ;;  %v1675_v22 = vpack.c.bf16 %v1179_v1, %v1171_v62  ;;  %v1676_v23 = vpack.c.bf16 %v1180_v7, %v1172_v2  ;;  %v1185_v1 = vcvt.s32.f32 %v673_v38 }
 0x132   : > { %v1193_v7 = vcvt.s32.f32 %v681_v45 }
 0x133   : > { %7636 = vst [vmem:[#allocation15_spill] sm:$0xff] %v6552_v34  ;;  %v2651_v50 = vpop.f32.mrf.mxu1 }
 0x134   : > { %v6555_v59 = vadd.f32 %v2651_v50, %v2482_v47  ;;  %v674_v47 = vunpack.c.3.s8 %v6049_v37  ;;  %v675_v50 = vunpack.c.0.s8 %v520_v40  ;;  %v1681_v37 = vpack.c.bf16 %v1193_v7, %v1185_v1  ;;  %v524_v1 = vld [vmem:[%s6293_s10 + $0x68] sm:$0xff] }
 0x137   : > { %v2562_v8 = vpop.f32.mrf.mxu2 }
 0x138   : > { %v2731_v9 = vpop.f32.mrf.mxu3 }
 0x139   : > { %v6557_v10 = vadd.f32 %v2731_v9, %v2562_v8  ;;  %v2485_v24 = vpop.f32.mrf.mxu0  ;;  %v1186_v8 = vcvt.s32.f32 %v674_v47  ;;  %v1194_v9 = vcvt.s32.f32 %v682_v48  ;;  %v5942_v48 = vld [vmem:[%s7617_s1 + $0x1b0] sm:$0xff] }
 0x13a   : > { %3446 = vmatpush.bf16.msra.mxu2 %v5942_v48 }
 0x13b   : > { %7637 = vst [vmem:[#allocation16_spill] sm:$0xff] %v6557_v10  ;;  %v2654_v25 = vpop.f32.mrf.mxu1  ;;  %v1682_v40 = vpack.c.bf16 %v1194_v9, %v1186_v8  ;;  %v6052_v8 = vld [vmem:[%s6293_s10 + $0x70] sm:$0xff] }
 0x13c   : > { %2782 = vmatmul.bf16.gmra.mxu2 %v1673_v13  ;;  %v6559_v27 = vadd.f32 %v2654_v25, %v2485_v24  ;;  %3120 = vmatmul.bf16.gmra.mxu0 %v1675_v22  ;;  %v1195_v22 = vcvt.s32.f32 %v683_v51  ;;  %v1196_v24 = vcvt.s32.f32 %v684_v58  ;;  %v6051_v58 = vld [vmem:[%s6293_s10 + $0x60] sm:$0xff]  ;;  %v697_v9 = vunpack.c.2.s8 %v6052_v8 }
 0x13d   : > { %2951 = vmatmul.bf16.gmra.mxu3 %v1674_v17  ;;  %v1187_v17 = vcvt.s32.f32 %v675_v50  ;;  %v5950_v50 = vld [vmem:[%s7617_s1 + $0x1f0] sm:$0xff] }
 0x13e   : > { %3289 = vmatmul.bf16.gmra.mxu1 %v1676_v23  ;;  %v1188_v23 = vcvt.s32.f32 %v676_v55  ;;  %3615 = vmatpush.bf16.msra.mxu3 %v5950_v50 }
 0x13f   : > { %v2565_v32 = vpop.f32.mrf.mxu2  ;;  %v1683_v41 = vpack.c.bf16 %v1195_v22, %v1187_v17  ;;  %v690_v17 = vunpack.c.3.s8 %v6051_v58  ;;  %v698_v22 = vunpack.c.3.s8 %v6052_v8 }
 0x140   : > { %v2734_v35 = vpop.f32.mrf.mxu3  ;;  %v1684_v38 = vpack.c.bf16 %v1196_v24, %v1188_v23  ;;  %v691_v23 = vunpack.c.0.s8 %v524_v1 }
 0x141   : > { %v6564_v43 = vadd.f32 %v2734_v35, %v2565_v32  ;;  %v2487_v62 = vpop.f32.mrf.mxu0 }
 0x142   : > { %v1203_v48 = vcvt.s32.f32 %v691_v23 }
 0x143   : > { %7638 = vst [vmem:[#allocation17_spill] sm:$0xff] %v6564_v43  ;;  %v2656_v2 = vpop.f32.mrf.mxu1 }
 0x144   : > { %v6567_v13 = vadd.f32 %v2656_v2, %v2487_v62  ;;  %v689_v62 = vunpack.c.2.s8 %v6051_v58  ;;  %v526_v2 = vld [vmem:[%s6293_s10 + $0x78] sm:$0xff] }
 0x145   : > { %v699_v24 = vunpack.c.0.s8 %v526_v2 }
 0x147   : > { %v2567_v25 = vpop.f32.mrf.mxu2  ;;  %v1211_v50 = vcvt.s32.f32 %v699_v24 }
 0x148   : > { %v2736_v32 = vpop.f32.mrf.mxu3 }
 0x149   : > { %v6569_v35 = vadd.f32 %v2736_v32, %v2567_v25  ;;  %v2490_v44 = vpop.f32.mrf.mxu0  ;;  %v692_v25 = vunpack.c.1.s8 %v524_v1  ;;  %v700_v32 = vunpack.c.1.s8 %v526_v2 }
 0x14b   : > { %7639 = vst [vmem:[#allocation18_spill] sm:$0xff] %v6569_v35  ;;  %v2659_v45 = vpop.f32.mrf.mxu1 }
 0x14c   : > { %2787 = vmatmul.bf16.gmra.mxu2 %v1681_v37  ;;  %v6571_v47 = vadd.f32 %v2659_v45, %v2490_v44  ;;  %3125 = vmatmul.bf16.gmra.mxu0 %v1683_v41  ;;  %v1202_v44 = vcvt.s32.f32 %v690_v17  ;;  %v1210_v45 = vcvt.s32.f32 %v698_v22 }
 0x14d   : > { %2956 = vmatmul.bf16.gmra.mxu3 %v1682_v40  ;;  %v1201_v40 = vcvt.s32.f32 %v689_v62  ;;  %v1691_v62 = vpack.c.bf16 %v1211_v50, %v1203_v48 }
 0x14e   : > { %3294 = vmatmul.bf16.gmra.mxu1 %v1684_v38  ;;  %v1209_v38 = vcvt.s32.f32 %v697_v9  ;;  %v1690_v2 = vpack.c.bf16 %v1210_v45, %v1202_v44 }
 0x14f   : > { %v2570_v51 = vpop.f32.mrf.mxu2 }
 0x150   : > { %v2739_v55 = vpop.f32.mrf.mxu3  ;;  %v1689_v1 = vpack.c.bf16 %v1209_v38, %v1201_v40  ;;  %v6054_v38 = vld [vmem:[%s6293_s10 + $0x90] sm:$0xff] }
 0x151   : > { %v6582_v7 = vadd.f32 %v2739_v55, %v2570_v51  ;;  %v2492_v37 = vpop.f32.mrf.mxu0  ;;  %v1204_v51 = vcvt.s32.f32 %v692_v25  ;;  %v1212_v55 = vcvt.s32.f32 %v700_v32  ;;  %v6053_v32 = vld [vmem:[%s6293_s10 + $0x80] sm:$0xff]  ;;  %v713_v44 = vunpack.c.2.s8 %v6054_v38 }
 0x152   : > { %v706_v45 = vunpack.c.3.s8 %v6053_v32  ;;  %v714_v48 = vunpack.c.3.s8 %v6054_v38 }
 0x153   : > { %7640 = vst [vmem:[#allocation19_spill] sm:$0xff] %v6582_v7  ;;  %v2661_v41 = vpop.f32.mrf.mxu1  ;;  %v1692_v9 = vpack.c.bf16 %v1212_v55, %v1204_v51 }
 0x154   : > { %v6585_v35 = vadd.f32 %v2661_v41, %v2492_v37  ;;  %v528_v37 = vld [vmem:[%s6293_s10 + $0x88] sm:$0xff]  ;;  %v530_v41 = vld [vmem:[%s6293_s10 + $0x98] sm:$0xff] }
 0x155   : > { %v707_v50 = vunpack.c.0.s8 %v528_v37  ;;  %v715_v51 = vunpack.c.0.s8 %v530_v41  ;;  %v708_v55 = vunpack.c.1.s8 %v528_v37 }
 0x157   : > { %v2572_v7 = vpop.f32.mrf.mxu2  ;;  %v1219_v43 = vcvt.s32.f32 %v707_v50  ;;  %v1227_v10 = vcvt.s32.f32 %v715_v51 }
 0x158   : > { %v2741_v58 = vpop.f32.mrf.mxu3 }
 0x159   : > { %v6587_v8 = vadd.f32 %v2741_v58, %v2572_v7  ;;  %v2495_v17 = vpop.f32.mrf.mxu0  ;;  %v705_v7 = vunpack.c.2.s8 %v6053_v32  ;;  %v716_v58 = vunpack.c.1.s8 %v530_v41 }
 0x15b   : > { %7641 = vst [vmem:[#allocation20_spill] sm:$0xff] %v6587_v8  ;;  %v2664_v22 = vpop.f32.mrf.mxu1 }
 0x15c   : > { %2792 = vmatmul.bf16.gmra.mxu2 %v1689_v1  ;;  %v6589_v23 = vadd.f32 %v2664_v22, %v2495_v17  ;;  %3130 = vmatmul.bf16.gmra.mxu0 %v1691_v62  ;;  %v1218_v17 = vcvt.s32.f32 %v706_v45  ;;  %v1226_v22 = vcvt.s32.f32 %v714_v48 }
 0x15d   : > { %2961 = vmatmul.bf16.gmra.mxu3 %v1690_v2  ;;  %v1217_v2 = vcvt.s32.f32 %v705_v7  ;;  %v1699_v7 = vpack.c.bf16 %v1227_v10, %v1219_v43 }
 0x15e   : > { %3299 = vmatmul.bf16.gmra.mxu1 %v1692_v9  ;;  %v1225_v9 = vcvt.s32.f32 %v713_v44  ;;  %v1698_v41 = vpack.c.bf16 %v1226_v22, %v1218_v17 }
 0x15f   : > { %v2575_v24 = vpop.f32.mrf.mxu2 }
 0x160   : > { %v2744_v25 = vpop.f32.mrf.mxu3  ;;  %v1697_v37 = vpack.c.bf16 %v1225_v9, %v1217_v2  ;;  %v6056_v9 = vld [vmem:[%s6293_s10 + $0xb0] sm:$0xff] }
 0x161   : > { %v6594_v40 = vadd.f32 %v2744_v25, %v2575_v24  ;;  %v2497_v1 = vpop.f32.mrf.mxu0  ;;  %v1220_v24 = vcvt.s32.f32 %v708_v55  ;;  %v1228_v25 = vcvt.s32.f32 %v716_v58  ;;  %v6055_v58 = vld [vmem:[%s6293_s10 + $0xa0] sm:$0xff]  ;;  %v729_v10 = vunpack.c.2.s8 %v6056_v9 }
 0x162   : > { %v722_v43 = vunpack.c.3.s8 %v6055_v58  ;;  %v730_v17 = vunpack.c.3.s8 %v6056_v9 }
 0x163   : > { %7642 = vst [vmem:[#allocation21_spill] sm:$0xff] %v6594_v40  ;;  %v2666_v62 = vpop.f32.mrf.mxu1  ;;  %v1700_v44 = vpack.c.bf16 %v1228_v25, %v1220_v24 }
 0x164   : > { %v6597_v8 = vadd.f32 %v2666_v62, %v2497_v1  ;;  %v532_v1 = vld [vmem:[%s6293_s10 + $0xa8] sm:$0xff]  ;;  %v534_v62 = vld [vmem:[%s6293_s10 + $0xb8] sm:$0xff] }
 0x165   : > { %v723_v22 = vunpack.c.0.s8 %v532_v1  ;;  %v731_v24 = vunpack.c.0.s8 %v534_v62  ;;  %v724_v25 = vunpack.c.1.s8 %v532_v1 }
 0x167   : > { %v2577_v40 = vpop.f32.mrf.mxu2  ;;  %v1235_v34 = vcvt.s32.f32 %v723_v22  ;;  %v1243_v3 = vcvt.s32.f32 %v731_v24 }
 0x168   : > { %v2746_v32 = vpop.f32.mrf.mxu3 }
 0x169   : > { %v6599_v38 = vadd.f32 %v2746_v32, %v2577_v40  ;;  %v2500_v45 = vpop.f32.mrf.mxu0  ;;  %v721_v40 = vunpack.c.2.s8 %v6055_v58  ;;  %v732_v32 = vunpack.c.1.s8 %v534_v62 }
 0x16b   : > { %7643 = vst [vmem:[#allocation22_spill] sm:$0xff] %v6599_v38  ;;  %v2669_v48 = vpop.f32.mrf.mxu1 }
 0x16c   : > { %2797 = vmatmul.bf16.gmra.mxu2 %v1697_v37  ;;  %v6601_v50 = vadd.f32 %v2669_v48, %v2500_v45  ;;  %3135 = vmatmul.bf16.gmra.mxu0 %v1699_v7  ;;  %v1234_v45 = vcvt.s32.f32 %v722_v43  ;;  %v1242_v48 = vcvt.s32.f32 %v730_v17 }
 0x16d   : > { %2966 = vmatmul.bf16.gmra.mxu3 %v1698_v41  ;;  %v1233_v41 = vcvt.s32.f32 %v721_v40  ;;  %v1707_v40 = vpack.c.bf16 %v1243_v3, %v1235_v34 }
 0x16e   : > { %3304 = vmatmul.bf16.gmra.mxu1 %v1700_v44  ;;  %v1241_v44 = vcvt.s32.f32 %v729_v10  ;;  %v1706_v62 = vpack.c.bf16 %v1242_v48, %v1234_v45 }
 0x16f   : > { %v2580_v51 = vpop.f32.mrf.mxu2 }
 0x170   : > { %v2749_v55 = vpop.f32.mrf.mxu3  ;;  %v1705_v1 = vpack.c.bf16 %v1241_v44, %v1233_v41  ;;  %v6058_v44 = vld [vmem:[%s6293_s10 + $0xd0] sm:$0xff] }
 0x171   : > { %v6606_v2 = vadd.f32 %v2749_v55, %v2580_v51  ;;  %v2502_v37 = vpop.f32.mrf.mxu0  ;;  %v1236_v51 = vcvt.s32.f32 %v724_v25  ;;  %v1244_v55 = vcvt.s32.f32 %v732_v32  ;;  %v6057_v32 = vld [vmem:[%s6293_s10 + $0xc0] sm:$0xff]  ;;  %v745_v3 = vunpack.c.2.s8 %v6058_v44 }
 0x172   : > { %v738_v34 = vunpack.c.3.s8 %v6057_v32  ;;  %v746_v45 = vunpack.c.3.s8 %v6058_v44 }
 0x173   : > { %7644 = vst [vmem:[#allocation23_spill] sm:$0xff] %v6606_v2  ;;  %v2671_v7 = vpop.f32.mrf.mxu1  ;;  %v1708_v10 = vpack.c.bf16 %v1244_v55, %v1236_v51 }
 0x174   : > { %v6609_v38 = vadd.f32 %v2671_v7, %v2502_v37  ;;  %v536_v37 = vld [vmem:[%s6293_s10 + $0xc8] sm:$0xff]  ;;  %v538_v7 = vld [vmem:[%s6293_s10 + $0xd8] sm:$0xff] }
 0x175   : > { %v739_v48 = vunpack.c.0.s8 %v536_v37  ;;  %v747_v51 = vunpack.c.0.s8 %v538_v7  ;;  %v740_v55 = vunpack.c.1.s8 %v536_v37 }
 0x177   : > { %v2582_v2 = vpop.f32.mrf.mxu2  ;;  %v1251_v30 = vcvt.s32.f32 %v739_v48  ;;  %v1259_v5 = vcvt.s32.f32 %v747_v51  ;;  %v5941_v48 = vld [vmem:[%s7617_s1 + $0x1a8] sm:$0xff] }
 0x178   : > { %v2751_v58 = vpop.f32.mrf.mxu3  ;;  %3447 = vmatpush.bf16.msra.mxu2 %v5941_v48 }
 0x179   : > { %v6611_v9 = vadd.f32 %v2751_v58, %v2582_v2  ;;  %v2505_v43 = vpop.f32.mrf.mxu0  ;;  %v737_v2 = vunpack.c.2.s8 %v6057_v32  ;;  %v748_v58 = vunpack.c.1.s8 %v538_v7  ;;  %v1715_v7 = vpack.c.bf16 %v1259_v5, %v1251_v30 }
 0x17b   : > { %7645 = vst [vmem:[#allocation24_spill] sm:$0xff] %v6611_v9  ;;  %v2674_v17 = vpop.f32.mrf.mxu1 }
 0x17c   : > { %2802 = vmatmul.bf16.gmra.mxu2 %v1705_v1  ;;  %v6613_v22 = vadd.f32 %v2674_v17, %v2505_v43  ;;  %3140 = vmatmul.bf16.gmra.mxu0 %v1707_v40  ;;  %v1250_v43 = vcvt.s32.f32 %v738_v34  ;;  %v1258_v17 = vcvt.s32.f32 %v746_v45 }
 0x17d   : > { %2971 = vmatmul.bf16.gmra.mxu3 %v1706_v62  ;;  %v1249_v62 = vcvt.s32.f32 %v737_v2 }
 0x17e   : > { %3309 = vmatmul.bf16.gmra.mxu1 %v1708_v10  ;;  %v1257_v10 = vcvt.s32.f32 %v745_v3  ;;  %v1714_v37 = vpack.c.bf16 %v1258_v17, %v1250_v43 }
 0x17f   : > { %v2585_v24 = vpop.f32.mrf.mxu2 }
 0x180   : > { %v2754_v25 = vpop.f32.mrf.mxu3  ;;  %v1713_v44 = vpack.c.bf16 %v1257_v10, %v1249_v62  ;;  %v6060_v62 = vld [vmem:[%s6293_s10 + $0xf0] sm:$0xff] }
 0x181   : > { %v6618_v41 = vadd.f32 %v2754_v25, %v2585_v24  ;;  %v2507_v1 = vpop.f32.mrf.mxu0  ;;  %v1252_v24 = vcvt.s32.f32 %v740_v55  ;;  %v1260_v25 = vcvt.s32.f32 %v748_v58  ;;  %v540_v55 = vld [vmem:[%s6293_s10 + $0xe8] sm:$0xff]  ;;  %v542_v58 = vld [vmem:[%s6293_s10 + $0xf8] sm:$0xff]  ;;  %v762_v43 = vunpack.c.3.s8 %v6060_v62 }
 0x182   : > { %v755_v17 = vunpack.c.0.s8 %v540_v55 }
 0x183   : > { %7646 = vst [vmem:[#allocation25_spill] sm:$0xff] %v6618_v41  ;;  %v2676_v40 = vpop.f32.mrf.mxu1  ;;  %v1716_v2 = vpack.c.bf16 %v1260_v25, %v1252_v24  ;;  %v763_v24 = vunpack.c.0.s8 %v542_v58  ;;  %v756_v25 = vunpack.c.1.s8 %v540_v55 }
 0x184   : > { %v6621_v9 = vadd.f32 %v2676_v40, %v2507_v1  ;;  %v761_v40 = vunpack.c.2.s8 %v6060_v62  ;;  %v1267_v48 = vcvt.s32.f32 %v755_v17 }
 0x187   : > { %v2587_v41 = vpop.f32.mrf.mxu2 }
 0x188   : > { %v2756_v33 = vpop.f32.mrf.mxu3 }
 0x189   : > { %v6623_v32 = vadd.f32 %v2756_v33, %v2587_v41  ;;  %v2510_v3 = vpop.f32.mrf.mxu0  ;;  %v5949_v33 = vld [vmem:[%s7617_s1 + $0x1e8] sm:$0xff]  ;;  %v6059_v41 = vld [vmem:[%s6293_s10 + $0xe0] sm:$0xff] }
 0x18a   : > { %v753_v51 = vunpack.c.2.s8 %v6059_v41  ;;  %3616 = vmatpush.bf16.msra.mxu3 %v5949_v33  ;;  %v754_v10 = vunpack.c.3.s8 %v6059_v41  ;;  %v1275_v33 = vcvt.s32.f32 %v763_v24 }
 0x18b   : > { %7647 = vst [vmem:[#allocation26_spill] sm:$0xff] %v6623_v32  ;;  %v2679_v34 = vpop.f32.mrf.mxu1  ;;  %v1274_v32 = vcvt.s32.f32 %v762_v43 }
 0x18c   : > { %2807 = vmatmul.bf16.gmra.mxu2 %v1713_v44  ;;  %v6625_v45 = vadd.f32 %v2679_v34, %v2510_v3  ;;  %3145 = vmatmul.bf16.gmra.mxu0 %v1715_v7  ;;  %v764_v44 = vunpack.c.1.s8 %v542_v58  ;;  %v1265_v7 = vcvt.s32.f32 %v753_v51  ;;  %v1273_v3 = vcvt.s32.f32 %v761_v40 }
 0x18d   : > { %2976 = vmatmul.bf16.gmra.mxu3 %v1714_v37  ;;  %v1266_v34 = vcvt.s32.f32 %v754_v10  ;;  %v1723_v51 = vpack.c.bf16 %v1275_v33, %v1267_v48 }
 0x18e   : > { %3314 = vmatmul.bf16.gmra.mxu1 %v1716_v2  ;;  %v1721_v55 = vpack.c.bf16 %v1273_v3, %v1265_v7 }
 0x18f   : > { %v2590_v5 = vpop.f32.mrf.mxu2  ;;  %v1722_v58 = vpack.c.bf16 %v1274_v32, %v1266_v34  ;;  %v6062_v32 = vld [vmem:[%s6293_s10 + $0x110] sm:$0xff] }
 0x190   : > { %v2759_v30 = vpop.f32.mrf.mxu3  ;;  %v777_v3 = vunpack.c.2.s8 %v6062_v32  ;;  %v778_v48 = vunpack.c.3.s8 %v6062_v32 }
 0x191   : > { %v6636_v1 = vadd.f32 %v2759_v30, %v2590_v5  ;;  %v2512_v37 = vpop.f32.mrf.mxu0  ;;  %v1268_v5 = vcvt.s32.f32 %v756_v25  ;;  %v1276_v30 = vcvt.s32.f32 %v764_v44  ;;  %v6061_v44 = vld [vmem:[%s6293_s10 + $0x100] sm:$0xff] }
 0x192   : > { %v770_v34 = vunpack.c.3.s8 %v6061_v44 }
 0x193   : > { %7648 = vst [vmem:[#allocation27_spill] sm:$0xff] %v6636_v1  ;;  %v2681_v2 = vpop.f32.mrf.mxu1  ;;  %v1724_v40 = vpack.c.bf16 %v1276_v30, %v1268_v5 }
 0x194   : > { %v6639_v63 = vadd.f32 %v2681_v2, %v2512_v37  ;;  %v544_v37 = vld [vmem:[%s6293_s10 + $0x108] sm:$0xff]  ;;  %v546_v2 = vld [vmem:[%s6293_s10 + $0x118] sm:$0xff] }
 0x195   : > { %v771_v33 = vunpack.c.0.s8 %v544_v37  ;;  %v779_v5 = vunpack.c.0.s8 %v546_v2  ;;  %v772_v30 = vunpack.c.1.s8 %v544_v37 }
 0x197   : > { %v2592_v1 = vpop.f32.mrf.mxu2  ;;  %v1283_v37 = vcvt.s32.f32 %v771_v33  ;;  %v1284_v32 = vcvt.s32.f32 %v772_v30  ;;  %v548_v33 = vld [vmem:[%s6293_s10 + $0x128] sm:$0xff] }
 0x198   : > { %v2761_v41 = vpop.f32.mrf.mxu3 }
 0x199   : > { %v6641_v62 = vadd.f32 %v2761_v41, %v2592_v1  ;;  %v2515_v10 = vpop.f32.mrf.mxu0  ;;  %v769_v1 = vunpack.c.2.s8 %v6061_v44  ;;  %v780_v41 = vunpack.c.1.s8 %v546_v2  ;;  %v1291_v2 = vcvt.s32.f32 %v779_v5 }
 0x19b   : > { %7649 = vst [vmem:[#allocation28_spill] sm:$0xff] %v6641_v62  ;;  %v2684_v43 = vpop.f32.mrf.mxu1 }
 0x19c   : > { %2812 = vmatmul.bf16.gmra.mxu2 %v1721_v55  ;;  %v6643_v17 = vadd.f32 %v2684_v43, %v2515_v10  ;;  %3150 = vmatmul.bf16.gmra.mxu0 %v1723_v51  ;;  %v5999_v55 = vld [vmem:[%s7621_s5 + $0x38] sm:$0xff]  ;;  %v1289_v43 = vcvt.s32.f32 %v777_v3  ;;  %v1731_v3 = vpack.c.bf16 %v1291_v2, %v1283_v37  ;;  %v788_v37 = vunpack.c.1.s8 %v548_v33 }
 0x19d   : > { %2981 = vmatmul.bf16.gmra.mxu3 %v1722_v58  ;;  %v5959_v58 = vld [vmem:[%s7620_s4 + $0x38] sm:$0xff]  ;;  %4794 = vmatpush.bf16.msra.mxu0 %v5999_v55 }
 0x19e   : > { %3319 = vmatmul.bf16.gmra.mxu1 %v1724_v40  ;;  %v1281_v40 = vcvt.s32.f32 %v769_v1 }
 0x19f   : > { %v2595_v24 = vpop.f32.mrf.mxu2  ;;  %5011 = vmatpush.bf16.msra.mxu1 %v5959_v58  ;;  %v550_v58 = vld [vmem:[%s6293_s10 + $0x138] sm:$0xff] }
 0x1a0   : > { %v2764_v25 = vpop.f32.mrf.mxu3  ;;  %v1729_v1 = vpack.c.bf16 %v1289_v43, %v1281_v40  ;;  %v796_v2 = vunpack.c.1.s8 %v550_v58 }
 0x1a1   : > { %v6648_v7 = vadd.f32 %v2764_v25, %v2595_v24  ;;  %v2517_v51 = vpop.f32.mrf.mxu0  ;;  %v1282_v24 = vcvt.s32.f32 %v770_v34  ;;  %v1290_v25 = vcvt.s32.f32 %v778_v48 }
 0x1a2   : > { %v1308_v15 = vcvt.s32.f32 %v796_v2 }
 0x1a3   : > { %7650 = vst [vmem:[#allocation29_spill] sm:$0xff] %v6648_v7  ;;  %v2686_v10 = vpop.f32.mrf.mxu1  ;;  %v1292_v7 = vcvt.s32.f32 %v780_v41  ;;  %v1730_v42 = vpack.c.bf16 %v1290_v25, %v1282_v24  ;;  %v6063_v41 = vld [vmem:[%s6293_s10 + $0x120] sm:$0xff]  ;;  %v787_v24 = vunpack.c.0.s8 %v548_v33  ;;  %v795_v25 = vunpack.c.0.s8 %v550_v58 }
 0x1a4   : > { %v6657_v44 = vadd.f32 %v2686_v10, %v2517_v51  ;;  %v785_v55 = vunpack.c.2.s8 %v6063_v41  ;;  %v786_v10 = vunpack.c.3.s8 %v6063_v41 }
 0x1a5   : > { %v1732_v34 = vpack.c.bf16 %v1292_v7, %v1284_v32  ;;  %v1299_v56 = vcvt.s32.f32 %v787_v24  ;;  %v552_v24 = vld [vmem:[%s6293_s10 + $0x148] sm:$0xff] }
 0x1a6   : > { %v1297_v32 = vcvt.s32.f32 %v785_v55 }
 0x1a7   : > { %v2597_v62 = vpop.f32.mrf.mxu2 }
 0x1a8   : > { %v2766_v26 = vpop.f32.mrf.mxu3 }
 0x1a9   : > { %v6659_v6 = vadd.f32 %v2766_v26, %v2597_v62  ;;  %v3116_v48 = vpop.f32.mrf.mxu0  ;;  %v6064_v62 = vld [vmem:[%s6293_s10 + $0x130] sm:$0xff] }
 0x1aa   : > { %v793_v40 = vunpack.c.2.s8 %v6064_v62  ;;  %v794_v43 = vunpack.c.3.s8 %v6064_v62 }
 0x1ab   : > { %7651 = vst [vmem:[#allocation30_spill] sm:$0xff] %v6659_v6  ;;  %v3285_v51 = vpop.f32.mrf.mxu1  ;;  %v1298_v6 = vcvt.s32.f32 %v786_v10 }
 0x1ac   : > { %2817 = vmatmul.bf16.gmra.mxu2 %v1729_v1  ;;  %3155 = vmatmul.bf16.gmra.mxu0 %v1731_v3  ;;  %v1306_v20 = vcvt.s32.f32 %v794_v43 }
 0x1ad   : > { %2986 = vmatmul.bf16.gmra.mxu3 %v1730_v42 }
 0x1ae   : > { %3324 = vmatmul.bf16.gmra.mxu1 %v1732_v34  ;;  %v1305_v34 = vcvt.s32.f32 %v793_v40  ;;  %v1738_v58 = vpack.c.bf16 %v1306_v20, %v1298_v6  ;;  %v554_v20 = vld [vmem:[%s6293_s10 + $0x158] sm:$0xff] }
 0x1af   : > { %v2778_v5 = vpop.f32.mrf.mxu2 }
 0x1b0   : > { %v2947_v30 = vpop.f32.mrf.mxu3  ;;  %v2779_v26 = vadd.f32 %v2778_v5, %v6385_v54  ;;  %v1307_v54 = vcvt.s32.f32 %v795_v25  ;;  %v1300_v5 = vcvt.s32.f32 %v788_v37  ;;  %v1737_v33 = vpack.c.bf16 %v1305_v34, %v1297_v32  ;;  %v6065_v25 = vld [vmem:[%s6293_s10 + $0x140] sm:$0xff] }
 0x1b1   : > { %v3118_v42 = vpop.f32.mrf.mxu0  ;;  %v801_v37 = vunpack.c.2.s8 %v6065_v25  ;;  %v802_v2 = vunpack.c.3.s8 %v6065_v25  ;;  %v811_v34 = vunpack.c.0.s8 %v554_v20 }
 0x1b2   : > { %v2948_v7 = vadd.f32 %v2947_v30, %v2779_v26  ;;  %v1740_v26 = vpack.c.bf16 %v1308_v15, %v1300_v5 }
 0x1b3   : > { %v3287_v1 = vpop.f32.mrf.mxu1 }
 0x1b4   : > { %v3117_v3 = vadd.f32 %v3116_v48, %v2948_v7  ;;  %v1739_v48 = vpack.c.bf16 %v1307_v54, %v1299_v56  ;;  %v6066_v56 = vld [vmem:[%s6293_s10 + $0x150] sm:$0xff]  ;;  %v804_v54 = vunpack.c.1.s8 %v552_v24 }
 0x1b5   : > { %v809_v15 = vunpack.c.2.s8 %v6066_v56  ;;  %v810_v32 = vunpack.c.3.s8 %v6066_v56 }
 0x1b6   : > { %v6666_v39 = vadd.f32 %v3285_v51, %v3117_v3  ;;  %v803_v3 = vunpack.c.0.s8 %v552_v24 }
 0x1b7   : > { %v2780_v41 = vpop.f32.mrf.mxu2 }
 0x1b8   : > { %v2949_v62 = vpop.f32.mrf.mxu3  ;;  %v2781_v30 = vadd.f32 %v2780_v41, %v6399_v14  ;;  %v1313_v41 = vcvt.s32.f32 %v801_v37 }
 0x1b9   : > { %v3121_v40 = vpop.f32.mrf.mxu0 }
 0x1ba   : > { %v2950_v55 = vadd.f32 %v2949_v62, %v2781_v30 }
 0x1bb   : > { %v3290_v10 = vpop.f32.mrf.mxu1 }
 0x1bc   : > { %v3119_v51 = vadd.f32 %v3118_v42, %v2950_v55  ;;  %2822 = vmatmul.bf16.gmra.mxu2 %v1737_v33  ;;  %3160 = vmatmul.bf16.gmra.mxu0 %v1739_v48  ;;  %v1321_v33 = vcvt.s32.f32 %v809_v15  ;;  %v1322_v55 = vcvt.s32.f32 %v810_v32  ;;  %v1315_v48 = vcvt.s32.f32 %v803_v3 }
 0x1bd   : > { %2991 = vmatmul.bf16.gmra.mxu3 %v1738_v58  ;;  %v1314_v58 = vcvt.s32.f32 %v802_v2 }
 0x1be   : > { %v6669_v43 = vadd.f32 %v3287_v1, %v3119_v51  ;;  %3329 = vmatmul.bf16.gmra.mxu1 %v1740_v26  ;;  %v812_v1 = vunpack.c.1.s8 %v554_v20  ;;  %v1316_v51 = vcvt.s32.f32 %v804_v54  ;;  %v1745_v24 = vpack.c.bf16 %v1321_v33, %v1313_v41  ;;  %v558_v41 = vld [vmem:[%s6293_s10 + $0x178] sm:$0xff]  ;;  %v6068_v33 = vld [vmem:[%s6293_s10 + $0x170] sm:$0xff] }
 0x1bf   : > { %v2783_v7 = vpop.f32.mrf.mxu2  ;;  %v1746_v20 = vpack.c.bf16 %v1322_v55, %v1314_v58  ;;  %v825_v58 = vunpack.c.2.s8 %v6068_v33 }
 0x1c0   : > { %v2952_v14 = vpop.f32.mrf.mxu3  ;;  %v2784_v6 = vadd.f32 %v2783_v7, %v6403_v28  ;;  %v1323_v28 = vcvt.s32.f32 %v811_v34  ;;  %v1324_v7 = vcvt.s32.f32 %v812_v1  ;;  %v6067_v1 = vld [vmem:[%s6293_s10 + $0x160] sm:$0xff] }
 0x1c1   : > { %v3123_v5 = vpop.f32.mrf.mxu0  ;;  %v818_v55 = vunpack.c.3.s8 %v6067_v1 }
 0x1c2   : > { %v2953_v42 = vadd.f32 %v2952_v14, %v2784_v6  ;;  %v1747_v37 = vpack.c.bf16 %v1323_v28, %v1315_v48 }
 0x1c3   : > { %v3292_v62 = vpop.f32.mrf.mxu1 }
 0x1c4   : > { %v3122_v30 = vadd.f32 %v3121_v40, %v2953_v42  ;;  %v1748_v40 = vpack.c.bf16 %v1324_v7, %v1316_v51  ;;  %v5948_v42 = vld [vmem:[%s7617_s1 + $0x1e0] sm:$0xff]  ;;  %v827_v51 = vunpack.c.0.s8 %v558_v41 }
 0x1c5   : > { %3617 = vmatpush.bf16.msra.mxu3 %v5948_v42 }
 0x1c6   : > { %v6676_v26 = vadd.f32 %v3290_v10, %v3122_v30  ;;  %v5940_v10 = vld [vmem:[%s7617_s1 + $0x1a0] sm:$0xff] }
 0x1c7   : > { %v2785_v25 = vpop.f32.mrf.mxu2  ;;  %3448 = vmatpush.bf16.msra.mxu2 %v5940_v10 }
 0x1c8   : > { %v2954_v56 = vpop.f32.mrf.mxu3  ;;  %v2786_v14 = vadd.f32 %v2785_v25, %v6417_v52  ;;  %v556_v52 = vld [vmem:[%s6293_s10 + $0x168] sm:$0xff]  ;;  %v828_v25 = vunpack.c.1.s8 %v558_v41 }
 0x1c9   : > { %v3126_v15 = vpop.f32.mrf.mxu0  ;;  %v819_v48 = vunpack.c.0.s8 %v556_v52  ;;  %v820_v7 = vunpack.c.1.s8 %v556_v52 }
 0x1ca   : > { %v2955_v6 = vadd.f32 %v2954_v56, %v2786_v14 }
 0x1cb   : > { %v3295_v2 = vpop.f32.mrf.mxu1 }
 0x1cc   : > { %v3124_v32 = vadd.f32 %v3123_v5, %v2955_v6  ;;  %2827 = vmatmul.bf16.gmra.mxu2 %v1745_v24  ;;  %3165 = vmatmul.bf16.gmra.mxu0 %v1747_v37  ;;  %v817_v5 = vunpack.c.2.s8 %v6067_v1  ;;  %v1337_v6 = vcvt.s32.f32 %v825_v58  ;;  %v1330_v37 = vcvt.s32.f32 %v818_v55 }
 0x1cd   : > { %2996 = vmatmul.bf16.gmra.mxu3 %v1746_v20  ;;  %v1340_v1 = vcvt.s32.f32 %v828_v25  ;;  %v562_v25 = vld [vmem:[%s6293_s10 + $0x198] sm:$0xff] }
 0x1ce   : > { %v6682_v3 = vadd.f32 %v3292_v62, %v3124_v32  ;;  %3334 = vmatmul.bf16.gmra.mxu1 %v1748_v40  ;;  %v826_v62 = vunpack.c.3.s8 %v6068_v33  ;;  %v1329_v14 = vcvt.s32.f32 %v817_v5  ;;  %v1331_v32 = vcvt.s32.f32 %v819_v48  ;;  %v560_v48 = vld [vmem:[%s6293_s10 + $0x188] sm:$0xff] }
 0x1cf   : > { %v2788_v34 = vpop.f32.mrf.mxu2 }
 0x1d0   : > { %v2957_v54 = vpop.f32.mrf.mxu3  ;;  %v2789_v30 = vadd.f32 %v2788_v34, %v6421_v4  ;;  %v1338_v40 = vcvt.s32.f32 %v826_v62  ;;  %v1339_v4 = vcvt.s32.f32 %v827_v51  ;;  %v1332_v34 = vcvt.s32.f32 %v820_v7  ;;  %v6069_v51 = vld [vmem:[%s6293_s10 + $0x180] sm:$0xff] }
 0x1d1   : > { %v3128_v56 = vpop.f32.mrf.mxu0  ;;  %v1753_v52 = vpack.c.bf16 %v1337_v6, %v1329_v14  ;;  %v833_v7 = vunpack.c.2.s8 %v6069_v51 }
 0x1d2   : > { %v2958_v28 = vadd.f32 %v2957_v54, %v2789_v30  ;;  %v1754_v41 = vpack.c.bf16 %v1338_v40, %v1330_v37  ;;  %v1756_v30 = vpack.c.bf16 %v1340_v1, %v1332_v34  ;;  %v834_v37 = vunpack.c.3.s8 %v6069_v51  ;;  %v5998_v1 = vld [vmem:[%s7621_s5 + $0x30] sm:$0xff] }
 0x1d3   : > { %v3297_v24 = vpop.f32.mrf.mxu1  ;;  %v836_v34 = vunpack.c.1.s8 %v560_v48  ;;  %4795 = vmatpush.bf16.msra.mxu0 %v5998_v1 }
 0x1d4   : > { %v3127_v20 = vadd.f32 %v3126_v15, %v2958_v28  ;;  %v1755_v15 = vpack.c.bf16 %v1339_v4, %v1331_v32  ;;  %v835_v32 = vunpack.c.0.s8 %v560_v48  ;;  %v843_v4 = vunpack.c.0.s8 %v562_v25 }
 0x1d6   : > { %v6692_v10 = vadd.f32 %v3295_v2, %v3127_v20  ;;  %v6070_v20 = vld [vmem:[%s6293_s10 + $0x190] sm:$0xff]  ;;  %v1355_v48 = vcvt.s32.f32 %v843_v4  ;;  %v564_v4 = vld [vmem:[%s6293_s10 + $0x1a8] sm:$0xff] }
 0x1d7   : > { %v2790_v33 = vpop.f32.mrf.mxu2  ;;  %v841_v6 = vunpack.c.2.s8 %v6070_v20  ;;  %v842_v40 = vunpack.c.3.s8 %v6070_v20 }
 0x1d8   : > { %v2959_v42 = vpop.f32.mrf.mxu3  ;;  %v2791_v54 = vadd.f32 %v2790_v33, %v6435_v31  ;;  %v5958_v33 = vld [vmem:[%s7620_s4 + $0x30] sm:$0xff] }
 0x1d9   : > { %v3131_v58 = vpop.f32.mrf.mxu0  ;;  %5012 = vmatpush.bf16.msra.mxu1 %v5958_v33  ;;  %v566_v33 = vld [vmem:[%s6293_s10 + $0x1b8] sm:$0xff] }
 0x1da   : > { %v2960_v5 = vadd.f32 %v2959_v42, %v2791_v54  ;;  %v1345_v54 = vcvt.s32.f32 %v833_v7 }
 0x1db   : > { %v3300_v55 = vpop.f32.mrf.mxu1 }
 0x1dc   : > { %v3129_v2 = vadd.f32 %v3128_v56, %v2960_v5  ;;  %2832 = vmatmul.bf16.gmra.mxu2 %v1753_v52  ;;  %3170 = vmatmul.bf16.gmra.mxu0 %v1755_v15  ;;  %v1346_v5 = vcvt.s32.f32 %v834_v37  ;;  %v1354_v15 = vcvt.s32.f32 %v842_v40 }
 0x1dd   : > { %3001 = vmatmul.bf16.gmra.mxu3 %v1754_v41  ;;  %v1353_v41 = vcvt.s32.f32 %v841_v6 }
 0x1de   : > { %v6695_v62 = vadd.f32 %v3297_v24, %v3129_v2  ;;  %3339 = vmatmul.bf16.gmra.mxu1 %v1756_v30  ;;  %v844_v24 = vunpack.c.1.s8 %v562_v25  ;;  %v1347_v30 = vcvt.s32.f32 %v835_v32  ;;  %v1762_v7 = vpack.c.bf16 %v1354_v15, %v1346_v5 }
 0x1df   : > { %v2793_v28 = vpop.f32.mrf.mxu2  ;;  %v1761_v20 = vpack.c.bf16 %v1353_v41, %v1345_v54 }
 0x1e0   : > { %v2962_v31 = vpop.f32.mrf.mxu3  ;;  %v2794_v14 = vadd.f32 %v2793_v28, %v6439_v46  ;;  %v1348_v28 = vcvt.s32.f32 %v836_v34  ;;  %v1763_v6 = vpack.c.bf16 %v1355_v48, %v1347_v30  ;;  %v851_v30 = vunpack.c.0.s8 %v564_v4 }
 0x1e1   : > { %v3133_v42 = vpop.f32.mrf.mxu0  ;;  %v859_v48 = vunpack.c.0.s8 %v566_v33 }
 0x1e2   : > { %v2963_v56 = vadd.f32 %v2962_v31, %v2794_v14  ;;  %v1356_v31 = vcvt.s32.f32 %v844_v24  ;;  %v6071_v24 = vld [vmem:[%s6293_s10 + $0x1a0] sm:$0xff] }
 0x1e3   : > { %v3302_v46 = vpop.f32.mrf.mxu1  ;;  %v849_v1 = vunpack.c.2.s8 %v6071_v24  ;;  %v850_v5 = vunpack.c.3.s8 %v6071_v24 }
 0x1e4   : > { %v3132_v52 = vadd.f32 %v3131_v58, %v2963_v56  ;;  %v1764_v37 = vpack.c.bf16 %v1356_v31, %v1348_v28  ;;  %v852_v28 = vunpack.c.1.s8 %v564_v4 }
 0x1e6   : > { %v6708_v2 = vadd.f32 %v3300_v55, %v3132_v52  ;;  %v6072_v52 = vld [vmem:[%s6293_s10 + $0x1b0] sm:$0xff] }
 0x1e7   : > { %v2795_v51 = vpop.f32.mrf.mxu2  ;;  %v857_v41 = vunpack.c.2.s8 %v6072_v52  ;;  %v858_v15 = vunpack.c.3.s8 %v6072_v52 }
 0x1e8   : > { %v2964_v25 = vpop.f32.mrf.mxu3  ;;  %v2796_v14 = vadd.f32 %v2795_v51, %v6453_v11  ;;  %v1361_v51 = vcvt.s32.f32 %v849_v1 }
 0x1e9   : > { %v3136_v40 = vpop.f32.mrf.mxu0 }
 0x1ea   : > { %v2965_v58 = vadd.f32 %v2964_v25, %v2796_v14 }
 0x1eb   : > { %v3305_v32 = vpop.f32.mrf.mxu1 }
 0x1ec   : > { %v3134_v55 = vadd.f32 %v3133_v42, %v2965_v58  ;;  %2837 = vmatmul.bf16.gmra.mxu2 %v1761_v20  ;;  %3175 = vmatmul.bf16.gmra.mxu0 %v1763_v6  ;;  %v1369_v20 = vcvt.s32.f32 %v857_v41  ;;  %v1370_v58 = vcvt.s32.f32 %v858_v15  ;;  %v1363_v6 = vcvt.s32.f32 %v851_v30  ;;  %v568_v30 = vld [vmem:[%s6293_s10 + $0x1c8] sm:$0xff] }
 0x1ed   : > { %3006 = vmatmul.bf16.gmra.mxu3 %v1762_v7  ;;  %v1362_v7 = vcvt.s32.f32 %v850_v5 }
 0x1ee   : > { %v6711_v56 = vadd.f32 %v3302_v46, %v3134_v55  ;;  %3344 = vmatmul.bf16.gmra.mxu1 %v1764_v37  ;;  %v860_v46 = vunpack.c.1.s8 %v566_v33  ;;  %v1364_v55 = vcvt.s32.f32 %v852_v28  ;;  %v1769_v4 = vpack.c.bf16 %v1369_v20, %v1361_v51 }
 0x1ef   : > { %v2798_v34 = vpop.f32.mrf.mxu2  ;;  %v1770_v33 = vpack.c.bf16 %v1370_v58, %v1362_v7 }
 0x1f0   : > { %v2967_v11 = vpop.f32.mrf.mxu3  ;;  %v2799_v54 = vadd.f32 %v2798_v34, %v6457_v29  ;;  %v1371_v29 = vcvt.s32.f32 %v859_v48  ;;  %v1372_v34 = vcvt.s32.f32 %v860_v46  ;;  %v6073_v48 = vld [vmem:[%s6293_s10 + $0x1c0] sm:$0xff]  ;;  %v570_v46 = vld [vmem:[%s6293_s10 + $0x1d8] sm:$0xff] }
 0x1f1   : > { %v3138_v31 = vpop.f32.mrf.mxu0  ;;  %v865_v28 = vunpack.c.2.s8 %v6073_v48  ;;  %v866_v7 = vunpack.c.3.s8 %v6073_v48 }
 0x1f2   : > { %v2968_v42 = vadd.f32 %v2967_v11, %v2799_v54  ;;  %v1772_v54 = vpack.c.bf16 %v1372_v34, %v1364_v55  ;;  %v868_v55 = vunpack.c.1.s8 %v568_v30 }
 0x1f3   : > { %v3307_v25 = vpop.f32.mrf.mxu1 }
 0x1f4   : > { %v3137_v14 = vadd.f32 %v3136_v40, %v2968_v42  ;;  %v1771_v40 = vpack.c.bf16 %v1371_v29, %v1363_v6  ;;  %v867_v6 = vunpack.c.0.s8 %v568_v30  ;;  %v875_v29 = vunpack.c.0.s8 %v570_v46 }
 0x1f6   : > { %v6718_v37 = vadd.f32 %v3305_v32, %v3137_v14  ;;  %v6074_v14 = vld [vmem:[%s6293_s10 + $0x1d0] sm:$0xff] }
 0x1f7   : > { %v2800_v24 = vpop.f32.mrf.mxu2  ;;  %v873_v20 = vunpack.c.2.s8 %v6074_v14  ;;  %v874_v58 = vunpack.c.3.s8 %v6074_v14 }
 0x1f8   : > { %v2969_v52 = vpop.f32.mrf.mxu3  ;;  %v2801_v11 = vadd.f32 %v2800_v24, %v6471_v61  ;;  %v1377_v24 = vcvt.s32.f32 %v865_v28 }
 0x1f9   : > { %v3141_v41 = vpop.f32.mrf.mxu0 }
 0x1fa   : > { %v2970_v1 = vadd.f32 %v2969_v52, %v2801_v11 }
 0x1fb   : > { %v3310_v5 = vpop.f32.mrf.mxu1 }
 0x1fc   : > { %v3139_v32 = vadd.f32 %v3138_v31, %v2970_v1  ;;  %2842 = vmatmul.bf16.gmra.mxu2 %v1769_v4  ;;  %3180 = vmatmul.bf16.gmra.mxu0 %v1771_v40  ;;  %v1385_v4 = vcvt.s32.f32 %v873_v20  ;;  %v1386_v1 = vcvt.s32.f32 %v874_v58  ;;  %v1379_v40 = vcvt.s32.f32 %v867_v6 }
 0x1fd   : > { %3011 = vmatmul.bf16.gmra.mxu3 %v1770_v33  ;;  %v1378_v33 = vcvt.s32.f32 %v866_v7 }
 0x1fe   : > { %v6721_v15 = vadd.f32 %v3307_v25, %v3139_v32  ;;  %3349 = vmatmul.bf16.gmra.mxu1 %v1772_v54  ;;  %v876_v25 = vunpack.c.1.s8 %v570_v46  ;;  %v1380_v32 = vcvt.s32.f32 %v868_v55  ;;  %v1777_v30 = vpack.c.bf16 %v1385_v4, %v1377_v24  ;;  %v574_v24 = vld [vmem:[%s6293_s10 + $0x1f8] sm:$0xff]  ;;  %v6076_v4 = vld [vmem:[%s6293_s10 + $0x1f0] sm:$0xff] }
 0x1ff   : > { %v2803_v42 = vpop.f32.mrf.mxu2  ;;  %v1778_v46 = vpack.c.bf16 %v1386_v1, %v1378_v33  ;;  %v889_v33 = vunpack.c.2.s8 %v6076_v4 }
 0x200   : > { %v2972_v61 = vpop.f32.mrf.mxu3  ;;  %v2804_v51 = vadd.f32 %v2803_v42, %v6475_v16  ;;  %v1387_v16 = vcvt.s32.f32 %v875_v29  ;;  %v1388_v42 = vcvt.s32.f32 %v876_v25  ;;  %v6075_v25 = vld [vmem:[%s6293_s10 + $0x1e0] sm:$0xff] }
 0x201   : > { %v3143_v34 = vpop.f32.mrf.mxu0  ;;  %v882_v1 = vunpack.c.3.s8 %v6075_v25 }
 0x202   : > { %v2973_v31 = vadd.f32 %v2972_v61, %v2804_v51  ;;  %v1779_v28 = vpack.c.bf16 %v1387_v16, %v1379_v40 }
 0x203   : > { %v3312_v52 = vpop.f32.mrf.mxu1 }
 0x204   : > { %v3142_v11 = vadd.f32 %v3141_v41, %v2973_v31  ;;  %v1780_v41 = vpack.c.bf16 %v1388_v42, %v1380_v32  ;;  %v5947_v31 = vld [vmem:[%s7617_s1 + $0x1d8] sm:$0xff]  ;;  %v891_v32 = vunpack.c.0.s8 %v574_v24 }
 0x205   : > { %3618 = vmatpush.bf16.msra.mxu3 %v5947_v31 }
 0x206   : > { %v6728_v54 = vadd.f32 %v3310_v5, %v3142_v11  ;;  %v5939_v5 = vld [vmem:[%s7617_s1 + $0x198] sm:$0xff] }
 0x207   : > { %v2805_v48 = vpop.f32.mrf.mxu2  ;;  %3449 = vmatpush.bf16.msra.mxu2 %v5939_v5 }
 0x208   : > { %v2974_v14 = vpop.f32.mrf.mxu3  ;;  %v2806_v61 = vadd.f32 %v2805_v48, %v6489_v49  ;;  %v572_v49 = vld [vmem:[%s6293_s10 + $0x1e8] sm:$0xff]  ;;  %v892_v48 = vunpack.c.1.s8 %v574_v24 }
 0x209   : > { %v3146_v20 = vpop.f32.mrf.mxu0  ;;  %v883_v40 = vunpack.c.0.s8 %v572_v49  ;;  %v884_v42 = vunpack.c.1.s8 %v572_v49 }
 0x20a   : > { %v2975_v51 = vadd.f32 %v2974_v14, %v2806_v61 }
 0x20b   : > { %v3315_v7 = vpop.f32.mrf.mxu1 }
 0x20c   : > { %v3144_v58 = vadd.f32 %v3143_v34, %v2975_v51  ;;  %2847 = vmatmul.bf16.gmra.mxu2 %v1777_v30  ;;  %3185 = vmatmul.bf16.gmra.mxu0 %v1779_v28  ;;  %v881_v34 = vunpack.c.2.s8 %v6075_v25  ;;  %v1401_v51 = vcvt.s32.f32 %v889_v33  ;;  %v1394_v28 = vcvt.s32.f32 %v882_v1 }
 0x20d   : > { %3016 = vmatmul.bf16.gmra.mxu3 %v1778_v46  ;;  %v1404_v25 = vcvt.s32.f32 %v892_v48  ;;  %v578_v48 = vld [vmem:[%s6293_s10 + $0x218] sm:$0xff] }
 0x20e   : > { %v6734_v6 = vadd.f32 %v3312_v52, %v3144_v58  ;;  %3354 = vmatmul.bf16.gmra.mxu1 %v1780_v41  ;;  %v890_v52 = vunpack.c.3.s8 %v6076_v4  ;;  %v1393_v61 = vcvt.s32.f32 %v881_v34  ;;  %v1395_v58 = vcvt.s32.f32 %v883_v40  ;;  %v576_v40 = vld [vmem:[%s6293_s10 + $0x208] sm:$0xff] }
 0x20f   : > { %v2808_v29 = vpop.f32.mrf.mxu2 }
 0x210   : > { %v2977_v55 = vpop.f32.mrf.mxu3  ;;  %v2809_v11 = vadd.f32 %v2808_v29, %v6505_v12  ;;  %v1402_v41 = vcvt.s32.f32 %v890_v52  ;;  %v1403_v12 = vcvt.s32.f32 %v891_v32  ;;  %v1396_v29 = vcvt.s32.f32 %v884_v42  ;;  %v6077_v32 = vld [vmem:[%s6293_s10 + $0x200] sm:$0xff] }
 0x211   : > { %v3148_v14 = vpop.f32.mrf.mxu0  ;;  %v1785_v49 = vpack.c.bf16 %v1401_v51, %v1393_v61  ;;  %v897_v42 = vunpack.c.2.s8 %v6077_v32 }
 0x212   : > { %v2978_v16 = vadd.f32 %v2977_v55, %v2809_v11  ;;  %v1786_v24 = vpack.c.bf16 %v1402_v41, %v1394_v28  ;;  %v1788_v11 = vpack.c.bf16 %v1404_v25, %v1396_v29  ;;  %v898_v28 = vunpack.c.3.s8 %v6077_v32  ;;  %v5997_v25 = vld [vmem:[%s7621_s5 + $0x28] sm:$0xff] }
 0x213   : > { %v3317_v30 = vpop.f32.mrf.mxu1  ;;  %v900_v29 = vunpack.c.1.s8 %v576_v40  ;;  %4796 = vmatpush.bf16.msra.mxu0 %v5997_v25 }
 0x214   : > { %v3147_v46 = vadd.f32 %v3146_v20, %v2978_v16  ;;  %v1787_v20 = vpack.c.bf16 %v1403_v12, %v1395_v58  ;;  %v899_v58 = vunpack.c.0.s8 %v576_v40  ;;  %v907_v12 = vunpack.c.0.s8 %v578_v48 }
 0x216   : > { %v6744_v5 = vadd.f32 %v3315_v7, %v3147_v46  ;;  %v6078_v46 = vld [vmem:[%s6293_s10 + $0x210] sm:$0xff]  ;;  %v1419_v40 = vcvt.s32.f32 %v907_v12  ;;  %v580_v12 = vld [vmem:[%s6293_s10 + $0x228] sm:$0xff] }
 0x217   : > { %v2810_v4 = vpop.f32.mrf.mxu2  ;;  %v905_v51 = vunpack.c.2.s8 %v6078_v46  ;;  %v906_v41 = vunpack.c.3.s8 %v6078_v46 }
 0x218   : > { %v2979_v31 = vpop.f32.mrf.mxu3  ;;  %v2811_v55 = vadd.f32 %v2810_v4, %v6531_v57  ;;  %v5957_v4 = vld [vmem:[%s7620_s4 + $0x28] sm:$0xff] }
 0x219   : > { %v3151_v33 = vpop.f32.mrf.mxu0  ;;  %5013 = vmatpush.bf16.msra.mxu1 %v5957_v4  ;;  %v582_v4 = vld [vmem:[%s6293_s10 + $0x238] sm:$0xff] }
 0x21a   : > { %v2980_v34 = vadd.f32 %v2979_v31, %v2811_v55  ;;  %v1409_v55 = vcvt.s32.f32 %v897_v42 }
 0x21b   : > { %v3320_v1 = vpop.f32.mrf.mxu1 }
 0x21c   : > { %v3149_v7 = vadd.f32 %v3148_v14, %v2980_v34  ;;  %2852 = vmatmul.bf16.gmra.mxu2 %v1785_v49  ;;  %3190 = vmatmul.bf16.gmra.mxu0 %v1787_v20  ;;  %v1410_v34 = vcvt.s32.f32 %v898_v28  ;;  %v1418_v20 = vcvt.s32.f32 %v906_v41 }
 0x21d   : > { %3021 = vmatmul.bf16.gmra.mxu3 %v1786_v24  ;;  %v1417_v24 = vcvt.s32.f32 %v905_v51 }
 0x21e   : > { %v6747_v52 = vadd.f32 %v3317_v30, %v3149_v7  ;;  %3359 = vmatmul.bf16.gmra.mxu1 %v1788_v11  ;;  %v908_v30 = vunpack.c.1.s8 %v578_v48  ;;  %v1411_v11 = vcvt.s32.f32 %v899_v58  ;;  %v1794_v42 = vpack.c.bf16 %v1418_v20, %v1410_v34 }
 0x21f   : > { %v2813_v16 = vpop.f32.mrf.mxu2  ;;  %v1793_v46 = vpack.c.bf16 %v1417_v24, %v1409_v55 }
 0x220   : > { %v2982_v57 = vpop.f32.mrf.mxu3  ;;  %v2814_v61 = vadd.f32 %v2813_v16, %v6535_v18  ;;  %v1412_v16 = vcvt.s32.f32 %v900_v29  ;;  %v1795_v51 = vpack.c.bf16 %v1419_v40, %v1411_v11  ;;  %v915_v11 = vunpack.c.0.s8 %v580_v12 }
 0x221   : > { %v3153_v31 = vpop.f32.mrf.mxu0  ;;  %v923_v40 = vunpack.c.0.s8 %v582_v4 }
 0x222   : > { %v2983_v14 = vadd.f32 %v2982_v57, %v2814_v61  ;;  %v1420_v57 = vcvt.s32.f32 %v908_v30  ;;  %v6079_v30 = vld [vmem:[%s6293_s10 + $0x220] sm:$0xff] }
 0x223   : > { %v3322_v18 = vpop.f32.mrf.mxu1  ;;  %v913_v25 = vunpack.c.2.s8 %v6079_v30  ;;  %v914_v34 = vunpack.c.3.s8 %v6079_v30 }
 0x224   : > { %v3152_v49 = vadd.f32 %v3151_v33, %v2983_v14  ;;  %v1796_v28 = vpack.c.bf16 %v1420_v57, %v1412_v16  ;;  %v916_v16 = vunpack.c.1.s8 %v580_v12 }
 0x226   : > { %v6760_v7 = vadd.f32 %v3320_v1, %v3152_v49  ;;  %v6080_v49 = vld [vmem:[%s6293_s10 + $0x230] sm:$0xff] }
 0x227   : > { %v2815_v32 = vpop.f32.mrf.mxu2  ;;  %v921_v24 = vunpack.c.2.s8 %v6080_v49  ;;  %v922_v20 = vunpack.c.3.s8 %v6080_v49 }
 0x228   : > { %v2984_v48 = vpop.f32.mrf.mxu3  ;;  %v2816_v61 = vadd.f32 %v2815_v32, %v6543_v53  ;;  %v1425_v32 = vcvt.s32.f32 %v913_v25 }
 0x229   : > { %v3156_v41 = vpop.f32.mrf.mxu0 }
 0x22a   : > { %v2985_v33 = vadd.f32 %v2984_v48, %v2816_v61 }
 0x22b   : > { %v3325_v58 = vpop.f32.mrf.mxu1 }
 0x22c   : > { %v3154_v1 = vadd.f32 %v3153_v31, %v2985_v33  ;;  %2857 = vmatmul.bf16.gmra.mxu2 %v1793_v46  ;;  %3195 = vmatmul.bf16.gmra.mxu0 %v1795_v51  ;;  %v1433_v46 = vcvt.s32.f32 %v921_v24  ;;  %v1434_v33 = vcvt.s32.f32 %v922_v20  ;;  %v1427_v51 = vcvt.s32.f32 %v915_v11  ;;  %v584_v11 = vld [vmem:[%s6293_s10 + $0x248] sm:$0xff] }
 0x22d   : > { %3026 = vmatmul.bf16.gmra.mxu3 %v1794_v42  ;;  %v1426_v42 = vcvt.s32.f32 %v914_v34 }
 0x22e   : > { %v6763_v14 = vadd.f32 %v3322_v18, %v3154_v1  ;;  %3364 = vmatmul.bf16.gmra.mxu1 %v1796_v28  ;;  %v924_v18 = vunpack.c.1.s8 %v582_v4  ;;  %v1428_v1 = vcvt.s32.f32 %v916_v16  ;;  %v1801_v12 = vpack.c.bf16 %v1433_v46, %v1425_v32 }
 0x22f   : > { %v2818_v29 = vpop.f32.mrf.mxu2  ;;  %v1802_v4 = vpack.c.bf16 %v1434_v33, %v1426_v42 }
 0x230   : > { %v2987_v53 = vpop.f32.mrf.mxu3  ;;  %v2819_v55 = vadd.f32 %v2818_v29, %v6547_v19  ;;  %v1435_v19 = vcvt.s32.f32 %v923_v40  ;;  %v1436_v29 = vcvt.s32.f32 %v924_v18  ;;  %v6081_v40 = vld [vmem:[%s6293_s10 + $0x240] sm:$0xff]  ;;  %v586_v18 = vld [vmem:[%s6293_s10 + $0x258] sm:$0xff] }
 0x231   : > { %v3158_v57 = vpop.f32.mrf.mxu0  ;;  %v929_v16 = vunpack.c.2.s8 %v6081_v40  ;;  %v930_v42 = vunpack.c.3.s8 %v6081_v40 }
 0x232   : > { %v2988_v31 = vadd.f32 %v2987_v53, %v2819_v55  ;;  %v1804_v55 = vpack.c.bf16 %v1436_v29, %v1428_v1  ;;  %v932_v1 = vunpack.c.1.s8 %v584_v11 }
 0x233   : > { %v3327_v48 = vpop.f32.mrf.mxu1 }
 0x234   : > { %v3157_v61 = vadd.f32 %v3156_v41, %v2988_v31  ;;  %v1803_v41 = vpack.c.bf16 %v1435_v19, %v1427_v51  ;;  %v931_v51 = vunpack.c.0.s8 %v584_v11  ;;  %v939_v19 = vunpack.c.0.s8 %v586_v18 }
 0x236   : > { %v6770_v28 = vadd.f32 %v3325_v58, %v3157_v61  ;;  %v6082_v61 = vld [vmem:[%s6293_s10 + $0x250] sm:$0xff] }
 0x237   : > { %v2820_v30 = vpop.f32.mrf.mxu2  ;;  %v937_v46 = vunpack.c.2.s8 %v6082_v61  ;;  %v938_v33 = vunpack.c.3.s8 %v6082_v61 }
 0x238   : > { %v2989_v49 = vpop.f32.mrf.mxu3  ;;  %v2821_v53 = vadd.f32 %v2820_v30, %v6555_v59  ;;  %v1441_v30 = vcvt.s32.f32 %v929_v16 }
 0x239   : > { %v3161_v24 = vpop.f32.mrf.mxu0 }
 0x23a   : > { %v2990_v25 = vadd.f32 %v2989_v49, %v2821_v53 }
 0x23b   : > { %v3330_v34 = vpop.f32.mrf.mxu1 }
 0x23c   : > { %v3159_v58 = vadd.f32 %v3158_v57, %v2990_v25  ;;  %2862 = vmatmul.bf16.gmra.mxu2 %v1801_v12  ;;  %3200 = vmatmul.bf16.gmra.mxu0 %v1803_v41  ;;  %v1449_v12 = vcvt.s32.f32 %v937_v46  ;;  %v1450_v25 = vcvt.s32.f32 %v938_v33  ;;  %v1443_v41 = vcvt.s32.f32 %v931_v51 }
 0x23d   : > { %3031 = vmatmul.bf16.gmra.mxu3 %v1802_v4  ;;  %v1442_v4 = vcvt.s32.f32 %v930_v42 }
 0x23e   : > { %v6773_v20 = vadd.f32 %v3327_v48, %v3159_v58  ;;  %3369 = vmatmul.bf16.gmra.mxu1 %v1804_v55  ;;  %v940_v48 = vunpack.c.1.s8 %v586_v18  ;;  %v1444_v58 = vcvt.s32.f32 %v932_v1  ;;  %v1809_v11 = vpack.c.bf16 %v1449_v12, %v1441_v30  ;;  %v590_v30 = vld [vmem:[%s6293_s10 + $0x278] sm:$0xff]  ;;  %v6084_v12 = vld [vmem:[%s6293_s10 + $0x270] sm:$0xff] }
 0x23f   : > { %v2823_v31 = vpop.f32.mrf.mxu2  ;;  %v1810_v18 = vpack.c.bf16 %v1450_v25, %v1442_v4  ;;  %v953_v4 = vunpack.c.2.s8 %v6084_v12 }
 0x240   : > { %v2992_v59 = vpop.f32.mrf.mxu3  ;;  %v2824_v32 = vadd.f32 %v2823_v31, %v6559_v27  ;;  %v1451_v27 = vcvt.s32.f32 %v939_v19  ;;  %v1452_v31 = vcvt.s32.f32 %v940_v48  ;;  %v6083_v48 = vld [vmem:[%s6293_s10 + $0x260] sm:$0xff] }
 0x241   : > { %v3163_v29 = vpop.f32.mrf.mxu0  ;;  %v946_v25 = vunpack.c.3.s8 %v6083_v48 }
 0x242   : > { %v2993_v57 = vadd.f32 %v2992_v59, %v2824_v32  ;;  %v1811_v16 = vpack.c.bf16 %v1451_v27, %v1443_v41 }
 0x243   : > { %v3332_v49 = vpop.f32.mrf.mxu1 }
 0x244   : > { %v3162_v53 = vadd.f32 %v3161_v24, %v2993_v57  ;;  %v1812_v24 = vpack.c.bf16 %v1452_v31, %v1444_v58  ;;  %v5946_v57 = vld [vmem:[%s7617_s1 + $0x1d0] sm:$0xff]  ;;  %v955_v58 = vunpack.c.0.s8 %v590_v30 }
 0x245   : > { %3619 = vmatpush.bf16.msra.mxu3 %v5946_v57 }
 0x246   : > { %v6780_v55 = vadd.f32 %v3330_v34, %v3162_v53  ;;  %v5938_v34 = vld [vmem:[%s7617_s1 + $0x190] sm:$0xff] }
 0x247   : > { %v2825_v40 = vpop.f32.mrf.mxu2  ;;  %3450 = vmatpush.bf16.msra.mxu2 %v5938_v34 }
 0x248   : > { %v2994_v61 = vpop.f32.mrf.mxu3  ;;  %v2826_v59 = vadd.f32 %v2825_v40, %v6567_v13  ;;  %v588_v13 = vld [vmem:[%s6293_s10 + $0x268] sm:$0xff]  ;;  %v956_v40 = vunpack.c.1.s8 %v590_v30 }
 0x249   : > { %v3166_v46 = vpop.f32.mrf.mxu0  ;;  %v947_v41 = vunpack.c.0.s8 %v588_v13  ;;  %v948_v31 = vunpack.c.1.s8 %v588_v13 }
 0x24a   : > { %v2995_v32 = vadd.f32 %v2994_v61, %v2826_v59 }
 0x24b   : > { %v3335_v42 = vpop.f32.mrf.mxu1 }
 0x24c   : > { %v3164_v33 = vadd.f32 %v3163_v29, %v2995_v32  ;;  %2867 = vmatmul.bf16.gmra.mxu2 %v1809_v11  ;;  %3205 = vmatmul.bf16.gmra.mxu0 %v1811_v16  ;;  %v945_v29 = vunpack.c.2.s8 %v6083_v48  ;;  %v1465_v32 = vcvt.s32.f32 %v953_v4  ;;  %v1458_v16 = vcvt.s32.f32 %v946_v25 }
 0x24d   : > { %3036 = vmatmul.bf16.gmra.mxu3 %v1810_v18  ;;  %v1468_v48 = vcvt.s32.f32 %v956_v40  ;;  %v594_v40 = vld [vmem:[%s6293_s10 + $0x298] sm:$0xff] }
 0x24e   : > { %v6786_v51 = vadd.f32 %v3332_v49, %v3164_v33  ;;  %3374 = vmatmul.bf16.gmra.mxu1 %v1812_v24  ;;  %v954_v49 = vunpack.c.3.s8 %v6084_v12  ;;  %v1457_v59 = vcvt.s32.f32 %v945_v29  ;;  %v1459_v33 = vcvt.s32.f32 %v947_v41  ;;  %v592_v41 = vld [vmem:[%s6293_s10 + $0x288] sm:$0xff] }
 0x24f   : > { %v2828_v19 = vpop.f32.mrf.mxu2 }
 0x250   : > { %v2997_v1 = vpop.f32.mrf.mxu3  ;;  %v2829_v53 = vadd.f32 %v2828_v19, %v6571_v47  ;;  %v1466_v24 = vcvt.s32.f32 %v954_v49  ;;  %v1467_v47 = vcvt.s32.f32 %v955_v58  ;;  %v1460_v19 = vcvt.s32.f32 %v948_v31  ;;  %v6085_v58 = vld [vmem:[%s6293_s10 + $0x280] sm:$0xff] }
 0x251   : > { %v3168_v61 = vpop.f32.mrf.mxu0  ;;  %v1817_v13 = vpack.c.bf16 %v1465_v32, %v1457_v59  ;;  %v961_v31 = vunpack.c.2.s8 %v6085_v58 }
 0x252   : > { %v2998_v27 = vadd.f32 %v2997_v1, %v2829_v53  ;;  %v1818_v30 = vpack.c.bf16 %v1466_v24, %v1458_v16  ;;  %v1820_v53 = vpack.c.bf16 %v1468_v48, %v1460_v19  ;;  %v962_v16 = vunpack.c.3.s8 %v6085_v58  ;;  %v5996_v48 = vld [vmem:[%s7621_s5 + $0x20] sm:$0xff] }
 0x253   : > { %v3337_v11 = vpop.f32.mrf.mxu1  ;;  %v964_v19 = vunpack.c.1.s8 %v592_v41  ;;  %4797 = vmatpush.bf16.msra.mxu0 %v5996_v48 }
 0x254   : > { %v3167_v18 = vadd.f32 %v3166_v46, %v2998_v27  ;;  %v1819_v46 = vpack.c.bf16 %v1467_v47, %v1459_v33  ;;  %v963_v33 = vunpack.c.0.s8 %v592_v41  ;;  %v971_v47 = vunpack.c.0.s8 %v594_v40 }
 0x256   : > { %v6796_v34 = vadd.f32 %v3335_v42, %v3167_v18  ;;  %v6086_v18 = vld [vmem:[%s6293_s10 + $0x290] sm:$0xff]  ;;  %v1483_v41 = vcvt.s32.f32 %v971_v47  ;;  %v596_v47 = vld [vmem:[%s6293_s10 + $0x2a8] sm:$0xff] }
 0x257   : > { %v2830_v12 = vpop.f32.mrf.mxu2  ;;  %v969_v32 = vunpack.c.2.s8 %v6086_v18  ;;  %v970_v24 = vunpack.c.3.s8 %v6086_v18 }
 0x258   : > { %v2999_v57 = vpop.f32.mrf.mxu3  ;;  %v2831_v1 = vadd.f32 %v2830_v12, %v6585_v35  ;;  %v5956_v12 = vld [vmem:[%s7620_s4 + $0x20] sm:$0xff] }
 0x259   : > { %v3171_v4 = vpop.f32.mrf.mxu0  ;;  %5014 = vmatpush.bf16.msra.mxu1 %v5956_v12  ;;  %v598_v12 = vld [vmem:[%s6293_s10 + $0x2b8] sm:$0xff] }
 0x25a   : > { %v3000_v29 = vadd.f32 %v2999_v57, %v2831_v1  ;;  %v1473_v1 = vcvt.s32.f32 %v961_v31 }
 0x25b   : > { %v3340_v25 = vpop.f32.mrf.mxu1 }
 0x25c   : > { %v3169_v42 = vadd.f32 %v3168_v61, %v3000_v29  ;;  %2872 = vmatmul.bf16.gmra.mxu2 %v1817_v13  ;;  %3210 = vmatmul.bf16.gmra.mxu0 %v1819_v46  ;;  %v1474_v29 = vcvt.s32.f32 %v962_v16  ;;  %v1482_v46 = vcvt.s32.f32 %v970_v24 }
 0x25d   : > { %3041 = vmatmul.bf16.gmra.mxu3 %v1818_v30  ;;  %v1481_v30 = vcvt.s32.f32 %v969_v32 }
 0x25e   : > { %v6799_v49 = vadd.f32 %v3337_v11, %v3169_v42  ;;  %3379 = vmatmul.bf16.gmra.mxu1 %v1820_v53  ;;  %v972_v11 = vunpack.c.1.s8 %v594_v40  ;;  %v1475_v53 = vcvt.s32.f32 %v963_v33  ;;  %v1826_v31 = vpack.c.bf16 %v1482_v46, %v1474_v29 }
 0x25f   : > { %v2833_v27 = vpop.f32.mrf.mxu2  ;;  %v1825_v18 = vpack.c.bf16 %v1481_v30, %v1473_v1  ;;  %v979_v46 = vunpack.c.0.s8 %v596_v47 }
 0x260   : > { %v3002_v35 = vpop.f32.mrf.mxu3  ;;  %v2834_v59 = vadd.f32 %v2833_v27, %v6589_v23  ;;  %v1476_v27 = vcvt.s32.f32 %v964_v19  ;;  %v1827_v32 = vpack.c.bf16 %v1483_v41, %v1475_v53  ;;  %v980_v41 = vunpack.c.1.s8 %v596_v47 }
 0x261   : > { %v3173_v57 = vpop.f32.mrf.mxu0 }
 0x262   : > { %v3003_v61 = vadd.f32 %v3002_v35, %v2834_v59  ;;  %v1484_v35 = vcvt.s32.f32 %v972_v11  ;;  %v6087_v11 = vld [vmem:[%s6293_s10 + $0x2a0] sm:$0xff] }
 0x263   : > { %v3342_v23 = vpop.f32.mrf.mxu1  ;;  %v977_v48 = vunpack.c.2.s8 %v6087_v11  ;;  %v978_v29 = vunpack.c.3.s8 %v6087_v11 }
 0x264   : > { %v3172_v13 = vadd.f32 %v3171_v4, %v3003_v61  ;;  %v1828_v16 = vpack.c.bf16 %v1484_v35, %v1476_v27  ;;  %v988_v27 = vunpack.c.1.s8 %v598_v12 }
 0x266   : > { %v6812_v42 = vadd.f32 %v3340_v25, %v3172_v13  ;;  %v6088_v13 = vld [vmem:[%s6293_s10 + $0x2b0] sm:$0xff]  ;;  %v1500_v47 = vcvt.s32.f32 %v988_v27  ;;  %v6089_v27 = vld [vmem:[%s6293_s10 + $0x2c0] sm:$0xff] }
 0x267   : > { %v2835_v58 = vpop.f32.mrf.mxu2  ;;  %v985_v30 = vunpack.c.2.s8 %v6088_v13 }
 0x268   : > { %v3004_v40 = vpop.f32.mrf.mxu3  ;;  %v2836_v59 = vadd.f32 %v2835_v58, %v6597_v8  ;;  %v1489_v58 = vcvt.s32.f32 %v977_v48 }
 0x269   : > { %v3176_v24 = vpop.f32.mrf.mxu0 }
 0x26a   : > { %v3005_v4 = vadd.f32 %v3004_v40, %v2836_v59 }
 0x26b   : > { %v3345_v33 = vpop.f32.mrf.mxu1 }
 0x26c   : > { %v3174_v25 = vadd.f32 %v3173_v57, %v3005_v4  ;;  %2877 = vmatmul.bf16.gmra.mxu2 %v1825_v18  ;;  %3215 = vmatmul.bf16.gmra.mxu0 %v1827_v32  ;;  %v986_v57 = vunpack.c.3.s8 %v6088_v13  ;;  %v1497_v18 = vcvt.s32.f32 %v985_v30  ;;  %v1491_v32 = vcvt.s32.f32 %v979_v46 }
 0x26d   : > { %3046 = vmatmul.bf16.gmra.mxu3 %v1826_v31  ;;  %v1490_v31 = vcvt.s32.f32 %v978_v29 }
 0x26e   : > { %v6815_v61 = vadd.f32 %v3342_v23, %v3174_v25  ;;  %3384 = vmatmul.bf16.gmra.mxu1 %v1828_v16  ;;  %v987_v23 = vunpack.c.0.s8 %v598_v12  ;;  %v1498_v4 = vcvt.s32.f32 %v986_v57  ;;  %v1492_v25 = vcvt.s32.f32 %v980_v41 }
 0x26f   : > { %v2838_v8 = vpop.f32.mrf.mxu2  ;;  %v1833_v11 = vpack.c.bf16 %v1497_v18, %v1489_v58  ;;  %v6198_v12 = vmov 0   ;;  %v993_v58 = vunpack.c.2.s8 %v6089_v27 }
 0x270   : > { %v3007_v19 = vpop.f32.mrf.mxu3  ;;  %v2839_v1 = vadd.f32 %v2838_v8, %v6601_v50  ;;  %v1499_v16 = vcvt.s32.f32 %v987_v23  ;;  %v1834_v48 = vpack.c.bf16 %v1498_v4, %v1490_v31  ;;  %6041 = vset.pattern.permute.xlu0 %v6198_v12  ;;  %6042 = vset.pattern.permute.xlu1 %v6198_v12  ;;  %v1836_v30 = vpack.c.bf16 %v1500_v47, %v1492_v25  ;;  %v6090_v31 = vld [vmem:[%s6293_s10 + $0x2d0] sm:$0xff] }
 0x271   : > { %v3178_v35 = vpop.f32.mrf.mxu0  ;;  %6043 = vset.pattern.permute.xlu2 %v6198_v12  ;;  %v1001_v4 = vunpack.c.2.s8 %v6090_v31 }
 0x272   : > { %v3008_v53 = vadd.f32 %v3007_v19, %v2839_v1  ;;  %v3914_v1 = vld [vmem:[%s6828_s22] sm:$0xff] }
 0x273   : > { %v3347_v40 = vpop.f32.mrf.mxu1  ;;  %4044 = vperm.xlu0 %6041, %v3914_v1   ;;  %v1513_v1 = vcvt.s32.f32 %v1001_v4 }
 0x274   : > { %v3177_v59 = vadd.f32 %v3176_v24, %v3008_v53  ;;  %v600_v53 = vld [vmem:[%s6293_s10 + $0x2c8] sm:$0xff] }
 0x275   : > { %v995_v25 = vunpack.c.0.s8 %v600_v53 }
 0x276   : > { %v6830_v50 = vadd.f32 %v3345_v33, %v3177_v59  ;;  %v1835_v33 = vpack.c.bf16 %v1499_v16, %v1491_v32  ;;  %v602_v59 = vld [vmem:[%s6293_s10 + $0x2d8] sm:$0xff]  ;;  %v994_v32 = vunpack.c.3.s8 %v6089_v27  ;;  %v1002_v16 = vunpack.c.3.s8 %v6090_v31 }
 0x277   : > { %v2840_v8 = vpop.f32.mrf.mxu2 }
 0x278   : > { %v3009_v19 = vpop.f32.mrf.mxu3  ;;  %v2841_v24 = vadd.f32 %v2840_v8, %v6609_v38  ;;  %v996_v8 = vunpack.c.1.s8 %v600_v53 }
 0x279   : > { %v3181_v29 = vpop.f32.mrf.mxu0 }
 0x27a   : > { %v3010_v13 = vadd.f32 %v3009_v19, %v2841_v24  ;;  %v1004_v19 = vunpack.c.1.s8 %v602_v59 }
 0x27b   : > { %v3350_v57 = vpop.f32.mrf.mxu1 }
 0x27c   : > { %v3179_v46 = vadd.f32 %v3178_v35, %v3010_v13  ;;  %2882 = vmatmul.bf16.gmra.mxu2 %v1833_v11  ;;  %3220 = vmatmul.bf16.gmra.mxu0 %v1835_v33  ;;  %v3915_v35 = vld [vmem:[%s6828_s22 + $0x8] sm:$0xff]  ;;  %v1505_v11 = vcvt.s32.f32 %v993_v58  ;;  %v1506_v13 = vcvt.s32.f32 %v994_v32  ;;  %v1514_v33 = vcvt.s32.f32 %v1002_v16  ;;  %v3920_v58 = vld [vmem:[%s6828_s22 + $0x30] sm:$0xff] }
 0x27d   : > { %3051 = vmatmul.bf16.gmra.mxu3 %v1834_v48  ;;  %4049 = vperm.xlu0 %6041, %v3915_v35   ;;  %v1516_v27 = vcvt.s32.f32 %v1004_v19 }
 0x27e   : > { %v6834_v38 = vadd.f32 %v3347_v40, %v3179_v46  ;;  %3389 = vmatmul.bf16.gmra.mxu1 %v1836_v30  ;;  %v1003_v40 = vunpack.c.0.s8 %v602_v59  ;;  %v1841_v53 = vpack.c.bf16 %v1513_v1, %v1505_v11  ;;  %v1842_v59 = vpack.c.bf16 %v1514_v33, %v1506_v13  ;;  %v6092_v13 = vld [vmem:[%s6293_s10 + $0x2f0] sm:$0xff] }
 0x27f   : > { %v2843_v23 = vpop.f32.mrf.mxu2 }
 0x280   : > { %v3012_v41 = vpop.f32.mrf.mxu3  ;;  %v2844_v18 = vadd.f32 %v2843_v23, %v6613_v22  ;;  %v1507_v22 = vcvt.s32.f32 %v995_v25  ;;  %v1515_v46 = vcvt.s32.f32 %v1003_v40  ;;  %v1508_v23 = vcvt.s32.f32 %v996_v8  ;;  %v5945_v40 = vld [vmem:[%s7617_s1 + $0x1c8] sm:$0xff] }
 0x281   : > { %v3183_v24 = vpop.f32.mrf.mxu0  ;;  %3620 = vmatpush.bf16.msra.mxu3 %v5945_v40 }
 0x282   : > { %v3013_v47 = vadd.f32 %v3012_v41, %v2844_v18  ;;  %v1844_v4 = vpack.c.bf16 %v1516_v27, %v1508_v23  ;;  %v3923_v23 = vld [vmem:[%s6828_s22 + $0x48] sm:$0xff] }
 0x283   : > { %v3352_v48 = vpop.f32.mrf.mxu1 }
 0x284   : > { %v3182_v12 = vadd.f32 %v3181_v29, %v3013_v47  ;;  %v1843_v29 = vpack.c.bf16 %v1515_v46, %v1507_v22  ;;  %v604_v47 = vld [vmem:[%s6293_s10 + $0x2e8] sm:$0xff]  ;;  %v1018_v22 = vunpack.c.3.s8 %v6092_v13  ;;  %v3916_v46 = vld [vmem:[%s6828_s22 + $0x10] sm:$0xff] }
 0x285   : > { %4074 = vperm.xlu0 %6041, %v3920_v58   ;;  %v1011_v27 = vunpack.c.0.s8 %v604_v47  ;;  %4054 = vperm.xlu1 %6042, %v3916_v46  }
 0x286   : > { %v6842_v30 = vadd.f32 %v3350_v57, %v3182_v12  ;;  %v606_v12 = vld [vmem:[%s6293_s10 + $0x2f8] sm:$0xff] }
 0x287   : > { %v2845_v31 = vpop.f32.mrf.mxu2 }
 0x288   : > { %v3014_v35 = vpop.f32.mrf.mxu3  ;;  %v2846_v41 = vadd.f32 %v2845_v31, %v6621_v9  ;;  %v5937_v9 = vld [vmem:[%s7617_s1 + $0x188] sm:$0xff] }
 0x289   : > { %v3186_v32 = vpop.f32.mrf.mxu0  ;;  %3451 = vmatpush.bf16.msra.mxu2 %v5937_v9  ;;  %v1523_v9 = vcvt.s32.f32 %v1011_v27 }
 0x28a   : > { %v3015_v18 = vadd.f32 %v3014_v35, %v2846_v41  ;;  %v1019_v35 = vunpack.c.0.s8 %v606_v12  ;;  %v1012_v41 = vunpack.c.1.s8 %v604_v47 }
 0x28b   : > { %v3355_v57 = vpop.f32.mrf.mxu1 }
 0x28c   : > { %v3184_v16 = vadd.f32 %v3183_v24, %v3015_v18  ;;  %2887 = vmatmul.bf16.gmra.mxu2 %v1841_v53  ;;  %3225 = vmatmul.bf16.gmra.mxu0 %v1843_v29  ;;  %v6091_v24 = vld [vmem:[%s6293_s10 + $0x2e0] sm:$0xff]  ;;  %v1020_v53 = vunpack.c.1.s8 %v606_v12 }
 0x28d   : > { %3056 = vmatmul.bf16.gmra.mxu3 %v1842_v59  ;;  %v1009_v11 = vunpack.c.2.s8 %v6091_v24  ;;  %v1010_v33 = vunpack.c.3.s8 %v6091_v24  ;;  %4089 = vperm.xlu0 %6041, %v3923_v23   ;;  %v1524_v24 = vcvt.s32.f32 %v1012_v41  ;;  %v3926_v23 = vld [vmem:[%s6828_s22 + $0x60] sm:$0xff] }
 0x28e   : > { %v6849_v25 = vadd.f32 %v3352_v48, %v3184_v16  ;;  %3394 = vmatmul.bf16.gmra.mxu1 %v1844_v4  ;;  %v1017_v48 = vunpack.c.2.s8 %v6092_v13  ;;  %v1530_v16 = vcvt.s32.f32 %v1018_v22  ;;  %v1532_v13 = vcvt.s32.f32 %v1020_v53  ;;  %v6093_v53 = vld [vmem:[%s6293_s10 + $0x300] sm:$0xff] }
 0x28f   : > { %v2848_v8 = vpop.f32.mrf.mxu2  ;;  %v1521_v58 = vcvt.s32.f32 %v1009_v11  ;;  %v1522_v4 = vcvt.s32.f32 %v1010_v33  ;;  %v3917_v11 = vld [vmem:[%s6828_s22 + $0x18] sm:$0xff] }
 0x290   : > { %v3017_v19 = vpop.f32.mrf.mxu3  ;;  %v2849_v1 = vadd.f32 %v2848_v8, %v6625_v45  ;;  %v1529_v29 = vcvt.s32.f32 %v1017_v48  ;;  %v1531_v8 = vcvt.s32.f32 %v1019_v35  ;;  %4059 = vperm.xlu1 %6042, %v3917_v11  }
 0x291   : > { %v3188_v59 = vpop.f32.mrf.mxu0 }
 0x292   : > { %v3018_v31 = vadd.f32 %v3017_v19, %v2849_v1  ;;  %v1849_v12 = vpack.c.bf16 %v1529_v29, %v1521_v58  ;;  %v1850_v1 = vpack.c.bf16 %v1530_v16, %v1522_v4  ;;  %v1851_v48 = vpack.c.bf16 %v1531_v8, %v1523_v9  ;;  %v6094_v4 = vld [vmem:[%s6293_s10 + $0x310] sm:$0xff]  ;;  %v3921_v8 = vld [vmem:[%s6828_s22 + $0x38] sm:$0xff] }
 0x293   : > { %v3357_v18 = vpop.f32.mrf.mxu1  ;;  %v1025_v58 = vunpack.c.2.s8 %v6093_v53  ;;  %v1033_v16 = vunpack.c.2.s8 %v6094_v4  ;;  %v1026_v9 = vunpack.c.3.s8 %v6093_v53 }
 0x294   : > { %v3187_v45 = vadd.f32 %v3186_v32, %v3018_v31  ;;  %v608_v31 = vld [vmem:[%s6293_s10 + $0x308] sm:$0xff] }
 0x295   : > { %4104 = vperm.xlu0 %6041, %v3926_v23   ;;  %v1537_v11 = vcvt.s32.f32 %v1025_v58 }
 0x296   : > { %v6861_v40 = vadd.f32 %v3355_v57, %v3187_v45  ;;  %v1852_v57 = vpack.c.bf16 %v1532_v13, %v1524_v24  ;;  %v610_v45 = vld [vmem:[%s6293_s10 + $0x318] sm:$0xff]  ;;  %v1027_v13 = vunpack.c.0.s8 %v608_v31 }
 0x297   : > { %v2850_v46 = vpop.f32.mrf.mxu2  ;;  %v3929_v24 = vld [vmem:[%s6828_s22 + $0x78] sm:$0xff] }
 0x298   : > { %v3019_v19 = vpop.f32.mrf.mxu3  ;;  %v2851_v47 = vadd.f32 %v2850_v46, %v6639_v63  ;;  %4079 = vperm.xlu1 %6042, %v3921_v8   ;;  %v1035_v46 = vunpack.c.0.s8 %v610_v45 }
 0x299   : > { %v3191_v33 = vpop.f32.mrf.mxu0 }
 0x29a   : > { %v3020_v32 = vadd.f32 %v3019_v19, %v2851_v47  ;;  %v1028_v19 = vunpack.c.1.s8 %v608_v31  ;;  %v1036_v47 = vunpack.c.1.s8 %v610_v45  ;;  %v1539_v31 = vcvt.s32.f32 %v1027_v13 }
 0x29b   : > { %v3360_v22 = vpop.f32.mrf.mxu1 }
 0x29c   : > { %v3189_v27 = vadd.f32 %v3188_v59, %v3020_v32  ;;  %2892 = vmatmul.bf16.gmra.mxu2 %v1849_v12  ;;  %3230 = vmatmul.bf16.gmra.mxu0 %v1851_v48  ;;  %v1034_v59 = vunpack.c.3.s8 %v6094_v4  ;;  %v5995_v12 = vld [vmem:[%s7621_s5 + $0x18] sm:$0xff]  ;;  %v1545_v48 = vcvt.s32.f32 %v1033_v16  ;;  %v1540_v53 = vcvt.s32.f32 %v1028_v19  ;;  %v3932_v16 = vld [vmem:[%s6828_s22 + $0x90] sm:$0xff]  ;;  %v612_v19 = vld [vmem:[%s6293_s10 + $0x328] sm:$0xff] }
 0x29d   : > { %3061 = vmatmul.bf16.gmra.mxu3 %v1850_v1  ;;  %4119 = vperm.xlu0 %6041, %v3929_v24   ;;  %v1548_v45 = vcvt.s32.f32 %v1036_v47 }
 0x29e   : > { %v6866_v63 = vadd.f32 %v3357_v18, %v3189_v27  ;;  %3399 = vmatmul.bf16.gmra.mxu1 %v1852_v57  ;;  %v1538_v57 = vcvt.s32.f32 %v1026_v9  ;;  %v1546_v27 = vcvt.s32.f32 %v1034_v59  ;;  %4798 = vmatpush.bf16.msra.mxu0 %v5995_v12  ;;  %v1857_v58 = vpack.c.bf16 %v1545_v48, %v1537_v11 }
 0x29f   : > { %v2853_v35 = vpop.f32.mrf.mxu2 }
 0x2a0   : > { %v3022_v41 = vpop.f32.mrf.mxu3  ;;  %v2854_v29 = vadd.f32 %v2853_v35, %v6643_v17  ;;  %v5955_v17 = vld [vmem:[%s7620_s4 + $0x18] sm:$0xff]  ;;  %v1858_v24 = vpack.c.bf16 %v1546_v27, %v1538_v57  ;;  %v6096_v57 = vld [vmem:[%s6293_s10 + $0x330] sm:$0xff] }
 0x2a1   : > { %v3193_v1 = vpop.f32.mrf.mxu0  ;;  %5015 = vmatpush.bf16.msra.mxu1 %v5955_v17  ;;  %v6095_v17 = vld [vmem:[%s6293_s10 + $0x320] sm:$0xff]  ;;  %v1049_v27 = vunpack.c.2.s8 %v6096_v57 }
 0x2a2   : > { %v3023_v18 = vadd.f32 %v3022_v41, %v2854_v29  ;;  %v1547_v41 = vcvt.s32.f32 %v1035_v46  ;;  %v1041_v11 = vunpack.c.2.s8 %v6095_v17 }
 0x2a3   : > { %v3362_v23 = vpop.f32.mrf.mxu1 }
 0x2a4   : > { %v3192_v32 = vadd.f32 %v3191_v33, %v3023_v18  ;;  %v3924_v33 = vld [vmem:[%s6828_s22 + $0x50] sm:$0xff]  ;;  %v1859_v59 = vpack.c.bf16 %v1547_v41, %v1539_v31  ;;  %v1042_v31 = vunpack.c.3.s8 %v6095_v17  ;;  %v3927_v41 = vld [vmem:[%s6828_s22 + $0x68] sm:$0xff] }
 0x2a5   : > { %4094 = vperm.xlu1 %6042, %v3924_v33   ;;  %4134 = vperm.xlu0 %6041, %v3932_v16  }
 0x2a6   : > { %v6881_v35 = vadd.f32 %v3360_v22, %v3192_v32  ;;  %v1860_v22 = vpack.c.bf16 %v1548_v45, %v1540_v53  ;;  %v614_v32 = vld [vmem:[%s6293_s10 + $0x338] sm:$0xff]  ;;  %v3935_v53 = vld [vmem:[%s6828_s22 + $0xa8] sm:$0xff]  ;;  %v1043_v45 = vunpack.c.0.s8 %v612_v19 }
 0x2a7   : > { %v2855_v29 = vpop.f32.mrf.mxu2 }
 0x2a8   : > { %v3024_v4 = vpop.f32.mrf.mxu3  ;;  %v2856_v8 = vadd.f32 %v2855_v29, %v6657_v44  ;;  %v1051_v29 = vunpack.c.0.s8 %v614_v32 }
 0x2a9   : > { %v3196_v13 = vpop.f32.mrf.mxu0 }
 0x2aa   : > { %v3025_v9 = vadd.f32 %v3024_v4, %v2856_v8  ;;  %v1044_v4 = vunpack.c.1.s8 %v612_v19  ;;  %v1052_v8 = vunpack.c.1.s8 %v614_v32 }
 0x2ab   : > { %v3365_v18 = vpop.f32.mrf.mxu1 }
 0x2ac   : > { %v3194_v46 = vadd.f32 %v3193_v1, %v3025_v9  ;;  %2897 = vmatmul.bf16.gmra.mxu2 %v1857_v58  ;;  %3235 = vmatmul.bf16.gmra.mxu0 %v1859_v59  ;;  %v1050_v1 = vunpack.c.3.s8 %v6096_v57  ;;  %v1554_v9 = vcvt.s32.f32 %v1042_v31  ;;  %v1556_v17 = vcvt.s32.f32 %v1044_v4 }
 0x2ad   : > { %3066 = vmatmul.bf16.gmra.mxu3 %v1858_v24  ;;  %4109 = vperm.xlu1 %6042, %v3927_v41   ;;  %v1553_v24 = vcvt.s32.f32 %v1041_v11  ;;  %v1564_v57 = vcvt.s32.f32 %v1052_v8  ;;  %v3918_v41 = vld [vmem:[%s6828_s22 + $0x20] sm:$0xff] }
 0x2ae   : > { %v6886_v44 = vadd.f32 %v3362_v23, %v3194_v46  ;;  %3404 = vmatmul.bf16.gmra.mxu1 %v1860_v22  ;;  %4149 = vperm.xlu0 %6041, %v3935_v53   ;;  %v1562_v59 = vcvt.s32.f32 %v1050_v1  ;;  %v1555_v22 = vcvt.s32.f32 %v1043_v45  ;;  %v3930_v53 = vld [vmem:[%s6828_s22 + $0x80] sm:$0xff] }
 0x2af   : > { %v2858_v47 = vpop.f32.mrf.mxu2  ;;  %4064 = vperm.xlu2 %6043, %v3918_v41  }
 0x2b0   : > { %v3027_v12 = vpop.f32.mrf.mxu3  ;;  %v2859_v48 = vadd.f32 %v2858_v47, %v6397_v0  ;;  %v1561_v0 = vcvt.s32.f32 %v1049_v27  ;;  %v1563_v47 = vcvt.s32.f32 %v1051_v29  ;;  %v1866_v11 = vpack.c.bf16 %v1562_v59, %v1554_v9  ;;  %v616_v29 = vld [vmem:[%s6293_s10 + $0x348] sm:$0xff]  ;;  %v6098_v59 = vld [vmem:[%s6293_s10 + $0x350] sm:$0xff] }
 0x2b1   : > { %v3198_v58 = vpop.f32.mrf.mxu0 }
 0x2b2   : > { %v3028_v23 = vadd.f32 %v3027_v12, %v2859_v48  ;;  %v1865_v32 = vpack.c.bf16 %v1561_v0, %v1553_v24  ;;  %v1867_v31 = vpack.c.bf16 %v1563_v47, %v1555_v22  ;;  %v6097_v24 = vld [vmem:[%s6293_s10 + $0x340] sm:$0xff]  ;;  %v618_v0 = vld [vmem:[%s6293_s10 + $0x358] sm:$0xff]  ;;  %v1065_v22 = vunpack.c.2.s8 %v6098_v59 }
 0x2b3   : > { %v3367_v33 = vpop.f32.mrf.mxu1  ;;  %v1066_v47 = vunpack.c.3.s8 %v6098_v59 }
 0x2b4   : > { %v3197_v16 = vadd.f32 %v3196_v13, %v3028_v23  ;;  %v3938_v13 = vld [vmem:[%s6828_s22 + $0xc0] sm:$0xff] }
 0x2b5   : > { %4124 = vperm.xlu1 %6042, %v3930_v53  }
 0x2b6   : > { %v6895_v46 = vadd.f32 %v3365_v18, %v3197_v16  ;;  %v1868_v18 = vpack.c.bf16 %v1564_v57, %v1556_v17  ;;  %4164 = vperm.xlu0 %6041, %v3938_v13   ;;  %v1057_v16 = vunpack.c.2.s8 %v6097_v24  ;;  %v3919_v17 = vld [vmem:[%s6828_s22 + $0x28] sm:$0xff]  ;;  %v3933_v57 = vld [vmem:[%s6828_s22 + $0x98] sm:$0xff] }
 0x2b7   : > { %v2860_v12 = vpop.f32.mrf.mxu2  ;;  %4069 = vperm.xlu2 %6043, %v3919_v17  }
 0x2b8   : > { %v3029_v48 = vpop.f32.mrf.mxu3  ;;  %v2861_v19 = vadd.f32 %v2860_v12, %v6401_v21  ;;  %v3941_v12 = vld [vmem:[%s6828_s22 + $0xd8] sm:$0xff]  ;;  %v1569_v53 = vcvt.s32.f32 %v1057_v16 }
 0x2b9   : > { %v3201_v1 = vpop.f32.mrf.mxu0 }
 0x2ba   : > { %v3030_v27 = vadd.f32 %v3029_v48, %v2861_v19  ;;  %v1067_v19 = vunpack.c.0.s8 %v618_v0 }
 0x2bb   : > { %v3370_v45 = vpop.f32.mrf.mxu1 }
 0x2bc   : > { %v3199_v23 = vadd.f32 %v3198_v58, %v3030_v27  ;;  %2902 = vmatmul.bf16.gmra.mxu2 %v1865_v32  ;;  %3240 = vmatmul.bf16.gmra.mxu0 %v1867_v31  ;;  %v1058_v58 = vunpack.c.3.s8 %v6097_v24  ;;  %v1060_v32 = vunpack.c.1.s8 %v616_v29  ;;  %v1577_v27 = vcvt.s32.f32 %v1065_v22 }
 0x2bd   : > { %3071 = vmatmul.bf16.gmra.mxu3 %v1866_v11  ;;  %4139 = vperm.xlu1 %6042, %v3933_v57   ;;  %v1068_v11 = vunpack.c.1.s8 %v618_v0  ;;  %v1579_v24 = vcvt.s32.f32 %v1067_v19  ;;  %v3922_v57 = vld [vmem:[%s6828_s22 + $0x40] sm:$0xff]  ;;  %v620_v19 = vld [vmem:[%s6293_s10 + $0x368] sm:$0xff] }
 0x2be   : > { %v6901_v21 = vadd.f32 %v3367_v33, %v3199_v23  ;;  %3409 = vmatmul.bf16.gmra.mxu1 %v1868_v18  ;;  %v1059_v33 = vunpack.c.0.s8 %v616_v29  ;;  %4179 = vperm.xlu0 %6041, %v3941_v12   ;;  %v1570_v31 = vcvt.s32.f32 %v1058_v58  ;;  %v1578_v18 = vcvt.s32.f32 %v1066_v47  ;;  %v3936_v12 = vld [vmem:[%s6828_s22 + $0xb0] sm:$0xff] }
 0x2bf   : > { %v2863_v4 = vpop.f32.mrf.mxu2  ;;  %v1572_v59 = vcvt.s32.f32 %v1060_v32  ;;  %v1873_v17 = vpack.c.bf16 %v1577_v27, %v1569_v53  ;;  %4084 = vperm.xlu2 %6043, %v3922_v57   ;;  %v7654_v27 = vld [vmem:[#allocation3_spill] sm:$0xff] }
 0x2c0   : > { %7652 = vst [vmem:[#allocation31_spill] sm:$0xff] %v6901_v21  ;;  %v3032_v8 = vpop.f32.mrf.mxu3  ;;  %v2864_v9 = vadd.f32 %v2863_v4, %v6409_v36  ;;  %v1571_v23 = vcvt.s32.f32 %v1059_v33  ;;  %v1874_v16 = vpack.c.bf16 %v1578_v18, %v1570_v31  ;;  %v3944_v21 = vld [vmem:[%s6828_s22 + $0xf0] sm:$0xff] }
 0x2c1   : > { %v3203_v41 = vpop.f32.mrf.mxu0 }
 0x2c2   : > { %v3033_v48 = vadd.f32 %v3032_v8, %v2864_v9  ;;  %v1580_v8 = vcvt.s32.f32 %v1068_v11  ;;  %v1875_v22 = vpack.c.bf16 %v1579_v24, %v1571_v23 }
 0x2c3   : > { %v3372_v13 = vpop.f32.mrf.mxu1 }
 0x2c4   : > { %v3202_v36 = vadd.f32 %v3201_v1, %v3033_v48 }
 0x2c5   : > { %4154 = vperm.xlu1 %6042, %v3936_v12  }
 0x2c6   : > { %v6911_v4 = vadd.f32 %v3370_v45, %v3202_v36  ;;  %v1876_v45 = vpack.c.bf16 %v1580_v8, %v1572_v59  ;;  %4194 = vperm.xlu0 %6041, %v3944_v21   ;;  %v5944_v21 = vld [vmem:[%s7617_s1 + $0x1c0] sm:$0xff]  ;;  %v622_v36 = vld [vmem:[%s6293_s10 + $0x378] sm:$0xff]  ;;  %v3939_v8 = vld [vmem:[%s6828_s22 + $0xc8] sm:$0xff] }
 0x2c7   : > { %v2865_v9 = vpop.f32.mrf.mxu2  ;;  %3621 = vmatpush.bf16.msra.mxu3 %v5944_v21  ;;  %v3925_v59 = vld [vmem:[%s6828_s22 + $0x58] sm:$0xff]  ;;  %v1084_v57 = vunpack.c.1.s8 %v622_v36 }
 0x2c8   : > { %v3034_v29 = vpop.f32.mrf.mxu3  ;;  %v2866_v0 = vadd.f32 %v2865_v9, %v6419_v60  ;;  %v5936_v60 = vld [vmem:[%s7617_s1 + $0x180] sm:$0xff]  ;;  %v3947_v9 = vld [vmem:[%s6828_s22 + $0x108] sm:$0xff]  ;;  %4099 = vperm.xlu2 %6043, %v3925_v59  }
 0x2c9   : > { %v3206_v58 = vpop.f32.mrf.mxu0  ;;  %3452 = vmatpush.bf16.msra.mxu2 %v5936_v60 }
 0x2ca   : > { %v3035_v1 = vadd.f32 %v3034_v29, %v2866_v0  ;;  %v1075_v29 = vunpack.c.0.s8 %v620_v19 }
 0x2cb   : > { %v3375_v47 = vpop.f32.mrf.mxu1 }
 0x2cc   : > { %v3204_v33 = vadd.f32 %v3203_v41, %v3035_v1  ;;  %2907 = vmatmul.bf16.gmra.mxu2 %v1873_v17  ;;  %3245 = vmatmul.bf16.gmra.mxu0 %v1875_v22  ;;  %v6099_v41 = vld [vmem:[%s6293_s10 + $0x360] sm:$0xff]  ;;  %v1083_v17 = vunpack.c.0.s8 %v622_v36  ;;  %v7655_v36 = vld [vmem:[#allocation4_spill] sm:$0xff] }
 0x2cd   : > { %3076 = vmatmul.bf16.gmra.mxu3 %v1874_v16  ;;  %v1073_v53 = vunpack.c.2.s8 %v6099_v41  ;;  %v1074_v23 = vunpack.c.3.s8 %v6099_v41  ;;  %4169 = vperm.xlu1 %6042, %v3939_v8   ;;  %v1076_v16 = vunpack.c.1.s8 %v620_v19 }
 0x2ce   : > { %v6920_v48 = vadd.f32 %v3372_v13, %v3204_v33  ;;  %3414 = vmatmul.bf16.gmra.mxu1 %v1876_v45  ;;  %v6100_v13 = vld [vmem:[%s6293_s10 + $0x370] sm:$0xff]  ;;  %4209 = vperm.xlu0 %6041, %v3947_v9  }
 0x2cf   : > { %v2868_v32 = vpop.f32.mrf.mxu2  ;;  %v1081_v18 = vunpack.c.2.s8 %v6100_v13  ;;  %v1082_v24 = vunpack.c.3.s8 %v6100_v13  ;;  %v1585_v1 = vcvt.s32.f32 %v1073_v53  ;;  %v1586_v60 = vcvt.s32.f32 %v1074_v23  ;;  %v3928_v9 = vld [vmem:[%s6828_s22 + $0x70] sm:$0xff] }
 0x2d0   : > { %7653 = vst [vmem:[#allocation32_spill] sm:$0xff] %v6920_v48  ;;  %v3037_v11 = vpop.f32.mrf.mxu3  ;;  %v2869_v31 = vadd.f32 %v2868_v32, %v7654_v27  ;;  %v1587_v32 = vcvt.s32.f32 %v1075_v29  ;;  %v1595_v27 = vcvt.s32.f32 %v1083_v17  ;;  %v1588_v13 = vcvt.s32.f32 %v1076_v16  ;;  %v3942_v48 = vld [vmem:[%s6828_s22 + $0xe0] sm:$0xff]  ;;  %4114 = vperm.xlu2 %6043, %v3928_v9   ;;  %v5994_v9 = vld [vmem:[%s7621_s5 + $0x10] sm:$0xff] }
 0x2d1   : > { %v3208_v12 = vpop.f32.mrf.mxu0  ;;  %v1593_v33 = vcvt.s32.f32 %v1081_v18  ;;  %v1594_v21 = vcvt.s32.f32 %v1082_v24  ;;  %4799 = vmatpush.bf16.msra.mxu0 %v5994_v9 }
 0x2d2   : > { %v3038_v0 = vadd.f32 %v3037_v11, %v2869_v31  ;;  %v1596_v11 = vcvt.s32.f32 %v1084_v57  ;;  %v1883_v23 = vpack.c.bf16 %v1595_v27, %v1587_v32  ;;  %v6102_v32 = vld [vmem:[%s6293_s10 + $0x390] sm:$0xff] }
 0x2d3   : > { %v3377_v22 = vpop.f32.mrf.mxu1  ;;  %v1881_v8 = vpack.c.bf16 %v1593_v33, %v1585_v1  ;;  %v1882_v53 = vpack.c.bf16 %v1594_v21, %v1586_v60  ;;  %v6101_v1 = vld [vmem:[%s6293_s10 + $0x380] sm:$0xff]  ;;  %v626_v33 = vld [vmem:[%s6293_s10 + $0x398] sm:$0xff]  ;;  %v7657_v60 = vld [vmem:[#allocation5_spill] sm:$0xff]  ;;  %v1097_v27 = vunpack.c.2.s8 %v6102_v32 }
 0x2d4   : > { %v3207_v45 = vadd.f32 %v3206_v58, %v3038_v0  ;;  %v3950_v58 = vld [vmem:[%s6828_s22 + $0x120] sm:$0xff] }
 0x2d5   : > { %4184 = vperm.xlu1 %6042, %v3942_v48   ;;  %v624_v48 = vld [vmem:[%s6293_s10 + $0x388] sm:$0xff] }
 0x2d6   : > { %v6933_v41 = vadd.f32 %v3375_v47, %v3207_v45  ;;  %v1884_v47 = vpack.c.bf16 %v1596_v11, %v1588_v13  ;;  %4224 = vperm.xlu0 %6041, %v3950_v58   ;;  %v1089_v45 = vunpack.c.2.s8 %v6101_v1  ;;  %v1098_v13 = vunpack.c.3.s8 %v6102_v32  ;;  %v3931_v11 = vld [vmem:[%s6828_s22 + $0x88] sm:$0xff]  ;;  %v5954_v58 = vld [vmem:[%s7620_s4 + $0x10] sm:$0xff] }
 0x2d7   : > { %v2870_v31 = vpop.f32.mrf.mxu2  ;;  %5016 = vmatpush.bf16.msra.mxu1 %v5954_v58  ;;  %v628_v58 = vld [vmem:[%s6293_s10 + $0x3a8] sm:$0xff] }
 0x2d8   : > { %v3039_v19 = vpop.f32.mrf.mxu3  ;;  %v2871_v59 = vadd.f32 %v2870_v31, %v7655_v36  ;;  %v3945_v31 = vld [vmem:[%s6828_s22 + $0xf8] sm:$0xff]  ;;  %4129 = vperm.xlu2 %6043, %v3931_v11  }
 0x2d9   : > { %v3211_v24 = vpop.f32.mrf.mxu0 }
 0x2da   : > { %v3040_v18 = vadd.f32 %v3039_v19, %v2871_v59  ;;  %v3953_v19 = vld [vmem:[%s6828_s22 + $0x138] sm:$0xff]  ;;  %v1099_v59 = vunpack.c.0.s8 %v626_v33 }
 0x2db   : > { %v3380_v29 = vpop.f32.mrf.mxu1 }
 0x2dc   : > { %v3209_v0 = vadd.f32 %v3208_v12, %v3040_v18  ;;  %2912 = vmatmul.bf16.gmra.mxu2 %v1881_v8  ;;  %3250 = vmatmul.bf16.gmra.mxu0 %v1883_v23  ;;  %v1090_v12 = vunpack.c.3.s8 %v6101_v1  ;;  %v1092_v8 = vunpack.c.1.s8 %v624_v48  ;;  %v1601_v23 = vcvt.s32.f32 %v1089_v45 }
 0x2dd   : > { %3081 = vmatmul.bf16.gmra.mxu3 %v1882_v53  ;;  %4199 = vperm.xlu1 %6042, %v3945_v31   ;;  %v1100_v53 = vunpack.c.1.s8 %v626_v33 }
 0x2de   : > { %v6939_v17 = vadd.f32 %v3377_v22, %v3209_v0  ;;  %3419 = vmatmul.bf16.gmra.mxu1 %v1884_v47  ;;  %v1091_v22 = vunpack.c.0.s8 %v624_v48  ;;  %4239 = vperm.xlu0 %6041, %v3953_v19   ;;  %v1610_v48 = vcvt.s32.f32 %v1098_v13  ;;  %v7658_v19 = vld [vmem:[#allocation6_spill] sm:$0xff] }
 0x2df   : > { %v2873_v16 = vpop.f32.mrf.mxu2  ;;  %v1612_v32 = vcvt.s32.f32 %v1100_v53 }
 0x2e0   : > { %7656 = vst [vmem:[#allocation3_spill] sm:$0xff] %v6939_v17  ;;  %v3042_v57 = vpop.f32.mrf.mxu3  ;;  %v2874_v21 = vadd.f32 %v2873_v16, %v7657_v60  ;;  %v1609_v16 = vcvt.s32.f32 %v1097_v27  ;;  %v1603_v1 = vcvt.s32.f32 %v1091_v22  ;;  %v1611_v60 = vcvt.s32.f32 %v1099_v59  ;;  %v3948_v27 = vld [vmem:[%s6828_s22 + $0x110] sm:$0xff] }
 0x2e1   : > { %v3213_v18 = vpop.f32.mrf.mxu0 }
 0x2e2   : > { %v3043_v36 = vadd.f32 %v3042_v57, %v2874_v21  ;;  %v1602_v57 = vcvt.s32.f32 %v1090_v12  ;;  %v1604_v21 = vcvt.s32.f32 %v1092_v8  ;;  %v1889_v17 = vpack.c.bf16 %v1609_v16, %v1601_v23  ;;  %v3956_v12 = vld [vmem:[%s6828_s22 + $0x150] sm:$0xff]  ;;  %v6103_v16 = vld [vmem:[%s6293_s10 + $0x3a0] sm:$0xff] }
 0x2e3   : > { %v3382_v47 = vpop.f32.mrf.mxu1  ;;  %v1891_v22 = vpack.c.bf16 %v1611_v60, %v1603_v1  ;;  %v7660_v1 = vld [vmem:[#allocation7_spill] sm:$0xff] }
 0x2e4   : > { %v3212_v0 = vadd.f32 %v3211_v24, %v3043_v36  ;;  %v1890_v24 = vpack.c.bf16 %v1610_v48, %v1602_v57  ;;  %v3934_v36 = vld [vmem:[%s6828_s22 + $0xa0] sm:$0xff]  ;;  %v1105_v57 = vunpack.c.2.s8 %v6103_v16  ;;  %v630_v48 = vld [vmem:[%s6293_s10 + $0x3b8] sm:$0xff] }
 0x2e5   : > { %4144 = vperm.xlu2 %6043, %v3934_v36   ;;  %4214 = vperm.xlu1 %6042, %v3948_v27   ;;  %v1108_v36 = vunpack.c.1.s8 %v628_v58  ;;  %v1116_v27 = vunpack.c.1.s8 %v630_v48 }
 0x2e6   : > { %v6955_v33 = vadd.f32 %v3380_v29, %v3212_v0  ;;  %v1892_v29 = vpack.c.bf16 %v1612_v32, %v1604_v21  ;;  %4254 = vperm.xlu0 %6041, %v3956_v12   ;;  %v6104_v21 = vld [vmem:[%s6293_s10 + $0x3b0] sm:$0xff] }
 0x2e7   : > { %v2875_v11 = vpop.f32.mrf.mxu2  ;;  %v1113_v32 = vunpack.c.2.s8 %v6104_v21 }
 0x2e8   : > { %v3044_v31 = vpop.f32.mrf.mxu3  ;;  %v2876_v45 = vadd.f32 %v2875_v11, %v7658_v19  ;;  %v3937_v11 = vld [vmem:[%s6828_s22 + $0xb8] sm:$0xff]  ;;  %v3959_v19 = vld [vmem:[%s6828_s22 + $0x168] sm:$0xff] }
 0x2e9   : > { %v3216_v59 = vpop.f32.mrf.mxu0 }
 0x2ea   : > { %v3045_v13 = vadd.f32 %v3044_v31, %v2876_v45  ;;  %v3951_v31 = vld [vmem:[%s6828_s22 + $0x128] sm:$0xff] }
 0x2eb   : > { %v3385_v8 = vpop.f32.mrf.mxu1 }
 0x2ec   : > { %v3214_v53 = vadd.f32 %v3213_v18, %v3045_v13  ;;  %2917 = vmatmul.bf16.gmra.mxu2 %v1889_v17  ;;  %3255 = vmatmul.bf16.gmra.mxu0 %v1891_v22  ;;  %v1106_v18 = vunpack.c.3.s8 %v6103_v16  ;;  %v1114_v17 = vunpack.c.3.s8 %v6104_v21  ;;  %v1617_v13 = vcvt.s32.f32 %v1105_v57 }
 0x2ed   : > { %3086 = vmatmul.bf16.gmra.mxu3 %v1890_v24  ;;  %4159 = vperm.xlu2 %6043, %v3937_v11   ;;  %v1115_v24 = vunpack.c.0.s8 %v630_v48 }
 0x2ee   : > { %v6961_v9 = vadd.f32 %v3382_v47, %v3214_v53  ;;  %3424 = vmatmul.bf16.gmra.mxu1 %v1892_v29  ;;  %v1107_v47 = vunpack.c.0.s8 %v628_v58  ;;  %4229 = vperm.xlu1 %6042, %v3951_v31   ;;  %v1625_v53 = vcvt.s32.f32 %v1113_v32  ;;  %v1626_v16 = vcvt.s32.f32 %v1114_v17  ;;  %v7664_v31 = vld [vmem:[#allocation8_spill] sm:$0xff] }
 0x2ef   : > { %v2878_v23 = vpop.f32.mrf.mxu2  ;;  %4269 = vperm.xlu0 %6041, %v3959_v19   ;;  %v1628_v58 = vcvt.s32.f32 %v1116_v27 }
 0x2f0   : > { %7659 = vst [vmem:[#allocation4_spill] sm:$0xff] %v6961_v9  ;;  %v3047_v0 = vpop.f32.mrf.mxu3  ;;  %v2879_v60 = vadd.f32 %v2878_v23, %v7660_v1  ;;  %v1618_v23 = vcvt.s32.f32 %v1106_v18  ;;  %v1619_v1 = vcvt.s32.f32 %v1107_v47  ;;  %v1897_v57 = vpack.c.bf16 %v1625_v53, %v1617_v13  ;;  %v3954_v9 = vld [vmem:[%s6828_s22 + $0x140] sm:$0xff]  ;;  %v634_v13 = vld [vmem:[%s6293_s10 + $0x3d8] sm:$0xff]  ;;  %v6106_v53 = vld [vmem:[%s6293_s10 + $0x3d0] sm:$0xff] }
 0x2f1   : > { %v6971_v12 = vpop.f32.mrf.mxu0 }
 0x2f2   : > { %v3048_v45 = vadd.f32 %v3047_v0, %v2879_v60  ;;  %7661 = vst [vmem:[#allocation5_spill] sm:$0xff] %v6971_v12  ;;  %v1627_v0 = vcvt.s32.f32 %v1115_v24  ;;  %v1620_v60 = vcvt.s32.f32 %v1108_v36  ;;  %v1898_v12 = vpack.c.bf16 %v1626_v16, %v1618_v23 }
 0x2f3   : > { %v6973_v22 = vpop.f32.mrf.mxu1  ;;  %v1129_v23 = vunpack.c.2.s8 %v6106_v53 }
 0x2f4   : > { %7662 = vst [vmem:[#allocation6_spill] sm:$0xff] %v6973_v22  ;;  %v3217_v29 = vadd.f32 %v3216_v59, %v3048_v45  ;;  %v3940_v22 = vld [vmem:[%s6828_s22 + $0xd0] sm:$0xff]  ;;  %v3962_v59 = vld [vmem:[%s6828_s22 + $0x180] sm:$0xff]  ;;  %v1900_v18 = vpack.c.bf16 %v1628_v58, %v1620_v60  ;;  %v632_v45 = vld [vmem:[%s6293_s10 + $0x3c8] sm:$0xff] }
 0x2f5   : > { %4174 = vperm.xlu2 %6043, %v3940_v22   ;;  %v7666_v22 = vld [vmem:[#allocation9_spill] sm:$0xff]  ;;  %v3957_v60 = vld [vmem:[%s6828_s22 + $0x158] sm:$0xff] }
 0x2f6   : > { %v6975_v21 = vadd.f32 %v3385_v8, %v3217_v29  ;;  %4244 = vperm.xlu1 %6042, %v3954_v9   ;;  %v1899_v8 = vpack.c.bf16 %v1627_v0, %v1619_v1  ;;  %v6105_v9 = vld [vmem:[%s6293_s10 + $0x3c0] sm:$0xff]  ;;  %v1130_v1 = vunpack.c.3.s8 %v6106_v53  ;;  %v3943_v0 = vld [vmem:[%s6828_s22 + $0xe8] sm:$0xff]  ;;  %v3965_v58 = vld [vmem:[%s6828_s22 + $0x198] sm:$0xff] }
 0x2f7   : > { %v2880_v48 = vpop.f32.mrf.mxu2  ;;  %4284 = vperm.xlu0 %6041, %v3962_v59   ;;  %v1121_v27 = vunpack.c.2.s8 %v6105_v9  ;;  %v1122_v16 = vunpack.c.3.s8 %v6105_v9 }
 0x2f8   : > { %7663 = vst [vmem:[#allocation7_spill] sm:$0xff] %v6975_v21  ;;  %v3049_v11 = vpop.f32.mrf.mxu3  ;;  %v2881_v19 = vadd.f32 %v2880_v48, %v7664_v31  ;;  %v1123_v48 = vunpack.c.0.s8 %v632_v45  ;;  %v1124_v31 = vunpack.c.1.s8 %v632_v45 }
 0x2f9   : > { %v3221_v17 = vpop.f32.mrf.mxu0  ;;  %v1633_v59 = vcvt.s32.f32 %v1121_v27  ;;  %v1634_v9 = vcvt.s32.f32 %v1122_v16 }
 0x2fa   : > { %v6981_v32 = vadd.f32 %v3049_v11, %v2881_v19  ;;  %v1131_v11 = vunpack.c.0.s8 %v634_v13  ;;  %v1132_v19 = vunpack.c.1.s8 %v634_v13  ;;  %v1635_v53 = vcvt.s32.f32 %v1123_v48 }
 0x2fb   : > { %v3390_v47 = vpop.f32.mrf.mxu1 }
 0x2fc   : > { %7665 = vst [vmem:[#allocation8_spill] sm:$0xff] %v6981_v32  ;;  %2922 = vmatmul.bf16.gmra.mxu2 %v1897_v57  ;;  %3260 = vmatmul.bf16.gmra.mxu0 %v1899_v8  ;;  %v1644_v45 = vcvt.s32.f32 %v1132_v19  ;;  %v3960_v32 = vld [vmem:[%s6828_s22 + $0x170] sm:$0xff] }
 0x2fd   : > { %3091 = vmatmul.bf16.gmra.mxu3 %v1898_v12  ;;  %4189 = vperm.xlu2 %6043, %v3943_v0  }
 0x2fe   : > { %3429 = vmatmul.bf16.gmra.mxu1 %v1900_v18  ;;  %4259 = vperm.xlu1 %6042, %v3957_v60  }
 0x2ff   : > { %v2883_v24 = vpop.f32.mrf.mxu2  ;;  %4299 = vperm.xlu0 %6041, %v3965_v58   ;;  %v7670_v58 = vld [vmem:[#allocation10_spill] sm:$0xff] }
 0x300   : > { %v3052_v36 = vpop.f32.mrf.mxu3  ;;  %v2884_v29 = vadd.f32 %v2883_v24, %v7666_v22  ;;  %v1641_v24 = vcvt.s32.f32 %v1129_v23  ;;  %v1642_v22 = vcvt.s32.f32 %v1130_v1 }
 0x301   : > { %v6991_v57 = vpop.f32.mrf.mxu0 }
 0x302   : > { %v3053_v12 = vadd.f32 %v3052_v36, %v2884_v29  ;;  %7667 = vst [vmem:[#allocation9_spill] sm:$0xff] %v6991_v57  ;;  %v1643_v36 = vcvt.s32.f32 %v1131_v11  ;;  %v1636_v29 = vcvt.s32.f32 %v1124_v31  ;;  %v1905_v27 = vpack.c.bf16 %v1641_v24, %v1633_v59  ;;  %v7672_v59 = vld [vmem:[#allocation11_spill] sm:$0xff] }
 0x303   : > { %v6993_v8 = vpop.f32.mrf.mxu1  ;;  %v1906_v21 = vpack.c.bf16 %v1642_v22, %v1634_v9 }
 0x304   : > { %7668 = vst [vmem:[#allocation33_spill] sm:$0xff] %v6993_v8  ;;  %v3222_v18 = vadd.f32 %v3221_v17, %v3053_v12  ;;  %v3946_v8 = vld [vmem:[%s6828_s22 + $0x100] sm:$0xff]  ;;  %v3968_v17 = vld [vmem:[%s6828_s22 + $0x1b0] sm:$0xff]  ;;  %v1908_v16 = vpack.c.bf16 %v1644_v45, %v1636_v29  ;;  %v636_v12 = vld [vmem:[%s6293_s10 + $0x3e8] sm:$0xff] }
 0x305   : > { %4204 = vperm.xlu2 %6043, %v3946_v8   ;;  %v3971_v29 = vld [vmem:[%s6828_s22 + $0x1c8] sm:$0xff]  ;;  %v1139_v45 = vunpack.c.0.s8 %v636_v12 }
 0x306   : > { %v6995_v0 = vadd.f32 %v3390_v47, %v3222_v18  ;;  %4274 = vperm.xlu1 %6042, %v3960_v32   ;;  %v1907_v47 = vpack.c.bf16 %v1643_v36, %v1635_v53  ;;  %v6107_v32 = vld [vmem:[%s6293_s10 + $0x3e0] sm:$0xff]  ;;  %v6108_v18 = vld [vmem:[%s6293_s10 + $0x3f0] sm:$0xff]  ;;  %v3949_v53 = vld [vmem:[%s6828_s22 + $0x118] sm:$0xff] }
 0x307   : > { %v2885_v13 = vpop.f32.mrf.mxu2  ;;  %4314 = vperm.xlu0 %6041, %v3968_v17   ;;  %v1137_v19 = vunpack.c.2.s8 %v6107_v32  ;;  %v1145_v24 = vunpack.c.2.s8 %v6108_v18  ;;  %v1138_v9 = vunpack.c.3.s8 %v6107_v32  ;;  %v1146_v22 = vunpack.c.3.s8 %v6108_v18  ;;  %v3963_v36 = vld [vmem:[%s6828_s22 + $0x188] sm:$0xff] }
 0x308   : > { %7669 = vst [vmem:[#allocation34_spill] sm:$0xff] %v6995_v0  ;;  %v3054_v60 = vpop.f32.mrf.mxu3  ;;  %v2886_v57 = vadd.f32 %v2885_v13, %v7670_v58  ;;  %v1651_v18 = vcvt.s32.f32 %v1139_v45 }
 0x309   : > { %v3226_v1 = vpop.f32.mrf.mxu0  ;;  %v1649_v17 = vcvt.s32.f32 %v1137_v19  ;;  %v1650_v32 = vcvt.s32.f32 %v1138_v9 }
 0x30a   : > { %v7001_v23 = vadd.f32 %v3054_v60, %v2886_v57  ;;  %v638_v57 = vld [vmem:[%s6293_s10 + $0x3f8] sm:$0xff]  ;;  %v1140_v60 = vunpack.c.1.s8 %v636_v12 }
 0x30b   : > { %v3395_v48 = vpop.f32.mrf.mxu1  ;;  %v1147_v13 = vunpack.c.0.s8 %v638_v57  ;;  %v1148_v58 = vunpack.c.1.s8 %v638_v57 }
 0x30c   : > { %7671 = vst [vmem:[#allocation10_spill] sm:$0xff] %v7001_v23  ;;  %2927 = vmatmul.bf16.gmra.mxu2 %v1905_v27  ;;  %3265 = vmatmul.bf16.gmra.mxu0 %v1907_v47  ;;  %v3952_v23 = vld [vmem:[%s6828_s22 + $0x130] sm:$0xff] }
 0x30d   : > { %3096 = vmatmul.bf16.gmra.mxu3 %v1906_v21  ;;  %4219 = vperm.xlu2 %6043, %v3949_v53   ;;  %v1660_v12 = vcvt.s32.f32 %v1148_v58  ;;  %v7676_v58 = vld [vmem:[#allocation13_spill] sm:$0xff] }
 0x30e   : > { %3434 = vmatmul.bf16.gmra.mxu1 %v1908_v16  ;;  %4289 = vperm.xlu1 %6042, %v3963_v36  }
 0x30f   : > { %v2888_v11 = vpop.f32.mrf.mxu2  ;;  %4329 = vperm.xlu0 %6041, %v3971_v29   ;;  %v7675_v29 = vld [vmem:[#allocation12_spill] sm:$0xff] }
 0x310   : > { %v3057_v31 = vpop.f32.mrf.mxu3  ;;  %v2889_v8 = vadd.f32 %v2888_v11, %v7672_v59  ;;  %v1657_v11 = vcvt.s32.f32 %v1145_v24  ;;  %v1658_v59 = vcvt.s32.f32 %v1146_v22 }
 0x311   : > { %v7011_v27 = vpop.f32.mrf.mxu0 }
 0x312   : > { %v3058_v21 = vadd.f32 %v3057_v31, %v2889_v8  ;;  %7673 = vst [vmem:[#allocation11_spill] sm:$0xff] %v7011_v27  ;;  %v1659_v31 = vcvt.s32.f32 %v1147_v13  ;;  %v1652_v8 = vcvt.s32.f32 %v1140_v60  ;;  %v1913_v19 = vpack.c.bf16 %v1657_v11, %v1649_v17  ;;  %v6109_v60 = vld [vmem:[%s6293_s10 + $0x8] sm:$0xff] }
 0x313   : > { %v7013_v47 = vpop.f32.mrf.mxu1  ;;  %v1914_v0 = vpack.c.bf16 %v1658_v59, %v1650_v32  ;;  %v3955_v32 = vld [vmem:[%s6828_s22 + $0x148] sm:$0xff]  ;;  %v3969_v59 = vld [vmem:[%s6828_s22 + $0x1b8] sm:$0xff] }
 0x314   : > { %7674 = vst [vmem:[#allocation35_spill] sm:$0xff] %v7013_v47  ;;  %v3227_v16 = vadd.f32 %v3226_v1, %v3058_v21  ;;  %v3966_v47 = vld [vmem:[%s6828_s22 + $0x1a0] sm:$0xff]  ;;  %v1916_v9 = vpack.c.bf16 %v1660_v12, %v1652_v8  ;;  %v5953_v8 = vld [vmem:[%s7620_s4 + $0x8] sm:$0xff] }
 0x315   : > { %v3974_v1 = vld [vmem:[%s6828_s22 + $0x1e0] sm:$0xff]  ;;  %4234 = vperm.xlu2 %6043, %v3952_v23   ;;  %v645_v23 = vunpack.c.2.s8 %v6109_v60  ;;  %5017 = vmatpush.bf16.msra.mxu1 %v5953_v8  ;;  %v6112_v8 = vld [vmem:[%s6293_s10 + $0x38] sm:$0xff] }
 0x316   : > { %v7015_v53 = vadd.f32 %v3395_v48, %v3227_v16  ;;  %4304 = vperm.xlu1 %6042, %v3966_v47   ;;  %v1915_v48 = vpack.c.bf16 %v1659_v31, %v1651_v18  ;;  %v646_v16 = vunpack.c.3.s8 %v6109_v60  ;;  %v3977_v18 = vld [vmem:[%s6828_s22 + $0x1f8] sm:$0xff] }
 0x317   : > { %v2890_v57 = vpop.f32.mrf.mxu2  ;;  %4344 = vperm.xlu0 %6041, %v3974_v1   ;;  %v7679_v60 = vld [vmem:[#allocation14_spill] sm:$0xff] }
 0x318   : > { %v3059_v36 = vpop.f32.mrf.mxu3  ;;  %v2891_v27 = vadd.f32 %v2890_v57, %v7675_v29  ;;  %v1157_v57 = vcvt.s32.f32 %v645_v23  ;;  %v1158_v1 = vcvt.s32.f32 %v646_v16  ;;  %v3972_v23 = vld [vmem:[%s6828_s22 + $0x1d0] sm:$0xff] }
 0x319   : > { %v3231_v22 = vpop.f32.mrf.mxu0 }
 0x31a   : > { %v7021_v24 = vadd.f32 %v3059_v36, %v2891_v27  ;;  %v6110_v27 = vld [vmem:[%s6293_s10 + $0x18] sm:$0xff] }
 0x31b   : > { %v3400_v45 = vpop.f32.mrf.mxu1  ;;  %v653_v47 = vunpack.c.2.s8 %v6110_v27  ;;  %v654_v11 = vunpack.c.3.s8 %v6110_v27 }
 0x31c   : > { %2932 = vmatmul.bf16.gmra.mxu2 %v1913_v19  ;;  %3270 = vmatmul.bf16.gmra.mxu0 %v1915_v48 }
 0x31d   : > { %3101 = vmatmul.bf16.gmra.mxu3 %v1914_v0  ;;  %4249 = vperm.xlu2 %6043, %v3955_v32   ;;  %v5993_v0 = vld [vmem:[%s7621_s5 + $0x8] sm:$0xff]  ;;  %v1165_v19 = vcvt.s32.f32 %v653_v47  ;;  %v1166_v48 = vcvt.s32.f32 %v654_v11  ;;  %v3958_v32 = vld [vmem:[%s6828_s22 + $0x160] sm:$0xff] }
 0x31e   : > { %3439 = vmatmul.bf16.gmra.mxu1 %v1916_v9  ;;  %4319 = vperm.xlu1 %6042, %v3969_v59   ;;  %v6111_v59 = vld [vmem:[%s6293_s10 + $0x28] sm:$0xff] }
 0x31f   : > { %v2893_v21 = vpop.f32.mrf.mxu2  ;;  %4359 = vperm.xlu0 %6041, %v3977_v18   ;;  %4800 = vmatpush.bf16.msra.mxu0 %v5993_v0  ;;  %v1670_v27 = vpack.c.bf16 %v1166_v48, %v1158_v1  ;;  %v661_v18 = vunpack.c.2.s8 %v6111_v59  ;;  %v3961_v1 = vld [vmem:[%s6828_s22 + $0x178] sm:$0xff]  ;;  %v3975_v48 = vld [vmem:[%s6828_s22 + $0x1e8] sm:$0xff] }
 0x320   : > { %v3062_v13 = vpop.f32.mrf.mxu3  ;;  %v2894_v17 = vadd.f32 %v2893_v21, %v7676_v58 }
 0x321   : > { %v7035_v12 = vpop.f32.mrf.mxu0 }
 0x322   : > { %v3063_v31 = vadd.f32 %v3062_v13, %v2894_v17  ;;  %v1669_v17 = vpack.c.bf16 %v1165_v19, %v1157_v57  ;;  %v669_v57 = vunpack.c.2.s8 %v6112_v8  ;;  %v670_v19 = vunpack.c.3.s8 %v6112_v8  ;;  %v7684_v8 = vld [vmem:[#allocation16_spill] sm:$0xff] }
 0x323   : > { %v7037_v36 = vpop.f32.mrf.mxu1 }
 0x324   : > { %7677 = vst [vmem:[#allocation12_spill] sm:$0xff] %v7037_v36  ;;  %v3232_v29 = vadd.f32 %v3231_v22, %v3063_v31  ;;  %v7680_v31 = vld [vmem:[#allocation15_spill] sm:$0xff] }
 0x325   : > { %4264 = vperm.xlu2 %6043, %v3958_v32  }
 0x326   : > { %v7039_v9 = vadd.f32 %v3400_v45, %v3232_v29  ;;  %4334 = vperm.xlu1 %6042, %v3972_v23   ;;  %v662_v29 = vunpack.c.3.s8 %v6111_v59  ;;  %v1182_v23 = vcvt.s32.f32 %v670_v19 }
 0x327   : > { %v2895_v21 = vpop.f32.mrf.mxu2 }
 0x328   : > { %7678 = vst [vmem:[#allocation13_spill] sm:$0xff] %v7039_v9  ;;  %v3064_v13 = vpop.f32.mrf.mxu3  ;;  %v2896_v58 = vadd.f32 %v2895_v21, %v7679_v60  ;;  %v1173_v60 = vcvt.s32.f32 %v661_v18  ;;  %v1174_v32 = vcvt.s32.f32 %v662_v29 }
 0x329   : > { %v3236_v47 = vpop.f32.mrf.mxu0 }
 0x32a   : > { %v7044_v22 = vadd.f32 %v3064_v13, %v2896_v58 }
 0x32b   : > { %v3405_v16 = vpop.f32.mrf.mxu1 }
 0x32c   : > { %3453 = vmatmul.bf16.vlgmr.msra.gmra.mxu2 %v1669_v17 }
 0x32d   : > { %3622 = vmatmul.bf16.vlgmr.msra.gmra.mxu3 %v1670_v27  ;;  %4279 = vperm.xlu2 %6043, %v3961_v1   ;;  %v1181_v27 = vcvt.s32.f32 %v669_v57 }
 0x32e   : > { %4349 = vperm.xlu1 %6042, %v3975_v48   ;;  %v1678_v48 = vpack.c.bf16 %v1182_v23, %v1174_v32 }
 0x32f   : > { %v2898_v45 = vpop.f32.mrf.mxu2  ;;  %v1677_v36 = vpack.c.bf16 %v1181_v27, %v1173_v60  ;;  %v3967_v27 = vld [vmem:[%s6828_s22 + $0x1a8] sm:$0xff] }
 0x330   : > { %v3067_v11 = vpop.f32.mrf.mxu3  ;;  %v2899_v0 = vadd.f32 %v2898_v45, %v7680_v31 }
 0x331   : > { %v7051_v13 = vpop.f32.mrf.mxu0 }
 0x332   : > { %v3068_v21 = vadd.f32 %v3067_v11, %v2899_v0  ;;  %7681 = vst [vmem:[#allocation14_spill] sm:$0xff] %v7051_v13  ;;  %v3964_v11 = vld [vmem:[%s6828_s22 + $0x190] sm:$0xff] }
 0x333   : > { %v7053_v58 = vpop.f32.mrf.mxu1 }
 0x334   : > { %7682 = vst [vmem:[#allocation15_spill] sm:$0xff] %v7053_v58  ;;  %v3237_v17 = vadd.f32 %v3236_v47, %v3068_v21  ;;  %v7686_v21 = vld [vmem:[#allocation17_spill] sm:$0xff]  ;;  %v6114_v58 = vld [vmem:[%s6293_s10 + $0x58] sm:$0xff] }
 0x335   : > { %4294 = vperm.xlu2 %6043, %v3964_v11   ;;  %v686_v60 = vunpack.c.3.s8 %v6114_v58 }
 0x336   : > { %v7055_v45 = vadd.f32 %v3405_v16, %v3237_v17  ;;  %v6113_v16 = vld [vmem:[%s6293_s10 + $0x48] sm:$0xff] }
 0x337   : > { %v2900_v59 = vpop.f32.mrf.mxu2  ;;  %v677_v19 = vunpack.c.2.s8 %v6113_v16  ;;  %v1198_v11 = vcvt.s32.f32 %v686_v60 }
 0x338   : > { %7683 = vst [vmem:[#allocation36_spill] sm:$0xff] %v7055_v45  ;;  %v3069_v31 = vpop.f32.mrf.mxu3  ;;  %v2901_v1 = vadd.f32 %v2900_v59, %v7684_v8  ;;  %v685_v45 = vunpack.c.2.s8 %v6114_v58  ;;  %v678_v59 = vunpack.c.3.s8 %v6113_v16  ;;  %v7690_v16 = vld [vmem:[#allocation18_spill] sm:$0xff] }
 0x339   : > { %v3241_v0 = vpop.f32.mrf.mxu0 }
 0x33a   : > { %v7059_v18 = vadd.f32 %v3069_v31, %v2901_v1  ;;  %v1189_v31 = vcvt.s32.f32 %v677_v19  ;;  %v1197_v1 = vcvt.s32.f32 %v685_v45 }
 0x33b   : > { %v3410_v47 = vpop.f32.mrf.mxu1 }
 0x33c   : > { %7685 = vst [vmem:[#allocation16_spill] sm:$0xff] %v7059_v18  ;;  %3458 = vmatmul.bf16.gmra.mxu2 %v1677_v36  ;;  %v1685_v18 = vpack.c.bf16 %v1197_v1, %v1189_v31  ;;  %v3973_v1 = vld [vmem:[%s6828_s22 + $0x1d8] sm:$0xff] }
 0x33d   : > { %3627 = vmatmul.bf16.gmra.mxu3 %v1678_v48  ;;  %4309 = vperm.xlu2 %6043, %v3967_v27   ;;  %v1190_v48 = vcvt.s32.f32 %v678_v59 }
 0x33f   : > { %v2903_v57 = vpop.f32.mrf.mxu2  ;;  %v1686_v27 = vpack.c.bf16 %v1198_v11, %v1190_v48 }
 0x340   : > { %v3072_v29 = vpop.f32.mrf.mxu3  ;;  %v2904_v17 = vadd.f32 %v2903_v57, %v7686_v21 }
 0x341   : > { %v7065_v23 = vpop.f32.mrf.mxu0 }
 0x342   : > { %v3073_v32 = vadd.f32 %v3072_v29, %v2904_v17  ;;  %7687 = vst [vmem:[#allocation17_spill] sm:$0xff] %v7065_v23  ;;  %v3970_v29 = vld [vmem:[%s6828_s22 + $0x1c0] sm:$0xff] }
 0x343   : > { %v7067_v8 = vpop.f32.mrf.mxu1 }
 0x344   : > { %7688 = vst [vmem:[#allocation37_spill] sm:$0xff] %v7067_v8  ;;  %v3242_v36 = vadd.f32 %v3241_v0, %v3073_v32  ;;  %v7692_v32 = vld [vmem:[#allocation19_spill] sm:$0xff]  ;;  %v6116_v8 = vld [vmem:[%s6293_s10 + $0x78] sm:$0xff] }
 0x345   : > { %4324 = vperm.xlu2 %6043, %v3970_v29   ;;  %v702_v31 = vunpack.c.3.s8 %v6116_v8 }
 0x346   : > { %v7069_v13 = vadd.f32 %v3410_v47, %v3242_v36  ;;  %v6115_v47 = vld [vmem:[%s6293_s10 + $0x68] sm:$0xff] }
 0x347   : > { %v2905_v57 = vpop.f32.mrf.mxu2  ;;  %v693_v60 = vunpack.c.2.s8 %v6115_v47  ;;  %v1214_v29 = vcvt.s32.f32 %v702_v31  ;;  %v7698_v31 = vld [vmem:[#allocation21_spill] sm:$0xff] }
 0x348   : > { %7689 = vst [vmem:[#allocation38_spill] sm:$0xff] %v7069_v13  ;;  %v3074_v21 = vpop.f32.mrf.mxu3  ;;  %v2906_v58 = vadd.f32 %v2905_v57, %v7690_v16  ;;  %v701_v13 = vunpack.c.2.s8 %v6116_v8  ;;  %v694_v57 = vunpack.c.3.s8 %v6115_v47  ;;  %v7696_v47 = vld [vmem:[#allocation20_spill] sm:$0xff] }
 0x349   : > { %v3246_v17 = vpop.f32.mrf.mxu0 }
 0x34a   : > { %v7073_v19 = vadd.f32 %v3074_v21, %v2906_v58  ;;  %v1205_v21 = vcvt.s32.f32 %v693_v60  ;;  %v1213_v58 = vcvt.s32.f32 %v701_v13 }
 0x34b   : > { %v3415_v0 = vpop.f32.mrf.mxu1 }
 0x34c   : > { %7691 = vst [vmem:[#allocation18_spill] sm:$0xff] %v7073_v19  ;;  %3463 = vmatmul.bf16.gmra.mxu2 %v1685_v18  ;;  %v1693_v19 = vpack.c.bf16 %v1213_v58, %v1205_v21  ;;  %v5992_v58 = vld [vmem:[%s7621_s5] sm:$0xff] }
 0x34d   : > { %3632 = vmatmul.bf16.gmra.mxu3 %v1686_v27  ;;  %4339 = vperm.xlu2 %6043, %v3973_v1   ;;  %v1206_v27 = vcvt.s32.f32 %v694_v57  ;;  %v6117_v57 = vld [vmem:[%s6293_s10 + $0x88] sm:$0xff] }
 0x34e   : > { %4801 = vmatpush.bf16.msra.mxu0 %v5992_v58  ;;  %v6120_v58 = vld [vmem:[%s6293_s10 + $0xb8] sm:$0xff] }
 0x34f   : > { %v2908_v45 = vpop.f32.mrf.mxu2  ;;  %v1694_v1 = vpack.c.bf16 %v1214_v29, %v1206_v27 }
 0x350   : > { %v3077_v59 = vpop.f32.mrf.mxu3  ;;  %v2909_v36 = vadd.f32 %v2908_v45, %v7692_v32 }
 0x351   : > { %v7079_v11 = vpop.f32.mrf.mxu0 }
 0x352   : > { %v3078_v48 = vadd.f32 %v3077_v59, %v2909_v36  ;;  %7693 = vst [vmem:[#allocation19_spill] sm:$0xff] %v7079_v11  ;;  %v3976_v59 = vld [vmem:[%s6828_s22 + $0x1f0] sm:$0xff]  ;;  %v710_v11 = vunpack.c.3.s8 %v6117_v57 }
 0x353   : > { %v7081_v16 = vpop.f32.mrf.mxu1 }
 0x354   : > { %7694 = vst [vmem:[#allocation39_spill] sm:$0xff] %v7081_v16  ;;  %v3247_v18 = vadd.f32 %v3246_v17, %v3078_v48 }
 0x355   : > { %4354 = vperm.xlu2 %6043, %v3976_v59  }
 0x356   : > { %v7083_v23 = vadd.f32 %v3415_v0, %v3247_v18  ;;  %v709_v0 = vunpack.c.2.s8 %v6117_v57  ;;  %v6118_v18 = vld [vmem:[%s6293_s10 + $0x98] sm:$0xff] }
 0x357   : > { %v2910_v45 = vpop.f32.mrf.mxu2 }
 0x358   : > { %7695 = vst [vmem:[#allocation40_spill] sm:$0xff] %v7083_v23  ;;  %v3079_v32 = vpop.f32.mrf.mxu3  ;;  %v2911_v8 = vadd.f32 %v2910_v45, %v7696_v47  ;;  %v717_v23 = vunpack.c.2.s8 %v6118_v18  ;;  %v718_v45 = vunpack.c.3.s8 %v6118_v18  ;;  %v1221_v29 = vcvt.s32.f32 %v709_v0 }
 0x359   : > { %v3251_v60 = vpop.f32.mrf.mxu0 }
 0x35a   : > { %v7087_v36 = vadd.f32 %v3079_v32, %v2911_v8  ;;  %v1229_v8 = vcvt.s32.f32 %v717_v23  ;;  %v1230_v59 = vcvt.s32.f32 %v718_v45 }
 0x35b   : > { %v3420_v16 = vpop.f32.mrf.mxu1 }
 0x35c   : > { %7697 = vst [vmem:[#allocation20_spill] sm:$0xff] %v7087_v36  ;;  %3468 = vmatmul.bf16.gmra.mxu2 %v1693_v19  ;;  %v5952_v19 = vld [vmem:[%s7620_s4] sm:$0xff]  ;;  %v1701_v18 = vpack.c.bf16 %v1229_v8, %v1221_v29 }
 0x35d   : > { %3637 = vmatmul.bf16.gmra.mxu3 %v1694_v1  ;;  %v1222_v1 = vcvt.s32.f32 %v710_v11  ;;  %5018 = vmatpush.bf16.msra.mxu1 %v5952_v19  ;;  %v733_v19 = vunpack.c.2.s8 %v6120_v58 }
 0x35f   : > { %v2913_v13 = vpop.f32.mrf.mxu2  ;;  %v1702_v36 = vpack.c.bf16 %v1230_v59, %v1222_v1  ;;  %v1245_v59 = vcvt.s32.f32 %v733_v19  ;;  %v6121_v19 = vld [vmem:[%s6293_s10 + $0xc8] sm:$0xff] }
 0x360   : > { %v3082_v17 = vpop.f32.mrf.mxu3  ;;  %v2914_v48 = vadd.f32 %v2913_v13, %v7698_v31  ;;  %v7702_v31 = vld [vmem:[#allocation22_spill] sm:$0xff] }
 0x361   : > { %v7098_v27 = vpop.f32.mrf.mxu0 }
 0x362   : > { %v3083_v21 = vadd.f32 %v3082_v17, %v2914_v48  ;;  %7699 = vst [vmem:[#allocation21_spill] sm:$0xff] %v7098_v27 }
 0x363   : > { %v7100_v32 = vpop.f32.mrf.mxu1 }
 0x364   : > { %7700 = vst [vmem:[#allocation41_spill] sm:$0xff] %v7100_v32  ;;  %v3252_v47 = vadd.f32 %v3251_v60, %v3083_v21  ;;  %v6119_v60 = vld [vmem:[%s6293_s10 + $0xa8] sm:$0xff]  ;;  %v7704_v21 = vld [vmem:[#allocation23_spill] sm:$0xff] }
 0x365   : > { %v725_v45 = vunpack.c.2.s8 %v6119_v60 }
 0x366   : > { %v7102_v13 = vadd.f32 %v3420_v16, %v3252_v47  ;;  %v726_v47 = vunpack.c.3.s8 %v6119_v60 }
 0x367   : > { %v2915_v17 = vpop.f32.mrf.mxu2  ;;  %v1237_v29 = vcvt.s32.f32 %v725_v45 }
 0x368   : > { %7701 = vst [vmem:[#allocation42_spill] sm:$0xff] %v7102_v13  ;;  %v3084_v57 = vpop.f32.mrf.mxu3  ;;  %v2916_v48 = vadd.f32 %v2915_v17, %v7702_v31  ;;  %v734_v13 = vunpack.c.3.s8 %v6120_v58 }
 0x369   : > { %v3256_v0 = vpop.f32.mrf.mxu0  ;;  %v1709_v60 = vpack.c.bf16 %v1245_v59, %v1237_v29 }
 0x36a   : > { %v7105_v27 = vadd.f32 %v3084_v57, %v2916_v48  ;;  %v1246_v57 = vcvt.s32.f32 %v734_v13  ;;  %v7709_v13 = vld [vmem:[#allocation25_spill] sm:$0xff] }
 0x36b   : > { %v3425_v32 = vpop.f32.mrf.mxu1 }
 0x36c   : > { %7703 = vst [vmem:[#allocation22_spill] sm:$0xff] %v7105_v27  ;;  %3473 = vmatmul.bf16.gmra.mxu2 %v1701_v18 }
 0x36d   : > { %3642 = vmatmul.bf16.gmra.mxu3 %v1702_v36  ;;  %v1238_v36 = vcvt.s32.f32 %v726_v47  ;;  %v741_v47 = vunpack.c.2.s8 %v6121_v19 }
 0x36f   : > { %v2918_v23 = vpop.f32.mrf.mxu2  ;;  %v1710_v58 = vpack.c.bf16 %v1246_v57, %v1238_v36  ;;  %v1253_v29 = vcvt.s32.f32 %v741_v47 }
 0x370   : > { %v3087_v11 = vpop.f32.mrf.mxu3  ;;  %v2919_v16 = vadd.f32 %v2918_v23, %v7704_v21  ;;  %v7708_v23 = vld [vmem:[#allocation24_spill] sm:$0xff] }
 0x371   : > { %v7110_v17 = vpop.f32.mrf.mxu0 }
 0x372   : > { %v3088_v9 = vadd.f32 %v3087_v11, %v2919_v16  ;;  %7705 = vst [vmem:[#allocation23_spill] sm:$0xff] %v7110_v17 }
 0x373   : > { %v7112_v8 = vpop.f32.mrf.mxu1 }
 0x374   : > { %7706 = vst [vmem:[#allocation43_spill] sm:$0xff] %v7112_v8  ;;  %v3257_v1 = vadd.f32 %v3256_v0, %v3088_v9 }
 0x376   : > { %v7114_v31 = vadd.f32 %v3425_v32, %v3257_v1  ;;  %v6122_v1 = vld [vmem:[%s6293_s10 + $0xd8] sm:$0xff] }
 0x377   : > { %v2920_v48 = vpop.f32.mrf.mxu2  ;;  %v749_v8 = vunpack.c.2.s8 %v6122_v1  ;;  %v750_v17 = vunpack.c.3.s8 %v6122_v1 }
 0x378   : > { %7707 = vst [vmem:[#allocation44_spill] sm:$0xff] %v7114_v31  ;;  %v3089_v18 = vpop.f32.mrf.mxu3  ;;  %v2921_v21 = vadd.f32 %v2920_v48, %v7708_v23  ;;  %v742_v31 = vunpack.c.3.s8 %v6121_v19 }
 0x379   : > { %v3261_v16 = vpop.f32.mrf.mxu0  ;;  %v1261_v36 = vcvt.s32.f32 %v749_v8 }
 0x37a   : > { %v7117_v11 = vadd.f32 %v3089_v18, %v2921_v21  ;;  %v1254_v57 = vcvt.s32.f32 %v742_v31  ;;  %v1262_v18 = vcvt.s32.f32 %v750_v17 }
 0x37b   : > { %v3430_v45 = vpop.f32.mrf.mxu1  ;;  %v1717_v19 = vpack.c.bf16 %v1261_v36, %v1253_v29 }
 0x37c   : > { %3478 = vmatmul.bf16.gmra.mxu2 %v1709_v60 }
 0x37d   : > { %3647 = vmatmul.bf16.gmra.mxu3 %v1710_v58 }
 0x37f   : > { %v2923_v9 = vpop.f32.mrf.mxu2 }
 0x380   : > { %v3092_v0 = vpop.f32.mrf.mxu3  ;;  %v2924_v32 = vadd.f32 %v2923_v9, %v7709_v13  ;;  %v7713_v9 = vld [vmem:[#allocation26_spill] sm:$0xff] }
 0x381   : > { %v7122_v48 = vpop.f32.mrf.mxu0 }
 0x382   : > { %v3093_v27 = vadd.f32 %v3092_v0, %v2924_v32  ;;  %7710 = vst [vmem:[#allocation24_spill] sm:$0xff] %v7122_v48  ;;  %v1718_v0 = vpack.c.bf16 %v1262_v18, %v1254_v57 }
 0x383   : > { %v7124_v23 = vpop.f32.mrf.mxu1 }
 0x384   : > { %v3262_v59 = vadd.f32 %v3261_v16, %v3093_v27  ;;  %7711 = vst [vmem:[#allocation25_spill] sm:$0xff] %v7124_v23  ;;  %v6123_v16 = vld [vmem:[%s6293_s10 + $0xe8] sm:$0xff] }
 0x385   : > { %v757_v47 = vunpack.c.2.s8 %v6123_v16 }
 0x386   : > { %v7126_v21 = vadd.f32 %v3430_v45, %v3262_v59  ;;  %v7715_v45 = vld [vmem:[#allocation27_spill] sm:$0xff]  ;;  %v6124_v59 = vld [vmem:[%s6293_s10 + $0xf8] sm:$0xff] }
 0x387   : > { %v2925_v60 = vpop.f32.mrf.mxu2  ;;  %v765_v23 = vunpack.c.2.s8 %v6124_v59  ;;  %v766_v48 = vunpack.c.3.s8 %v6124_v59  ;;  %v1269_v36 = vcvt.s32.f32 %v757_v47  ;;  %v7721_v59 = vld [vmem:[#allocation29_spill] sm:$0xff] }
 0x388   : > { %7712 = vst [vmem:[#allocation45_spill] sm:$0xff] %v7126_v21  ;;  %v3094_v58 = vpop.f32.mrf.mxu3  ;;  %v2926_v13 = vadd.f32 %v2925_v60, %v7713_v9  ;;  %v758_v21 = vunpack.c.3.s8 %v6123_v16 }
 0x389   : > { %v3266_v27 = vpop.f32.mrf.mxu0  ;;  %v1277_v18 = vcvt.s32.f32 %v765_v23 }
 0x38a   : > { %v7129_v32 = vadd.f32 %v3094_v58, %v2926_v13  ;;  %v1270_v60 = vcvt.s32.f32 %v758_v21  ;;  %v1278_v58 = vcvt.s32.f32 %v766_v48  ;;  %v6125_v21 = vld [vmem:[%s6293_s10 + $0x108] sm:$0xff] }
 0x38b   : > { %v3435_v8 = vpop.f32.mrf.mxu1  ;;  %v1725_v47 = vpack.c.bf16 %v1277_v18, %v1269_v36 }
 0x38c   : > { %7714 = vst [vmem:[#allocation26_spill] sm:$0xff] %v7129_v32  ;;  %3483 = vmatmul.bf16.gmra.mxu2 %v1717_v19  ;;  %v5960_v19 = vld [vmem:[%s7138_s15] sm:$0xff] }
 0x38d   : > { %3652 = vmatmul.bf16.gmra.mxu3 %v1718_v0  ;;  %4802 = vmatmul.bf16.vlgmr.msra.gmra.mxu0 %v5960_v19 }
 0x38f   : > { %v2928_v31 = vpop.f32.mrf.mxu2 }
 0x390   : > { %v3097_v17 = vpop.f32.mrf.mxu3  ;;  %v2929_v1 = vadd.f32 %v2928_v31, %v7715_v45  ;;  %v1726_v45 = vpack.c.bf16 %v1278_v58, %v1270_v60 }
 0x391   : > { %v7142_v13 = vpop.f32.mrf.mxu0 }
 0x392   : > { %v3098_v29 = vadd.f32 %v3097_v17, %v2929_v1  ;;  %7717 = vst [vmem:[#allocation46_spill] sm:$0xff] %v7142_v13  ;;  %v7718_v17 = vld [vmem:[#allocation28_spill] sm:$0xff]  ;;  %v774_v13 = vunpack.c.3.s8 %v6125_v21 }
 0x393   : > { %v7146_v1 = vpop.f32.mrf.mxu1 }
 0x394   : > { %v3267_v57 = vadd.f32 %v3266_v27, %v3098_v29  ;;  %7719 = vst [vmem:[#allocation28_spill] sm:$0xff] %v7146_v1 }
 0x396   : > { %v7140_v9 = vadd.f32 %v3435_v8, %v3267_v57  ;;  %v773_v8 = vunpack.c.2.s8 %v6125_v21  ;;  %v6126_v57 = vld [vmem:[%s6293_s10 + $0x118] sm:$0xff] }
 0x397   : > { %v2930_v0 = vpop.f32.mrf.mxu2 }
 0x398   : > { %7716 = vst [vmem:[#allocation27_spill] sm:$0xff] %v7140_v9  ;;  %v3099_v31 = vpop.f32.mrf.mxu3  ;;  %v2931_v16 = vadd.f32 %v2930_v0, %v7718_v17  ;;  %v781_v9 = vunpack.c.2.s8 %v6126_v57  ;;  %v782_v0 = vunpack.c.3.s8 %v6126_v57  ;;  %v1285_v58 = vcvt.s32.f32 %v773_v8 }
 0x399   : > { %v3271_v36 = vpop.f32.mrf.mxu0  ;;  %v1286_v17 = vcvt.s32.f32 %v774_v13  ;;  %v6127_v13 = vld [vmem:[%s6293_s10 + $0x128] sm:$0xff] }
 0x39a   : > { %v7148_v27 = vadd.f32 %v3099_v31, %v2931_v16  ;;  %v1293_v31 = vcvt.s32.f32 %v781_v9  ;;  %v1294_v16 = vcvt.s32.f32 %v782_v0  ;;  %v789_v8 = vunpack.c.2.s8 %v6127_v13 }
 0x39b   : > { %v3440_v60 = vpop.f32.mrf.mxu1 }
 0x39c   : > { %7720 = vst [vmem:[#allocation47_spill] sm:$0xff] %v7148_v27  ;;  %3488 = vmatmul.bf16.gmra.mxu2 %v1725_v47  ;;  %v1733_v32 = vpack.c.bf16 %v1293_v31, %v1285_v58  ;;  %v1734_v21 = vpack.c.bf16 %v1294_v16, %v1286_v17 }
 0x39d   : > { %3657 = vmatmul.bf16.gmra.mxu3 %v1726_v45  ;;  %v5961_v45 = vld [vmem:[%s7138_s15 + $0x8] sm:$0xff] }
 0x39e   : > { %4807 = vmatmul.bf16.gmra.mxu0 %v5961_v45 }
 0x39f   : > { %v2933_v48 = vpop.f32.mrf.mxu2 }
 0x3a0   : > { %v3102_v23 = vpop.f32.mrf.mxu3  ;;  %v2934_v29 = vadd.f32 %v2933_v48, %v7721_v59  ;;  %v7723_v48 = vld [vmem:[#allocation30_spill] sm:$0xff] }
 0x3a2   : > { %v3103_v18 = vadd.f32 %v3102_v23, %v2934_v29  ;;  %v6128_v29 = vld [vmem:[%s6293_s10 + $0x138] sm:$0xff] }
 0x3a3   : > { %v797_v0 = vunpack.c.2.s8 %v6128_v29 }
 0x3a4   : > { %v3272_v19 = vadd.f32 %v3271_v36, %v3103_v18  ;;  %v790_v36 = vunpack.c.3.s8 %v6127_v13  ;;  %v798_v18 = vunpack.c.3.s8 %v6128_v29 }
 0x3a5   : > { %v1309_v58 = vcvt.s32.f32 %v797_v0 }
 0x3a6   : > { %v7153_v47 = vadd.f32 %v3440_v60, %v3272_v19  ;;  %v4045_v60 = vpop.permute.xlu0 %4044  ;;  %v1301_v19 = vcvt.s32.f32 %v789_v8  ;;  %v1302_v31 = vcvt.s32.f32 %v790_v36  ;;  %v1310_v17 = vcvt.s32.f32 %v798_v18  ;;  %v6129_v36 = vld [vmem:[%s6293_s10 + $0x148] sm:$0xff] }
 0x3a7   : > { %v2935_v1 = vpop.f32.mrf.mxu2  ;;  %v805_v18 = vunpack.c.2.s8 %v6129_v36 }
 0x3a8   : > { %7722 = vst [vmem:[#allocation29_spill] sm:$0xff] %v7153_v47  ;;  %v3104_v27 = vpop.f32.mrf.mxu3  ;;  %v2936_v59 = vadd.f32 %v2935_v1, %v7723_v48 }
 0x3aa   : > { %v7157_v57 = vadd.f32 %v3104_v27, %v2936_v59  ;;  %v5962_v27 = vld [vmem:[%s7138_s15 + $0x10] sm:$0xff]  ;;  %v1741_v59 = vpack.c.bf16 %v1309_v58, %v1301_v19  ;;  %v4055_v19 = vpop.permute.xlu1 %4054  ;;  %v1317_v58 = vcvt.s32.f32 %v805_v18 }
 0x3ac   : > { %3493 = vmatmul.bf16.gmra.mxu2 %v1733_v32 }
 0x3ad   : > { %3662 = vmatmul.bf16.gmra.mxu3 %v1734_v21  ;;  %v1742_v21 = vpack.c.bf16 %v1310_v17, %v1302_v31 }
 0x3ae   : > { %4812 = vmatmul.bf16.gmra.mxu0 %v5962_v27  ;;  %v4050_v29 = vpop.permute.xlu0 %4049 }
 0x3af   : > { %v3454_v9 = vpop.f32.mrf.mxu2 }
 0x3b0   : > { %v3623_v23 = vpop.f32.mrf.mxu3  ;;  %v3455_v1 = vadd.f32 %v3454_v9, %v6666_v39 }
 0x3b2   : > { %v3624_v45 = vadd.f32 %v3623_v23, %v3455_v1  ;;  %v6130_v23 = vld [vmem:[%s6293_s10 + $0x158] sm:$0xff] }
 0x3b3   : > { %v813_v1 = vunpack.c.2.s8 %v6130_v23 }
 0x3b4   : > { %v4362_v47 = vmul.f32 %v4045_v60, %v3624_v45 }
 0x3b5   : > { %v1325_v17 = vcvt.s32.f32 %v813_v1 }
 0x3b7   : > { %v3456_v16 = vpop.f32.mrf.mxu2 }
 0x3b8   : > { %v3625_v32 = vpop.f32.mrf.mxu3  ;;  %v3457_v48 = vadd.f32 %v3456_v16, %v6669_v43  ;;  %v806_v43 = vunpack.c.3.s8 %v6129_v36  ;;  %v814_v16 = vunpack.c.3.s8 %v6130_v23  ;;  %v6131_v23 = vld [vmem:[%s6293_s10 + $0x168] sm:$0xff] }
 0x3b9   : > { %v821_v1 = vunpack.c.2.s8 %v6131_v23 }
 0x3ba   : > { %v3626_v13 = vadd.f32 %v3625_v32, %v3457_v48  ;;  %v1318_v60 = vcvt.s32.f32 %v806_v43  ;;  %v1326_v27 = vcvt.s32.f32 %v814_v16  ;;  %v5963_v32 = vld [vmem:[%s7138_s15 + $0x18] sm:$0xff] }
 0x3bc   : > { %v4363_v8 = vmul.f32 %v4050_v29, %v3626_v13  ;;  %3498 = vmatmul.bf16.gmra.mxu2 %v1741_v59  ;;  %v1750_v13 = vpack.c.bf16 %v1326_v27, %v1318_v60 }
 0x3bd   : > { %3667 = vmatmul.bf16.gmra.mxu3 %v1742_v21  ;;  %v1749_v21 = vpack.c.bf16 %v1325_v17, %v1317_v58  ;;  %v4065_v58 = vpop.permute.xlu2 %4064 }
 0x3be   : > { %v4426_v39 = vpack.c.bf16 %v4363_v8, %v4362_v47  ;;  %4817 = vmatmul.bf16.gmra.mxu0 %v5963_v32  ;;  %v4060_v8 = vpop.permute.xlu1 %4059  ;;  %v5964_v32 = vld [vmem:[%s7138_s15 + $0x20] sm:$0xff] }
 0x3bf   : > { %v3459_v9 = vpop.f32.mrf.mxu2 }
 0x3c0   : > { %v3628_v0 = vpop.f32.mrf.mxu3  ;;  %5019 = vmatmul.bf16.vlgmr.msra.gmra.mxu1 %v4426_v39  ;;  %v3460_v31 = vadd.f32 %v3459_v9, %v6676_v26 }
 0x3c2   : > { %v3629_v48 = vadd.f32 %v3628_v0, %v3460_v31  ;;  %v6132_v0 = vld [vmem:[%s6293_s10 + $0x178] sm:$0xff]  ;;  %v1333_v31 = vcvt.s32.f32 %v821_v1 }
 0x3c3   : > { %v829_v43 = vunpack.c.2.s8 %v6132_v0  ;;  %v830_v16 = vunpack.c.3.s8 %v6132_v0 }
 0x3c4   : > { %v4364_v39 = vmul.f32 %v4055_v19, %v3629_v48 }
 0x3c5   : > { %v1341_v60 = vcvt.s32.f32 %v829_v43  ;;  %v1342_v27 = vcvt.s32.f32 %v830_v16 }
 0x3c7   : > { %v3461_v45 = vpop.f32.mrf.mxu2 }
 0x3c8   : > { %v3630_v47 = vpop.f32.mrf.mxu3  ;;  %v3462_v59 = vadd.f32 %v3461_v45, %v6682_v3  ;;  %v822_v3 = vunpack.c.3.s8 %v6131_v23  ;;  %v6133_v23 = vld [vmem:[%s6293_s10 + $0x188] sm:$0xff] }
 0x3c9   : > { %v837_v1 = vunpack.c.2.s8 %v6133_v23 }
 0x3ca   : > { %v3631_v29 = vadd.f32 %v3630_v47, %v3462_v59  ;;  %v1334_v19 = vcvt.s32.f32 %v822_v3 }
 0x3cb   : > { %v1349_v3 = vcvt.s32.f32 %v837_v1 }
 0x3cc   : > { %v4365_v36 = vmul.f32 %v4060_v8, %v3631_v29  ;;  %3503 = vmatmul.bf16.gmra.mxu2 %v1749_v21  ;;  %v1757_v21 = vpack.c.bf16 %v1341_v60, %v1333_v31  ;;  %v4070_v8 = vpop.permute.xlu2 %4069  ;;  %v5965_v60 = vld [vmem:[%s7138_s15 + $0x28] sm:$0xff] }
 0x3cd   : > { %3672 = vmatmul.bf16.gmra.mxu3 %v1750_v13  ;;  %v1758_v13 = vpack.c.bf16 %v1342_v27, %v1334_v19 }
 0x3ce   : > { %v4427_v26 = vpack.c.bf16 %v4365_v36, %v4364_v39  ;;  %4822 = vmatmul.bf16.gmra.mxu0 %v5964_v32 }
 0x3cf   : > { %v3464_v9 = vpop.f32.mrf.mxu2 }
 0x3d0   : > { %v3633_v18 = vpop.f32.mrf.mxu3  ;;  %5024 = vmatmul.bf16.gmra.mxu1 %v4427_v26  ;;  %v3465_v17 = vadd.f32 %v3464_v9, %v6692_v10 }
 0x3d2   : > { %v3634_v48 = vadd.f32 %v3633_v18, %v3465_v17  ;;  %v6134_v18 = vld [vmem:[%s6293_s10 + $0x198] sm:$0xff] }
 0x3d3   : > { %v845_v0 = vunpack.c.2.s8 %v6134_v18  ;;  %v846_v43 = vunpack.c.3.s8 %v6134_v18 }
 0x3d4   : > { %v4366_v39 = vmul.f32 %v4065_v58, %v3634_v48 }
 0x3d5   : > { %v1357_v31 = vcvt.s32.f32 %v845_v0  ;;  %v1358_v58 = vcvt.s32.f32 %v846_v43 }
 0x3d7   : > { %v3466_v45 = vpop.f32.mrf.mxu2 }
 0x3d8   : > { %v3635_v47 = vpop.f32.mrf.mxu3  ;;  %v3467_v59 = vadd.f32 %v3466_v45, %v6695_v62  ;;  %v838_v62 = vunpack.c.3.s8 %v6133_v23 }
 0x3da   : > { %v3636_v29 = vadd.f32 %v3635_v47, %v3467_v59  ;;  %v1350_v17 = vcvt.s32.f32 %v838_v62  ;;  %v1765_v47 = vpack.c.bf16 %v1357_v31, %v1349_v3 }
 0x3dc   : > { %v4367_v36 = vmul.f32 %v4070_v8, %v3636_v29  ;;  %3508 = vmatmul.bf16.gmra.mxu2 %v1757_v21  ;;  %v1766_v48 = vpack.c.bf16 %v1358_v58, %v1350_v17  ;;  %v4075_v21 = vpop.permute.xlu0 %4074 }
 0x3dd   : > { %3677 = vmatmul.bf16.gmra.mxu3 %v1758_v13  ;;  %v4080_v13 = vpop.permute.xlu1 %4079 }
 0x3de   : > { %v4428_v10 = vpack.c.bf16 %v4367_v36, %v4366_v39  ;;  %4827 = vmatmul.bf16.gmra.mxu0 %v5965_v60 }
 0x3df   : > { %v3469_v26 = vpop.f32.mrf.mxu2 }
 0x3e0   : > { %v3638_v9 = vpop.f32.mrf.mxu3  ;;  %5029 = vmatmul.bf16.gmra.mxu1 %v4428_v10  ;;  %v3470_v16 = vadd.f32 %v3469_v26, %v6708_v2  ;;  %v6135_v10 = vld [vmem:[%s6293_s10 + $0x1a8] sm:$0xff] }
 0x3e1   : > { %v853_v26 = vunpack.c.2.s8 %v6135_v10  ;;  %v854_v23 = vunpack.c.3.s8 %v6135_v10 }
 0x3e2   : > { %v3639_v32 = vadd.f32 %v3638_v9, %v3470_v16  ;;  %v6136_v9 = vld [vmem:[%s6293_s10 + $0x1b8] sm:$0xff]  ;;  %v5966_v16 = vld [vmem:[%s7138_s15 + $0x30] sm:$0xff] }
 0x3e3   : > { %v862_v1 = vunpack.c.3.s8 %v6136_v9  ;;  %v1365_v18 = vcvt.s32.f32 %v853_v26  ;;  %v1366_v43 = vcvt.s32.f32 %v854_v23 }
 0x3e4   : > { %v4368_v29 = vmul.f32 %v4075_v21, %v3639_v32 }
 0x3e5   : > { %v1374_v3 = vcvt.s32.f32 %v862_v1  ;;  %v5967_v1 = vld [vmem:[%s7138_s15 + $0x38] sm:$0xff] }
 0x3e7   : > { %v3471_v19 = vpop.f32.mrf.mxu2 }
 0x3e8   : > { %v3640_v27 = vpop.f32.mrf.mxu3  ;;  %v3472_v45 = vadd.f32 %v3471_v19, %v6711_v56  ;;  %v861_v56 = vunpack.c.2.s8 %v6136_v9 }
 0x3ea   : > { %v3641_v59 = vadd.f32 %v3640_v27, %v3472_v45  ;;  %v1373_v62 = vcvt.s32.f32 %v861_v56  ;;  %v1774_v27 = vpack.c.bf16 %v1374_v3, %v1366_v43  ;;  %v4090_v45 = vpop.permute.xlu0 %4089 }
 0x3ec   : > { %v4369_v8 = vmul.f32 %v4080_v13, %v3641_v59  ;;  %3513 = vmatmul.bf16.gmra.mxu2 %v1765_v47  ;;  %v1773_v19 = vpack.c.bf16 %v1373_v62, %v1365_v18  ;;  %v4085_v47 = vpop.permute.xlu2 %4084 }
 0x3ed   : > { %3682 = vmatmul.bf16.gmra.mxu3 %v1766_v48 }
 0x3ee   : > { %v4429_v2 = vpack.c.bf16 %v4369_v8, %v4368_v29  ;;  %4832 = vmatmul.bf16.gmra.mxu0 %v5966_v16  ;;  %v6137_v29 = vld [vmem:[%s6293_s10 + $0x1c8] sm:$0xff] }
 0x3ef   : > { %v3474_v39 = vpop.f32.mrf.mxu2  ;;  %v869_v8 = vunpack.c.2.s8 %v6137_v29 }
 0x3f0   : > { %v3643_v36 = vpop.f32.mrf.mxu3  ;;  %5034 = vmatmul.bf16.gmra.mxu1 %v4429_v2  ;;  %v3475_v0 = vadd.f32 %v3474_v39, %v6718_v37  ;;  %v6138_v2 = vld [vmem:[%s6293_s10 + $0x1d8] sm:$0xff]  ;;  %v870_v39 = vunpack.c.3.s8 %v6137_v29 }
 0x3f1   : > { %v1381_v10 = vcvt.s32.f32 %v869_v8 }
 0x3f2   : > { %v3644_v58 = vadd.f32 %v3643_v36, %v3475_v0  ;;  %v878_v36 = vunpack.c.3.s8 %v6138_v2  ;;  %v1382_v56 = vcvt.s32.f32 %v870_v39 }
 0x3f4   : > { %v4370_v48 = vmul.f32 %v4085_v47, %v3644_v58  ;;  %v1390_v23 = vcvt.s32.f32 %v878_v36  ;;  %v4100_v58 = vpop.permute.xlu2 %4099  ;;  %v6139_v47 = vld [vmem:[%s6293_s10 + $0x1e8] sm:$0xff]  ;;  %v5968_v36 = vld [vmem:[%s7138_s15 + $0x40] sm:$0xff] }
 0x3f6   : > { %v1782_v16 = vpack.c.bf16 %v1390_v23, %v1382_v56 }
 0x3f7   : > { %v3476_v31 = vpop.f32.mrf.mxu2 }
 0x3f8   : > { %v3645_v17 = vpop.f32.mrf.mxu3  ;;  %v3477_v60 = vadd.f32 %v3476_v31, %v6721_v15  ;;  %v877_v15 = vunpack.c.2.s8 %v6138_v2 }
 0x3fa   : > { %v3646_v32 = vadd.f32 %v3645_v17, %v3477_v60  ;;  %v1389_v9 = vcvt.s32.f32 %v877_v15  ;;  %v4095_v17 = vpop.permute.xlu1 %4094 }
 0x3fc   : > { %v4371_v59 = vmul.f32 %v4090_v45, %v3646_v32  ;;  %3518 = vmatmul.bf16.gmra.mxu2 %v1773_v19  ;;  %v1781_v3 = vpack.c.bf16 %v1389_v9, %v1381_v10 }
 0x3fd   : > { %3687 = vmatmul.bf16.gmra.mxu3 %v1774_v27 }
 0x3fe   : > { %v4430_v37 = vpack.c.bf16 %v4371_v59, %v4370_v48  ;;  %4837 = vmatmul.bf16.gmra.mxu0 %v5967_v1  ;;  %v885_v48 = vunpack.c.2.s8 %v6139_v47 }
 0x3ff   : > { %v3479_v21 = vpop.f32.mrf.mxu2 }
 0x400   : > { %v3648_v13 = vpop.f32.mrf.mxu3  ;;  %5039 = vmatmul.bf16.gmra.mxu1 %v4430_v37  ;;  %v3480_v26 = vadd.f32 %v3479_v21, %v6728_v54  ;;  %v7189_v54 = vpop.f32.mrf.mxu0  ;;  %v886_v37 = vunpack.c.3.s8 %v6139_v47 }
 0x402   : > { %v3649_v62 = vadd.f32 %v3648_v13, %v3480_v26  ;;  %v1397_v13 = vcvt.s32.f32 %v885_v48  ;;  %v1398_v2 = vcvt.s32.f32 %v886_v37 }
 0x404   : > { %v4372_v60 = vmul.f32 %v4095_v17, %v3649_v62  ;;  %v4110_v62 = vpop.permute.xlu1 %4109 }
 0x407   : > { %v3481_v18 = vpop.f32.mrf.mxu2 }
 0x408   : > { %v3650_v0 = vpop.f32.mrf.mxu3  ;;  %v3482_v43 = vadd.f32 %v3481_v18, %v6734_v6  ;;  %v6140_v6 = vld [vmem:[%s6293_s10 + $0x1f8] sm:$0xff] }
 0x409   : > { %v893_v59 = vunpack.c.2.s8 %v6140_v6  ;;  %v894_v21 = vunpack.c.3.s8 %v6140_v6 }
 0x40a   : > { %v3651_v31 = vadd.f32 %v3650_v0, %v3482_v43  ;;  %v7194_v39 = vpop.f32.mrf.mxu0  ;;  %v4105_v0 = vpop.permute.xlu0 %4104 }
 0x40b   : > { %v1405_v8 = vcvt.s32.f32 %v893_v59  ;;  %v1406_v15 = vcvt.s32.f32 %v894_v21  ;;  %v5969_v21 = vld [vmem:[%s7138_s15 + $0x48] sm:$0xff] }
 0x40c   : > { %v4373_v19 = vmul.f32 %v4100_v58, %v3651_v31  ;;  %3523 = vmatmul.bf16.gmra.mxu2 %v1781_v3  ;;  %v6141_v58 = vld [vmem:[%s6293_s10 + $0x208] sm:$0xff] }
 0x40d   : > { %3692 = vmatmul.bf16.gmra.mxu3 %v1782_v16  ;;  %v1789_v23 = vpack.c.bf16 %v1405_v8, %v1397_v13  ;;  %v1790_v1 = vpack.c.bf16 %v1406_v15, %v1398_v2 }
 0x40e   : > { %v4431_v27 = vpack.c.bf16 %v4373_v19, %v4372_v60  ;;  %4842 = vmatmul.bf16.gmra.mxu0 %v5968_v36  ;;  %v901_v60 = vunpack.c.2.s8 %v6141_v58 }
 0x40f   : > { %v3484_v32 = vpop.f32.mrf.mxu2 }
 0x410   : > { %v3653_v45 = vpop.f32.mrf.mxu3  ;;  %5044 = vmatmul.bf16.gmra.mxu1 %v4431_v27  ;;  %v3485_v29 = vadd.f32 %v3484_v32, %v6744_v5  ;;  %v902_v27 = vunpack.c.3.s8 %v6141_v58 }
 0x412   : > { %v3654_v9 = vadd.f32 %v3653_v45, %v3485_v29  ;;  %v7198_v3 = vpop.f32.mrf.mxu0  ;;  %v1413_v45 = vcvt.s32.f32 %v901_v60  ;;  %v1414_v6 = vcvt.s32.f32 %v902_v27  ;;  %v7212_v27 = vpop.f32.mrf.mxu1 }
 0x414   : > { %v4374_v5 = vmul.f32 %v4105_v0, %v3654_v9  ;;  %v4115_v9 = vpop.permute.xlu2 %4114 }
 0x417   : > { %v3486_v10 = vpop.f32.mrf.mxu2 }
 0x418   : > { %v3655_v26 = vpop.f32.mrf.mxu3  ;;  %v3487_v56 = vadd.f32 %v3486_v10, %v6747_v52  ;;  %v6142_v52 = vld [vmem:[%s6293_s10 + $0x218] sm:$0xff] }
 0x419   : > { %v909_v19 = vunpack.c.2.s8 %v6142_v52  ;;  %v910_v32 = vunpack.c.3.s8 %v6142_v52 }
 0x41a   : > { %v3656_v18 = vadd.f32 %v3655_v26, %v3487_v56  ;;  %v4120_v26 = vpop.permute.xlu0 %4119 }
 0x41b   : > { %v1421_v48 = vcvt.s32.f32 %v909_v19  ;;  %v1422_v59 = vcvt.s32.f32 %v910_v32  ;;  %v7203_v37 = vpop.f32.mrf.mxu0 }
 0x41c   : > { %v4375_v43 = vmul.f32 %v4110_v62, %v3656_v18  ;;  %3528 = vmatmul.bf16.gmra.mxu2 %v1789_v23  ;;  %v6143_v62 = vld [vmem:[%s6293_s10 + $0x228] sm:$0xff] }
 0x41d   : > { %3697 = vmatmul.bf16.gmra.mxu3 %v1790_v1  ;;  %v1797_v15 = vpack.c.bf16 %v1421_v48, %v1413_v45  ;;  %v1798_v36 = vpack.c.bf16 %v1422_v59, %v1414_v6  ;;  %v5970_v45 = vld [vmem:[%s7138_s15 + $0x50] sm:$0xff] }
 0x41e   : > { %v4432_v16 = vpack.c.bf16 %v4375_v43, %v4374_v5  ;;  %4847 = vmatmul.bf16.gmra.mxu0 %v5969_v21  ;;  %v917_v5 = vunpack.c.2.s8 %v6143_v62 }
 0x41f   : > { %v3489_v31 = vpop.f32.mrf.mxu2 }
 0x420   : > { %v3658_v17 = vpop.f32.mrf.mxu3  ;;  %5049 = vmatmul.bf16.gmra.mxu1 %v4432_v16  ;;  %v3490_v47 = vadd.f32 %v3489_v31, %v6760_v7  ;;  %v918_v16 = vunpack.c.3.s8 %v6143_v62 }
 0x422   : > { %v3659_v8 = vadd.f32 %v3658_v17, %v3490_v47  ;;  %v1429_v17 = vcvt.s32.f32 %v917_v5  ;;  %v1430_v52 = vcvt.s32.f32 %v918_v16 }
 0x423   : > { %v7207_v23 = vpop.f32.mrf.mxu0 }
 0x424   : > { %v4376_v7 = vmul.f32 %v4115_v9, %v3659_v8  ;;  %v4130_v8 = vpop.permute.xlu2 %4129 }
 0x427   : > { %v3491_v13 = vpop.f32.mrf.mxu2 }
 0x428   : > { %v3660_v29 = vpop.f32.mrf.mxu3  ;;  %v3492_v2 = vadd.f32 %v3491_v13, %v6763_v14  ;;  %v6144_v14 = vld [vmem:[%s6293_s10 + $0x238] sm:$0xff] }
 0x429   : > { %v925_v43 = vunpack.c.2.s8 %v6144_v14  ;;  %v926_v31 = vunpack.c.3.s8 %v6144_v14 }
 0x42a   : > { %v3661_v10 = vadd.f32 %v3660_v29, %v3492_v2 }
 0x42b   : > { %v1437_v60 = vcvt.s32.f32 %v925_v43  ;;  %v1438_v19 = vcvt.s32.f32 %v926_v31  ;;  %v7214_v32 = vpop.f32.mrf.mxu0 }
 0x42c   : > { %v4377_v56 = vmul.f32 %v4120_v26, %v3661_v10  ;;  %3533 = vmatmul.bf16.gmra.mxu2 %v1797_v15 }
 0x42d   : > { %3702 = vmatmul.bf16.gmra.mxu3 %v1798_v36  ;;  %v1805_v21 = vpack.c.bf16 %v1437_v60, %v1429_v17  ;;  %v1806_v13 = vpack.c.bf16 %v1438_v19, %v1430_v52  ;;  %v7221_v36 = vld [vmem:[%s7622_s6] ss:$0 sm:$0xff] }
 0x42e   : > { %v4433_v1 = vpack.c.bf16 %v4377_v56, %v4376_v7  ;;  %4852 = vmatmul.bf16.gmra.mxu0 %v5970_v45  ;;  %v5971_v45 = vld [vmem:[%s7138_s15 + $0x58] sm:$0xff] }
 0x42f   : > { %v3494_v18 = vpop.f32.mrf.mxu2 }
 0x430   : > { %v3663_v0 = vpop.f32.mrf.mxu3  ;;  %5054 = vmatmul.bf16.gmra.mxu1 %v4433_v1  ;;  %v3495_v58 = vadd.f32 %v3494_v18, %v6770_v28  ;;  %v4125_v28 = vpop.permute.xlu1 %4124  ;;  %v6145_v1 = vld [vmem:[%s6293_s10 + $0x248] sm:$0xff] }
 0x431   : > { %v933_v18 = vunpack.c.2.s8 %v6145_v1  ;;  %v934_v14 = vunpack.c.3.s8 %v6145_v1 }
 0x432   : > { %v3664_v6 = vadd.f32 %v3663_v0, %v3495_v58  ;;  %v6146_v0 = vld [vmem:[%s6293_s10 + $0x258] sm:$0xff] }
 0x433   : > { %v941_v62 = vunpack.c.2.s8 %v6146_v0  ;;  %v1445_v43 = vcvt.s32.f32 %v933_v18  ;;  %v1446_v17 = vcvt.s32.f32 %v934_v14  ;;  %v6148_v18 = vld [vmem:[%s6293_s10 + $0x278] sm:$0xff] }
 0x434   : > { %v4378_v2 = vmul.f32 %v4125_v28, %v3664_v6  ;;  %v4135_v28 = vpop.permute.xlu0 %4134  ;;  %v958_v14 = vunpack.c.3.s8 %v6148_v18 }
 0x435   : > { %v1453_v16 = vcvt.s32.f32 %v941_v62 }
 0x437   : > { %v3496_v47 = vpop.f32.mrf.mxu2  ;;  %v1813_v6 = vpack.c.bf16 %v1453_v16, %v1445_v43 }
 0x438   : > { %v3665_v48 = vpop.f32.mrf.mxu3  ;;  %v3497_v59 = vadd.f32 %v3496_v47, %v6773_v20  ;;  %v7223_v20 = vpop.f32.mrf.mxu0 }
 0x43a   : > { %v3666_v29 = vadd.f32 %v3665_v48, %v3497_v59 }
 0x43c   : > { %v4379_v15 = vmul.f32 %v4130_v8, %v3666_v29  ;;  %3538 = vmatmul.bf16.gmra.mxu2 %v1805_v21  ;;  %v4140_v8 = vpop.permute.xlu1 %4139 }
 0x43d   : > { %3707 = vmatmul.bf16.gmra.mxu3 %v1806_v13  ;;  %v5020_v10 = vpop.f32.mrf.mxu1 }
 0x43e   : > { %v5021_v26 = vadd.f32 %v5020_v10, %v7194_v39  ;;  %v4434_v9 = vpack.c.bf16 %v4379_v15, %v4378_v2  ;;  %v942_v39 = vunpack.c.3.s8 %v6146_v0  ;;  %4857 = vmatmul.bf16.gmra.mxu0 %v5971_v45  ;;  %v957_v0 = vunpack.c.2.s8 %v6148_v18 }
 0x43f   : > { %v3499_v7 = vpop.f32.mrf.mxu2 }
 0x440   : > { %v3668_v56 = vpop.f32.mrf.mxu3  ;;  %v5184_v5 = vadd.f32 %v7221_v36, %v5021_v26  ;;  %5059 = vmatmul.bf16.gmra.mxu1 %v4434_v9  ;;  %v3500_v31 = vadd.f32 %v3499_v7, %v6780_v55  ;;  %v1454_v58 = vcvt.s32.f32 %v942_v39  ;;  %v7238_v52 = vpop.f32.mrf.mxu0  ;;  %v1469_v43 = vcvt.s32.f32 %v957_v0 }
 0x442   : > { %5248 = vst [vmem:[%s7231_s21] sm:$0xff] %v5184_v5  ;;  %v3669_v59 = vadd.f32 %v3668_v56, %v3500_v31  ;;  %v1814_v29 = vpack.c.bf16 %v1454_v58, %v1446_v17  ;;  %v6147_v56 = vld [vmem:[%s6293_s10 + $0x268] sm:$0xff]  ;;  %v1470_v31 = vcvt.s32.f32 %v958_v14 }
 0x443   : > { %v949_v1 = vunpack.c.2.s8 %v6147_v56  ;;  %v950_v5 = vunpack.c.3.s8 %v6147_v56 }
 0x444   : > { %v4380_v2 = vmul.f32 %v4135_v28, %v3669_v59 }
 0x445   : > { %v5022_v60 = vpop.f32.mrf.mxu1  ;;  %v1461_v39 = vcvt.s32.f32 %v949_v1 }
 0x446   : > { %v5023_v19 = vadd.f32 %v5022_v60, %v7198_v3 }
 0x447   : > { %v3501_v47 = vpop.f32.mrf.mxu2 }
 0x448   : > { %v3670_v48 = vpop.f32.mrf.mxu3  ;;  %v5185_v21 = vadd.f32 %v7221_v36, %v5023_v19  ;;  %v3502_v13 = vadd.f32 %v3501_v47, %v6786_v51  ;;  %v7245_v10 = vpop.f32.mrf.mxu0  ;;  %v5972_v19 = vld [vmem:[%s7138_s15 + $0x60] sm:$0xff] }
 0x44a   : > { %5249 = vst [vmem:[%s7231_s21 + $0x8] sm:$0xff] %v5185_v21  ;;  %v3671_v55 = vadd.f32 %v3670_v48, %v3502_v13  ;;  %v1821_v48 = vpack.c.bf16 %v1469_v43, %v1461_v39 }
 0x44c   : > { %v4381_v15 = vmul.f32 %v4140_v8, %v3671_v55  ;;  %3543 = vmatmul.bf16.gmra.mxu2 %v1813_v6  ;;  %v4145_v55 = vpop.permute.xlu2 %4144 }
 0x44d   : > { %3712 = vmatmul.bf16.gmra.mxu3 %v1814_v29  ;;  %v5025_v3 = vpop.f32.mrf.mxu1  ;;  %v4150_v29 = vpop.permute.xlu0 %4149 }
 0x44e   : > { %v5026_v26 = vadd.f32 %v5025_v3, %v7203_v37  ;;  %v4435_v9 = vpack.c.bf16 %v4381_v15, %v4380_v2  ;;  %v1462_v37 = vcvt.s32.f32 %v950_v5  ;;  %4862 = vmatmul.bf16.gmra.mxu0 %v5972_v19 }
 0x44f   : > { %v3504_v51 = vpop.f32.mrf.mxu2 }
 0x450   : > { %v3673_v7 = vpop.f32.mrf.mxu3  ;;  %v5186_v62 = vadd.f32 %v7221_v36, %v5026_v26  ;;  %5064 = vmatmul.bf16.gmra.mxu1 %v4435_v9  ;;  %v3505_v16 = vadd.f32 %v3504_v51, %v6796_v34  ;;  %v7253_v58 = vpop.f32.mrf.mxu0  ;;  %v1822_v13 = vpack.c.bf16 %v1470_v31, %v1462_v37  ;;  %v6149_v9 = vld [vmem:[%s6293_s10 + $0x288] sm:$0xff] }
 0x451   : > { %v965_v51 = vunpack.c.2.s8 %v6149_v9  ;;  %v966_v18 = vunpack.c.3.s8 %v6149_v9  ;;  %v5973_v31 = vld [vmem:[%s7138_s15 + $0x68] sm:$0xff] }
 0x452   : > { %5250 = vst [vmem:[%s7231_s21 + $0x10] sm:$0xff] %v5186_v62  ;;  %v3674_v6 = vadd.f32 %v3673_v7, %v3505_v16  ;;  %v6150_v7 = vld [vmem:[%s6293_s10 + $0x298] sm:$0xff] }
 0x453   : > { %v973_v56 = vunpack.c.2.s8 %v6150_v7  ;;  %v974_v0 = vunpack.c.3.s8 %v6150_v7  ;;  %v1477_v62 = vcvt.s32.f32 %v965_v51 }
 0x454   : > { %v4382_v28 = vmul.f32 %v4145_v55, %v3674_v6 }
 0x455   : > { %v5027_v17 = vpop.f32.mrf.mxu1  ;;  %v1485_v5 = vcvt.s32.f32 %v973_v56  ;;  %v1486_v39 = vcvt.s32.f32 %v974_v0 }
 0x456   : > { %v5028_v60 = vadd.f32 %v5027_v17, %v7207_v23 }
 0x457   : > { %v3506_v45 = vpop.f32.mrf.mxu2  ;;  %v1829_v19 = vpack.c.bf16 %v1485_v5, %v1477_v62 }
 0x458   : > { %v3675_v47 = vpop.f32.mrf.mxu3  ;;  %v5187_v59 = vadd.f32 %v7221_v36, %v5028_v60  ;;  %v3507_v21 = vadd.f32 %v3506_v45, %v6799_v49  ;;  %v7260_v2 = vpop.f32.mrf.mxu0 }
 0x45a   : > { %5251 = vst [vmem:[%s7231_s21 + $0x18] sm:$0xff] %v5187_v59  ;;  %v3676_v34 = vadd.f32 %v3675_v47, %v3507_v21  ;;  %v4155_v59 = vpop.permute.xlu1 %4154  ;;  %v4160_v21 = vpop.permute.xlu2 %4159 }
 0x45c   : > { %v4383_v8 = vmul.f32 %v4150_v29, %v3676_v34  ;;  %3548 = vmatmul.bf16.gmra.mxu2 %v1821_v48 }
 0x45d   : > { %3717 = vmatmul.bf16.gmra.mxu3 %v1822_v13  ;;  %v5030_v23 = vpop.f32.mrf.mxu1 }
 0x45e   : > { %v5031_v15 = vadd.f32 %v5030_v23, %v7214_v32  ;;  %v4436_v3 = vpack.c.bf16 %v4383_v8, %v4382_v28  ;;  %v1478_v32 = vcvt.s32.f32 %v966_v18  ;;  %4867 = vmatmul.bf16.gmra.mxu0 %v5973_v31  ;;  %v6151_v23 = vld [vmem:[%s6293_s10 + $0x2a8] sm:$0xff] }
 0x45f   : > { %v3509_v49 = vpop.f32.mrf.mxu2  ;;  %v982_v9 = vunpack.c.3.s8 %v6151_v23 }
 0x460   : > { %v3678_v26 = vpop.f32.mrf.mxu3  ;;  %v5188_v1 = vadd.f32 %v7221_v36, %v5031_v15  ;;  %5069 = vmatmul.bf16.gmra.mxu1 %v4436_v3  ;;  %v3510_v14 = vadd.f32 %v3509_v49, %v6812_v42  ;;  %v7268_v16 = vpop.f32.mrf.mxu0  ;;  %v1830_v6 = vpack.c.bf16 %v1486_v39, %v1478_v32  ;;  %v981_v15 = vunpack.c.2.s8 %v6151_v23  ;;  %v6152_v3 = vld [vmem:[%s6293_s10 + $0x2b8] sm:$0xff] }
 0x461   : > { %v989_v49 = vunpack.c.2.s8 %v6152_v3  ;;  %v990_v51 = vunpack.c.3.s8 %v6152_v3 }
 0x462   : > { %5252 = vst [vmem:[%s7231_s21 + $0x20] sm:$0xff] %v5188_v1  ;;  %v3679_v45 = vadd.f32 %v3678_v26, %v3510_v14  ;;  %v1493_v7 = vcvt.s32.f32 %v981_v15  ;;  %v5974_v14 = vld [vmem:[%s7138_s15 + $0x70] sm:$0xff] }
 0x463   : > { %v1501_v56 = vcvt.s32.f32 %v989_v49  ;;  %v1502_v18 = vcvt.s32.f32 %v990_v51 }
 0x464   : > { %v4384_v13 = vmul.f32 %v4155_v59, %v3679_v45  ;;  %v4170_v45 = vpop.permute.xlu1 %4169 }
 0x465   : > { %v5032_v43 = vpop.f32.mrf.mxu1 }
 0x466   : > { %v5033_v37 = vadd.f32 %v5032_v43, %v7223_v20  ;;  %v1837_v43 = vpack.c.bf16 %v1501_v56, %v1493_v7  ;;  %v5975_v7 = vld [vmem:[%s7138_s15 + $0x78] sm:$0xff] }
 0x467   : > { %v3511_v17 = vpop.f32.mrf.mxu2 }
 0x468   : > { %v3680_v60 = vpop.f32.mrf.mxu3  ;;  %v5189_v47 = vadd.f32 %v7221_v36, %v5033_v37  ;;  %v3512_v48 = vadd.f32 %v3511_v17, %v6815_v61  ;;  %v7275_v29 = vpop.f32.mrf.mxu0 }
 0x46a   : > { %5253 = vst [vmem:[%s7231_s21 + $0x28] sm:$0xff] %v5189_v47  ;;  %v3681_v42 = vadd.f32 %v3680_v60, %v3512_v48 }
 0x46c   : > { %v4385_v34 = vmul.f32 %v4160_v21, %v3681_v42  ;;  %3553 = vmatmul.bf16.gmra.mxu2 %v1829_v19  ;;  %v4165_v19 = vpop.permute.xlu0 %4164 }
 0x46d   : > { %3722 = vmatmul.bf16.gmra.mxu3 %v1830_v6  ;;  %v5035_v20 = vpop.f32.mrf.mxu1 }
 0x46e   : > { %v5036_v55 = vadd.f32 %v5035_v20, %v7238_v52  ;;  %v4437_v28 = vpack.c.bf16 %v4385_v34, %v4384_v13  ;;  %v1494_v52 = vcvt.s32.f32 %v982_v9  ;;  %4872 = vmatmul.bf16.gmra.mxu0 %v5974_v14  ;;  %v6153_v13 = vld [vmem:[%s6293_s10 + $0x2c8] sm:$0xff]  ;;  %v6154_v20 = vld [vmem:[%s6293_s10 + $0x2d8] sm:$0xff] }
 0x46f   : > { %v3514_v61 = vpop.f32.mrf.mxu2  ;;  %v997_v34 = vunpack.c.2.s8 %v6153_v13 }
 0x470   : > { %v3683_v8 = vpop.f32.mrf.mxu3  ;;  %v5190_v26 = vadd.f32 %v7221_v36, %v5036_v55  ;;  %5074 = vmatmul.bf16.gmra.mxu1 %v4437_v28  ;;  %v3515_v1 = vadd.f32 %v3514_v61, %v6830_v50  ;;  %v7283_v62 = vpop.f32.mrf.mxu0  ;;  %v1838_v60 = vpack.c.bf16 %v1502_v18, %v1494_v52  ;;  %v1005_v55 = vunpack.c.2.s8 %v6154_v20 }
 0x471   : > { %v998_v61 = vunpack.c.3.s8 %v6153_v13  ;;  %v1509_v23 = vcvt.s32.f32 %v997_v34 }
 0x472   : > { %5254 = vst [vmem:[%s7231_s21 + $0x30] sm:$0xff] %v5190_v26  ;;  %v3684_v37 = vadd.f32 %v3683_v8, %v3515_v1  ;;  %v1006_v8 = vunpack.c.3.s8 %v6154_v20  ;;  %v1517_v15 = vcvt.s32.f32 %v1005_v55 }
 0x474   : > { %v4386_v47 = vmul.f32 %v4165_v19, %v3684_v37  ;;  %v1518_v49 = vcvt.s32.f32 %v1006_v8  ;;  %v1845_v52 = vpack.c.bf16 %v1517_v15, %v1509_v23  ;;  %v6155_v19 = vld [vmem:[%s6293_s10 + $0x2e8] sm:$0xff] }
 0x475   : > { %v5037_v0 = vpop.f32.mrf.mxu1 }
 0x476   : > { %v5038_v5 = vadd.f32 %v5037_v0, %v7245_v10 }
 0x477   : > { %v3516_v32 = vpop.f32.mrf.mxu2 }
 0x478   : > { %v3685_v39 = vpop.f32.mrf.mxu3  ;;  %v5191_v31 = vadd.f32 %v7221_v36, %v5038_v5  ;;  %v3517_v17 = vadd.f32 %v3516_v32, %v6834_v38  ;;  %v7290_v6 = vpop.f32.mrf.mxu0 }
 0x479   : > { %v4180_v32 = vpop.permute.xlu0 %4179 }
 0x47a   : > { %5255 = vst [vmem:[%s7231_s21 + $0x38] sm:$0xff] %v5191_v31  ;;  %v3686_v50 = vadd.f32 %v3685_v39, %v3517_v17  ;;  %v4175_v39 = vpop.permute.xlu2 %4174 }
 0x47c   : > { %v4387_v48 = vmul.f32 %v4170_v45, %v3686_v50  ;;  %3558 = vmatmul.bf16.gmra.mxu2 %v1837_v43  ;;  %v1013_v45 = vunpack.c.2.s8 %v6155_v19 }
 0x47d   : > { %3727 = vmatmul.bf16.gmra.mxu3 %v1838_v60  ;;  %v5040_v10 = vpop.f32.mrf.mxu1 }
 0x47e   : > { %v5041_v42 = vadd.f32 %v5040_v10, %v7253_v58  ;;  %v4438_v59 = vpack.c.bf16 %v4387_v48, %v4386_v47  ;;  %v1510_v58 = vcvt.s32.f32 %v998_v61  ;;  %4877 = vmatmul.bf16.gmra.mxu0 %v5975_v7  ;;  %v6156_v47 = vld [vmem:[%s6293_s10 + $0x2f8] sm:$0xff]  ;;  %v5976_v61 = vld [vmem:[%s7138_s15 + $0x80] sm:$0xff] }
 0x47f   : > { %v3519_v38 = vpop.f32.mrf.mxu2  ;;  %v1021_v48 = vunpack.c.2.s8 %v6156_v47 }
 0x480   : > { %v3688_v21 = vpop.f32.mrf.mxu3  ;;  %v5192_v28 = vadd.f32 %v7221_v36, %v5041_v42  ;;  %5079 = vmatmul.bf16.gmra.mxu1 %v4438_v59  ;;  %v3520_v3 = vadd.f32 %v3519_v38, %v6842_v30  ;;  %v7298_v9 = vpop.f32.mrf.mxu0  ;;  %v1846_v14 = vpack.c.bf16 %v1518_v49, %v1510_v58  ;;  %v1014_v42 = vunpack.c.3.s8 %v6155_v19 }
 0x481   : > { %v1022_v59 = vunpack.c.3.s8 %v6156_v47  ;;  %v1525_v38 = vcvt.s32.f32 %v1013_v45 }
 0x482   : > { %5256 = vst [vmem:[%s7231_s21 + $0x40] sm:$0xff] %v5192_v28  ;;  %v3689_v18 = vadd.f32 %v3688_v21, %v3520_v3  ;;  %v1533_v21 = vcvt.s32.f32 %v1021_v48  ;;  %v4190_v7 = vpop.permute.xlu2 %4189  ;;  %v5977_v48 = vld [vmem:[%s7138_s15 + $0x88] sm:$0xff] }
 0x483   : > { %v1534_v34 = vcvt.s32.f32 %v1022_v59 }
 0x484   : > { %v4388_v43 = vmul.f32 %v4175_v39, %v3689_v18  ;;  %v1853_v15 = vpack.c.bf16 %v1533_v21, %v1525_v38 }
 0x485   : > { %v5042_v26 = vpop.f32.mrf.mxu1 }
 0x486   : > { %v5043_v51 = vadd.f32 %v5042_v26, %v7260_v2 }
 0x487   : > { %v3521_v56 = vpop.f32.mrf.mxu2 }
 0x488   : > { %v3690_v1 = vpop.f32.mrf.mxu3  ;;  %v5193_v0 = vadd.f32 %v7221_v36, %v5043_v51  ;;  %v3522_v5 = vadd.f32 %v3521_v56, %v6849_v25  ;;  %v7305_v31 = vpop.f32.mrf.mxu0 }
 0x489   : > { %v4185_v51 = vpop.permute.xlu1 %4184 }
 0x48a   : > { %5257 = vst [vmem:[%s7231_s21 + $0x48] sm:$0xff] %v5193_v0  ;;  %v3691_v30 = vadd.f32 %v3690_v1, %v3522_v5 }
 0x48c   : > { %v4389_v37 = vmul.f32 %v4180_v32, %v3691_v30  ;;  %3563 = vmatmul.bf16.gmra.mxu2 %v1845_v52  ;;  %v6158_v32 = vld [vmem:[%s6293_s10 + $0x318] sm:$0xff] }
 0x48d   : > { %3732 = vmatmul.bf16.gmra.mxu3 %v1846_v14  ;;  %v5045_v2 = vpop.f32.mrf.mxu1  ;;  %v6157_v14 = vld [vmem:[%s6293_s10 + $0x308] sm:$0xff]  ;;  %v1037_v39 = vunpack.c.2.s8 %v6158_v32 }
 0x48e   : > { %v5046_v17 = vadd.f32 %v5045_v2, %v7268_v16  ;;  %v4439_v60 = vpack.c.bf16 %v4389_v37, %v4388_v43  ;;  %v1526_v16 = vcvt.s32.f32 %v1014_v42  ;;  %4882 = vmatmul.bf16.gmra.mxu0 %v5976_v61  ;;  %v1029_v30 = vunpack.c.2.s8 %v6157_v14 }
 0x48f   : > { %v3524_v25 = vpop.f32.mrf.mxu2  ;;  %v1030_v37 = vunpack.c.3.s8 %v6157_v14  ;;  %v1038_v2 = vunpack.c.3.s8 %v6158_v32 }
 0x490   : > { %v3693_v50 = vpop.f32.mrf.mxu3  ;;  %v5194_v10 = vadd.f32 %v7221_v36, %v5046_v17  ;;  %5084 = vmatmul.bf16.gmra.mxu1 %v4439_v60  ;;  %v3525_v13 = vadd.f32 %v3524_v25, %v6861_v40  ;;  %v7313_v55 = vpop.f32.mrf.mxu0  ;;  %v1854_v26 = vpack.c.bf16 %v1534_v34, %v1526_v16  ;;  %v1541_v17 = vcvt.s32.f32 %v1029_v30  ;;  %v5978_v30 = vld [vmem:[%s7138_s15 + $0x90] sm:$0xff] }
 0x491   : > { %v1549_v60 = vcvt.s32.f32 %v1037_v39  ;;  %v4195_v34 = vpop.permute.xlu0 %4194 }
 0x492   : > { %5258 = vst [vmem:[%s7231_s21 + $0x50] sm:$0xff] %v5194_v10  ;;  %v3694_v3 = vadd.f32 %v3693_v50, %v3525_v13  ;;  %v1550_v50 = vcvt.s32.f32 %v1038_v2 }
 0x493   : > { %v1861_v59 = vpack.c.bf16 %v1549_v60, %v1541_v17  ;;  %v7724_v17 = vld [vmem:[#allocation31_spill] sm:$0xff] }
 0x494   : > { %v4390_v56 = vmul.f32 %v4185_v51, %v3694_v3 }
 0x495   : > { %v5047_v20 = vpop.f32.mrf.mxu1 }
 0x496   : > { %v5048_v28 = vadd.f32 %v5047_v20, %v7275_v29  ;;  %v4200_v20 = vpop.permute.xlu1 %4199 }
 0x497   : > { %v3526_v8 = vpop.f32.mrf.mxu2 }
 0x498   : > { %v3695_v23 = vpop.f32.mrf.mxu3  ;;  %v5195_v58 = vadd.f32 %v7221_v36, %v5048_v28  ;;  %v3527_v49 = vadd.f32 %v3526_v8, %v6866_v63  ;;  %v7320_v52 = vpop.f32.mrf.mxu0 }
 0x49a   : > { %5259 = vst [vmem:[%s7231_s21 + $0x58] sm:$0xff] %v5195_v58  ;;  %v3696_v40 = vadd.f32 %v3695_v23, %v3527_v49  ;;  %v6159_v58 = vld [vmem:[%s6293_s10 + $0x328] sm:$0xff] }
 0x49b   : > { %v1045_v49 = vunpack.c.2.s8 %v6159_v58 }
 0x49c   : > { %v4391_v1 = vmul.f32 %v4190_v7, %v3696_v40  ;;  %3568 = vmatmul.bf16.gmra.mxu2 %v1853_v15  ;;  %v1046_v7 = vunpack.c.3.s8 %v6159_v58 }
 0x49d   : > { %3737 = vmatmul.bf16.gmra.mxu3 %v1854_v26  ;;  %v5050_v29 = vpop.f32.mrf.mxu1  ;;  %v6160_v26 = vld [vmem:[%s6293_s10 + $0x338] sm:$0xff] }
 0x49e   : > { %v5051_v18 = vadd.f32 %v5050_v29, %v7283_v62  ;;  %v4440_v0 = vpack.c.bf16 %v4391_v1, %v4390_v56  ;;  %v1542_v62 = vcvt.s32.f32 %v1030_v37  ;;  %4887 = vmatmul.bf16.gmra.mxu0 %v5977_v48  ;;  %v1053_v40 = vunpack.c.2.s8 %v6160_v26 }
 0x49f   : > { %v3529_v63 = vpop.f32.mrf.mxu2  ;;  %v1054_v56 = vunpack.c.3.s8 %v6160_v26  ;;  %v1557_v1 = vcvt.s32.f32 %v1045_v49  ;;  %v5979_v49 = vld [vmem:[%s7138_s15 + $0x98] sm:$0xff] }
 0x4a0   : > { %v3698_v5 = vpop.f32.mrf.mxu3  ;;  %v5196_v43 = vadd.f32 %v7221_v36, %v5051_v18  ;;  %5089 = vmatmul.bf16.gmra.mxu1 %v4440_v0  ;;  %v3530_v25 = vadd.f32 %v3529_v63, %v6881_v35  ;;  %v7328_v45 = vpop.f32.mrf.mxu0  ;;  %v1862_v16 = vpack.c.bf16 %v1550_v50, %v1542_v62  ;;  %v1565_v29 = vcvt.s32.f32 %v1053_v40 }
 0x4a1   : > { %v1566_v0 = vcvt.s32.f32 %v1054_v56  ;;  %v4210_v62 = vpop.permute.xlu0 %4209  ;;  %v4205_v50 = vpop.permute.xlu2 %4204 }
 0x4a2   : > { %5260 = vst [vmem:[%s7231_s21 + $0x60] sm:$0xff] %v5196_v43  ;;  %v3699_v38 = vadd.f32 %v3698_v5, %v3530_v25  ;;  %v1869_v43 = vpack.c.bf16 %v1565_v29, %v1557_v1  ;;  %v7725_v1 = vld [vmem:[#allocation32_spill] sm:$0xff] }
 0x4a4   : > { %v4392_v28 = vmul.f32 %v4195_v34, %v3699_v38 }
 0x4a5   : > { %v5052_v19 = vpop.f32.mrf.mxu1 }
 0x4a6   : > { %v5053_v47 = vadd.f32 %v5052_v19, %v7290_v6 }
 0x4a7   : > { %v3531_v10 = vpop.f32.mrf.mxu2 }
 0x4a8   : > { %v3700_v42 = vpop.f32.mrf.mxu3  ;;  %v5197_v21 = vadd.f32 %v7221_v36, %v5053_v47  ;;  %v3532_v13 = vadd.f32 %v3531_v10, %v6886_v44  ;;  %v7335_v8 = vpop.f32.mrf.mxu0 }
 0x4aa   : > { %5261 = vst [vmem:[%s7231_s21 + $0x68] sm:$0xff] %v5197_v21  ;;  %v3701_v35 = vadd.f32 %v3700_v42, %v3532_v13  ;;  %v6161_v21 = vld [vmem:[%s6293_s10 + $0x348] sm:$0xff] }
 0x4ab   : > { %v1061_v13 = vunpack.c.2.s8 %v6161_v21 }
 0x4ac   : > { %v4393_v61 = vmul.f32 %v4200_v20, %v3701_v35  ;;  %3573 = vmatmul.bf16.gmra.mxu2 %v1861_v59  ;;  %v1062_v20 = vunpack.c.3.s8 %v6161_v21  ;;  %v5980_v21 = vld [vmem:[%s7138_s15 + $0xa0] sm:$0xff] }
 0x4ad   : > { %3742 = vmatmul.bf16.gmra.mxu3 %v1862_v16  ;;  %v5055_v6 = vpop.f32.mrf.mxu1  ;;  %v6162_v16 = vld [vmem:[%s6293_s10 + $0x358] sm:$0xff] }
 0x4ae   : > { %v5056_v23 = vadd.f32 %v5055_v6, %v7298_v9  ;;  %v4441_v15 = vpack.c.bf16 %v4393_v61, %v4392_v28  ;;  %v1558_v9 = vcvt.s32.f32 %v1046_v7  ;;  %4892 = vmatmul.bf16.gmra.mxu0 %v5978_v30  ;;  %v1069_v35 = vunpack.c.2.s8 %v6162_v16 }
 0x4af   : > { %v3534_v44 = vpop.f32.mrf.mxu2  ;;  %v1070_v28 = vunpack.c.3.s8 %v6162_v16  ;;  %v1573_v61 = vcvt.s32.f32 %v1061_v13 }
 0x4b0   : > { %v3703_v3 = vpop.f32.mrf.mxu3  ;;  %v5198_v51 = vadd.f32 %v7221_v36, %v5056_v23  ;;  %5094 = vmatmul.bf16.gmra.mxu1 %v4441_v15  ;;  %v3535_v18 = vadd.f32 %v3534_v44, %v6895_v46  ;;  %v7343_v5 = vpop.f32.mrf.mxu0  ;;  %v1870_v25 = vpack.c.bf16 %v1566_v0, %v1558_v9  ;;  %v1581_v6 = vcvt.s32.f32 %v1069_v35 }
 0x4b1   : > { %v1582_v15 = vcvt.s32.f32 %v1070_v28  ;;  %v4215_v9 = vpop.permute.xlu1 %4214  ;;  %v4220_v0 = vpop.permute.xlu2 %4219  ;;  %v7726_v28 = vld [vmem:[#allocation3_spill] sm:$0xff] }
 0x4b2   : > { %5262 = vst [vmem:[%s7231_s21 + $0x70] sm:$0xff] %v5198_v51  ;;  %v3704_v37 = vadd.f32 %v3703_v3, %v3535_v18  ;;  %v1877_v51 = vpack.c.bf16 %v1581_v6, %v1573_v61 }
 0x4b4   : > { %v4394_v19 = vmul.f32 %v4205_v50, %v3704_v37 }
 0x4b5   : > { %v5057_v63 = vpop.f32.mrf.mxu1 }
 0x4b6   : > { %v5058_v14 = vadd.f32 %v5057_v63, %v7305_v31 }
 0x4b7   : > { %v3536_v32 = vpop.f32.mrf.mxu2 }
 0x4b8   : > { %v3705_v39 = vpop.f32.mrf.mxu3  ;;  %v5199_v2 = vadd.f32 %v7221_v36, %v5058_v14  ;;  %v3537_v60 = vadd.f32 %v3536_v32, %v7724_v17  ;;  %v7350_v48 = vpop.f32.mrf.mxu0 }
 0x4ba   : > { %5263 = vst [vmem:[%s7231_s21 + $0x78] sm:$0xff] %v5199_v2  ;;  %v3706_v46 = vadd.f32 %v3705_v39, %v3537_v60  ;;  %v6163_v2 = vld [vmem:[%s6293_s10 + $0x368] sm:$0xff]  ;;  %v6164_v60 = vld [vmem:[%s6293_s10 + $0x378] sm:$0xff] }
 0x4bb   : > { %v1077_v17 = vunpack.c.2.s8 %v6163_v2  ;;  %v1086_v50 = vunpack.c.3.s8 %v6164_v60 }
 0x4bc   : > { %v4395_v47 = vmul.f32 %v4210_v62, %v3706_v46  ;;  %3578 = vmatmul.bf16.gmra.mxu2 %v1869_v43  ;;  %v1078_v62 = vunpack.c.3.s8 %v6163_v2 }
 0x4bd   : > { %3747 = vmatmul.bf16.gmra.mxu3 %v1870_v25  ;;  %v5060_v31 = vpop.f32.mrf.mxu1  ;;  %v1085_v25 = vunpack.c.2.s8 %v6164_v60 }
 0x4be   : > { %v5061_v10 = vadd.f32 %v5060_v31, %v7313_v55  ;;  %v4442_v42 = vpack.c.bf16 %v4395_v47, %v4394_v19  ;;  %v1574_v55 = vcvt.s32.f32 %v1062_v20  ;;  %4897 = vmatmul.bf16.gmra.mxu0 %v5979_v49  ;;  %v1589_v19 = vcvt.s32.f32 %v1077_v17 }
 0x4bf   : > { %v3539_v59 = vpop.f32.mrf.mxu2  ;;  %v1597_v47 = vcvt.s32.f32 %v1085_v25 }
 0x4c0   : > { %v3708_v38 = vpop.f32.mrf.mxu3  ;;  %v5200_v34 = vadd.f32 %v7221_v36, %v5061_v10  ;;  %5099 = vmatmul.bf16.gmra.mxu1 %v4442_v42  ;;  %v3540_v23 = vadd.f32 %v3539_v59, %v6911_v4  ;;  %v7358_v3 = vpop.f32.mrf.mxu0  ;;  %v1878_v18 = vpack.c.bf16 %v1582_v15, %v1574_v55  ;;  %v1598_v10 = vcvt.s32.f32 %v1086_v50 }
 0x4c1   : > { %v1885_v35 = vpack.c.bf16 %v1597_v47, %v1589_v19  ;;  %v4230_v55 = vpop.permute.xlu1 %4229 }
 0x4c2   : > { %5264 = vst [vmem:[%s7231_s21 + $0x80] sm:$0xff] %v5200_v34  ;;  %v3709_v7 = vadd.f32 %v3708_v38, %v3540_v23  ;;  %v4225_v23 = vpop.permute.xlu0 %4224 }
 0x4c4   : > { %v4396_v63 = vmul.f32 %v4215_v9, %v3709_v7  ;;  %v6165_v7 = vld [vmem:[%s6293_s10 + $0x388] sm:$0xff] }
 0x4c5   : > { %v5062_v44 = vpop.f32.mrf.mxu1 }
 0x4c6   : > { %v5063_v58 = vadd.f32 %v5062_v44, %v7320_v52 }
 0x4c7   : > { %v3541_v26 = vpop.f32.mrf.mxu2 }
 0x4c8   : > { %v3710_v40 = vpop.f32.mrf.mxu3  ;;  %v5201_v56 = vadd.f32 %v7221_v36, %v5063_v58  ;;  %v3542_v29 = vadd.f32 %v3541_v26, %v7725_v1  ;;  %v7365_v30 = vpop.f32.mrf.mxu0  ;;  %v6166_v1 = vld [vmem:[%s6293_s10 + $0x398] sm:$0xff] }
 0x4c9   : > { %v1102_v9 = vunpack.c.3.s8 %v6166_v1 }
 0x4ca   : > { %5265 = vst [vmem:[%s7231_s21 + $0x88] sm:$0xff] %v5201_v56  ;;  %v3711_v4 = vadd.f32 %v3710_v40, %v3542_v29  ;;  %v1093_v56 = vunpack.c.2.s8 %v6165_v7  ;;  %v1101_v29 = vunpack.c.2.s8 %v6166_v1  ;;  %v4240_v47 = vpop.permute.xlu0 %4239 }
 0x4cc   : > { %v4397_v14 = vmul.f32 %v4220_v0, %v3711_v4  ;;  %3583 = vmatmul.bf16.gmra.mxu2 %v1877_v51  ;;  %v1094_v4 = vunpack.c.3.s8 %v6165_v7  ;;  %v1605_v0 = vcvt.s32.f32 %v1093_v56  ;;  %v7731_v56 = vld [vmem:[#allocation6_spill] sm:$0xff] }
 0x4cd   : > { %3752 = vmatmul.bf16.gmra.mxu3 %v1878_v18  ;;  %v5065_v52 = vpop.f32.mrf.mxu1 }
 0x4ce   : > { %v5066_v32 = vadd.f32 %v5065_v52, %v7328_v45  ;;  %v4443_v39 = vpack.c.bf16 %v4397_v14, %v4396_v63  ;;  %v1590_v45 = vcvt.s32.f32 %v1078_v62  ;;  %4902 = vmatmul.bf16.gmra.mxu0 %v5980_v21  ;;  %v1613_v63 = vcvt.s32.f32 %v1101_v29  ;;  %v7727_v62 = vld [vmem:[#allocation4_spill] sm:$0xff] }
 0x4cf   : > { %v3544_v43 = vpop.f32.mrf.mxu2  ;;  %v1614_v52 = vcvt.s32.f32 %v1102_v9 }
 0x4d0   : > { %v3713_v37 = vpop.f32.mrf.mxu3  ;;  %v5202_v46 = vadd.f32 %v7221_v36, %v5066_v32  ;;  %5104 = vmatmul.bf16.gmra.mxu1 %v4443_v39  ;;  %v3545_v31 = vadd.f32 %v3544_v43, %v6933_v41  ;;  %v7373_v59 = vpop.f32.mrf.mxu0  ;;  %v1886_v6 = vpack.c.bf16 %v1598_v10, %v1590_v45  ;;  %v1893_v60 = vpack.c.bf16 %v1613_v63, %v1605_v0 }
 0x4d2   : > { %5266 = vst [vmem:[%s7231_s21 + $0x90] sm:$0xff] %v5202_v46  ;;  %v3714_v34 = vadd.f32 %v3713_v37, %v3545_v31  ;;  %v5981_v37 = vld [vmem:[%s7138_s15 + $0xa8] sm:$0xff]  ;;  %v4235_v31 = vpop.permute.xlu2 %4234 }
 0x4d4   : > { %v4398_v15 = vmul.f32 %v4225_v23, %v3714_v34  ;;  %v7728_v23 = vld [vmem:[#allocation8_spill] sm:$0xff] }
 0x4d5   : > { %v5067_v42 = vpop.f32.mrf.mxu1 }
 0x4d6   : > { %v5068_v38 = vadd.f32 %v5067_v42, %v7335_v8 }
 0x4d7   : > { %v3546_v13 = vpop.f32.mrf.mxu2 }
 0x4d8   : > { %v3715_v16 = vpop.f32.mrf.mxu3  ;;  %v5203_v20 = vadd.f32 %v7221_v36, %v5068_v38  ;;  %v3547_v61 = vadd.f32 %v3546_v13, %v7726_v28  ;;  %v7380_v58 = vpop.f32.mrf.mxu0 }
 0x4da   : > { %5267 = vst [vmem:[%s7231_s21 + $0x98] sm:$0xff] %v5203_v20  ;;  %v3716_v41 = vadd.f32 %v3715_v16, %v3547_v61  ;;  %v6168_v20 = vld [vmem:[%s6293_s10 + $0x3b8] sm:$0xff] }
 0x4db   : > { %v1117_v28 = vunpack.c.2.s8 %v6168_v20 }
 0x4dc   : > { %v4399_v44 = vmul.f32 %v4230_v55, %v3716_v41  ;;  %3588 = vmatmul.bf16.gmra.mxu2 %v1885_v35  ;;  %v6167_v35 = vld [vmem:[%s6293_s10 + $0x3a8] sm:$0xff]  ;;  %v1118_v41 = vunpack.c.3.s8 %v6168_v20  ;;  %v7729_v55 = vld [vmem:[#allocation5_spill] sm:$0xff] }
 0x4dd   : > { %3757 = vmatmul.bf16.gmra.mxu3 %v1886_v6  ;;  %v5070_v8 = vpop.f32.mrf.mxu1  ;;  %v1109_v34 = vunpack.c.2.s8 %v6167_v35  ;;  %v1110_v6 = vunpack.c.3.s8 %v6167_v35 }
 0x4de   : > { %v5071_v49 = vadd.f32 %v5070_v8, %v7343_v5  ;;  %v4444_v26 = vpack.c.bf16 %v4399_v44, %v4398_v15  ;;  %v1606_v5 = vcvt.s32.f32 %v1094_v4  ;;  %4907 = vmatmul.bf16.gmra.mxu0 %v5981_v37  ;;  %v3219_v15 = vadd.f32 %v7729_v55, %v7728_v23  ;;  %v4250_v37 = vpop.permute.xlu2 %4249 }
 0x4df   : > { %v3549_v40 = vpop.f32.mrf.mxu2  ;;  %v1621_v44 = vcvt.s32.f32 %v1109_v34  ;;  %v1629_v8 = vcvt.s32.f32 %v1117_v28 }
 0x4e0   : > { %v3718_v51 = vpop.f32.mrf.mxu3  ;;  %v5204_v18 = vadd.f32 %v7221_v36, %v5071_v49  ;;  %5109 = vmatmul.bf16.gmra.mxu1 %v4444_v26  ;;  %v3550_v14 = vadd.f32 %v3549_v40, %v6955_v33  ;;  %v7388_v39 = vpop.f32.mrf.mxu0  ;;  %v1894_v19 = vpack.c.bf16 %v1614_v52, %v1606_v5  ;;  %v1622_v26 = vcvt.s32.f32 %v1110_v6 }
 0x4e1   : > { %v1630_v40 = vcvt.s32.f32 %v1118_v41  ;;  %v3388_v1 = vadd.f32 %v7731_v56, %v3219_v15  ;;  %v1901_v0 = vpack.c.bf16 %v1629_v8, %v1621_v44  ;;  %v7735_v41 = vld [vmem:[#allocation33_spill] sm:$0xff]  ;;  %v5983_v15 = vld [vmem:[%s7138_s15 + $0xb8] sm:$0xff] }
 0x4e2   : > { %5268 = vst [vmem:[%s7231_s21 + $0xa0] sm:$0xff] %v5204_v18  ;;  %v3719_v25 = vadd.f32 %v3718_v51, %v3550_v14  ;;  %v5982_v18 = vld [vmem:[%s7138_s15 + $0xb0] sm:$0xff] }
 0x4e3   : > { %v1902_v52 = vpack.c.bf16 %v1630_v40, %v1622_v26 }
 0x4e4   : > { %v4400_v45 = vmul.f32 %v4235_v31, %v3719_v25 }
 0x4e5   : > { %v5072_v32 = vpop.f32.mrf.mxu1 }
 0x4e6   : > { %v5073_v43 = vadd.f32 %v5072_v32, %v7350_v48 }
 0x4e7   : > { %v3551_v2 = vpop.f32.mrf.mxu2 }
 0x4e8   : > { %v3720_v17 = vpop.f32.mrf.mxu3  ;;  %v5205_v46 = vadd.f32 %v7221_v36, %v5073_v43  ;;  %v3552_v50 = vadd.f32 %v3551_v2, %v7727_v62  ;;  %v7395_v42 = vpop.f32.mrf.mxu0 }
 0x4e9   : > { %v4245_v43 = vpop.permute.xlu1 %4244 }
 0x4ea   : > { %5269 = vst [vmem:[%s7231_s21 + $0xa8] sm:$0xff] %v5205_v46  ;;  %v3721_v33 = vadd.f32 %v3720_v17, %v3552_v50 }
 0x4ec   : > { %v4401_v10 = vmul.f32 %v4240_v47, %v3721_v33  ;;  %3593 = vmatmul.bf16.gmra.mxu2 %v1893_v60  ;;  %v6170_v47 = vld [vmem:[%s6293_s10 + $0x3d8] sm:$0xff] }
 0x4ed   : > { %3762 = vmatmul.bf16.gmra.mxu3 %v1894_v19  ;;  %v5075_v48 = vpop.f32.mrf.mxu1  ;;  %v6169_v19 = vld [vmem:[%s6293_s10 + $0x3c8] sm:$0xff]  ;;  %v1133_v31 = vunpack.c.2.s8 %v6170_v47 }
 0x4ee   : > { %v5076_v38 = vadd.f32 %v5075_v48, %v7358_v3  ;;  %v4445_v21 = vpack.c.bf16 %v4401_v10, %v4400_v45  ;;  %v7730_v3 = vld [vmem:[#allocation7_spill] sm:$0xff]  ;;  %4912 = vmatmul.bf16.gmra.mxu0 %v5982_v18  ;;  %v1125_v33 = vunpack.c.2.s8 %v6169_v19  ;;  %v1126_v10 = vunpack.c.3.s8 %v6169_v19 }
 0x4ef   : > { %v3554_v13 = vpop.f32.mrf.mxu2  ;;  %v1134_v48 = vunpack.c.3.s8 %v6170_v47  ;;  %v1645_v35 = vcvt.s32.f32 %v1133_v31 }
 0x4f0   : > { %v3723_v16 = vpop.f32.mrf.mxu3  ;;  %v5206_v61 = vadd.f32 %v7221_v36, %v5076_v38  ;;  %5114 = vmatmul.bf16.gmra.mxu1 %v4445_v21  ;;  %v3555_v49 = vadd.f32 %v3554_v13, %v7730_v3  ;;  %v7405_v7 = vpop.f32.mrf.mxu0  ;;  %v7732_v38 = vld [vmem:[#allocation10_spill] sm:$0xff]  ;;  %v7733_v21 = vld [vmem:[#allocation9_spill] sm:$0xff]  ;;  %v1638_v20 = vcvt.s32.f32 %v1126_v10 }
 0x4f1   : > { %v3224_v13 = vadd.f32 %v7733_v21, %v7732_v38  ;;  %v1646_v28 = vcvt.s32.f32 %v1134_v48  ;;  %v5984_v48 = vld [vmem:[%s7138_s15 + $0xc0] sm:$0xff] }
 0x4f2   : > { %5270 = vst [vmem:[%s7231_s21 + $0xb0] sm:$0xff] %v5206_v61  ;;  %v3724_v63 = vadd.f32 %v3723_v16, %v3555_v49  ;;  %v1637_v16 = vcvt.s32.f32 %v1125_v33 }
 0x4f3   : > { %v3393_v23 = vadd.f32 %v7735_v41, %v3224_v13 }
 0x4f4   : > { %v4402_v2 = vmul.f32 %v4245_v43, %v3724_v63  ;;  %v1909_v3 = vpack.c.bf16 %v1645_v35, %v1637_v16  ;;  %v6172_v43 = vld [vmem:[%s6293_s10 + $0x3f8] sm:$0xff]  ;;  %v7447_v16 = vld [vmem:[%s7622_s6] ss:$0 sm:$0xff] }
 0x4f5   : > { %v5077_v51 = vpop.f32.mrf.mxu1 }
 0x4f6   : > { %v5078_v29 = vadd.f32 %v5077_v51, %v7365_v30  ;;  %v1910_v51 = vpack.c.bf16 %v1646_v28, %v1638_v20 }
 0x4f7   : > { %v3556_v4 = vpop.f32.mrf.mxu2 }
 0x4f8   : > { %v3725_v9 = vpop.f32.mrf.mxu3  ;;  %v5207_v14 = vadd.f32 %v7221_v36, %v5078_v29  ;;  %v3557_v5 = vadd.f32 %v3556_v4, %v3388_v1  ;;  %v7412_v60 = vpop.f32.mrf.mxu0 }
 0x4f9   : > { %v4255_v1 = vpop.permute.xlu0 %4254  ;;  %v4260_v29 = vpop.permute.xlu1 %4259 }
 0x4fa   : > { %5271 = vst [vmem:[%s7231_s21 + $0xb8] sm:$0xff] %v5207_v14  ;;  %v3726_v32 = vadd.f32 %v3725_v9, %v3557_v5 }
 0x4fc   : > { %v4403_v17 = vmul.f32 %v4250_v37, %v3726_v32  ;;  %3598 = vmatmul.bf16.gmra.mxu2 %v1901_v0  ;;  %v1149_v37 = vunpack.c.2.s8 %v6172_v43 }
 0x4fd   : > { %3767 = vmatmul.bf16.gmra.mxu3 %v1902_v52  ;;  %v5080_v30 = vpop.f32.mrf.mxu1  ;;  %v6171_v52 = vld [vmem:[%s6293_s10 + $0x3e8] sm:$0xff] }
 0x4fe   : > { %v5081_v25 = vadd.f32 %v5080_v30, %v7373_v59  ;;  %v4446_v46 = vpack.c.bf16 %v4403_v17, %v4402_v2  ;;  %v7734_v59 = vld [vmem:[#allocation34_spill] sm:$0xff]  ;;  %4917 = vmatmul.bf16.gmra.mxu0 %v5983_v15  ;;  %v1141_v32 = vunpack.c.2.s8 %v6171_v52  ;;  %v1142_v17 = vunpack.c.3.s8 %v6171_v52 }
 0x4ff   : > { %v3559_v62 = vpop.f32.mrf.mxu2  ;;  %v1150_v30 = vunpack.c.3.s8 %v6172_v43 }
 0x500   : > { %v3728_v50 = vpop.f32.mrf.mxu3  ;;  %v5208_v45 = vadd.f32 %v7221_v36, %v5081_v25  ;;  %5119 = vmatmul.bf16.gmra.mxu1 %v4446_v46  ;;  %v3560_v34 = vadd.f32 %v3559_v62, %v7734_v59  ;;  %v7422_v6 = vpop.f32.mrf.mxu0  ;;  %v7736_v25 = vld [vmem:[#allocation11_spill] sm:$0xff]  ;;  %v1653_v62 = vcvt.s32.f32 %v1141_v32  ;;  %v1654_v19 = vcvt.s32.f32 %v1142_v17 }
 0x501   : > { %v3229_v46 = vadd.f32 %v7736_v25, %v7021_v24  ;;  %v1662_v33 = vcvt.s32.f32 %v1150_v30  ;;  %v4270_v20 = vpop.permute.xlu0 %4269 }
 0x502   : > { %5272 = vst [vmem:[%s7231_s21 + $0xc0] sm:$0xff] %v5208_v45  ;;  %v3729_v49 = vadd.f32 %v3728_v50, %v3560_v34  ;;  %v1661_v50 = vcvt.s32.f32 %v1149_v37  ;;  %v7737_v45 = vld [vmem:[#allocation35_spill] sm:$0xff] }
 0x503   : > { %v3398_v10 = vadd.f32 %v7737_v45, %v3229_v46  ;;  %v1918_v59 = vpack.c.bf16 %v1662_v33, %v1654_v19  ;;  %v7740_v46 = vld [vmem:[#allocation16_spill] sm:$0xff]  ;;  %v7743_v45 = vld [vmem:[#allocation15_spill] sm:$0xff] }
 0x504   : > { %v4404_v18 = vmul.f32 %v4255_v1, %v3729_v49  ;;  %v1917_v13 = vpack.c.bf16 %v1661_v50, %v1653_v62  ;;  %v3234_v49 = vadd.f32 %v7035_v12, %v7044_v22  ;;  %v7739_v1 = vld [vmem:[#allocation12_spill] sm:$0xff]  ;;  %v4275_v22 = vpop.permute.xlu1 %4274  ;;  %v7741_v62 = vld [vmem:[#allocation14_spill] sm:$0xff] }
 0x505   : > { %v5082_v61 = vpop.f32.mrf.mxu1  ;;  %v3239_v50 = vadd.f32 %v7741_v62, %v7740_v46  ;;  %v7749_v46 = vld [vmem:[#allocation19_spill] sm:$0xff] }
 0x506   : > { %v5083_v55 = vadd.f32 %v5082_v61, %v7380_v58 }
 0x507   : > { %v3561_v44 = vpop.f32.mrf.mxu2 }
 0x508   : > { %v3730_v8 = vpop.f32.mrf.mxu3  ;;  %v5209_v26 = vadd.f32 %v7221_v36, %v5083_v55  ;;  %v3562_v40 = vadd.f32 %v3561_v44, %v3393_v23  ;;  %v7429_v9 = vpop.f32.mrf.mxu0 }
 0x50a   : > { %5273 = vst [vmem:[%s7231_s21 + $0xc8] sm:$0xff] %v5209_v26  ;;  %v3731_v56 = vadd.f32 %v3730_v8, %v3562_v40  ;;  %v7738_v26 = vld [vmem:[#allocation13_spill] sm:$0xff] }
 0x50c   : > { %v4405_v4 = vmul.f32 %v4260_v29, %v3731_v56  ;;  %3603 = vmatmul.bf16.gmra.mxu2 %v1909_v3  ;;  %v3403_v29 = vadd.f32 %v7739_v1, %v3234_v49  ;;  %v7746_v49 = vld [vmem:[#allocation38_spill] sm:$0xff]  ;;  %v7747_v1 = vld [vmem:[#allocation37_spill] sm:$0xff] }
 0x50d   : > { %3772 = vmatmul.bf16.gmra.mxu3 %v1910_v51  ;;  %v5085_v58 = vpop.f32.mrf.mxu1 }
 0x50e   : > { %v5086_v0 = vadd.f32 %v5085_v58, %v7388_v39  ;;  %v4447_v63 = vpack.c.bf16 %v4405_v4, %v4404_v18  ;;  %4922 = vmatmul.bf16.gmra.mxu0 %v5984_v48  ;;  %v5985_v18 = vld [vmem:[%s7138_s15 + $0xc8] sm:$0xff] }
 0x50f   : > { %v3564_v14 = vpop.f32.mrf.mxu2 }
 0x510   : > { %v3733_v5 = vpop.f32.mrf.mxu3  ;;  %v5210_v2 = vadd.f32 %v7221_v36, %v5086_v0  ;;  %5124 = vmatmul.bf16.gmra.mxu1 %v4447_v63  ;;  %v3565_v39 = vadd.f32 %v3564_v14, %v7015_v53  ;;  %v7439_v31 = vpop.f32.mrf.mxu0 }
 0x512   : > { %5274 = vst [vmem:[%s7231_s21 + $0xd0] sm:$0xff] %v5210_v2  ;;  %v3734_v24 = vadd.f32 %v3733_v5, %v3565_v39  ;;  %v7742_v39 = vld [vmem:[#allocation36_spill] sm:$0xff] }
 0x515   : > { %v5087_v47 = vpop.f32.mrf.mxu1 }
 0x516   : > { %v5088_v36 = vadd.f32 %v5087_v47, %v7395_v42  ;;  %v4265_v42 = vpop.permute.xlu2 %4264 }
 0x517   : > { %v3566_v38 = vpop.f32.mrf.mxu2  ;;  %v4406_v28 = vmul.f32 %v4265_v42, %v3734_v24 }
 0x518   : > { %v3735_v21 = vpop.f32.mrf.mxu3  ;;  %v5211_v53 = vadd.f32 %v7447_v16, %v5088_v36  ;;  %v3567_v35 = vadd.f32 %v3566_v38, %v3398_v10  ;;  %v7451_v23 = vpop.f32.mrf.mxu0  ;;  %v3408_v10 = vadd.f32 %v7743_v45, %v3239_v50  ;;  %v5986_v36 = vld [vmem:[%s7138_s15 + $0xd0] sm:$0xff]  ;;  %v7750_v50 = vld [vmem:[#allocation40_spill] sm:$0xff]  ;;  %v7751_v45 = vld [vmem:[#allocation39_spill] sm:$0xff] }
 0x51a   : > { %5275 = vst [vmem:[%s7231_s21 + $0xd8] sm:$0xff] %v5211_v53  ;;  %v3736_v34 = vadd.f32 %v3735_v21, %v3567_v35  ;;  %v4285_v35 = vpop.permute.xlu0 %4284 }
 0x51c   : > { %v4407_v61 = vmul.f32 %v4270_v20, %v3736_v34  ;;  %3608 = vmatmul.bf16.gmra.mxu2 %v1917_v13 }
 0x51d   : > { %3777 = vmatmul.bf16.gmra.mxu3 %v1918_v59  ;;  %v5090_v41 = vpop.f32.mrf.mxu1  ;;  %v4290_v59 = vpop.permute.xlu1 %4289 }
 0x51e   : > { %v5091_v55 = vadd.f32 %v5090_v41, %v7405_v7  ;;  %v4448_v15 = vpack.c.bf16 %v4407_v61, %v4406_v28  ;;  %4927 = vmatmul.bf16.gmra.mxu0 %v5985_v18  ;;  %v4280_v5 = vpop.permute.xlu2 %4279 }
 0x51f   : > { %v3569_v44 = vpop.f32.mrf.mxu2 }
 0x520   : > { %v3738_v8 = vpop.f32.mrf.mxu3  ;;  %v5212_v3 = vadd.f32 %v7447_v16, %v5091_v55  ;;  %5129 = vmatmul.bf16.gmra.mxu1 %v4448_v15  ;;  %v3570_v40 = vadd.f32 %v3569_v44, %v7738_v26  ;;  %v7459_v56 = vpop.f32.mrf.mxu0  ;;  %v7744_v44 = vld [vmem:[#allocation18_spill] sm:$0xff] }
 0x522   : > { %5276 = vst [vmem:[%s7231_s21 + $0xe0] sm:$0xff] %v5212_v3  ;;  %v3739_v0 = vadd.f32 %v3738_v8, %v3570_v40  ;;  %v7745_v8 = vld [vmem:[#allocation17_spill] sm:$0xff] }
 0x523   : > { %v3244_v3 = vadd.f32 %v7745_v8, %v7744_v44  ;;  %v7753_v44 = vld [vmem:[#allocation21_spill] sm:$0xff] }
 0x524   : > { %v4408_v52 = vmul.f32 %v4275_v22, %v3739_v0 }
 0x525   : > { %v5092_v51 = vpop.f32.mrf.mxu1 }
 0x526   : > { %v5093_v7 = vadd.f32 %v5092_v51, %v7412_v60  ;;  %v4295_v22 = vpop.permute.xlu2 %4294 }
 0x527   : > { %v3571_v4 = vpop.f32.mrf.mxu2 }
 0x528   : > { %v3740_v58 = vpop.f32.mrf.mxu3  ;;  %v5213_v63 = vadd.f32 %v7447_v16, %v5093_v7  ;;  %v3572_v14 = vadd.f32 %v3571_v4, %v3403_v29  ;;  %v7466_v37 = vpop.f32.mrf.mxu0  ;;  %v3413_v29 = vadd.f32 %v7747_v1, %v3244_v3  ;;  %v5987_v7 = vld [vmem:[%s7138_s15 + $0xd8] sm:$0xff]  ;;  %v7755_v1 = vld [vmem:[#allocation41_spill] sm:$0xff] }
 0x529   : > { %v7754_v3 = vld [vmem:[#allocation42_spill] sm:$0xff] }
 0x52a   : > { %5277 = vst [vmem:[%s7231_s21 + $0xe8] sm:$0xff] %v5213_v63  ;;  %v3741_v12 = vadd.f32 %v3740_v58, %v3572_v14 }
 0x52c   : > { %v4409_v32 = vmul.f32 %v4280_v5, %v3741_v12  ;;  %v4300_v12 = vpop.permute.xlu0 %4299 }
 0x52d   : > { %v5095_v43 = vpop.f32.mrf.mxu1 }
 0x52e   : > { %v5096_v60 = vadd.f32 %v5095_v43, %v7422_v6  ;;  %v4449_v2 = vpack.c.bf16 %v4409_v32, %v4408_v52  ;;  %4932 = vmatmul.bf16.gmra.mxu0 %v5986_v36 }
 0x52f   : > { %v3574_v17 = vpop.f32.mrf.mxu2 }
 0x530   : > { %v3743_v30 = vpop.f32.mrf.mxu3  ;;  %v5214_v25 = vadd.f32 %v7447_v16, %v5096_v60  ;;  %5134 = vmatmul.bf16.gmra.mxu1 %v4449_v2  ;;  %v3575_v19 = vadd.f32 %v3574_v17, %v7742_v39  ;;  %v7474_v47 = vpop.f32.mrf.mxu0 }
 0x532   : > { %5278 = vst [vmem:[%s7231_s21 + $0xf0] sm:$0xff] %v5214_v25  ;;  %v3744_v21 = vadd.f32 %v3743_v30, %v3575_v19  ;;  %v7748_v25 = vld [vmem:[#allocation20_spill] sm:$0xff] }
 0x533   : > { %v3249_v62 = vadd.f32 %v7749_v46, %v7748_v25  ;;  %v7757_v46 = vld [vmem:[#allocation44_spill] sm:$0xff] }
 0x534   : > { %v4410_v34 = vmul.f32 %v4285_v35, %v3744_v21  ;;  %v4310_v35 = vpop.permute.xlu2 %4309 }
 0x535   : > { %v5097_v33 = vpop.f32.mrf.mxu1 }
 0x536   : > { %v5098_v6 = vadd.f32 %v5097_v33, %v7429_v9 }
 0x537   : > { %v3576_v48 = vpop.f32.mrf.mxu2 }
 0x538   : > { %v3745_v38 = vpop.f32.mrf.mxu3  ;;  %v5215_v13 = vadd.f32 %v7447_v16, %v5098_v6  ;;  %v3577_v24 = vadd.f32 %v3576_v48, %v3408_v10  ;;  %v7481_v28 = vpop.f32.mrf.mxu0  ;;  %v3418_v10 = vadd.f32 %v7751_v45, %v3249_v62  ;;  %v5988_v6 = vld [vmem:[%s7138_s15 + $0xe0] sm:$0xff] }
 0x53a   : > { %5279 = vst [vmem:[%s7231_s21 + $0xf8] sm:$0xff] %v5215_v13  ;;  %v3746_v53 = vadd.f32 %v3745_v38, %v3577_v24 }
 0x53c   : > { %v4411_v20 = vmul.f32 %v4290_v59, %v3746_v53  ;;  %v4305_v53 = vpop.permute.xlu1 %4304 }
 0x53d   : > { %v5100_v42 = vpop.f32.mrf.mxu1 }
 0x53e   : > { %v5101_v9 = vadd.f32 %v5100_v42, %v7439_v31  ;;  %v4450_v61 = vpack.c.bf16 %v4411_v20, %v4410_v34  ;;  %4937 = vmatmul.bf16.gmra.mxu0 %v5987_v7 }
 0x53f   : > { %v3579_v41 = vpop.f32.mrf.mxu2 }
 0x540   : > { %v3748_v55 = vpop.f32.mrf.mxu3  ;;  %v5216_v15 = vadd.f32 %v7447_v16, %v5101_v9  ;;  %5139 = vmatmul.bf16.gmra.mxu1 %v4450_v61  ;;  %v3580_v26 = vadd.f32 %v3579_v41, %v7746_v49  ;;  %v7489_v51 = vpop.f32.mrf.mxu0 }
 0x542   : > { %5280 = vst [vmem:[%s7231_s21 + $0x100] sm:$0xff] %v5216_v15  ;;  %v3749_v58 = vadd.f32 %v3748_v55, %v3580_v26  ;;  %v7752_v15 = vld [vmem:[#allocation22_spill] sm:$0xff] }
 0x543   : > { %v3254_v8 = vadd.f32 %v7753_v44, %v7752_v15  ;;  %v7761_v15 = vld [vmem:[#allocation45_spill] sm:$0xff] }
 0x544   : > { %v4412_v5 = vmul.f32 %v4295_v22, %v3749_v58 }
 0x545   : > { %v5102_v40 = vpop.f32.mrf.mxu1 }
 0x546   : > { %v5103_v31 = vadd.f32 %v5102_v40, %v7451_v23 }
 0x547   : > { %v3581_v18 = vpop.f32.mrf.mxu2 }
 0x548   : > { %v3750_v4 = vpop.f32.mrf.mxu3  ;;  %v5217_v0 = vadd.f32 %v7447_v16, %v5103_v31  ;;  %v3582_v63 = vadd.f32 %v3581_v18, %v3413_v29  ;;  %v7496_v43 = vpop.f32.mrf.mxu0  ;;  %v3423_v29 = vadd.f32 %v7755_v1, %v3254_v8  ;;  %v5989_v31 = vld [vmem:[%s7138_s15 + $0xe8] sm:$0xff] }
 0x54a   : > { %5281 = vst [vmem:[%s7231_s21 + $0x108] sm:$0xff] %v5217_v0  ;;  %v3751_v14 = vadd.f32 %v3750_v4, %v3582_v63 }
 0x54c   : > { %v4413_v52 = vmul.f32 %v4300_v12, %v3751_v14  ;;  %v4315_v14 = vpop.permute.xlu0 %4314  ;;  %v4320_v12 = vpop.permute.xlu1 %4319 }
 0x54d   : > { %v5105_v32 = vpop.f32.mrf.mxu1 }
 0x54e   : > { %v5106_v23 = vadd.f32 %v5105_v32, %v7459_v56  ;;  %v4451_v60 = vpack.c.bf16 %v4413_v52, %v4412_v5  ;;  %4942 = vmatmul.bf16.gmra.mxu0 %v5988_v6 }
 0x54f   : > { %v3584_v2 = vpop.f32.mrf.mxu2 }
 0x550   : > { %v3753_v17 = vpop.f32.mrf.mxu3  ;;  %v5218_v30 = vadd.f32 %v7447_v16, %v5106_v23  ;;  %5144 = vmatmul.bf16.gmra.mxu1 %v4451_v60  ;;  %v3585_v39 = vadd.f32 %v3584_v2, %v7750_v50  ;;  %v7504_v33 = vpop.f32.mrf.mxu0 }
 0x552   : > { %5282 = vst [vmem:[%s7231_s21 + $0x110] sm:$0xff] %v5218_v30  ;;  %v3754_v38 = vadd.f32 %v3753_v17, %v3585_v39  ;;  %v7756_v30 = vld [vmem:[#allocation23_spill] sm:$0xff] }
 0x553   : > { %v3259_v25 = vadd.f32 %v7756_v30, %v7117_v11  ;;  %v7758_v39 = vld [vmem:[#allocation43_spill] sm:$0xff] }
 0x554   : > { %v4414_v59 = vmul.f32 %v4305_v53, %v3754_v38 }
 0x555   : > { %v5107_v19 = vpop.f32.mrf.mxu1 }
 0x556   : > { %v5108_v56 = vadd.f32 %v5107_v19, %v7466_v37  ;;  %v3428_v19 = vadd.f32 %v7758_v39, %v3259_v25 }
 0x557   : > { %v3586_v36 = vpop.f32.mrf.mxu2 }
 0x558   : > { %v3755_v48 = vpop.f32.mrf.mxu3  ;;  %v5219_v21 = vadd.f32 %v7447_v16, %v5108_v56  ;;  %v3587_v13 = vadd.f32 %v3586_v36, %v3418_v10  ;;  %v7511_v42 = vpop.f32.mrf.mxu0 }
 0x55a   : > { %5283 = vst [vmem:[%s7231_s21 + $0x118] sm:$0xff] %v5219_v21  ;;  %v3756_v24 = vadd.f32 %v3755_v48, %v3587_v13  ;;  %v4330_v21 = vpop.permute.xlu0 %4329  ;;  %v4325_v13 = vpop.permute.xlu2 %4324 }
 0x55c   : > { %v4415_v34 = vmul.f32 %v4310_v35, %v3756_v24 }
 0x55d   : > { %v5110_v20 = vpop.f32.mrf.mxu1 }
 0x55e   : > { %v5111_v37 = vadd.f32 %v5110_v20, %v7474_v47  ;;  %v4452_v9 = vpack.c.bf16 %v4415_v34, %v4414_v59  ;;  %4947 = vmatmul.bf16.gmra.mxu0 %v5989_v31 }
 0x55f   : > { %v3589_v61 = vpop.f32.mrf.mxu2 }
 0x560   : > { %v3758_v41 = vpop.f32.mrf.mxu3  ;;  %v5220_v55 = vadd.f32 %v7447_v16, %v5111_v37  ;;  %5149 = vmatmul.bf16.gmra.mxu1 %v4452_v9  ;;  %v3590_v49 = vadd.f32 %v3589_v61, %v7754_v3  ;;  %v7519_v40 = vpop.f32.mrf.mxu0  ;;  %v7759_v61 = vld [vmem:[#allocation26_spill] sm:$0xff]  ;;  %v7762_v3 = vld [vmem:[#allocation25_spill] sm:$0xff] }
 0x562   : > { %5284 = vst [vmem:[%s7231_s21 + $0x120] sm:$0xff] %v5220_v55  ;;  %v3759_v4 = vadd.f32 %v3758_v41, %v3590_v49  ;;  %v7760_v41 = vld [vmem:[#allocation24_spill] sm:$0xff] }
 0x563   : > { %v3264_v55 = vadd.f32 %v7760_v41, %v7759_v61 }
 0x564   : > { %v4416_v22 = vmul.f32 %v4315_v14, %v3759_v4 }
 0x565   : > { %v5112_v26 = vpop.f32.mrf.mxu1  ;;  %v3433_v49 = vadd.f32 %v7762_v3, %v3264_v55 }
 0x566   : > { %v5113_v47 = vadd.f32 %v5112_v26, %v7481_v28 }
 0x567   : > { %v3591_v7 = vpop.f32.mrf.mxu2 }
 0x568   : > { %v3760_v18 = vpop.f32.mrf.mxu3  ;;  %v5221_v58 = vadd.f32 %v7447_v16, %v5113_v47  ;;  %v3592_v0 = vadd.f32 %v3591_v7, %v3423_v29  ;;  %v7526_v32 = vpop.f32.mrf.mxu0 }
 0x56a   : > { %5285 = vst [vmem:[%s7231_s21 + $0x128] sm:$0xff] %v5221_v58  ;;  %v3761_v63 = vadd.f32 %v3760_v18, %v3592_v0  ;;  %v4335_v58 = vpop.permute.xlu1 %4334  ;;  %v4340_v0 = vpop.permute.xlu2 %4339 }
 0x56c   : > { %v4417_v5 = vmul.f32 %v4320_v12, %v3761_v63 }
 0x56d   : > { %v5115_v52 = vpop.f32.mrf.mxu1 }
 0x56e   : > { %v5116_v28 = vadd.f32 %v5115_v52, %v7489_v51  ;;  %v4453_v23 = vpack.c.bf16 %v4417_v5, %v4416_v22  ;;  %v5990_v51 = vld [vmem:[%s7138_s15 + $0xf0] sm:$0xff] }
 0x56f   : > { %v3594_v60 = vpop.f32.mrf.mxu2  ;;  %4952 = vmatmul.bf16.gmra.mxu0 %v5990_v51 }
 0x570   : > { %v3763_v2 = vpop.f32.mrf.mxu3  ;;  %v5222_v17 = vadd.f32 %v7447_v16, %v5116_v28  ;;  %5154 = vmatmul.bf16.gmra.mxu1 %v4453_v23  ;;  %v3595_v62 = vadd.f32 %v3594_v60, %v7757_v46  ;;  %v7536_v10 = vpop.f32.mrf.mxu0  ;;  %v7763_v23 = vld [vmem:[#allocation47_spill] sm:$0xff]  ;;  %v7764_v60 = vld [vmem:[#allocation46_spill] sm:$0xff] }
 0x572   : > { %5286 = vst [vmem:[%s7231_s21 + $0x130] sm:$0xff] %v5222_v17  ;;  %v3764_v36 = vadd.f32 %v3763_v2, %v3595_v62  ;;  %v3269_v2 = vadd.f32 %v7764_v60, %v7763_v23  ;;  %v7765_v17 = vld [vmem:[#allocation27_spill] sm:$0xff]  ;;  %v7766_v62 = vld [vmem:[#allocation28_spill] sm:$0xff] }
 0x574   : > { %v4418_v24 = vmul.f32 %v4325_v13, %v3764_v36  ;;  %v4345_v36 = vpop.permute.xlu0 %4344 }
 0x575   : > { %v5117_v50 = vpop.f32.mrf.mxu1 }
 0x576   : > { %v5118_v45 = vadd.f32 %v5117_v50, %v7496_v43  ;;  %v3438_v50 = vadd.f32 %v7766_v62, %v3269_v2 }
 0x577   : > { %v3596_v56 = vpop.f32.mrf.mxu2 }
 0x578   : > { %v3765_v6 = vpop.f32.mrf.mxu3  ;;  %v5223_v48 = vadd.f32 %v7447_v16, %v5118_v45  ;;  %v3597_v38 = vadd.f32 %v3596_v56, %v3428_v19  ;;  %v4915_v9 = vpop.f32.mrf.mxu0 }
 0x57a   : > { %5287 = vst [vmem:[%s7231_s21 + $0x138] sm:$0xff] %v5223_v48  ;;  %v3766_v11 = vadd.f32 %v3765_v6, %v3597_v38  ;;  %v4350_v48 = vpop.permute.xlu1 %4349 }
 0x57c   : > { %v4419_v53 = vmul.f32 %v4330_v21, %v3766_v11 }
 0x57d   : > { %v5120_v35 = vpop.f32.mrf.mxu1 }
 0x57e   : > { %v5121_v43 = vadd.f32 %v5120_v35, %v7504_v33  ;;  %v4454_v59 = vpack.c.bf16 %v4419_v53, %v4418_v24  ;;  %v5991_v33 = vld [vmem:[%s7138_s15 + $0xf8] sm:$0xff] }
 0x57f   : > { %v3599_v34 = vpop.f32.mrf.mxu2  ;;  %4957 = vmatmul.bf16.gmra.mxu0 %v5991_v33 }
 0x580   : > { %v3768_v20 = vpop.f32.mrf.mxu3  ;;  %v5224_v37 = vadd.f32 %v7447_v16, %v5121_v43  ;;  %5159 = vmatmul.bf16.gmra.mxu1 %v4454_v59  ;;  %v3600_v44 = vadd.f32 %v3599_v34, %v7761_v15  ;;  %v4918_v4 = vpop.f32.mrf.mxu0  ;;  %v3274_v59 = vadd.f32 %v7189_v54, %v7157_v57  ;;  %v7767_v34 = vld [vmem:[#allocation29_spill] sm:$0xff] }
 0x581   : > { %v4355_v57 = vpop.permute.xlu2 %4354 }
 0x582   : > { %5288 = vst [vmem:[%s7231_s21 + $0x140] sm:$0xff] %v5224_v37  ;;  %v3769_v47 = vadd.f32 %v3768_v20, %v3600_v44  ;;  %v3443_v61 = vadd.f32 %v7212_v27, %v3274_v59 }
 0x584   : > { %v4420_v63 = vmul.f32 %v4335_v58, %v3769_v47 }
 0x585   : > { %v5122_v8 = vpop.f32.mrf.mxu1 }
 0x586   : > { %v5123_v26 = vadd.f32 %v5122_v8, %v7511_v42 }
 0x587   : > { %v3601_v1 = vpop.f32.mrf.mxu2 }
 0x588   : > { %v3770_v29 = vpop.f32.mrf.mxu3  ;;  %v5225_v31 = vadd.f32 %v7447_v16, %v5123_v26  ;;  %v3602_v7 = vadd.f32 %v3601_v1, %v3433_v49  ;;  %v4920_v25 = vpop.f32.mrf.mxu0 }
 0x589   : > { %v4360_v26 = vpop.permute.xlu0 %4359 }
 0x58a   : > { %5289 = vst [vmem:[%s7231_s21 + $0x148] sm:$0xff] %v5225_v31  ;;  %v3771_v18 = vadd.f32 %v3770_v29, %v3602_v7 }
 0x58c   : > { %v4421_v14 = vmul.f32 %v4340_v0, %v3771_v18 }
 0x58d   : > { %v5125_v12 = vpop.f32.mrf.mxu1 }
 0x58e   : > { %v5126_v22 = vadd.f32 %v5125_v12, %v7519_v40  ;;  %v4455_v42 = vpack.c.bf16 %v4421_v14, %v4420_v63 }
 0x58f   : > { %v3604_v5 = vpop.f32.mrf.mxu2 }
 0x590   : > { %v3773_v52 = vpop.f32.mrf.mxu3  ;;  %v5226_v28 = vadd.f32 %v7447_v16, %v5126_v22  ;;  %5164 = vmatmul.bf16.gmra.mxu1 %v4455_v42  ;;  %v3605_v30 = vadd.f32 %v3604_v5, %v7765_v17  ;;  %v4923_v53 = vpop.f32.mrf.mxu0 }
 0x592   : > { %5290 = vst [vmem:[%s7231_s21 + $0x150] sm:$0xff] %v5226_v28  ;;  %v3774_v45 = vadd.f32 %v3773_v52, %v3605_v30 }
 0x594   : > { %v4422_v38 = vmul.f32 %v4345_v36, %v3774_v45 }
 0x595   : > { %v5127_v46 = vpop.f32.mrf.mxu1 }
 0x596   : > { %v5128_v39 = vadd.f32 %v5127_v46, %v7526_v32 }
 0x597   : > { %v3606_v40 = vpop.f32.mrf.mxu2 }
 0x598   : > { %v3775_v19 = vpop.f32.mrf.mxu3  ;;  %v5227_v51 = vadd.f32 %v7447_v16, %v5128_v39  ;;  %v3607_v56 = vadd.f32 %v3606_v40, %v3438_v50  ;;  %v4925_v3 = vpop.f32.mrf.mxu0 }
 0x59a   : > { %5291 = vst [vmem:[%s7231_s21 + $0x158] sm:$0xff] %v5227_v51  ;;  %v3776_v6 = vadd.f32 %v3775_v19, %v3607_v56 }
 0x59c   : > { %v4423_v11 = vmul.f32 %v4350_v48, %v3776_v6 }
 0x59d   : > { %v5130_v21 = vpop.f32.mrf.mxu1 }
 0x59e   : > { %v5131_v13 = vadd.f32 %v5130_v21, %v7536_v10  ;;  %v4456_v24 = vpack.c.bf16 %v4423_v11, %v4422_v38 }
 0x59f   : > { %v3609_v35 = vpop.f32.mrf.mxu2 }
 0x5a0   : > { %v3778_v32 = vpop.f32.mrf.mxu3  ;;  %v5228_v43 = vadd.f32 %v7447_v16, %v5131_v13  ;;  %5169 = vmatmul.bf16.gmra.mxu1 %v4456_v24  ;;  %v3610_v20 = vadd.f32 %v3609_v35, %v7767_v34  ;;  %v4928_v47 = vpop.f32.mrf.mxu0 }
 0x5a2   : > { %5292 = vst [vmem:[%s7231_s21 + $0x160] sm:$0xff] %v5228_v43  ;;  %v3779_v10 = vadd.f32 %v3778_v32, %v3610_v20 }
 0x5a4   : > { %v4424_v54 = vmul.f32 %v4355_v57, %v3779_v10 }
 0x5a5   : > { %v5132_v37 = vpop.f32.mrf.mxu1 }
 0x5a6   : > { %v5133_v41 = vadd.f32 %v5132_v37, %v4915_v9 }
 0x5a7   : > { %v3611_v55 = vpop.f32.mrf.mxu2 }
 0x5a8   : > { %v5229_v15 = vadd.f32 %v7447_v16, %v5133_v41  ;;  %v3612_v44 = vadd.f32 %v3611_v55, %v3443_v61  ;;  %v3780_v8 = vpop.f32.mrf.mxu3  ;;  %v4930_v0 = vpop.f32.mrf.mxu0 }
 0x5aa   : > { %5293 = vst [vmem:[%s7231_s21 + $0x168] sm:$0xff] %v5229_v15  ;;  %v3781_v49 = vadd.f32 %v3780_v8, %v3612_v44 }
 0x5ac   : > { %v4425_v33 = vmul.f32 %v4360_v26, %v3781_v49 }
 0x5ad   : > { %v5135_v1 = vpop.f32.mrf.mxu1 }
 0x5ae   : > { %v5136_v29 = vadd.f32 %v5135_v1, %v4918_v4  ;;  %v4457_v27 = vpack.c.bf16 %v4425_v33, %v4424_v54 }
 0x5b0   : > { %v5230_v9 = vadd.f32 %v7447_v16, %v5136_v29  ;;  %5174 = vmatmul.bf16.gmra.mxu1 %v4457_v27  ;;  %v4933_v22 = vpop.f32.mrf.mxu0 }
 0x5b2   : > { %5294 = vst [vmem:[%s7231_s21 + $0x170] sm:$0xff] %v5230_v9 }
 0x5b5   : > { %v5137_v31 = vpop.f32.mrf.mxu1 }
 0x5b6   : > { %v5138_v7 = vadd.f32 %v5137_v31, %v4920_v25 }
 0x5b8   : > { %v5231_v18 = vadd.f32 %v7447_v16, %v5138_v7  ;;  %v4935_v23 = vpop.f32.mrf.mxu0 }
 0x5ba   : > { %5295 = vst [vmem:[%s7231_s21 + $0x178] sm:$0xff] %v5231_v18 }
 0x5bd   : > { %v5140_v58 = vpop.f32.mrf.mxu1 }
 0x5be   : > { %v5141_v63 = vadd.f32 %v5140_v58, %v4923_v53 }
 0x5c0   : > { %v5232_v14 = vadd.f32 %v7447_v16, %v5141_v63  ;;  %v4938_v30 = vpop.f32.mrf.mxu0 }
 0x5c2   : > { %5296 = vst [vmem:[%s7231_s21 + $0x180] sm:$0xff] %v5232_v14 }
 0x5c5   : > { %v5142_v4 = vpop.f32.mrf.mxu1 }
 0x5c6   : > { %v5143_v12 = vadd.f32 %v5142_v4, %v4925_v3 }
 0x5c8   : > { %v5233_v42 = vadd.f32 %v7447_v16, %v5143_v12  ;;  %v4940_v39 = vpop.f32.mrf.mxu0 }
 0x5ca   : > { %5297 = vst [vmem:[%s7231_s21 + $0x188] sm:$0xff] %v5233_v42 }
 0x5cd   : > { %v5145_v5 = vpop.f32.mrf.mxu1 }
 0x5ce   : > { %v5146_v52 = vadd.f32 %v5145_v5, %v4928_v47 }
 0x5d0   : > { %v5234_v28 = vadd.f32 %v7447_v16, %v5146_v52  ;;  %v4943_v56 = vpop.f32.mrf.mxu0 }
 0x5d2   : > { %5298 = vst [vmem:[%s7231_s21 + $0x190] sm:$0xff] %v5234_v28 }
 0x5d5   : > { %v5147_v60 = vpop.f32.mrf.mxu1 }
 0x5d6   : > { %v5148_v2 = vadd.f32 %v5147_v60, %v4930_v0 }
 0x5d8   : > { %v5235_v17 = vadd.f32 %v7447_v16, %v5148_v2  ;;  %v4945_v11 = vpop.f32.mrf.mxu0 }
 0x5da   : > { %5299 = vst [vmem:[%s7231_s21 + $0x198] sm:$0xff] %v5235_v17 }
 0x5dd   : > { %v5150_v25 = vpop.f32.mrf.mxu1 }
 0x5de   : > { %v5151_v46 = vadd.f32 %v5150_v25, %v4933_v22 }
 0x5e0   : > { %v5236_v62 = vadd.f32 %v7447_v16, %v5151_v46  ;;  %v4948_v53 = vpop.f32.mrf.mxu0 }
 0x5e2   : > { %5300 = vst [vmem:[%s7231_s21 + $0x1a0] sm:$0xff] %v5236_v62 }
 0x5e5   : > { %v5152_v50 = vpop.f32.mrf.mxu1 }
 0x5e6   : > { %v5153_v40 = vadd.f32 %v5152_v50, %v4935_v23 }
 0x5e8   : > { %v5237_v19 = vadd.f32 %v7447_v16, %v5153_v40  ;;  %v4950_v59 = vpop.f32.mrf.mxu0 }
 0x5ea   : > { %5301 = vst [vmem:[%s7231_s21 + $0x1a8] sm:$0xff] %v5237_v19 }
 0x5ed   : > { %v5155_v45 = vpop.f32.mrf.mxu1 }
 0x5ee   : > { %v5156_v51 = vadd.f32 %v5155_v45, %v4938_v30 }
 0x5f0   : > { %v5238_v6 = vadd.f32 %v7447_v16, %v5156_v51  ;;  %v4953_v55 = vpop.f32.mrf.mxu0 }
 0x5f2   : > { %5302 = vst [vmem:[%s7231_s21 + $0x1b0] sm:$0xff] %v5238_v6 }
 0x5f5   : > { %v5157_v36 = vpop.f32.mrf.mxu1 }
 0x5f6   : > { %v5158_v48 = vadd.f32 %v5157_v36, %v4940_v39 }
 0x5f8   : > { %v5239_v38 = vadd.f32 %v7447_v16, %v5158_v48  ;;  %v4955_v3 = vpop.f32.mrf.mxu0 }
 0x5fa   : > { %5303 = vst [vmem:[%s7231_s21 + $0x1b8] sm:$0xff] %v5239_v38 }
 0x5fd   : > { %v5160_v21 = vpop.f32.mrf.mxu1 }
 0x5fe   : > { %v5161_v13 = vadd.f32 %v5160_v21, %v4943_v56 }
 0x600   : > { %v5240_v24 = vadd.f32 %v7447_v16, %v5161_v13  ;;  %v4958_v54 = vpop.f32.mrf.mxu0 }
 0x602   : > { %5304 = vst [vmem:[%s7231_s21 + $0x1c0] sm:$0xff] %v5240_v24 }
 0x605   : > { %v5162_v35 = vpop.f32.mrf.mxu1 }
 0x606   : > { %v5163_v32 = vadd.f32 %v5162_v35, %v4945_v11 }
 0x608   : > { %v5241_v43 = vadd.f32 %v7447_v16, %v5163_v32  ;;  %v4960_v27 = vpop.f32.mrf.mxu0 }
 0x60a   : > { %5305 = vst [vmem:[%s7231_s21 + $0x1c8] sm:$0xff] %v5241_v43 }
 0x60d   : > { %v5165_v34 = vpop.f32.mrf.mxu1 }
 0x60e   : > { %v5166_v20 = vadd.f32 %v5165_v34, %v4948_v53 }
 0x610   : > { %v5242_v37 = vadd.f32 %v7447_v16, %v5166_v20 }
 0x612   : > { %5306 = vst [vmem:[%s7231_s21 + $0x1d0] sm:$0xff] %v5242_v37 }
 0x615   : > { %v5167_v61 = vpop.f32.mrf.mxu1 }
 0x616   : > { %v5168_v41 = vadd.f32 %v5167_v61, %v4950_v59 }
 0x618   : > { %v5243_v10 = vadd.f32 %v7447_v16, %v5168_v41 }
 0x61a   : > { %5307 = vst [vmem:[%s7231_s21 + $0x1d8] sm:$0xff] %v5243_v10 }
 0x61d   : > { %v5170_v15 = vpop.f32.mrf.mxu1 }
 0x61e   : > { %v5171_v44 = vadd.f32 %v5170_v15, %v4953_v55 }
 0x620   : > { %v5244_v8 = vadd.f32 %v7447_v16, %v5171_v44 }
 0x622   : > { %5308 = vst [vmem:[%s7231_s21 + $0x1e0] sm:$0xff] %v5244_v8 }
 0x625   : > { %v5172_v49 = vpop.f32.mrf.mxu1 }
 0x626   : > { %v5173_v26 = vadd.f32 %v5172_v49, %v4955_v3 }
 0x628   : > { %v5245_v57 = vadd.f32 %v7447_v16, %v5173_v26 }
 0x62a   : > { %5309 = vst [vmem:[%s7231_s21 + $0x1e8] sm:$0xff] %v5245_v57 }
 0x62d   : > { %v5175_v33 = vpop.f32.mrf.mxu1 }
 0x62e   : > { %v5176_v1 = vadd.f32 %v5175_v33, %v4958_v54 }
 0x630   : > { %v5246_v29 = vadd.f32 %v7447_v16, %v5176_v1 }
 0x632   : > { %5310 = vst [vmem:[%s7231_s21 + $0x1f0] sm:$0xff] %v5246_v29 }
 0x635   : > { %v5177_v9 = vpop.f32.mrf.mxu1 }
 0x636   : > { %v5178_v47 = vadd.f32 %v5177_v9, %v4960_v27 }
 0x638   : > { %v5247_v31 = vadd.f32 %v7447_v16, %v5178_v47 }
 0x63a   : > { %5311 = vst [vmem:[%s7231_s21 + $0x1f8] sm:$0xff] %v5247_v31 }
 0x63b PF: > { %s17_s26 = sadd.s32 1, %s6196_s26   ;;  %s7768_s24 = smov %s6192_s25 }
 0x63c   : > { %p14_p5 = scmp.ge.s32.totalorder %s17_s26, 4   ;;  %s7769_s25 = smov %s7771_s27 }
 0x63e   :  { %16 = sbr.rel (!%p14_p5) target bundleno = 2 (0x2), region = 95 }

// kernel: sage_batch_forward.3
= control target key start
LH: loop header
LB: loop body
LE: loop exit
PB: predicated region body
PF: predicated region fallthrough
CT: control target
= control target key end

     0   :  { %s6558_s24 = smov 0   ;;  %s6560_s25 = smov 0   ;;  %s7909_s0 = inlined_call_operand.vmem [shape: s8[1024,1024], index: 0, kind: input, shape index: {}]   ;;  %s7910_s1 = inlined_call_operand.vmem [shape: bf16[1024,128], index: 1, kind: input, shape index: {}, may-alias: {1,2}]   ;;  %s7911_s2 = inlined_call_operand.vmem [shape: bf16[1024,128], index: 2, kind: input, shape index: {}, may-alias: {1,2}]   ;;  %s7912_s3 = inlined_call_operand.vmem [shape: f32[1024,1], index: 3, kind: input, shape index: {}]   ;;  %s7913_s4 = inlined_call_operand.vmem [shape: bf16[128,128], index: 4, kind: input, shape index: {}]   ;;  %s7914_s5 = inlined_call_operand.vmem [shape: bf16[128,128], index: 5, kind: input, shape index: {}]   ;;  %s7915_s6 = inlined_call_operand.vmem [shape: f32[1,128], index: 6, kind: input, shape index: {}]   ;;  %s7916_s7 = inlined_call_operand.vmem [shape: bf16[1024,128], index: 7, kind: output, shape index: {}]  }
   0x1   :  { %s6562_s26 = smov 0  }
   0x2 LB: > { %s29_s27 = sadd.s32 1, %s6511_s25  ;;  %p5555_p0 = scmp.ge.s32.totalorder %s6515_s26, 1  ;;  %s6515_s26 = sphi %s6562_s26, %s17_s26   ;;  %s6511_s25 = sphi %s6560_s25, %s8062_s25   ;;  %s6507_s24 = sphi %s6558_s24, %s8061_s24  }
   0x3   : > { %p31_p1 = scmp.ge.s32.totalorder %s29_s27, 2  ;;  %p291_p2 = scmp.lt.s32.totalorder %s6515_s26, 3 }
   0x5   : > { %s8064_s27 = smov (%p31_p1, %s29_s27), 0  ;;  %p292_p3 = pnand %p5555_p0, %p291_p2 }
   0x7   : > { %295 = sbr.rel (%p292_p3) target bundleno = 1599 (0x63f), region = 48 }
   0xc   : > { %v6023_v0 = vld [vmem:[%s7910_s1 + $0x38] sm:$0xff]  ;;  %s5556_s9 = sshll.u32 %s6507_s24, 6  ;;  %v6022_v2 = vld [vmem:[%s7910_s1 + $0x30] sm:$0xff]  ;;  %v6021_v4 = vld [vmem:[%s7910_s1 + $0x28] sm:$0xff] }
   0xd   : > { %v6031_v1 = vld [vmem:[%s7910_s1 + $0x78] sm:$0xff]  ;;  %6319 = vmatpush.bf16.msra.mxu2 %v6023_v0  ;;  %v6030_v3 = vld [vmem:[%s7910_s1 + $0x70] sm:$0xff]  ;;  %2431 = vmatpush.bf16.msra.mxu0 %v6023_v0  ;;  %p345_p4 = scmp.lt.s32.totalorder %s5556_s9, 127  ;;  %v6029_v5 = vld [vmem:[%s7910_s1 + $0x68] sm:$0xff] }
   0xe   : > { %6327 = vmatpush.bf16.msra.mxu3 %v6031_v1  ;;  %2600 = vmatpush.bf16.msra.mxu1 %v6031_v1  ;;  %v6020_v6 = vld [vmem:[%s7910_s1 + $0x20] sm:$0xff]  ;;  %v6019_v8 = vld [vmem:[%s7910_s1 + $0x18] sm:$0xff]  ;;  %v6018_v10 = vld [vmem:[%s7910_s1 + $0x10] sm:$0xff] }
   0xf   : > { %s8066_s9 = smov (!%p345_p4, %s5556_s9), 127  ;;  %v6028_v7 = vld [vmem:[%s7910_s1 + $0x60] sm:$0xff]  ;;  %v6027_v9 = vld [vmem:[%s7910_s1 + $0x58] sm:$0xff]  ;;  %v6026_v11 = vld [vmem:[%s7910_s1 + $0x50] sm:$0xff] }
  0x10   : > { %s6015_s22 = sshll.u32 %s8066_s9, 4  ;;  %v6017_v20 = vld [vmem:[%s7910_s1 + $0x8] sm:$0xff]  ;;  %v6016_v30 = vld [vmem:[%s7910_s1] sm:$0xff]  ;;  %v6039_v32 = vld [vmem:[%s7910_s1 + $0xb8] sm:$0xff]  ;;  %s5562_s19 = sshll.u32 %s8066_s9, 3 }
  0x11   : > { %6320 = vmatpush.bf16.msra.mxu2 %v6022_v2  ;;  %2432 = vmatpush.bf16.msra.mxu0 %v6022_v2  ;;  %s6612_s10 = scalar_lea.vmem %s7909_s0, %s6015_s22  ;;  %v6025_v21 = vld [vmem:[%s7910_s1 + $0x48] sm:$0xff]  ;;  %v6024_v31 = vld [vmem:[%s7910_s1 + $0x40] sm:$0xff]  ;;  %v6047_v33 = vld [vmem:[%s7910_s1 + $0xf8] sm:$0xff]  ;;  %s7145_s22 = scalar_lea.vmem %s7912_s3, %s5562_s19 }
  0x12   : > { %6328 = vmatpush.bf16.msra.mxu3 %v6030_v3  ;;  %2601 = vmatpush.bf16.msra.mxu1 %v6030_v3  ;;  %v575_v12 = vld [vmem:[%s6612_s10 + $0x200] sm:$0xff]  ;;  %v577_v13 = vld [vmem:[%s6612_s10 + $0x210] sm:$0xff]  ;;  %s5560_s11 = sshll.u32 %s8066_s9, 2 }
  0x13   : > { %v511_v14 = vld [vmem:[%s6612_s10] sm:$0xff]  ;;  %v513_v15 = vld [vmem:[%s6612_s10 + $0x10] sm:$0xff]  ;;  %v895_v16 = vunpack.c.0.s8 %v575_v12  ;;  %v903_v17 = vunpack.c.0.s8 %v577_v13  ;;  %v896_v18 = vunpack.c.1.s8 %v575_v12  ;;  %v904_v19 = vunpack.c.1.s8 %v577_v13  ;;  %s7457_s14 = scalar_lea.vmem %s7911_s2, %s5560_s11  ;;  %s7560_s19 = scalar_lea.vmem %s7916_s7, %s5560_s11 }
  0x14   : > { %v639_v22 = vunpack.c.0.s8 %v511_v14  ;;  %v647_v23 = vunpack.c.0.s8 %v513_v15  ;;  %v640_v24 = vunpack.c.1.s8 %v511_v14  ;;  %v648_v25 = vunpack.c.1.s8 %v513_v15  ;;  %v6038_v42 = vld [vmem:[%s7910_s1 + $0xb0] sm:$0xff]  ;;  %v579_v44 = vld [vmem:[%s6612_s10 + $0x220] sm:$0xff] }
  0x15   : > { %6321 = vmatpush.bf16.msra.mxu2 %v6021_v4  ;;  %2433 = vmatpush.bf16.msra.mxu0 %v6021_v4  ;;  %v1407_v26 = vcvt.s32.f32 %v895_v16  ;;  %v1415_v27 = vcvt.s32.f32 %v903_v17  ;;  %v1408_v28 = vcvt.s32.f32 %v896_v18  ;;  %v1416_v29 = vcvt.s32.f32 %v904_v19  ;;  %v6046_v43 = vld [vmem:[%s7910_s1 + $0xf0] sm:$0xff]  ;;  %v515_v46 = vld [vmem:[%s6612_s10 + $0x20] sm:$0xff] }
  0x16   : > { %6329 = vmatpush.bf16.msra.mxu3 %v6029_v5  ;;  %2602 = vmatpush.bf16.msra.mxu1 %v6029_v5  ;;  %v1151_v34 = vcvt.s32.f32 %v639_v22  ;;  %v1159_v35 = vcvt.s32.f32 %v647_v23  ;;  %v1152_v36 = vcvt.s32.f32 %v640_v24  ;;  %v1160_v37 = vcvt.s32.f32 %v648_v25  ;;  %v581_v45 = vld [vmem:[%s6612_s10 + $0x230] sm:$0xff]  ;;  %v583_v4 = vld [vmem:[%s6612_s10 + $0x240] sm:$0xff] }
  0x17   : > { %v1791_v38 = vpack.c.bf16 %v1415_v27, %v1407_v26  ;;  %v1792_v39 = vpack.c.bf16 %v1416_v29, %v1408_v28  ;;  %v517_v47 = vld [vmem:[%s6612_s10 + $0x30] sm:$0xff]  ;;  %v911_v48 = vunpack.c.0.s8 %v579_v44  ;;  %v919_v49 = vunpack.c.0.s8 %v581_v45  ;;  %v6037_v28 = vld [vmem:[%s7910_s1 + $0xa8] sm:$0xff] }
  0x18   : > { %v1663_v40 = vpack.c.bf16 %v1159_v35, %v1151_v34  ;;  %v1664_v41 = vpack.c.bf16 %v1160_v37, %v1152_v36  ;;  %v912_v50 = vunpack.c.1.s8 %v579_v44  ;;  %v920_v51 = vunpack.c.1.s8 %v581_v45  ;;  %v585_v5 = vld [vmem:[%s6612_s10 + $0x250] sm:$0xff]  ;;  %v6045_v29 = vld [vmem:[%s7910_s1 + $0xe8] sm:$0xff] }
  0x19   : > { %6322 = vmatpush.bf16.msra.mxu2 %v6020_v6  ;;  %2434 = vmatpush.bf16.msra.mxu0 %v6020_v6  ;;  %v655_v52 = vunpack.c.0.s8 %v515_v46  ;;  %v663_v53 = vunpack.c.0.s8 %v517_v47  ;;  %v656_v54 = vunpack.c.1.s8 %v515_v46  ;;  %v664_v55 = vunpack.c.1.s8 %v517_v47  ;;  %v519_v6 = vld [vmem:[%s6612_s10 + $0x40] sm:$0xff] }
  0x1a   : > { %6330 = vmatpush.bf16.msra.mxu3 %v6028_v7  ;;  %2603 = vmatpush.bf16.msra.mxu1 %v6028_v7  ;;  %v1423_v56 = vcvt.s32.f32 %v911_v48  ;;  %v1431_v57 = vcvt.s32.f32 %v919_v49  ;;  %v1424_v58 = vcvt.s32.f32 %v912_v50  ;;  %v1432_v59 = vcvt.s32.f32 %v920_v51  ;;  %v521_v7 = vld [vmem:[%s6612_s10 + $0x50] sm:$0xff] }
  0x1b   : > { %v1167_v60 = vcvt.s32.f32 %v655_v52  ;;  %v1175_v61 = vcvt.s32.f32 %v663_v53  ;;  %v1168_v62 = vcvt.s32.f32 %v656_v54  ;;  %v1176_v63 = vcvt.s32.f32 %v664_v55  ;;  %v591_v54 = vld [vmem:[%s6612_s10 + $0x280] sm:$0xff]  ;;  %v593_v55 = vld [vmem:[%s6612_s10 + $0x290] sm:$0xff] }
  0x1c   : > { %v1799_v0 = vpack.c.bf16 %v1431_v57, %v1423_v56  ;;  %v1800_v1 = vpack.c.bf16 %v1432_v59, %v1424_v58  ;;  %v671_v12 = vunpack.c.0.s8 %v519_v6  ;;  %v679_v13 = vunpack.c.0.s8 %v521_v7  ;;  %v527_v56 = vld [vmem:[%s6612_s10 + $0x80] sm:$0xff]  ;;  %v529_v57 = vld [vmem:[%s6612_s10 + $0x90] sm:$0xff] }
  0x1d   : > { %6323 = vmatpush.bf16.msra.mxu2 %v6019_v8  ;;  %2435 = vmatpush.bf16.msra.mxu0 %v6019_v8  ;;  %v1671_v2 = vpack.c.bf16 %v1175_v61, %v1167_v60  ;;  %v1672_v3 = vpack.c.bf16 %v1176_v63, %v1168_v62  ;;  %v927_v8 = vunpack.c.0.s8 %v583_v4  ;;  %v672_v14 = vunpack.c.1.s8 %v519_v6 }
  0x1e   : > { %6331 = vmatpush.bf16.msra.mxu3 %v6027_v9  ;;  %2604 = vmatpush.bf16.msra.mxu1 %v6027_v9  ;;  %v935_v9 = vunpack.c.0.s8 %v585_v5  ;;  %v680_v15 = vunpack.c.1.s8 %v521_v7  ;;  %v959_v58 = vunpack.c.0.s8 %v591_v54  ;;  %v967_v59 = vunpack.c.0.s8 %v593_v55 }
  0x1f   : > { %v1439_v16 = vcvt.s32.f32 %v927_v8  ;;  %v1184_v22 = vcvt.s32.f32 %v672_v14  ;;  %v960_v60 = vunpack.c.1.s8 %v591_v54  ;;  %v968_v61 = vunpack.c.1.s8 %v593_v55  ;;  %v6036_v14 = vld [vmem:[%s7910_s1 + $0xa0] sm:$0xff] }
  0x20   : > { %v1447_v17 = vcvt.s32.f32 %v935_v9  ;;  %v1192_v23 = vcvt.s32.f32 %v680_v15  ;;  %v703_v62 = vunpack.c.0.s8 %v527_v56  ;;  %v711_v63 = vunpack.c.0.s8 %v529_v57  ;;  %v6044_v15 = vld [vmem:[%s7910_s1 + $0xe0] sm:$0xff] }
  0x21   : > { %6324 = vmatpush.bf16.msra.mxu2 %v6018_v10  ;;  %2436 = vmatpush.bf16.msra.mxu0 %v6018_v10  ;;  %v928_v10 = vunpack.c.1.s8 %v583_v4  ;;  %v1472_v4 = vcvt.s32.f32 %v960_v60 }
  0x22   : > { %6332 = vmatpush.bf16.msra.mxu3 %v6026_v11  ;;  %2605 = vmatpush.bf16.msra.mxu1 %v6026_v11  ;;  %v936_v11 = vunpack.c.1.s8 %v585_v5  ;;  %v1807_v24 = vpack.c.bf16 %v1447_v17, %v1439_v16  ;;  %v1680_v27 = vpack.c.bf16 %v1192_v23, %v1184_v22  ;;  %v1480_v5 = vcvt.s32.f32 %v968_v61  ;;  %v595_v16 = vld [vmem:[%s6612_s10 + $0x2a0] sm:$0xff]  ;;  %v597_v17 = vld [vmem:[%s6612_s10 + $0x2b0] sm:$0xff] }
  0x23   : > { %v1440_v18 = vcvt.s32.f32 %v928_v10  ;;  %v1215_v6 = vcvt.s32.f32 %v703_v62  ;;  %v1223_v7 = vcvt.s32.f32 %v711_v63  ;;  %v976_v22 = vunpack.c.1.s8 %v595_v16 }
  0x24   : > { %v1448_v19 = vcvt.s32.f32 %v936_v11  ;;  %v1824_v11 = vpack.c.bf16 %v1480_v5, %v1472_v4  ;;  %v984_v23 = vunpack.c.1.s8 %v597_v17  ;;  %v539_v4 = vld [vmem:[%s6612_s10 + $0xe0] sm:$0xff]  ;;  %v541_v5 = vld [vmem:[%s6612_s10 + $0xf0] sm:$0xff] }
  0x25   : > { %6325 = vmatpush.bf16.msra.mxu2 %v6017_v20  ;;  %2437 = vmatpush.bf16.msra.mxu0 %v6017_v20  ;;  %v1183_v20 = vcvt.s32.f32 %v671_v12  ;;  %v1695_v12 = vpack.c.bf16 %v1223_v7, %v1215_v6 }
  0x26   : > { %6333 = vmatpush.bf16.msra.mxu3 %v6025_v21  ;;  %2606 = vmatpush.bf16.msra.mxu1 %v6025_v21  ;;  %v1191_v21 = vcvt.s32.f32 %v679_v13  ;;  %v1808_v25 = vpack.c.bf16 %v1448_v19, %v1440_v18  ;;  %v531_v18 = vld [vmem:[%s6612_s10 + $0xa0] sm:$0xff]  ;;  %v533_v19 = vld [vmem:[%s6612_s10 + $0xb0] sm:$0xff] }
  0x28   : > { %v1679_v26 = vpack.c.bf16 %v1191_v21, %v1183_v20  ;;  %v975_v20 = vunpack.c.0.s8 %v595_v16  ;;  %v983_v21 = vunpack.c.0.s8 %v597_v17 }
  0x29   : > { %6326 = vmatpush.bf16.msra.mxu2 %v6016_v30  ;;  %2438 = vmatpush.bf16.msra.mxu0 %v6016_v30  ;;  %v587_v30 = vld [vmem:[%s6612_s10 + $0x260] sm:$0xff] }
  0x2a   : > { %6334 = vmatpush.bf16.msra.mxu3 %v6024_v31  ;;  %2607 = vmatpush.bf16.msra.mxu1 %v6024_v31  ;;  %v589_v31 = vld [vmem:[%s6612_s10 + $0x270] sm:$0xff]  ;;  %v943_v34 = vunpack.c.0.s8 %v587_v30  ;;  %v944_v36 = vunpack.c.1.s8 %v587_v30  ;;  %v1488_v30 = vcvt.s32.f32 %v976_v22 }
  0x2b   : > { %v951_v35 = vunpack.c.0.s8 %v589_v31  ;;  %v952_v37 = vunpack.c.1.s8 %v589_v31  ;;  %v1496_v31 = vcvt.s32.f32 %v984_v23 }
  0x2c   : > { %2519 = vmatmul.bf16.vlgmr.msra.gmra.mxu2 %v1791_v38  ;;  %2439 = vmatmul.bf16.vlgmr.msra.gmra.mxu0 %v1663_v40  ;;  %v1456_v44 = vcvt.s32.f32 %v944_v36 }
  0x2d   : > { %2769 = vmatpush.bf16.msrb.mxu2 %v6039_v32  ;;  %2688 = vmatmul.bf16.vlgmr.msra.gmra.mxu3 %v1792_v39  ;;  %v523_v32 = vld [vmem:[%s6612_s10 + $0x60] sm:$0xff]  ;;  %v1464_v45 = vcvt.s32.f32 %v952_v37  ;;  %v1832_v37 = vpack.c.bf16 %v1496_v31, %v1488_v30 }
  0x2e   : > { %2938 = vmatpush.bf16.msrb.mxu3 %v6047_v33  ;;  %2608 = vmatmul.bf16.vlgmr.msra.gmra.mxu1 %v1664_v41  ;;  %v525_v33 = vld [vmem:[%s6612_s10 + $0x70] sm:$0xff]  ;;  %v687_v38 = vunpack.c.0.s8 %v523_v32  ;;  %v688_v40 = vunpack.c.1.s8 %v523_v32 }
  0x2f   : > { %v695_v39 = vunpack.c.0.s8 %v525_v33  ;;  %v696_v41 = vunpack.c.1.s8 %v525_v33  ;;  %v1816_v51 = vpack.c.bf16 %v1464_v45, %v1456_v44 }
  0x30   : > { %v1199_v46 = vcvt.s32.f32 %v687_v38  ;;  %v1200_v48 = vcvt.s32.f32 %v688_v40  ;;  %v599_v40 = vld [vmem:[%s6612_s10 + $0x2c0] sm:$0xff] }
  0x31   : > { %2770 = vmatpush.bf16.msrb.mxu2 %v6038_v42  ;;  %v1455_v42 = vcvt.s32.f32 %v943_v34  ;;  %v1207_v47 = vcvt.s32.f32 %v695_v39  ;;  %v1208_v49 = vcvt.s32.f32 %v696_v41  ;;  %v601_v41 = vld [vmem:[%s6612_s10 + $0x2d0] sm:$0xff]  ;;  %v991_v44 = vunpack.c.0.s8 %v599_v40 }
  0x32   : > { %2939 = vmatpush.bf16.msrb.mxu3 %v6046_v43  ;;  %v1463_v43 = vcvt.s32.f32 %v951_v35  ;;  %v999_v45 = vunpack.c.0.s8 %v601_v41 }
  0x33   : > { %v1687_v52 = vpack.c.bf16 %v1207_v47, %v1199_v46  ;;  %v1688_v53 = vpack.c.bf16 %v1208_v49, %v1200_v48  ;;  %v992_v46 = vunpack.c.1.s8 %v599_v40  ;;  %v1000_v47 = vunpack.c.1.s8 %v601_v41 }
  0x34   : > { %v1815_v50 = vpack.c.bf16 %v1463_v43, %v1455_v42  ;;  %v535_v42 = vld [vmem:[%s6612_s10 + $0xc0] sm:$0xff]  ;;  %v537_v43 = vld [vmem:[%s6612_s10 + $0xd0] sm:$0xff] }
  0x35   : > { %2771 = vmatpush.bf16.msrb.mxu2 %v6037_v28  ;;  %v1487_v28 = vcvt.s32.f32 %v975_v20  ;;  %v735_v48 = vunpack.c.0.s8 %v535_v42  ;;  %v743_v49 = vunpack.c.0.s8 %v537_v43  ;;  %v1504_v54 = vcvt.s32.f32 %v992_v46 }
  0x36   : > { %2940 = vmatpush.bf16.msrb.mxu3 %v6045_v29  ;;  %v1495_v29 = vcvt.s32.f32 %v983_v21  ;;  %v1512_v55 = vcvt.s32.f32 %v1000_v47 }
  0x38   : > { %v1831_v36 = vpack.c.bf16 %v1495_v29, %v1487_v28  ;;  %v1840_v61 = vpack.c.bf16 %v1512_v55, %v1504_v54  ;;  %v543_v28 = vld [vmem:[%s6612_s10 + $0x100] sm:$0xff]  ;;  %v545_v29 = vld [vmem:[%s6612_s10 + $0x110] sm:$0xff] }
  0x39   : > { %2772 = vmatpush.bf16.msrb.mxu2 %v6036_v14  ;;  %v611_v55 = vld [vmem:[%s6612_s10 + $0x320] sm:$0xff] }
  0x3a   : > { %2941 = vmatpush.bf16.msrb.mxu3 %v6044_v15 }
  0x3c   : > { %2524 = vmatmul.bf16.gmra.mxu2 %v1799_v0  ;;  %2444 = vmatmul.bf16.gmra.mxu0 %v1671_v2  ;;  %v704_v0 = vunpack.c.1.s8 %v527_v56  ;;  %v1471_v2 = vcvt.s32.f32 %v959_v58  ;;  %v1247_v56 = vcvt.s32.f32 %v735_v48 }
  0x3d   : > { %2693 = vmatmul.bf16.gmra.mxu3 %v1800_v1  ;;  %v712_v1 = vunpack.c.1.s8 %v529_v57  ;;  %v1255_v57 = vcvt.s32.f32 %v743_v49 }
  0x3e   : > { %2613 = vmatmul.bf16.gmra.mxu1 %v1672_v3  ;;  %v1479_v3 = vcvt.s32.f32 %v967_v59  ;;  %v1216_v8 = vcvt.s32.f32 %v704_v0  ;;  %v6035_v0 = vld [vmem:[%s7910_s1 + $0x98] sm:$0xff] }
  0x3f   : > { %v1224_v9 = vcvt.s32.f32 %v712_v1  ;;  %v1711_v62 = vpack.c.bf16 %v1255_v57, %v1247_v56  ;;  %v6043_v1 = vld [vmem:[%s7910_s1 + $0xd8] sm:$0xff]  ;;  %2773 = vmatpush.bf16.msrb.mxu2 %v6035_v0  ;;  %v6034_v56 = vld [vmem:[%s7910_s1 + $0x90] sm:$0xff] }
  0x40   : > { %v1823_v10 = vpack.c.bf16 %v1479_v3, %v1471_v2  ;;  %v603_v2 = vld [vmem:[%s6612_s10 + $0x2e0] sm:$0xff]  ;;  %v605_v3 = vld [vmem:[%s6612_s10 + $0x2f0] sm:$0xff]  ;;  %2942 = vmatpush.bf16.msrb.mxu3 %v6043_v1 }
  0x41   : > { %v1696_v13 = vpack.c.bf16 %v1224_v9, %v1216_v8  ;;  %v1007_v6 = vunpack.c.0.s8 %v603_v2  ;;  %v1015_v7 = vunpack.c.0.s8 %v605_v3  ;;  %v1008_v8 = vunpack.c.1.s8 %v603_v2  ;;  %v6042_v57 = vld [vmem:[%s7910_s1 + $0xd0] sm:$0xff] }
  0x42   : > { %v1016_v9 = vunpack.c.1.s8 %v605_v3  ;;  %v1040_v2 = vunpack.c.1.s8 %v611_v55 }
  0x43   : > { %v1519_v14 = vcvt.s32.f32 %v1007_v6  ;;  %v1527_v15 = vcvt.s32.f32 %v1015_v7  ;;  %v1520_v16 = vcvt.s32.f32 %v1008_v8  ;;  %2774 = vmatpush.bf16.msrb.mxu2 %v6034_v56 }
  0x44   : > { %v1528_v17 = vcvt.s32.f32 %v1016_v9  ;;  %2943 = vmatpush.bf16.msrb.mxu3 %v6042_v57 }
  0x45   : > { %v1847_v22 = vpack.c.bf16 %v1527_v15, %v1519_v14 }
  0x46   : > { %v1848_v23 = vpack.c.bf16 %v1528_v17, %v1520_v16 }
  0x4c   : > { %2529 = vmatmul.bf16.gmra.mxu2 %v1807_v24  ;;  %2449 = vmatmul.bf16.gmra.mxu0 %v1679_v26  ;;  %v719_v24 = vunpack.c.0.s8 %v531_v18  ;;  %v720_v26 = vunpack.c.1.s8 %v531_v18 }
  0x4d   : > { %2698 = vmatmul.bf16.gmra.mxu3 %v1808_v25  ;;  %v727_v25 = vunpack.c.0.s8 %v533_v19 }
  0x4e   : > { %2618 = vmatmul.bf16.gmra.mxu1 %v1680_v27  ;;  %v728_v27 = vunpack.c.1.s8 %v533_v19  ;;  %v1231_v32 = vcvt.s32.f32 %v719_v24  ;;  %v1232_v34 = vcvt.s32.f32 %v720_v26  ;;  %v607_v26 = vld [vmem:[%s6612_s10 + $0x300] sm:$0xff] }
  0x4f   : > { %v1239_v33 = vcvt.s32.f32 %v727_v25  ;;  %v1023_v30 = vunpack.c.0.s8 %v607_v26 }
  0x50   : > { %v1240_v35 = vcvt.s32.f32 %v728_v27  ;;  %v609_v27 = vld [vmem:[%s6612_s10 + $0x310] sm:$0xff] }
  0x51   : > { %v1703_v38 = vpack.c.bf16 %v1239_v33, %v1231_v32  ;;  %v1031_v31 = vunpack.c.0.s8 %v609_v27  ;;  %v1024_v32 = vunpack.c.1.s8 %v607_v26  ;;  %v1032_v33 = vunpack.c.1.s8 %v609_v27 }
  0x52   : > { %v1704_v39 = vpack.c.bf16 %v1240_v35, %v1232_v34  ;;  %v6055_v34 = vld [vmem:[%s7910_s1 + $0x138] sm:$0xff]  ;;  %v1535_v40 = vcvt.s32.f32 %v1023_v30  ;;  %v617_v30 = vld [vmem:[%s6612_s10 + $0x350] sm:$0xff] }
  0x53   : > { %v6063_v35 = vld [vmem:[%s7910_s1 + $0x178] sm:$0xff]  ;;  %3107 = vmatpush.bf16.msrb.mxu0 %v6055_v34  ;;  %v1543_v41 = vcvt.s32.f32 %v1031_v31  ;;  %v551_v34 = vld [vmem:[%s6612_s10 + $0x140] sm:$0xff] }
  0x54   : > { %3276 = vmatpush.bf16.msrb.mxu1 %v6063_v35  ;;  %v553_v35 = vld [vmem:[%s6612_s10 + $0x150] sm:$0xff] }
  0x55   : > { %v1855_v48 = vpack.c.bf16 %v1543_v41, %v1535_v40  ;;  %v6054_v40 = vld [vmem:[%s7910_s1 + $0x130] sm:$0xff] }
  0x56   : > { %v6062_v41 = vld [vmem:[%s7910_s1 + $0x170] sm:$0xff] }
  0x57   : > { %3108 = vmatpush.bf16.msrb.mxu0 %v6054_v40 }
  0x58   : > { %3277 = vmatpush.bf16.msrb.mxu1 %v6062_v41 }
  0x5c   : > { %2534 = vmatmul.bf16.gmra.mxu2 %v1815_v50  ;;  %2454 = vmatmul.bf16.gmra.mxu0 %v1687_v52  ;;  %v736_v50 = vunpack.c.1.s8 %v535_v42  ;;  %v1503_v52 = vcvt.s32.f32 %v991_v44  ;;  %v1536_v42 = vcvt.s32.f32 %v1024_v32 }
  0x5d   : > { %2703 = vmatmul.bf16.gmra.mxu3 %v1816_v51  ;;  %v744_v51 = vunpack.c.1.s8 %v537_v43  ;;  %v1544_v43 = vcvt.s32.f32 %v1032_v33 }
  0x5e   : > { %2623 = vmatmul.bf16.gmra.mxu1 %v1688_v53  ;;  %v1511_v53 = vcvt.s32.f32 %v999_v45  ;;  %v1248_v58 = vcvt.s32.f32 %v736_v50 }
  0x5f   : > { %v1256_v59 = vcvt.s32.f32 %v744_v51  ;;  %v1856_v49 = vpack.c.bf16 %v1544_v43, %v1536_v42  ;;  %v799_v42 = vunpack.c.0.s8 %v551_v34  ;;  %v807_v43 = vunpack.c.0.s8 %v553_v35 }
  0x60   : > { %v1839_v60 = vpack.c.bf16 %v1511_v53, %v1503_v52 }
  0x61   : > { %v1712_v63 = vpack.c.bf16 %v1256_v59, %v1248_v58  ;;  %v613_v58 = vld [vmem:[%s6612_s10 + $0x330] sm:$0xff] }
  0x62   : > { %v1047_v1 = vunpack.c.0.s8 %v613_v58  ;;  %v1048_v3 = vunpack.c.1.s8 %v613_v58 }
  0x6c   : > { %2539 = vmatmul.bf16.gmra.mxu2 %v1823_v10  ;;  %2459 = vmatmul.bf16.gmra.mxu0 %v1695_v12  ;;  %v751_v10 = vunpack.c.0.s8 %v539_v4  ;;  %v752_v12 = vunpack.c.1.s8 %v539_v4 }
  0x6d   : > { %2708 = vmatmul.bf16.gmra.mxu3 %v1824_v11  ;;  %v759_v11 = vunpack.c.0.s8 %v541_v5 }
  0x6e   : > { %2628 = vmatmul.bf16.gmra.mxu1 %v1696_v13  ;;  %v760_v13 = vunpack.c.1.s8 %v541_v5  ;;  %v1263_v18 = vcvt.s32.f32 %v751_v10  ;;  %v1264_v20 = vcvt.s32.f32 %v752_v12  ;;  %v1552_v12 = vcvt.s32.f32 %v1040_v2 }
  0x6f   : > { %v1271_v19 = vcvt.s32.f32 %v759_v11  ;;  %v1559_v11 = vcvt.s32.f32 %v1047_v1 }
  0x70   : > { %v1272_v21 = vcvt.s32.f32 %v760_v13  ;;  %v1560_v13 = vcvt.s32.f32 %v1048_v3 }
  0x71   : > { %v1719_v24 = vpack.c.bf16 %v1271_v19, %v1263_v18 }
  0x72   : > { %v1720_v25 = vpack.c.bf16 %v1272_v21, %v1264_v20 }
  0x7c   : > { %2544 = vmatmul.bf16.gmra.mxu2 %v1831_v36  ;;  %2464 = vmatmul.bf16.gmra.mxu0 %v1703_v38  ;;  %v767_v36 = vunpack.c.0.s8 %v543_v28  ;;  %v768_v38 = vunpack.c.1.s8 %v543_v28 }
  0x7d   : > { %2713 = vmatmul.bf16.gmra.mxu3 %v1832_v37  ;;  %v775_v37 = vunpack.c.0.s8 %v545_v29 }
  0x7e   : > { %2633 = vmatmul.bf16.gmra.mxu1 %v1704_v39  ;;  %v776_v39 = vunpack.c.1.s8 %v545_v29  ;;  %v1279_v44 = vcvt.s32.f32 %v767_v36  ;;  %v1280_v46 = vcvt.s32.f32 %v768_v38  ;;  %v615_v29 = vld [vmem:[%s6612_s10 + $0x340] sm:$0xff] }
  0x7f   : > { %v1287_v45 = vcvt.s32.f32 %v775_v37  ;;  %v1055_v33 = vunpack.c.0.s8 %v615_v29  ;;  %v1063_v37 = vunpack.c.0.s8 %v617_v30  ;;  %v1056_v38 = vunpack.c.1.s8 %v615_v29 }
  0x80   : > { %v1288_v47 = vcvt.s32.f32 %v776_v39  ;;  %v1064_v39 = vunpack.c.1.s8 %v617_v30 }
  0x81   : > { %v1727_v50 = vpack.c.bf16 %v1287_v45, %v1279_v44  ;;  %v800_v44 = vunpack.c.1.s8 %v551_v34  ;;  %v808_v45 = vunpack.c.1.s8 %v553_v35 }
  0x82   : > { %v1728_v51 = vpack.c.bf16 %v1288_v47, %v1280_v46  ;;  %v1567_v47 = vcvt.s32.f32 %v1055_v33 }
  0x83   : > { %v1312_v56 = vcvt.s32.f32 %v800_v44  ;;  %v1320_v57 = vcvt.s32.f32 %v808_v45 }
  0x85   : > { %v1744_v1 = vpack.c.bf16 %v1320_v57, %v1312_v56 }
  0x8c   : > { %2549 = vmatmul.bf16.gmra.mxu2 %v1839_v60  ;;  %2469 = vmatmul.bf16.gmra.mxu0 %v1711_v62  ;;  %v547_v62 = vld [vmem:[%s6612_s10 + $0x120] sm:$0xff] }
  0x8d   : > { %2718 = vmatmul.bf16.gmra.mxu3 %v1840_v61  ;;  %v1039_v61 = vunpack.c.0.s8 %v611_v55  ;;  %v783_v4 = vunpack.c.0.s8 %v547_v62  ;;  %v784_v6 = vunpack.c.1.s8 %v547_v62  ;;  %v1319_v55 = vcvt.s32.f32 %v807_v43 }
  0x8e   : > { %2638 = vmatmul.bf16.gmra.mxu1 %v1712_v63  ;;  %v549_v63 = vld [vmem:[%s6612_s10 + $0x130] sm:$0xff] }
  0x8f   : > { %v791_v5 = vunpack.c.0.s8 %v549_v63  ;;  %v792_v7 = vunpack.c.1.s8 %v549_v63  ;;  %v1551_v9 = vcvt.s32.f32 %v1039_v61  ;;  %v1295_v15 = vcvt.s32.f32 %v783_v4 }
  0x90   : > { %v1296_v17 = vcvt.s32.f32 %v784_v6  ;;  %v6033_v6 = vld [vmem:[%s7910_s1 + $0x88] sm:$0xff] }
  0x91   : > { %v1303_v16 = vcvt.s32.f32 %v791_v5  ;;  %v1304_v18 = vcvt.s32.f32 %v792_v7  ;;  %v619_v5 = vld [vmem:[%s6612_s10 + $0x360] sm:$0xff]  ;;  %v6041_v7 = vld [vmem:[%s7910_s1 + $0xc8] sm:$0xff]  ;;  %2775 = vmatpush.bf16.msrb.mxu2 %v6033_v6 }
  0x92   : > { %2944 = vmatpush.bf16.msrb.mxu3 %v6041_v7 }
  0x9c   : > { %2554 = vmatmul.bf16.gmra.mxu2 %v1847_v22  ;;  %2474 = vmatmul.bf16.gmra.mxu0 %v1719_v24  ;;  %v1863_v22 = vpack.c.bf16 %v1559_v11, %v1551_v9  ;;  %v1735_v24 = vpack.c.bf16 %v1303_v16, %v1295_v15  ;;  %v1071_v11 = vunpack.c.0.s8 %v619_v5 }
  0x9d   : > { %2723 = vmatmul.bf16.gmra.mxu3 %v1848_v23  ;;  %v1864_v23 = vpack.c.bf16 %v1560_v13, %v1552_v12  ;;  %v555_v12 = vld [vmem:[%s6612_s10 + $0x160] sm:$0xff]  ;;  %v557_v13 = vld [vmem:[%s6612_s10 + $0x170] sm:$0xff] }
  0x9e   : > { %2643 = vmatmul.bf16.gmra.mxu1 %v1720_v25  ;;  %v1736_v25 = vpack.c.bf16 %v1304_v18, %v1296_v17  ;;  %v1072_v17 = vunpack.c.1.s8 %v619_v5 }
  0xa0   : > { %v1584_v29 = vcvt.s32.f32 %v1072_v17 }
  0xa9   : > { %v2440_v52 = vpop.f32.mrf.mxu0 }
  0xab   : > { %v2609_v53 = vpop.f32.mrf.mxu1 }
  0xac   : > { %2559 = vmatmul.bf16.gmra.mxu2 %v1855_v48  ;;  %v6704_v54 = vadd.f32 %v2609_v53, %v2440_v52  ;;  %2479 = vmatmul.bf16.gmra.mxu0 %v1727_v50  ;;  %v1568_v50 = vcvt.s32.f32 %v1056_v38  ;;  %v1311_v53 = vcvt.s32.f32 %v799_v42 }
  0xad   : > { %2728 = vmatmul.bf16.gmra.mxu3 %v1856_v49  ;;  %v1575_v49 = vcvt.s32.f32 %v1063_v37 }
  0xae   : > { %2648 = vmatmul.bf16.gmra.mxu1 %v1728_v51  ;;  %v1576_v51 = vcvt.s32.f32 %v1064_v39  ;;  %v1743_v63 = vpack.c.bf16 %v1319_v55, %v1311_v53  ;;  %v559_v53 = vld [vmem:[%s6612_s10 + $0x180] sm:$0xff]  ;;  %v561_v55 = vld [vmem:[%s6612_s10 + $0x190] sm:$0xff] }
  0xaf   : > { %v2520_v59 = vpop.f32.mrf.mxu2  ;;  %v1871_v61 = vpack.c.bf16 %v1575_v49, %v1567_v47  ;;  %v623_v47 = vld [vmem:[%s6612_s10 + $0x380] sm:$0xff] }
  0xb0   : > { %v2689_v60 = vpop.f32.mrf.mxu3  ;;  %v1872_v62 = vpack.c.bf16 %v1576_v51, %v1568_v50  ;;  %v1087_v51 = vunpack.c.0.s8 %v623_v47 }
  0xb1   : > { %v6716_v0 = vadd.f32 %v2689_v60, %v2520_v59  ;;  %v2442_v8 = vpop.f32.mrf.mxu0 }
  0xb2   : > { %v1599_v6 = vcvt.s32.f32 %v1087_v51 }
  0xb3   : > { %v2611_v10 = vpop.f32.mrf.mxu1 }
  0xb4   : > { %v6718_v14 = vadd.f32 %v2611_v10, %v2442_v8  ;;  %v621_v8 = vld [vmem:[%s6612_s10 + $0x370] sm:$0xff] }
  0xb5   : > { %v1079_v16 = vunpack.c.0.s8 %v621_v8  ;;  %v1080_v18 = vunpack.c.1.s8 %v621_v8 }
  0xb7   : > { %v2522_v19 = vpop.f32.mrf.mxu2  ;;  %v1592_v30 = vcvt.s32.f32 %v1080_v18 }
  0xb8   : > { %v2691_v20 = vpop.f32.mrf.mxu3 }
  0xb9   : > { %v6720_v21 = vadd.f32 %v2691_v20, %v2522_v19  ;;  %v2445_v26 = vpop.f32.mrf.mxu0  ;;  %v815_v19 = vunpack.c.0.s8 %v555_v12  ;;  %v823_v20 = vunpack.c.0.s8 %v557_v13  ;;  %v1880_v41 = vpack.c.bf16 %v1592_v30, %v1584_v29  ;;  %v627_v30 = vld [vmem:[%s6612_s10 + $0x3a0] sm:$0xff] }
  0xbb   : > { %v2614_v27 = vpop.f32.mrf.mxu1  ;;  %v1335_v33 = vcvt.s32.f32 %v823_v20 }
  0xbc   : > { %2564 = vmatmul.bf16.gmra.mxu2 %v1863_v22  ;;  %v6722_v28 = vadd.f32 %v2614_v27, %v2445_v26  ;;  %2484 = vmatmul.bf16.gmra.mxu0 %v1735_v24  ;;  %v816_v22 = vunpack.c.1.s8 %v555_v12  ;;  %v1591_v27 = vcvt.s32.f32 %v1079_v16 }
  0xbd   : > { %2733 = vmatmul.bf16.gmra.mxu3 %v1864_v23  ;;  %v824_v23 = vunpack.c.1.s8 %v557_v13 }
  0xbe   : > { %2653 = vmatmul.bf16.gmra.mxu1 %v1736_v25  ;;  %v1583_v25 = vcvt.s32.f32 %v1071_v11  ;;  %v1328_v34 = vcvt.s32.f32 %v816_v22 }
  0xbf   : > { %v2525_v31 = vpop.f32.mrf.mxu2  ;;  %v1336_v35 = vcvt.s32.f32 %v824_v23 }
  0xc0   : > { %v2694_v32 = vpop.f32.mrf.mxu3  ;;  %v1879_v40 = vpack.c.bf16 %v1591_v27, %v1583_v25 }
  0xc1   : > { %v6728_v36 = vadd.f32 %v2694_v32, %v2525_v31  ;;  %v2447_v46 = vpop.f32.mrf.mxu0  ;;  %v1327_v32 = vcvt.s32.f32 %v815_v19  ;;  %v1752_v43 = vpack.c.bf16 %v1336_v35, %v1328_v34  ;;  %v629_v34 = vld [vmem:[%s6612_s10 + $0x3b0] sm:$0xff] }
  0xc3   : > { %v2616_v48 = vpop.f32.mrf.mxu1  ;;  %v1751_v42 = vpack.c.bf16 %v1335_v33, %v1327_v32  ;;  %v6032_v32 = vld [vmem:[%s7910_s1 + $0x80] sm:$0xff] }
  0xc4   : > { %v6736_v52 = vadd.f32 %v2616_v48, %v2447_v46  ;;  %v625_v48 = vld [vmem:[%s6612_s10 + $0x390] sm:$0xff]  ;;  %v6040_v33 = vld [vmem:[%s7910_s1 + $0xc0] sm:$0xff]  ;;  %2776 = vmatpush.bf16.msrb.mxu2 %v6032_v32 }
  0xc5   : > { %v1095_v57 = vunpack.c.0.s8 %v625_v48  ;;  %2945 = vmatpush.bf16.msrb.mxu3 %v6040_v33  ;;  %v6052_v33 = vld [vmem:[%s7910_s1 + $0x120] sm:$0xff] }
  0xc7   : > { %v2527_v58 = vpop.f32.mrf.mxu2  ;;  %v1607_v8 = vcvt.s32.f32 %v1095_v57 }
  0xc8   : > { %v2696_v59 = vpop.f32.mrf.mxu3 }
  0xc9   : > { %v6738_v60 = vadd.f32 %v2696_v59, %v2527_v58  ;;  %v2450_v2 = vpop.f32.mrf.mxu0  ;;  %v1088_v58 = vunpack.c.1.s8 %v623_v47  ;;  %v1096_v59 = vunpack.c.1.s8 %v625_v48  ;;  %v1887_v22 = vpack.c.bf16 %v1607_v8, %v1599_v6 }
  0xcb   : > { %v2619_v3 = vpop.f32.mrf.mxu1 }
  0xcc   : > { %2569 = vmatmul.bf16.gmra.mxu2 %v1871_v61  ;;  %v6740_v4 = vadd.f32 %v2619_v3, %v2450_v2  ;;  %2489 = vmatmul.bf16.gmra.mxu0 %v1743_v63  ;;  %v6053_v61 = vld [vmem:[%s7910_s1 + $0x128] sm:$0xff]  ;;  %v831_v63 = vunpack.c.0.s8 %v559_v53  ;;  %v832_v2 = vunpack.c.1.s8 %v559_v53  ;;  %v840_v3 = vunpack.c.1.s8 %v561_v55 }
  0xcd   : > { %2738 = vmatmul.bf16.gmra.mxu3 %v1872_v62  ;;  %v6061_v62 = vld [vmem:[%s7910_s1 + $0x168] sm:$0xff]  ;;  %3109 = vmatpush.bf16.msrb.mxu0 %v6053_v61 }
  0xce   : > { %2658 = vmatmul.bf16.gmra.mxu1 %v1744_v1  ;;  %v839_v1 = vunpack.c.0.s8 %v561_v55  ;;  %v1343_v12 = vcvt.s32.f32 %v831_v63  ;;  %v1344_v16 = vcvt.s32.f32 %v832_v2  ;;  %v1352_v17 = vcvt.s32.f32 %v840_v3 }
  0xcf   : > { %v2530_v9 = vpop.f32.mrf.mxu2  ;;  %3278 = vmatpush.bf16.msrb.mxu1 %v6061_v62 }
  0xd0   : > { %v2699_v10 = vpop.f32.mrf.mxu3  ;;  %v1351_v13 = vcvt.s32.f32 %v839_v1  ;;  %v1760_v25 = vpack.c.bf16 %v1352_v17, %v1344_v16  ;;  %v631_v17 = vld [vmem:[%s6612_s10 + $0x3c0] sm:$0xff] }
  0xd1   : > { %v6752_v15 = vadd.f32 %v2699_v10, %v2530_v9  ;;  %v2452_v24 = vpop.f32.mrf.mxu0  ;;  %v1600_v9 = vcvt.s32.f32 %v1088_v58  ;;  %v1608_v10 = vcvt.s32.f32 %v1096_v59  ;;  %3110 = vmatpush.bf16.msrb.mxu0 %v6052_v33 }
  0xd3   : > { %7917 = vst [vmem:[#allocation3_spill] sm:$0xff] %v6752_v15  ;;  %v2621_v26 = vpop.f32.mrf.mxu1  ;;  %v1888_v23 = vpack.c.bf16 %v1608_v10, %v1600_v9 }
  0xd4   : > { %v6754_v31 = vadd.f32 %v2621_v26, %v2452_v24  ;;  %v1759_v24 = vpack.c.bf16 %v1351_v13, %v1343_v12 }
  0xd7   : > { %v2532_v37 = vpop.f32.mrf.mxu2 }
  0xd8   : > { %v2701_v38 = vpop.f32.mrf.mxu3 }
  0xd9   : > { %v6756_v39 = vadd.f32 %v2701_v38, %v2532_v37  ;;  %v2455_v44 = vpop.f32.mrf.mxu0  ;;  %v1103_v38 = vunpack.c.0.s8 %v627_v30 }
  0xdb   : > { %7918 = vst [vmem:[#allocation4_spill] sm:$0xff] %v6756_v39  ;;  %v2624_v45 = vpop.f32.mrf.mxu1  ;;  %v1615_v53 = vcvt.s32.f32 %v1103_v38 }
  0xdc   : > { %2574 = vmatmul.bf16.gmra.mxu2 %v1879_v40  ;;  %v6758_v46 = vadd.f32 %v2624_v45, %v2455_v44  ;;  %2494 = vmatmul.bf16.gmra.mxu0 %v1751_v42  ;;  %v563_v40 = vld [vmem:[%s6612_s10 + $0x1a0] sm:$0xff]  ;;  %v1104_v44 = vunpack.c.1.s8 %v627_v30  ;;  %v1112_v45 = vunpack.c.1.s8 %v629_v34  ;;  %v1120_v30 = vunpack.c.1.s8 %v631_v17 }
  0xdd   : > { %2743 = vmatmul.bf16.gmra.mxu3 %v1880_v41  ;;  %v565_v41 = vld [vmem:[%s6612_s10 + $0x1b0] sm:$0xff]  ;;  %v847_v47 = vunpack.c.0.s8 %v563_v40 }
  0xde   : > { %2663 = vmatmul.bf16.gmra.mxu1 %v1752_v43  ;;  %v1111_v43 = vunpack.c.0.s8 %v629_v34  ;;  %v855_v48 = vunpack.c.0.s8 %v565_v41  ;;  %v1616_v58 = vcvt.s32.f32 %v1104_v44  ;;  %v1624_v59 = vcvt.s32.f32 %v1112_v45  ;;  %v6060_v34 = vld [vmem:[%s7910_s1 + $0x160] sm:$0xff] }
  0xdf   : > { %v2535_v49 = vpop.f32.mrf.mxu2  ;;  %v1359_v62 = vcvt.s32.f32 %v847_v47  ;;  %3279 = vmatpush.bf16.msrb.mxu1 %v6060_v34  ;;  %v1632_v47 = vcvt.s32.f32 %v1120_v30  ;;  %v573_v30 = vld [vmem:[%s6612_s10 + $0x1f0] sm:$0xff] }
  0xe0   : > { %v2704_v50 = vpop.f32.mrf.mxu3  ;;  %v1623_v57 = vcvt.s32.f32 %v1111_v43  ;;  %v1367_v63 = vcvt.s32.f32 %v855_v48  ;;  %v1896_v8 = vpack.c.bf16 %v1624_v59, %v1616_v58 }
  0xe1   : > { %v6764_v56 = vadd.f32 %v2704_v50, %v2535_v49  ;;  %v2457_v5 = vpop.f32.mrf.mxu0  ;;  %v848_v49 = vunpack.c.1.s8 %v563_v40  ;;  %v856_v50 = vunpack.c.1.s8 %v565_v41 }
  0xe2   : > { %v1767_v9 = vpack.c.bf16 %v1367_v63, %v1359_v62  ;;  %v6059_v62 = vld [vmem:[%s7910_s1 + $0x158] sm:$0xff] }
  0xe3   : > { %7919 = vst [vmem:[#allocation5_spill] sm:$0xff] %v6764_v56  ;;  %v2626_v7 = vpop.f32.mrf.mxu1  ;;  %v1360_v1 = vcvt.s32.f32 %v848_v49  ;;  %v1368_v2 = vcvt.s32.f32 %v856_v50  ;;  %v6051_v50 = vld [vmem:[%s7910_s1 + $0x118] sm:$0xff]  ;;  %3280 = vmatpush.bf16.msrb.mxu1 %v6059_v62 }
  0xe4   : > { %v6772_v11 = vadd.f32 %v2626_v7, %v2457_v5  ;;  %v1895_v7 = vpack.c.bf16 %v1623_v57, %v1615_v53  ;;  %3111 = vmatpush.bf16.msrb.mxu0 %v6051_v50 }
  0xe5   : > { %v1768_v10 = vpack.c.bf16 %v1368_v2, %v1360_v1 }
  0xe7   : > { %v2537_v18 = vpop.f32.mrf.mxu2 }
  0xe8   : > { %v2706_v19 = vpop.f32.mrf.mxu3 }
  0xe9   : > { %v6774_v20 = vadd.f32 %v2706_v19, %v2537_v18  ;;  %v2460_v26 = vpop.f32.mrf.mxu0  ;;  %v633_v18 = vld [vmem:[%s6612_s10 + $0x3d0] sm:$0xff] }
  0xea   : > { %v1128_v32 = vunpack.c.1.s8 %v633_v18 }
  0xeb   : > { %7920 = vst [vmem:[#allocation6_spill] sm:$0xff] %v6774_v20  ;;  %v2629_v27 = vpop.f32.mrf.mxu1 }
  0xec   : > { %2579 = vmatmul.bf16.gmra.mxu2 %v1887_v22  ;;  %v6776_v29 = vadd.f32 %v2629_v27, %v2460_v26  ;;  %2499 = vmatmul.bf16.gmra.mxu0 %v1759_v24  ;;  %v567_v24 = vld [vmem:[%s6612_s10 + $0x1c0] sm:$0xff]  ;;  %v1127_v27 = vunpack.c.0.s8 %v633_v18  ;;  %v1640_v48 = vcvt.s32.f32 %v1128_v32  ;;  %v6079_v18 = vld [vmem:[%s7910_s1 + $0x1f8] sm:$0xff]  ;;  %v6057_v32 = vld [vmem:[%s7910_s1 + $0x148] sm:$0xff] }
  0xed   : > { %2748 = vmatmul.bf16.gmra.mxu3 %v1888_v23  ;;  %v1119_v23 = vunpack.c.0.s8 %v631_v17  ;;  %v864_v38 = vunpack.c.1.s8 %v567_v24  ;;  %v6071_v17 = vld [vmem:[%s7910_s1 + $0x1b8] sm:$0xff] }
  0xee   : > { %2668 = vmatmul.bf16.gmra.mxu1 %v1760_v25  ;;  %v569_v25 = vld [vmem:[%s6612_s10 + $0x1d0] sm:$0xff]  ;;  %v1639_v45 = vcvt.s32.f32 %v1127_v27  ;;  %v1904_v2 = vpack.c.bf16 %v1640_v48, %v1632_v47  ;;  %v571_v27 = vld [vmem:[%s6612_s10 + $0x1e0] sm:$0xff]  ;;  %3445 = vmatpush.bf16.msra.mxu2 %v6071_v17 }
  0xef   : > { %v2540_v35 = vpop.f32.mrf.mxu2  ;;  %v872_v40 = vunpack.c.1.s8 %v569_v25  ;;  %v1631_v43 = vcvt.s32.f32 %v1119_v23  ;;  %3614 = vmatpush.bf16.msra.mxu3 %v6079_v18 }
  0xf0   : > { %v2709_v37 = vpop.f32.mrf.mxu3 }
  0xf1   : > { %v6788_v42 = vadd.f32 %v2709_v37, %v2540_v35  ;;  %v2462_v51 = vpop.f32.mrf.mxu0  ;;  %v863_v35 = vunpack.c.0.s8 %v567_v24  ;;  %v871_v37 = vunpack.c.0.s8 %v569_v25  ;;  %v1384_v57 = vcvt.s32.f32 %v872_v40  ;;  %v6056_v40 = vld [vmem:[%s7910_s1 + $0x140] sm:$0xff] }
  0xf2   : > { %v1903_v1 = vpack.c.bf16 %v1639_v45, %v1631_v43  ;;  %v887_v43 = vunpack.c.0.s8 %v573_v30  ;;  %v888_v45 = vunpack.c.1.s8 %v573_v30 }
  0xf3   : > { %7921 = vst [vmem:[#allocation7_spill] sm:$0xff] %v6788_v42  ;;  %v2631_v55 = vpop.f32.mrf.mxu1  ;;  %v1383_v53 = vcvt.s32.f32 %v871_v37 }
  0xf4   : > { %v6790_v61 = vadd.f32 %v2631_v55, %v2462_v51  ;;  %v1375_v51 = vcvt.s32.f32 %v863_v35  ;;  %v1376_v55 = vcvt.s32.f32 %v864_v38  ;;  %v6048_v38 = vld [vmem:[%s7910_s1 + $0x100] sm:$0xff] }
  0xf7   : > { %v2542_v3 = vpop.f32.mrf.mxu2 }
  0xf8   : > { %v2711_v5 = vpop.f32.mrf.mxu3 }
  0xf9   : > { %v6792_v6 = vadd.f32 %v2711_v5, %v2542_v3  ;;  %v2465_v12 = vpop.f32.mrf.mxu0  ;;  %v6050_v3 = vld [vmem:[%s7910_s1 + $0x110] sm:$0xff]  ;;  %v1775_v5 = vpack.c.bf16 %v1383_v53, %v1375_v51 }
  0xfa   : > { %3112 = vmatpush.bf16.msrb.mxu0 %v6050_v3 }
  0xfb   : > { %7922 = vst [vmem:[#allocation8_spill] sm:$0xff] %v6792_v6  ;;  %v2634_v13 = vpop.f32.mrf.mxu1 }
  0xfc   : > { %2584 = vmatmul.bf16.gmra.mxu2 %v1895_v7  ;;  %v6794_v16 = vadd.f32 %v2634_v13, %v2465_v12  ;;  %2504 = vmatmul.bf16.gmra.mxu0 %v1767_v9  ;;  %v1776_v7 = vpack.c.bf16 %v1384_v57, %v1376_v55  ;;  %v635_v13 = vld [vmem:[%s6612_s10 + $0x3e0] sm:$0xff] }
  0xfd   : > { %2753 = vmatmul.bf16.gmra.mxu3 %v1896_v8  ;;  %v1135_v25 = vunpack.c.0.s8 %v635_v13  ;;  %v1136_v35 = vunpack.c.1.s8 %v635_v13 }
  0xfe   : > { %2673 = vmatmul.bf16.gmra.mxu1 %v1768_v10  ;;  %v6058_v10 = vld [vmem:[%s7910_s1 + $0x150] sm:$0xff] }
  0xff   : > { %v2545_v19 = vpop.f32.mrf.mxu2  ;;  %3281 = vmatpush.bf16.msrb.mxu1 %v6058_v10  ;;  %v1647_v48 = vcvt.s32.f32 %v1135_v25  ;;  %v1648_v53 = vcvt.s32.f32 %v1136_v35  ;;  %v512_v25 = vld [vmem:[%s6612_s10 + $0x8] sm:$0xff] }
 0x100   : > { %v2714_v22 = vpop.f32.mrf.mxu3 }
 0x101   : > { %v6800_v26 = vadd.f32 %v2714_v22, %v2545_v19  ;;  %v2467_v41 = vpop.f32.mrf.mxu0  ;;  %v637_v19 = vld [vmem:[%s6612_s10 + $0x3f0] sm:$0xff]  ;;  %v6049_v22 = vld [vmem:[%s7910_s1 + $0x108] sm:$0xff] }
 0x102   : > { %v1143_v34 = vunpack.c.0.s8 %v637_v19  ;;  %v1144_v37 = vunpack.c.1.s8 %v637_v19  ;;  %3113 = vmatpush.bf16.msrb.mxu0 %v6049_v22 }
 0x103   : > { %7923 = vst [vmem:[#allocation9_spill] sm:$0xff] %v6800_v26  ;;  %v2636_v44 = vpop.f32.mrf.mxu1  ;;  %3282 = vmatpush.bf16.msrb.mxu1 %v6057_v32  ;;  %v6365_v32 = vld [vmem:[%s6612_s10 + $0x10] sm:$0xff] }
 0x104   : > { %v6808_v49 = vadd.f32 %v2636_v44, %v2467_v41  ;;  %v879_v41 = vunpack.c.0.s8 %v571_v27  ;;  %v880_v44 = vunpack.c.1.s8 %v571_v27  ;;  %v1655_v51 = vcvt.s32.f32 %v1143_v34  ;;  %v514_v27 = vld [vmem:[%s6612_s10 + $0x18] sm:$0xff] }
 0x105   : > { %v1656_v55 = vcvt.s32.f32 %v1144_v37  ;;  %v649_v34 = vunpack.c.2.s8 %v6365_v32  ;;  %v650_v37 = vunpack.c.3.s8 %v6365_v32  ;;  %v518_v32 = vld [vmem:[%s6612_s10 + $0x38] sm:$0xff] }
 0x106   : > { %3114 = vmatpush.bf16.msrb.mxu0 %v6048_v38  ;;  %v1392_v62 = vcvt.s32.f32 %v880_v44  ;;  %v643_v38 = vunpack.c.0.s8 %v512_v25 }
 0x107   : > { %v2547_v58 = vpop.f32.mrf.mxu2  ;;  %3283 = vmatpush.bf16.msrb.mxu1 %v6056_v40  ;;  %v651_v40 = vunpack.c.0.s8 %v514_v27 }
 0x108   : > { %v2716_v59 = vpop.f32.mrf.mxu3 }
 0x109   : > { %v6816_v63 = vadd.f32 %v2716_v59, %v2547_v58  ;;  %v2470_v8 = vpop.f32.mrf.mxu0  ;;  %v1391_v58 = vcvt.s32.f32 %v879_v41  ;;  %v1399_v59 = vcvt.s32.f32 %v887_v43  ;;  %v644_v41 = vunpack.c.1.s8 %v512_v25 }
 0x10a   : > { %v652_v43 = vunpack.c.1.s8 %v514_v27  ;;  %v516_v27 = vld [vmem:[%s6612_s10 + $0x28] sm:$0xff] }
 0x10b   : > { %7924 = vst [vmem:[#allocation10_spill] sm:$0xff] %v6816_v63  ;;  %v2639_v9 = vpop.f32.mrf.mxu1 }
 0x10c   : > { %2589 = vmatmul.bf16.gmra.mxu2 %v1903_v1  ;;  %v6824_v12 = vadd.f32 %v2639_v9, %v2470_v8  ;;  %2509 = vmatmul.bf16.gmra.mxu0 %v1775_v5  ;;  %v1400_v1 = vcvt.s32.f32 %v888_v45  ;;  %v1912_v8 = vpack.c.bf16 %v1656_v55, %v1648_v53  ;;  %v1783_v9 = vpack.c.bf16 %v1399_v59, %v1391_v58 }
 0x10d   : > { %2758 = vmatmul.bf16.gmra.mxu3 %v1904_v2  ;;  %v1155_v55 = vcvt.s32.f32 %v643_v38  ;;  %v1163_v58 = vcvt.s32.f32 %v651_v40  ;;  %v1156_v59 = vcvt.s32.f32 %v644_v41  ;;  %v659_v41 = vunpack.c.0.s8 %v516_v27 }
 0x10e   : > { %2678 = vmatmul.bf16.gmra.mxu1 %v1776_v7  ;;  %v1911_v7 = vpack.c.bf16 %v1655_v51, %v1647_v48  ;;  %v1784_v10 = vpack.c.bf16 %v1400_v1, %v1392_v62  ;;  %v1161_v48 = vcvt.s32.f32 %v649_v34  ;;  %v1162_v51 = vcvt.s32.f32 %v650_v37 }
 0x10f   : > { %v2550_v23 = vpop.f32.mrf.mxu2  ;;  %v1164_v62 = vcvt.s32.f32 %v652_v43  ;;  %v667_v43 = vunpack.c.0.s8 %v518_v32 }
 0x110   : > { %v2719_v24 = vpop.f32.mrf.mxu3 }
 0x111   : > { %v6842_v33 = vadd.f32 %v2719_v24, %v2550_v23  ;;  %v2472_v47 = vpop.f32.mrf.mxu0  ;;  %v6364_v23 = vld [vmem:[%s6612_s10] sm:$0xff] }
 0x112   : > { %v641_v24 = vunpack.c.2.s8 %v6364_v23  ;;  %v642_v35 = vunpack.c.3.s8 %v6364_v23 }
 0x113   : > { %7925 = vst [vmem:[#allocation11_spill] sm:$0xff] %v6842_v33  ;;  %v2641_v50 = vpop.f32.mrf.mxu1 }
 0x114   : > { %v6850_v57 = vadd.f32 %v2641_v50, %v2472_v47  ;;  %v1153_v45 = vcvt.s32.f32 %v641_v24  ;;  %v1154_v50 = vcvt.s32.f32 %v642_v35  ;;  %v6366_v24 = vld [vmem:[%s6612_s10 + $0x20] sm:$0xff]  ;;  %v6367_v35 = vld [vmem:[%s6612_s10 + $0x30] sm:$0xff] }
 0x115   : > { %v657_v25 = vunpack.c.2.s8 %v6366_v24  ;;  %v665_v37 = vunpack.c.2.s8 %v6367_v35  ;;  %v658_v38 = vunpack.c.3.s8 %v6366_v24  ;;  %v666_v40 = vunpack.c.3.s8 %v6367_v35 }
 0x117   : > { %v2552_v2 = vpop.f32.mrf.mxu2 }
 0x118   : > { %v2721_v3 = vpop.f32.mrf.mxu3 }
 0x119   : > { %v6852_v5 = vadd.f32 %v2721_v3, %v2552_v2  ;;  %v2475_v13 = vpop.f32.mrf.mxu0 }
 0x11b   : > { %7926 = vst [vmem:[#allocation12_spill] sm:$0xff] %v6852_v5  ;;  %v2644_v17 = vpop.f32.mrf.mxu1 }
 0x11c   : > { %2594 = vmatmul.bf16.gmra.mxu2 %v1911_v7  ;;  %v6854_v18 = vadd.f32 %v2644_v17, %v2475_v13  ;;  %2514 = vmatmul.bf16.gmra.mxu0 %v1783_v9  ;;  %v1665_v7 = vpack.c.bf16 %v1161_v48, %v1153_v45  ;;  %v1667_v9 = vpack.c.bf16 %v1163_v58, %v1155_v55  ;;  %v668_v45 = vunpack.c.1.s8 %v518_v32 }
 0x11d   : > { %2763 = vmatmul.bf16.gmra.mxu3 %v1912_v8  ;;  %v1666_v8 = vpack.c.bf16 %v1162_v51, %v1154_v50  ;;  %v1169_v48 = vcvt.s32.f32 %v657_v25  ;;  %v1177_v51 = vcvt.s32.f32 %v665_v37  ;;  %v1170_v55 = vcvt.s32.f32 %v658_v38  ;;  %v6368_v37 = vld [vmem:[%s6612_s10 + $0x40] sm:$0xff] }
 0x11e   : > { %2683 = vmatmul.bf16.gmra.mxu1 %v1784_v10  ;;  %v1668_v10 = vpack.c.bf16 %v1164_v62, %v1156_v59  ;;  %v1178_v58 = vcvt.s32.f32 %v666_v40  ;;  %v1171_v62 = vcvt.s32.f32 %v659_v41  ;;  %v673_v38 = vunpack.c.2.s8 %v6368_v37  ;;  %v520_v40 = vld [vmem:[%s6612_s10 + $0x48] sm:$0xff]  ;;  %v522_v41 = vld [vmem:[%s6612_s10 + $0x58] sm:$0xff] }
 0x11f   : > { %v2555_v19 = vpop.f32.mrf.mxu2 }
 0x120   : > { %v2724_v22 = vpop.f32.mrf.mxu3 }
 0x121   : > { %v6859_v30 = vadd.f32 %v2724_v22, %v2555_v19  ;;  %v2477_v44 = vpop.f32.mrf.mxu0 }
 0x123   : > { %7927 = vst [vmem:[#allocation13_spill] sm:$0xff] %v6859_v30  ;;  %v2646_v47 = vpop.f32.mrf.mxu1 }
 0x124   : > { %v6862_v53 = vadd.f32 %v2646_v47, %v2477_v44  ;;  %v660_v44 = vunpack.c.1.s8 %v516_v27 }
 0x127   : > { %v2557_v1 = vpop.f32.mrf.mxu2 }
 0x128   : > { %v2726_v2 = vpop.f32.mrf.mxu3 }
 0x129   : > { %v6864_v3 = vadd.f32 %v2726_v2, %v2557_v1  ;;  %v2480_v13 = vpop.f32.mrf.mxu0  ;;  %v1179_v1 = vcvt.s32.f32 %v667_v43  ;;  %v1172_v2 = vcvt.s32.f32 %v660_v44  ;;  %v6369_v44 = vld [vmem:[%s6612_s10 + $0x50] sm:$0xff] }
 0x12b   : > { %7928 = vst [vmem:[#allocation14_spill] sm:$0xff] %v6864_v3  ;;  %v2649_v17 = vpop.f32.mrf.mxu1 }
 0x12c   : > { %2777 = vmatmul.bf16.vlgmr.msrb.gmra.mxu2 %v1665_v7  ;;  %v6866_v19 = vadd.f32 %v2649_v17, %v2480_v13  ;;  %3115 = vmatmul.bf16.vlgmr.msrb.gmra.mxu0 %v1667_v9  ;;  %v1180_v7 = vcvt.s32.f32 %v668_v45  ;;  %v1673_v13 = vpack.c.bf16 %v1177_v51, %v1169_v48  ;;  %v1674_v17 = vpack.c.bf16 %v1178_v58, %v1170_v55 }
 0x12d   : > { %2946 = vmatmul.bf16.vlgmr.msrb.gmra.mxu3 %v1666_v8  ;;  %v681_v45 = vunpack.c.2.s8 %v6369_v44  ;;  %v682_v48 = vunpack.c.3.s8 %v6369_v44  ;;  %v683_v51 = vunpack.c.0.s8 %v522_v41  ;;  %v676_v55 = vunpack.c.1.s8 %v520_v40 }
 0x12e   : > { %3284 = vmatmul.bf16.vlgmr.msrb.gmra.mxu1 %v1668_v10  ;;  %v684_v58 = vunpack.c.1.s8 %v522_v41 }
 0x12f   : > { %v2560_v22 = vpop.f32.mrf.mxu2 }
 0x130   : > { %v2729_v23 = vpop.f32.mrf.mxu3 }
 0x131   : > { %v6871_v34 = vadd.f32 %v2729_v23, %v2560_v22  ;;  %v2482_v47 = vpop.f32.mrf.mxu0  ;;  %v1675_v22 = vpack.c.bf16 %v1179_v1, %v1171_v62  ;;  %v1676_v23 = vpack.c.bf16 %v1180_v7, %v1172_v2  ;;  %v1185_v1 = vcvt.s32.f32 %v673_v38 }
 0x132   : > { %v1193_v7 = vcvt.s32.f32 %v681_v45 }
 0x133   : > { %7929 = vst [vmem:[#allocation15_spill] sm:$0xff] %v6871_v34  ;;  %v2651_v50 = vpop.f32.mrf.mxu1 }
 0x134   : > { %v6874_v59 = vadd.f32 %v2651_v50, %v2482_v47  ;;  %v674_v47 = vunpack.c.3.s8 %v6368_v37  ;;  %v675_v50 = vunpack.c.0.s8 %v520_v40  ;;  %v1681_v37 = vpack.c.bf16 %v1193_v7, %v1185_v1  ;;  %v524_v1 = vld [vmem:[%s6612_s10 + $0x68] sm:$0xff] }
 0x137   : > { %v2562_v8 = vpop.f32.mrf.mxu2 }
 0x138   : > { %v2731_v9 = vpop.f32.mrf.mxu3 }
 0x139   : > { %v6876_v10 = vadd.f32 %v2731_v9, %v2562_v8  ;;  %v2485_v24 = vpop.f32.mrf.mxu0  ;;  %v1186_v8 = vcvt.s32.f32 %v674_v47  ;;  %v1194_v9 = vcvt.s32.f32 %v682_v48  ;;  %v6070_v48 = vld [vmem:[%s7910_s1 + $0x1b0] sm:$0xff] }
 0x13a   : > { %3446 = vmatpush.bf16.msra.mxu2 %v6070_v48 }
 0x13b   : > { %7930 = vst [vmem:[#allocation16_spill] sm:$0xff] %v6876_v10  ;;  %v2654_v25 = vpop.f32.mrf.mxu1  ;;  %v1682_v40 = vpack.c.bf16 %v1194_v9, %v1186_v8  ;;  %v6371_v8 = vld [vmem:[%s6612_s10 + $0x70] sm:$0xff] }
 0x13c   : > { %2782 = vmatmul.bf16.gmra.mxu2 %v1673_v13  ;;  %v6878_v27 = vadd.f32 %v2654_v25, %v2485_v24  ;;  %3120 = vmatmul.bf16.gmra.mxu0 %v1675_v22  ;;  %v1195_v22 = vcvt.s32.f32 %v683_v51  ;;  %v1196_v24 = vcvt.s32.f32 %v684_v58  ;;  %v6370_v58 = vld [vmem:[%s6612_s10 + $0x60] sm:$0xff]  ;;  %v697_v9 = vunpack.c.2.s8 %v6371_v8 }
 0x13d   : > { %2951 = vmatmul.bf16.gmra.mxu3 %v1674_v17  ;;  %v1187_v17 = vcvt.s32.f32 %v675_v50  ;;  %v6078_v50 = vld [vmem:[%s7910_s1 + $0x1f0] sm:$0xff] }
 0x13e   : > { %3289 = vmatmul.bf16.gmra.mxu1 %v1676_v23  ;;  %v1188_v23 = vcvt.s32.f32 %v676_v55  ;;  %3615 = vmatpush.bf16.msra.mxu3 %v6078_v50 }
 0x13f   : > { %v2565_v32 = vpop.f32.mrf.mxu2  ;;  %v1683_v41 = vpack.c.bf16 %v1195_v22, %v1187_v17  ;;  %v690_v17 = vunpack.c.3.s8 %v6370_v58  ;;  %v698_v22 = vunpack.c.3.s8 %v6371_v8 }
 0x140   : > { %v2734_v35 = vpop.f32.mrf.mxu3  ;;  %v1684_v38 = vpack.c.bf16 %v1196_v24, %v1188_v23  ;;  %v691_v23 = vunpack.c.0.s8 %v524_v1 }
 0x141   : > { %v6883_v43 = vadd.f32 %v2734_v35, %v2565_v32  ;;  %v2487_v62 = vpop.f32.mrf.mxu0 }
 0x142   : > { %v1203_v48 = vcvt.s32.f32 %v691_v23 }
 0x143   : > { %7931 = vst [vmem:[#allocation17_spill] sm:$0xff] %v6883_v43  ;;  %v2656_v2 = vpop.f32.mrf.mxu1 }
 0x144   : > { %v6886_v13 = vadd.f32 %v2656_v2, %v2487_v62  ;;  %v689_v62 = vunpack.c.2.s8 %v6370_v58  ;;  %v526_v2 = vld [vmem:[%s6612_s10 + $0x78] sm:$0xff] }
 0x145   : > { %v699_v24 = vunpack.c.0.s8 %v526_v2 }
 0x147   : > { %v2567_v25 = vpop.f32.mrf.mxu2  ;;  %v1211_v50 = vcvt.s32.f32 %v699_v24 }
 0x148   : > { %v2736_v32 = vpop.f32.mrf.mxu3 }
 0x149   : > { %v6888_v35 = vadd.f32 %v2736_v32, %v2567_v25  ;;  %v2490_v44 = vpop.f32.mrf.mxu0  ;;  %v692_v25 = vunpack.c.1.s8 %v524_v1  ;;  %v700_v32 = vunpack.c.1.s8 %v526_v2 }
 0x14b   : > { %7932 = vst [vmem:[#allocation18_spill] sm:$0xff] %v6888_v35  ;;  %v2659_v45 = vpop.f32.mrf.mxu1 }
 0x14c   : > { %2787 = vmatmul.bf16.gmra.mxu2 %v1681_v37  ;;  %v6890_v47 = vadd.f32 %v2659_v45, %v2490_v44  ;;  %3125 = vmatmul.bf16.gmra.mxu0 %v1683_v41  ;;  %v1202_v44 = vcvt.s32.f32 %v690_v17  ;;  %v1210_v45 = vcvt.s32.f32 %v698_v22 }
 0x14d   : > { %2956 = vmatmul.bf16.gmra.mxu3 %v1682_v40  ;;  %v1201_v40 = vcvt.s32.f32 %v689_v62  ;;  %v1691_v62 = vpack.c.bf16 %v1211_v50, %v1203_v48 }
 0x14e   : > { %3294 = vmatmul.bf16.gmra.mxu1 %v1684_v38  ;;  %v1209_v38 = vcvt.s32.f32 %v697_v9  ;;  %v1690_v2 = vpack.c.bf16 %v1210_v45, %v1202_v44 }
 0x14f   : > { %v2570_v51 = vpop.f32.mrf.mxu2 }
 0x150   : > { %v2739_v55 = vpop.f32.mrf.mxu3  ;;  %v1689_v1 = vpack.c.bf16 %v1209_v38, %v1201_v40  ;;  %v6373_v38 = vld [vmem:[%s6612_s10 + $0x90] sm:$0xff] }
 0x151   : > { %v6901_v7 = vadd.f32 %v2739_v55, %v2570_v51  ;;  %v2492_v37 = vpop.f32.mrf.mxu0  ;;  %v1204_v51 = vcvt.s32.f32 %v692_v25  ;;  %v1212_v55 = vcvt.s32.f32 %v700_v32  ;;  %v6372_v32 = vld [vmem:[%s6612_s10 + $0x80] sm:$0xff]  ;;  %v713_v44 = vunpack.c.2.s8 %v6373_v38 }
 0x152   : > { %v706_v45 = vunpack.c.3.s8 %v6372_v32  ;;  %v714_v48 = vunpack.c.3.s8 %v6373_v38 }
 0x153   : > { %7933 = vst [vmem:[#allocation19_spill] sm:$0xff] %v6901_v7  ;;  %v2661_v41 = vpop.f32.mrf.mxu1  ;;  %v1692_v9 = vpack.c.bf16 %v1212_v55, %v1204_v51 }
 0x154   : > { %v6904_v35 = vadd.f32 %v2661_v41, %v2492_v37  ;;  %v528_v37 = vld [vmem:[%s6612_s10 + $0x88] sm:$0xff]  ;;  %v530_v41 = vld [vmem:[%s6612_s10 + $0x98] sm:$0xff] }
 0x155   : > { %v707_v50 = vunpack.c.0.s8 %v528_v37  ;;  %v715_v51 = vunpack.c.0.s8 %v530_v41  ;;  %v708_v55 = vunpack.c.1.s8 %v528_v37 }
 0x157   : > { %v2572_v7 = vpop.f32.mrf.mxu2  ;;  %v1219_v43 = vcvt.s32.f32 %v707_v50  ;;  %v1227_v10 = vcvt.s32.f32 %v715_v51 }
 0x158   : > { %v2741_v58 = vpop.f32.mrf.mxu3 }
 0x159   : > { %v6906_v8 = vadd.f32 %v2741_v58, %v2572_v7  ;;  %v2495_v17 = vpop.f32.mrf.mxu0  ;;  %v705_v7 = vunpack.c.2.s8 %v6372_v32  ;;  %v716_v58 = vunpack.c.1.s8 %v530_v41 }
 0x15b   : > { %7934 = vst [vmem:[#allocation20_spill] sm:$0xff] %v6906_v8  ;;  %v2664_v22 = vpop.f32.mrf.mxu1 }
 0x15c   : > { %2792 = vmatmul.bf16.gmra.mxu2 %v1689_v1  ;;  %v6908_v23 = vadd.f32 %v2664_v22, %v2495_v17  ;;  %3130 = vmatmul.bf16.gmra.mxu0 %v1691_v62  ;;  %v1218_v17 = vcvt.s32.f32 %v706_v45  ;;  %v1226_v22 = vcvt.s32.f32 %v714_v48 }
 0x15d   : > { %2961 = vmatmul.bf16.gmra.mxu3 %v1690_v2  ;;  %v1217_v2 = vcvt.s32.f32 %v705_v7  ;;  %v1699_v7 = vpack.c.bf16 %v1227_v10, %v1219_v43 }
 0x15e   : > { %3299 = vmatmul.bf16.gmra.mxu1 %v1692_v9  ;;  %v1225_v9 = vcvt.s32.f32 %v713_v44  ;;  %v1698_v41 = vpack.c.bf16 %v1226_v22, %v1218_v17 }
 0x15f   : > { %v2575_v24 = vpop.f32.mrf.mxu2 }
 0x160   : > { %v2744_v25 = vpop.f32.mrf.mxu3  ;;  %v1697_v37 = vpack.c.bf16 %v1225_v9, %v1217_v2  ;;  %v6375_v9 = vld [vmem:[%s6612_s10 + $0xb0] sm:$0xff] }
 0x161   : > { %v6913_v40 = vadd.f32 %v2744_v25, %v2575_v24  ;;  %v2497_v1 = vpop.f32.mrf.mxu0  ;;  %v1220_v24 = vcvt.s32.f32 %v708_v55  ;;  %v1228_v25 = vcvt.s32.f32 %v716_v58  ;;  %v6374_v58 = vld [vmem:[%s6612_s10 + $0xa0] sm:$0xff]  ;;  %v729_v10 = vunpack.c.2.s8 %v6375_v9 }
 0x162   : > { %v722_v43 = vunpack.c.3.s8 %v6374_v58  ;;  %v730_v17 = vunpack.c.3.s8 %v6375_v9 }
 0x163   : > { %7935 = vst [vmem:[#allocation21_spill] sm:$0xff] %v6913_v40  ;;  %v2666_v62 = vpop.f32.mrf.mxu1  ;;  %v1700_v44 = vpack.c.bf16 %v1228_v25, %v1220_v24 }
 0x164   : > { %v6916_v8 = vadd.f32 %v2666_v62, %v2497_v1  ;;  %v532_v1 = vld [vmem:[%s6612_s10 + $0xa8] sm:$0xff]  ;;  %v534_v62 = vld [vmem:[%s6612_s10 + $0xb8] sm:$0xff] }
 0x165   : > { %v723_v22 = vunpack.c.0.s8 %v532_v1  ;;  %v731_v24 = vunpack.c.0.s8 %v534_v62  ;;  %v724_v25 = vunpack.c.1.s8 %v532_v1 }
 0x167   : > { %v2577_v40 = vpop.f32.mrf.mxu2  ;;  %v1235_v34 = vcvt.s32.f32 %v723_v22  ;;  %v1243_v3 = vcvt.s32.f32 %v731_v24 }
 0x168   : > { %v2746_v32 = vpop.f32.mrf.mxu3 }
 0x169   : > { %v6918_v38 = vadd.f32 %v2746_v32, %v2577_v40  ;;  %v2500_v45 = vpop.f32.mrf.mxu0  ;;  %v721_v40 = vunpack.c.2.s8 %v6374_v58  ;;  %v732_v32 = vunpack.c.1.s8 %v534_v62 }
 0x16b   : > { %7936 = vst [vmem:[#allocation22_spill] sm:$0xff] %v6918_v38  ;;  %v2669_v48 = vpop.f32.mrf.mxu1 }
 0x16c   : > { %2797 = vmatmul.bf16.gmra.mxu2 %v1697_v37  ;;  %v6920_v50 = vadd.f32 %v2669_v48, %v2500_v45  ;;  %3135 = vmatmul.bf16.gmra.mxu0 %v1699_v7  ;;  %v1234_v45 = vcvt.s32.f32 %v722_v43  ;;  %v1242_v48 = vcvt.s32.f32 %v730_v17 }
 0x16d   : > { %2966 = vmatmul.bf16.gmra.mxu3 %v1698_v41  ;;  %v1233_v41 = vcvt.s32.f32 %v721_v40  ;;  %v1707_v40 = vpack.c.bf16 %v1243_v3, %v1235_v34 }
 0x16e   : > { %3304 = vmatmul.bf16.gmra.mxu1 %v1700_v44  ;;  %v1241_v44 = vcvt.s32.f32 %v729_v10  ;;  %v1706_v62 = vpack.c.bf16 %v1242_v48, %v1234_v45 }
 0x16f   : > { %v2580_v51 = vpop.f32.mrf.mxu2 }
 0x170   : > { %v2749_v55 = vpop.f32.mrf.mxu3  ;;  %v1705_v1 = vpack.c.bf16 %v1241_v44, %v1233_v41  ;;  %v6377_v44 = vld [vmem:[%s6612_s10 + $0xd0] sm:$0xff] }
 0x171   : > { %v6925_v2 = vadd.f32 %v2749_v55, %v2580_v51  ;;  %v2502_v37 = vpop.f32.mrf.mxu0  ;;  %v1236_v51 = vcvt.s32.f32 %v724_v25  ;;  %v1244_v55 = vcvt.s32.f32 %v732_v32  ;;  %v6376_v32 = vld [vmem:[%s6612_s10 + $0xc0] sm:$0xff]  ;;  %v745_v3 = vunpack.c.2.s8 %v6377_v44 }
 0x172   : > { %v738_v34 = vunpack.c.3.s8 %v6376_v32  ;;  %v746_v45 = vunpack.c.3.s8 %v6377_v44 }
 0x173   : > { %7937 = vst [vmem:[#allocation23_spill] sm:$0xff] %v6925_v2  ;;  %v2671_v7 = vpop.f32.mrf.mxu1  ;;  %v1708_v10 = vpack.c.bf16 %v1244_v55, %v1236_v51 }
 0x174   : > { %v6928_v38 = vadd.f32 %v2671_v7, %v2502_v37  ;;  %v536_v37 = vld [vmem:[%s6612_s10 + $0xc8] sm:$0xff]  ;;  %v538_v7 = vld [vmem:[%s6612_s10 + $0xd8] sm:$0xff] }
 0x175   : > { %v739_v48 = vunpack.c.0.s8 %v536_v37  ;;  %v747_v51 = vunpack.c.0.s8 %v538_v7  ;;  %v740_v55 = vunpack.c.1.s8 %v536_v37 }
 0x177   : > { %v2582_v2 = vpop.f32.mrf.mxu2  ;;  %v1251_v30 = vcvt.s32.f32 %v739_v48  ;;  %v1259_v5 = vcvt.s32.f32 %v747_v51  ;;  %v6069_v48 = vld [vmem:[%s7910_s1 + $0x1a8] sm:$0xff] }
 0x178   : > { %v2751_v58 = vpop.f32.mrf.mxu3  ;;  %3447 = vmatpush.bf16.msra.mxu2 %v6069_v48 }
 0x179   : > { %v6930_v9 = vadd.f32 %v2751_v58, %v2582_v2  ;;  %v2505_v43 = vpop.f32.mrf.mxu0  ;;  %v737_v2 = vunpack.c.2.s8 %v6376_v32  ;;  %v748_v58 = vunpack.c.1.s8 %v538_v7  ;;  %v1715_v7 = vpack.c.bf16 %v1259_v5, %v1251_v30 }
 0x17b   : > { %7938 = vst [vmem:[#allocation24_spill] sm:$0xff] %v6930_v9  ;;  %v2674_v17 = vpop.f32.mrf.mxu1 }
 0x17c   : > { %2802 = vmatmul.bf16.gmra.mxu2 %v1705_v1  ;;  %v6932_v22 = vadd.f32 %v2674_v17, %v2505_v43  ;;  %3140 = vmatmul.bf16.gmra.mxu0 %v1707_v40  ;;  %v1250_v43 = vcvt.s32.f32 %v738_v34  ;;  %v1258_v17 = vcvt.s32.f32 %v746_v45 }
 0x17d   : > { %2971 = vmatmul.bf16.gmra.mxu3 %v1706_v62  ;;  %v1249_v62 = vcvt.s32.f32 %v737_v2 }
 0x17e   : > { %3309 = vmatmul.bf16.gmra.mxu1 %v1708_v10  ;;  %v1257_v10 = vcvt.s32.f32 %v745_v3  ;;  %v1714_v37 = vpack.c.bf16 %v1258_v17, %v1250_v43 }
 0x17f   : > { %v2585_v24 = vpop.f32.mrf.mxu2 }
 0x180   : > { %v2754_v25 = vpop.f32.mrf.mxu3  ;;  %v1713_v44 = vpack.c.bf16 %v1257_v10, %v1249_v62  ;;  %v6379_v62 = vld [vmem:[%s6612_s10 + $0xf0] sm:$0xff] }
 0x181   : > { %v6937_v41 = vadd.f32 %v2754_v25, %v2585_v24  ;;  %v2507_v1 = vpop.f32.mrf.mxu0  ;;  %v1252_v24 = vcvt.s32.f32 %v740_v55  ;;  %v1260_v25 = vcvt.s32.f32 %v748_v58  ;;  %v540_v55 = vld [vmem:[%s6612_s10 + $0xe8] sm:$0xff]  ;;  %v542_v58 = vld [vmem:[%s6612_s10 + $0xf8] sm:$0xff]  ;;  %v762_v43 = vunpack.c.3.s8 %v6379_v62 }
 0x182   : > { %v755_v17 = vunpack.c.0.s8 %v540_v55 }
 0x183   : > { %7939 = vst [vmem:[#allocation25_spill] sm:$0xff] %v6937_v41  ;;  %v2676_v40 = vpop.f32.mrf.mxu1  ;;  %v1716_v2 = vpack.c.bf16 %v1260_v25, %v1252_v24  ;;  %v763_v24 = vunpack.c.0.s8 %v542_v58  ;;  %v756_v25 = vunpack.c.1.s8 %v540_v55 }
 0x184   : > { %v6940_v9 = vadd.f32 %v2676_v40, %v2507_v1  ;;  %v761_v40 = vunpack.c.2.s8 %v6379_v62  ;;  %v1267_v48 = vcvt.s32.f32 %v755_v17 }
 0x187   : > { %v2587_v41 = vpop.f32.mrf.mxu2 }
 0x188   : > { %v2756_v33 = vpop.f32.mrf.mxu3 }
 0x189   : > { %v6942_v32 = vadd.f32 %v2756_v33, %v2587_v41  ;;  %v2510_v3 = vpop.f32.mrf.mxu0  ;;  %v6077_v33 = vld [vmem:[%s7910_s1 + $0x1e8] sm:$0xff]  ;;  %v6378_v41 = vld [vmem:[%s6612_s10 + $0xe0] sm:$0xff] }
 0x18a   : > { %v753_v51 = vunpack.c.2.s8 %v6378_v41  ;;  %3616 = vmatpush.bf16.msra.mxu3 %v6077_v33  ;;  %v754_v10 = vunpack.c.3.s8 %v6378_v41  ;;  %v1275_v33 = vcvt.s32.f32 %v763_v24 }
 0x18b   : > { %7940 = vst [vmem:[#allocation26_spill] sm:$0xff] %v6942_v32  ;;  %v2679_v34 = vpop.f32.mrf.mxu1  ;;  %v1274_v32 = vcvt.s32.f32 %v762_v43 }
 0x18c   : > { %2807 = vmatmul.bf16.gmra.mxu2 %v1713_v44  ;;  %v6944_v45 = vadd.f32 %v2679_v34, %v2510_v3  ;;  %3145 = vmatmul.bf16.gmra.mxu0 %v1715_v7  ;;  %v764_v44 = vunpack.c.1.s8 %v542_v58  ;;  %v1265_v7 = vcvt.s32.f32 %v753_v51  ;;  %v1273_v3 = vcvt.s32.f32 %v761_v40 }
 0x18d   : > { %2976 = vmatmul.bf16.gmra.mxu3 %v1714_v37  ;;  %v1266_v34 = vcvt.s32.f32 %v754_v10  ;;  %v1723_v51 = vpack.c.bf16 %v1275_v33, %v1267_v48 }
 0x18e   : > { %3314 = vmatmul.bf16.gmra.mxu1 %v1716_v2  ;;  %v1721_v55 = vpack.c.bf16 %v1273_v3, %v1265_v7 }
 0x18f   : > { %v2590_v5 = vpop.f32.mrf.mxu2  ;;  %v1722_v58 = vpack.c.bf16 %v1274_v32, %v1266_v34  ;;  %v6381_v32 = vld [vmem:[%s6612_s10 + $0x110] sm:$0xff] }
 0x190   : > { %v2759_v30 = vpop.f32.mrf.mxu3  ;;  %v777_v3 = vunpack.c.2.s8 %v6381_v32  ;;  %v778_v48 = vunpack.c.3.s8 %v6381_v32 }
 0x191   : > { %v6955_v1 = vadd.f32 %v2759_v30, %v2590_v5  ;;  %v2512_v37 = vpop.f32.mrf.mxu0  ;;  %v1268_v5 = vcvt.s32.f32 %v756_v25  ;;  %v1276_v30 = vcvt.s32.f32 %v764_v44  ;;  %v6380_v44 = vld [vmem:[%s6612_s10 + $0x100] sm:$0xff] }
 0x192   : > { %v770_v34 = vunpack.c.3.s8 %v6380_v44 }
 0x193   : > { %7941 = vst [vmem:[#allocation27_spill] sm:$0xff] %v6955_v1  ;;  %v2681_v2 = vpop.f32.mrf.mxu1  ;;  %v1724_v40 = vpack.c.bf16 %v1276_v30, %v1268_v5 }
 0x194   : > { %v6958_v63 = vadd.f32 %v2681_v2, %v2512_v37  ;;  %v544_v37 = vld [vmem:[%s6612_s10 + $0x108] sm:$0xff]  ;;  %v546_v2 = vld [vmem:[%s6612_s10 + $0x118] sm:$0xff] }
 0x195   : > { %v771_v33 = vunpack.c.0.s8 %v544_v37  ;;  %v779_v5 = vunpack.c.0.s8 %v546_v2  ;;  %v772_v30 = vunpack.c.1.s8 %v544_v37 }
 0x197   : > { %v2592_v1 = vpop.f32.mrf.mxu2  ;;  %v1283_v37 = vcvt.s32.f32 %v771_v33  ;;  %v1284_v32 = vcvt.s32.f32 %v772_v30  ;;  %v548_v33 = vld [vmem:[%s6612_s10 + $0x128] sm:$0xff] }
 0x198   : > { %v2761_v41 = vpop.f32.mrf.mxu3 }
 0x199   : > { %v6960_v62 = vadd.f32 %v2761_v41, %v2592_v1  ;;  %v2515_v10 = vpop.f32.mrf.mxu0  ;;  %v769_v1 = vunpack.c.2.s8 %v6380_v44  ;;  %v780_v41 = vunpack.c.1.s8 %v546_v2  ;;  %v1291_v2 = vcvt.s32.f32 %v779_v5 }
 0x19b   : > { %7942 = vst [vmem:[#allocation28_spill] sm:$0xff] %v6960_v62  ;;  %v2684_v43 = vpop.f32.mrf.mxu1 }
 0x19c   : > { %2812 = vmatmul.bf16.gmra.mxu2 %v1721_v55  ;;  %v6962_v17 = vadd.f32 %v2684_v43, %v2515_v10  ;;  %3150 = vmatmul.bf16.gmra.mxu0 %v1723_v51  ;;  %v6127_v55 = vld [vmem:[%s7914_s5 + $0x38] sm:$0xff]  ;;  %v1289_v43 = vcvt.s32.f32 %v777_v3  ;;  %v1731_v3 = vpack.c.bf16 %v1291_v2, %v1283_v37  ;;  %v788_v37 = vunpack.c.1.s8 %v548_v33 }
 0x19d   : > { %2981 = vmatmul.bf16.gmra.mxu3 %v1722_v58  ;;  %v6087_v58 = vld [vmem:[%s7913_s4 + $0x38] sm:$0xff]  ;;  %4794 = vmatpush.bf16.msra.mxu0 %v6127_v55 }
 0x19e   : > { %3319 = vmatmul.bf16.gmra.mxu1 %v1724_v40  ;;  %v1281_v40 = vcvt.s32.f32 %v769_v1 }
 0x19f   : > { %v2595_v24 = vpop.f32.mrf.mxu2  ;;  %5011 = vmatpush.bf16.msra.mxu1 %v6087_v58  ;;  %v550_v58 = vld [vmem:[%s6612_s10 + $0x138] sm:$0xff] }
 0x1a0   : > { %v2764_v25 = vpop.f32.mrf.mxu3  ;;  %v1729_v1 = vpack.c.bf16 %v1289_v43, %v1281_v40  ;;  %v796_v2 = vunpack.c.1.s8 %v550_v58 }
 0x1a1   : > { %v6967_v7 = vadd.f32 %v2764_v25, %v2595_v24  ;;  %v2517_v51 = vpop.f32.mrf.mxu0  ;;  %v1282_v24 = vcvt.s32.f32 %v770_v34  ;;  %v1290_v25 = vcvt.s32.f32 %v778_v48 }
 0x1a2   : > { %v1308_v15 = vcvt.s32.f32 %v796_v2 }
 0x1a3   : > { %7943 = vst [vmem:[#allocation29_spill] sm:$0xff] %v6967_v7  ;;  %v2686_v10 = vpop.f32.mrf.mxu1  ;;  %v1292_v7 = vcvt.s32.f32 %v780_v41  ;;  %v1730_v42 = vpack.c.bf16 %v1290_v25, %v1282_v24  ;;  %v6382_v41 = vld [vmem:[%s6612_s10 + $0x120] sm:$0xff]  ;;  %v787_v24 = vunpack.c.0.s8 %v548_v33  ;;  %v795_v25 = vunpack.c.0.s8 %v550_v58 }
 0x1a4   : > { %v6976_v44 = vadd.f32 %v2686_v10, %v2517_v51  ;;  %v785_v55 = vunpack.c.2.s8 %v6382_v41  ;;  %v786_v10 = vunpack.c.3.s8 %v6382_v41 }
 0x1a5   : > { %v1732_v34 = vpack.c.bf16 %v1292_v7, %v1284_v32  ;;  %v1299_v56 = vcvt.s32.f32 %v787_v24  ;;  %v552_v24 = vld [vmem:[%s6612_s10 + $0x148] sm:$0xff] }
 0x1a6   : > { %v1297_v32 = vcvt.s32.f32 %v785_v55 }
 0x1a7   : > { %v2597_v62 = vpop.f32.mrf.mxu2 }
 0x1a8   : > { %v2766_v26 = vpop.f32.mrf.mxu3 }
 0x1a9   : > { %v6978_v6 = vadd.f32 %v2766_v26, %v2597_v62  ;;  %v3116_v48 = vpop.f32.mrf.mxu0  ;;  %v6383_v62 = vld [vmem:[%s6612_s10 + $0x130] sm:$0xff] }
 0x1aa   : > { %v793_v40 = vunpack.c.2.s8 %v6383_v62  ;;  %v794_v43 = vunpack.c.3.s8 %v6383_v62 }
 0x1ab   : > { %7944 = vst [vmem:[#allocation30_spill] sm:$0xff] %v6978_v6  ;;  %v3285_v51 = vpop.f32.mrf.mxu1  ;;  %v1298_v6 = vcvt.s32.f32 %v786_v10 }
 0x1ac   : > { %2817 = vmatmul.bf16.gmra.mxu2 %v1729_v1  ;;  %3155 = vmatmul.bf16.gmra.mxu0 %v1731_v3  ;;  %v1306_v20 = vcvt.s32.f32 %v794_v43 }
 0x1ad   : > { %2986 = vmatmul.bf16.gmra.mxu3 %v1730_v42 }
 0x1ae   : > { %3324 = vmatmul.bf16.gmra.mxu1 %v1732_v34  ;;  %v1305_v34 = vcvt.s32.f32 %v793_v40  ;;  %v1738_v58 = vpack.c.bf16 %v1306_v20, %v1298_v6  ;;  %v554_v20 = vld [vmem:[%s6612_s10 + $0x158] sm:$0xff] }
 0x1af   : > { %v2778_v5 = vpop.f32.mrf.mxu2 }
 0x1b0   : > { %v2947_v30 = vpop.f32.mrf.mxu3  ;;  %v2779_v26 = vadd.f32 %v2778_v5, %v6704_v54  ;;  %v1307_v54 = vcvt.s32.f32 %v795_v25  ;;  %v1300_v5 = vcvt.s32.f32 %v788_v37  ;;  %v1737_v33 = vpack.c.bf16 %v1305_v34, %v1297_v32  ;;  %v6384_v25 = vld [vmem:[%s6612_s10 + $0x140] sm:$0xff] }
 0x1b1   : > { %v3118_v42 = vpop.f32.mrf.mxu0  ;;  %v801_v37 = vunpack.c.2.s8 %v6384_v25  ;;  %v802_v2 = vunpack.c.3.s8 %v6384_v25  ;;  %v811_v34 = vunpack.c.0.s8 %v554_v20 }
 0x1b2   : > { %v2948_v7 = vadd.f32 %v2947_v30, %v2779_v26  ;;  %v1740_v26 = vpack.c.bf16 %v1308_v15, %v1300_v5 }
 0x1b3   : > { %v3287_v1 = vpop.f32.mrf.mxu1 }
 0x1b4   : > { %v3117_v3 = vadd.f32 %v3116_v48, %v2948_v7  ;;  %v1739_v48 = vpack.c.bf16 %v1307_v54, %v1299_v56  ;;  %v6385_v56 = vld [vmem:[%s6612_s10 + $0x150] sm:$0xff]  ;;  %v804_v54 = vunpack.c.1.s8 %v552_v24 }
 0x1b5   : > { %v809_v15 = vunpack.c.2.s8 %v6385_v56  ;;  %v810_v32 = vunpack.c.3.s8 %v6385_v56 }
 0x1b6   : > { %v6985_v39 = vadd.f32 %v3285_v51, %v3117_v3  ;;  %v803_v3 = vunpack.c.0.s8 %v552_v24 }
 0x1b7   : > { %v2780_v41 = vpop.f32.mrf.mxu2 }
 0x1b8   : > { %v2949_v62 = vpop.f32.mrf.mxu3  ;;  %v2781_v30 = vadd.f32 %v2780_v41, %v6718_v14  ;;  %v1313_v41 = vcvt.s32.f32 %v801_v37 }
 0x1b9   : > { %v3121_v40 = vpop.f32.mrf.mxu0 }
 0x1ba   : > { %v2950_v55 = vadd.f32 %v2949_v62, %v2781_v30 }
 0x1bb   : > { %v3290_v10 = vpop.f32.mrf.mxu1 }
 0x1bc   : > { %v3119_v51 = vadd.f32 %v3118_v42, %v2950_v55  ;;  %2822 = vmatmul.bf16.gmra.mxu2 %v1737_v33  ;;  %3160 = vmatmul.bf16.gmra.mxu0 %v1739_v48  ;;  %v1321_v33 = vcvt.s32.f32 %v809_v15  ;;  %v1322_v55 = vcvt.s32.f32 %v810_v32  ;;  %v1315_v48 = vcvt.s32.f32 %v803_v3 }
 0x1bd   : > { %2991 = vmatmul.bf16.gmra.mxu3 %v1738_v58  ;;  %v1314_v58 = vcvt.s32.f32 %v802_v2 }
 0x1be   : > { %v6988_v43 = vadd.f32 %v3287_v1, %v3119_v51  ;;  %3329 = vmatmul.bf16.gmra.mxu1 %v1740_v26  ;;  %v812_v1 = vunpack.c.1.s8 %v554_v20  ;;  %v1316_v51 = vcvt.s32.f32 %v804_v54  ;;  %v1745_v24 = vpack.c.bf16 %v1321_v33, %v1313_v41  ;;  %v558_v41 = vld [vmem:[%s6612_s10 + $0x178] sm:$0xff]  ;;  %v6387_v33 = vld [vmem:[%s6612_s10 + $0x170] sm:$0xff] }
 0x1bf   : > { %v2783_v7 = vpop.f32.mrf.mxu2  ;;  %v1746_v20 = vpack.c.bf16 %v1322_v55, %v1314_v58  ;;  %v825_v58 = vunpack.c.2.s8 %v6387_v33 }
 0x1c0   : > { %v2952_v14 = vpop.f32.mrf.mxu3  ;;  %v2784_v6 = vadd.f32 %v2783_v7, %v6722_v28  ;;  %v1323_v28 = vcvt.s32.f32 %v811_v34  ;;  %v1324_v7 = vcvt.s32.f32 %v812_v1  ;;  %v6386_v1 = vld [vmem:[%s6612_s10 + $0x160] sm:$0xff] }
 0x1c1   : > { %v3123_v5 = vpop.f32.mrf.mxu0  ;;  %v818_v55 = vunpack.c.3.s8 %v6386_v1 }
 0x1c2   : > { %v2953_v42 = vadd.f32 %v2952_v14, %v2784_v6  ;;  %v1747_v37 = vpack.c.bf16 %v1323_v28, %v1315_v48 }
 0x1c3   : > { %v3292_v62 = vpop.f32.mrf.mxu1 }
 0x1c4   : > { %v3122_v30 = vadd.f32 %v3121_v40, %v2953_v42  ;;  %v1748_v40 = vpack.c.bf16 %v1324_v7, %v1316_v51  ;;  %v6076_v42 = vld [vmem:[%s7910_s1 + $0x1e0] sm:$0xff]  ;;  %v827_v51 = vunpack.c.0.s8 %v558_v41 }
 0x1c5   : > { %3617 = vmatpush.bf16.msra.mxu3 %v6076_v42 }
 0x1c6   : > { %v6995_v26 = vadd.f32 %v3290_v10, %v3122_v30  ;;  %v6068_v10 = vld [vmem:[%s7910_s1 + $0x1a0] sm:$0xff] }
 0x1c7   : > { %v2785_v25 = vpop.f32.mrf.mxu2  ;;  %3448 = vmatpush.bf16.msra.mxu2 %v6068_v10 }
 0x1c8   : > { %v2954_v56 = vpop.f32.mrf.mxu3  ;;  %v2786_v14 = vadd.f32 %v2785_v25, %v6736_v52  ;;  %v556_v52 = vld [vmem:[%s6612_s10 + $0x168] sm:$0xff]  ;;  %v828_v25 = vunpack.c.1.s8 %v558_v41 }
 0x1c9   : > { %v3126_v15 = vpop.f32.mrf.mxu0  ;;  %v819_v48 = vunpack.c.0.s8 %v556_v52  ;;  %v820_v7 = vunpack.c.1.s8 %v556_v52 }
 0x1ca   : > { %v2955_v6 = vadd.f32 %v2954_v56, %v2786_v14 }
 0x1cb   : > { %v3295_v2 = vpop.f32.mrf.mxu1 }
 0x1cc   : > { %v3124_v32 = vadd.f32 %v3123_v5, %v2955_v6  ;;  %2827 = vmatmul.bf16.gmra.mxu2 %v1745_v24  ;;  %3165 = vmatmul.bf16.gmra.mxu0 %v1747_v37  ;;  %v817_v5 = vunpack.c.2.s8 %v6386_v1  ;;  %v1337_v6 = vcvt.s32.f32 %v825_v58  ;;  %v1330_v37 = vcvt.s32.f32 %v818_v55 }
 0x1cd   : > { %2996 = vmatmul.bf16.gmra.mxu3 %v1746_v20  ;;  %v1340_v1 = vcvt.s32.f32 %v828_v25  ;;  %v562_v25 = vld [vmem:[%s6612_s10 + $0x198] sm:$0xff] }
 0x1ce   : > { %v7001_v3 = vadd.f32 %v3292_v62, %v3124_v32  ;;  %3334 = vmatmul.bf16.gmra.mxu1 %v1748_v40  ;;  %v826_v62 = vunpack.c.3.s8 %v6387_v33  ;;  %v1329_v14 = vcvt.s32.f32 %v817_v5  ;;  %v1331_v32 = vcvt.s32.f32 %v819_v48  ;;  %v560_v48 = vld [vmem:[%s6612_s10 + $0x188] sm:$0xff] }
 0x1cf   : > { %v2788_v34 = vpop.f32.mrf.mxu2 }
 0x1d0   : > { %v2957_v54 = vpop.f32.mrf.mxu3  ;;  %v2789_v30 = vadd.f32 %v2788_v34, %v6740_v4  ;;  %v1338_v40 = vcvt.s32.f32 %v826_v62  ;;  %v1339_v4 = vcvt.s32.f32 %v827_v51  ;;  %v1332_v34 = vcvt.s32.f32 %v820_v7  ;;  %v6388_v51 = vld [vmem:[%s6612_s10 + $0x180] sm:$0xff] }
 0x1d1   : > { %v3128_v56 = vpop.f32.mrf.mxu0  ;;  %v1753_v52 = vpack.c.bf16 %v1337_v6, %v1329_v14  ;;  %v833_v7 = vunpack.c.2.s8 %v6388_v51 }
 0x1d2   : > { %v2958_v28 = vadd.f32 %v2957_v54, %v2789_v30  ;;  %v1754_v41 = vpack.c.bf16 %v1338_v40, %v1330_v37  ;;  %v1756_v30 = vpack.c.bf16 %v1340_v1, %v1332_v34  ;;  %v834_v37 = vunpack.c.3.s8 %v6388_v51  ;;  %v6126_v1 = vld [vmem:[%s7914_s5 + $0x30] sm:$0xff] }
 0x1d3   : > { %v3297_v24 = vpop.f32.mrf.mxu1  ;;  %v836_v34 = vunpack.c.1.s8 %v560_v48  ;;  %4795 = vmatpush.bf16.msra.mxu0 %v6126_v1 }
 0x1d4   : > { %v3127_v20 = vadd.f32 %v3126_v15, %v2958_v28  ;;  %v1755_v15 = vpack.c.bf16 %v1339_v4, %v1331_v32  ;;  %v835_v32 = vunpack.c.0.s8 %v560_v48  ;;  %v843_v4 = vunpack.c.0.s8 %v562_v25 }
 0x1d6   : > { %v7011_v10 = vadd.f32 %v3295_v2, %v3127_v20  ;;  %v6389_v20 = vld [vmem:[%s6612_s10 + $0x190] sm:$0xff]  ;;  %v1355_v48 = vcvt.s32.f32 %v843_v4  ;;  %v564_v4 = vld [vmem:[%s6612_s10 + $0x1a8] sm:$0xff] }
 0x1d7   : > { %v2790_v33 = vpop.f32.mrf.mxu2  ;;  %v841_v6 = vunpack.c.2.s8 %v6389_v20  ;;  %v842_v40 = vunpack.c.3.s8 %v6389_v20 }
 0x1d8   : > { %v2959_v42 = vpop.f32.mrf.mxu3  ;;  %v2791_v54 = vadd.f32 %v2790_v33, %v6754_v31  ;;  %v6086_v33 = vld [vmem:[%s7913_s4 + $0x30] sm:$0xff] }
 0x1d9   : > { %v3131_v58 = vpop.f32.mrf.mxu0  ;;  %5012 = vmatpush.bf16.msra.mxu1 %v6086_v33  ;;  %v566_v33 = vld [vmem:[%s6612_s10 + $0x1b8] sm:$0xff] }
 0x1da   : > { %v2960_v5 = vadd.f32 %v2959_v42, %v2791_v54  ;;  %v1345_v54 = vcvt.s32.f32 %v833_v7 }
 0x1db   : > { %v3300_v55 = vpop.f32.mrf.mxu1 }
 0x1dc   : > { %v3129_v2 = vadd.f32 %v3128_v56, %v2960_v5  ;;  %2832 = vmatmul.bf16.gmra.mxu2 %v1753_v52  ;;  %3170 = vmatmul.bf16.gmra.mxu0 %v1755_v15  ;;  %v1346_v5 = vcvt.s32.f32 %v834_v37  ;;  %v1354_v15 = vcvt.s32.f32 %v842_v40 }
 0x1dd   : > { %3001 = vmatmul.bf16.gmra.mxu3 %v1754_v41  ;;  %v1353_v41 = vcvt.s32.f32 %v841_v6 }
 0x1de   : > { %v7014_v62 = vadd.f32 %v3297_v24, %v3129_v2  ;;  %3339 = vmatmul.bf16.gmra.mxu1 %v1756_v30  ;;  %v844_v24 = vunpack.c.1.s8 %v562_v25  ;;  %v1347_v30 = vcvt.s32.f32 %v835_v32  ;;  %v1762_v7 = vpack.c.bf16 %v1354_v15, %v1346_v5 }
 0x1df   : > { %v2793_v28 = vpop.f32.mrf.mxu2  ;;  %v1761_v20 = vpack.c.bf16 %v1353_v41, %v1345_v54 }
 0x1e0   : > { %v2962_v31 = vpop.f32.mrf.mxu3  ;;  %v2794_v14 = vadd.f32 %v2793_v28, %v6758_v46  ;;  %v1348_v28 = vcvt.s32.f32 %v836_v34  ;;  %v1763_v6 = vpack.c.bf16 %v1355_v48, %v1347_v30  ;;  %v851_v30 = vunpack.c.0.s8 %v564_v4 }
 0x1e1   : > { %v3133_v42 = vpop.f32.mrf.mxu0  ;;  %v859_v48 = vunpack.c.0.s8 %v566_v33 }
 0x1e2   : > { %v2963_v56 = vadd.f32 %v2962_v31, %v2794_v14  ;;  %v1356_v31 = vcvt.s32.f32 %v844_v24  ;;  %v6390_v24 = vld [vmem:[%s6612_s10 + $0x1a0] sm:$0xff] }
 0x1e3   : > { %v3302_v46 = vpop.f32.mrf.mxu1  ;;  %v849_v1 = vunpack.c.2.s8 %v6390_v24  ;;  %v850_v5 = vunpack.c.3.s8 %v6390_v24 }
 0x1e4   : > { %v3132_v52 = vadd.f32 %v3131_v58, %v2963_v56  ;;  %v1764_v37 = vpack.c.bf16 %v1356_v31, %v1348_v28  ;;  %v852_v28 = vunpack.c.1.s8 %v564_v4 }
 0x1e6   : > { %v7027_v2 = vadd.f32 %v3300_v55, %v3132_v52  ;;  %v6391_v52 = vld [vmem:[%s6612_s10 + $0x1b0] sm:$0xff] }
 0x1e7   : > { %v2795_v51 = vpop.f32.mrf.mxu2  ;;  %v857_v41 = vunpack.c.2.s8 %v6391_v52  ;;  %v858_v15 = vunpack.c.3.s8 %v6391_v52 }
 0x1e8   : > { %v2964_v25 = vpop.f32.mrf.mxu3  ;;  %v2796_v14 = vadd.f32 %v2795_v51, %v6772_v11  ;;  %v1361_v51 = vcvt.s32.f32 %v849_v1 }
 0x1e9   : > { %v3136_v40 = vpop.f32.mrf.mxu0 }
 0x1ea   : > { %v2965_v58 = vadd.f32 %v2964_v25, %v2796_v14 }
 0x1eb   : > { %v3305_v32 = vpop.f32.mrf.mxu1 }
 0x1ec   : > { %v3134_v55 = vadd.f32 %v3133_v42, %v2965_v58  ;;  %2837 = vmatmul.bf16.gmra.mxu2 %v1761_v20  ;;  %3175 = vmatmul.bf16.gmra.mxu0 %v1763_v6  ;;  %v1369_v20 = vcvt.s32.f32 %v857_v41  ;;  %v1370_v58 = vcvt.s32.f32 %v858_v15  ;;  %v1363_v6 = vcvt.s32.f32 %v851_v30  ;;  %v568_v30 = vld [vmem:[%s6612_s10 + $0x1c8] sm:$0xff] }
 0x1ed   : > { %3006 = vmatmul.bf16.gmra.mxu3 %v1762_v7  ;;  %v1362_v7 = vcvt.s32.f32 %v850_v5 }
 0x1ee   : > { %v7030_v56 = vadd.f32 %v3302_v46, %v3134_v55  ;;  %3344 = vmatmul.bf16.gmra.mxu1 %v1764_v37  ;;  %v860_v46 = vunpack.c.1.s8 %v566_v33  ;;  %v1364_v55 = vcvt.s32.f32 %v852_v28  ;;  %v1769_v4 = vpack.c.bf16 %v1369_v20, %v1361_v51 }
 0x1ef   : > { %v2798_v34 = vpop.f32.mrf.mxu2  ;;  %v1770_v33 = vpack.c.bf16 %v1370_v58, %v1362_v7 }
 0x1f0   : > { %v2967_v11 = vpop.f32.mrf.mxu3  ;;  %v2799_v54 = vadd.f32 %v2798_v34, %v6776_v29  ;;  %v1371_v29 = vcvt.s32.f32 %v859_v48  ;;  %v1372_v34 = vcvt.s32.f32 %v860_v46  ;;  %v6392_v48 = vld [vmem:[%s6612_s10 + $0x1c0] sm:$0xff]  ;;  %v570_v46 = vld [vmem:[%s6612_s10 + $0x1d8] sm:$0xff] }
 0x1f1   : > { %v3138_v31 = vpop.f32.mrf.mxu0  ;;  %v865_v28 = vunpack.c.2.s8 %v6392_v48  ;;  %v866_v7 = vunpack.c.3.s8 %v6392_v48 }
 0x1f2   : > { %v2968_v42 = vadd.f32 %v2967_v11, %v2799_v54  ;;  %v1772_v54 = vpack.c.bf16 %v1372_v34, %v1364_v55  ;;  %v868_v55 = vunpack.c.1.s8 %v568_v30 }
 0x1f3   : > { %v3307_v25 = vpop.f32.mrf.mxu1 }
 0x1f4   : > { %v3137_v14 = vadd.f32 %v3136_v40, %v2968_v42  ;;  %v1771_v40 = vpack.c.bf16 %v1371_v29, %v1363_v6  ;;  %v867_v6 = vunpack.c.0.s8 %v568_v30  ;;  %v875_v29 = vunpack.c.0.s8 %v570_v46 }
 0x1f6   : > { %v7037_v37 = vadd.f32 %v3305_v32, %v3137_v14  ;;  %v6393_v14 = vld [vmem:[%s6612_s10 + $0x1d0] sm:$0xff] }
 0x1f7   : > { %v2800_v24 = vpop.f32.mrf.mxu2  ;;  %v873_v20 = vunpack.c.2.s8 %v6393_v14  ;;  %v874_v58 = vunpack.c.3.s8 %v6393_v14 }
 0x1f8   : > { %v2969_v52 = vpop.f32.mrf.mxu3  ;;  %v2801_v11 = vadd.f32 %v2800_v24, %v6790_v61  ;;  %v1377_v24 = vcvt.s32.f32 %v865_v28 }
 0x1f9   : > { %v3141_v41 = vpop.f32.mrf.mxu0 }
 0x1fa   : > { %v2970_v1 = vadd.f32 %v2969_v52, %v2801_v11 }
 0x1fb   : > { %v3310_v5 = vpop.f32.mrf.mxu1 }
 0x1fc   : > { %v3139_v32 = vadd.f32 %v3138_v31, %v2970_v1  ;;  %2842 = vmatmul.bf16.gmra.mxu2 %v1769_v4  ;;  %3180 = vmatmul.bf16.gmra.mxu0 %v1771_v40  ;;  %v1385_v4 = vcvt.s32.f32 %v873_v20  ;;  %v1386_v1 = vcvt.s32.f32 %v874_v58  ;;  %v1379_v40 = vcvt.s32.f32 %v867_v6 }
 0x1fd   : > { %3011 = vmatmul.bf16.gmra.mxu3 %v1770_v33  ;;  %v1378_v33 = vcvt.s32.f32 %v866_v7 }
 0x1fe   : > { %v7040_v15 = vadd.f32 %v3307_v25, %v3139_v32  ;;  %3349 = vmatmul.bf16.gmra.mxu1 %v1772_v54  ;;  %v876_v25 = vunpack.c.1.s8 %v570_v46  ;;  %v1380_v32 = vcvt.s32.f32 %v868_v55  ;;  %v1777_v30 = vpack.c.bf16 %v1385_v4, %v1377_v24  ;;  %v574_v24 = vld [vmem:[%s6612_s10 + $0x1f8] sm:$0xff]  ;;  %v6395_v4 = vld [vmem:[%s6612_s10 + $0x1f0] sm:$0xff] }
 0x1ff   : > { %v2803_v42 = vpop.f32.mrf.mxu2  ;;  %v1778_v46 = vpack.c.bf16 %v1386_v1, %v1378_v33  ;;  %v889_v33 = vunpack.c.2.s8 %v6395_v4 }
 0x200   : > { %v2972_v61 = vpop.f32.mrf.mxu3  ;;  %v2804_v51 = vadd.f32 %v2803_v42, %v6794_v16  ;;  %v1387_v16 = vcvt.s32.f32 %v875_v29  ;;  %v1388_v42 = vcvt.s32.f32 %v876_v25  ;;  %v6394_v25 = vld [vmem:[%s6612_s10 + $0x1e0] sm:$0xff] }
 0x201   : > { %v3143_v34 = vpop.f32.mrf.mxu0  ;;  %v882_v1 = vunpack.c.3.s8 %v6394_v25 }
 0x202   : > { %v2973_v31 = vadd.f32 %v2972_v61, %v2804_v51  ;;  %v1779_v28 = vpack.c.bf16 %v1387_v16, %v1379_v40 }
 0x203   : > { %v3312_v52 = vpop.f32.mrf.mxu1 }
 0x204   : > { %v3142_v11 = vadd.f32 %v3141_v41, %v2973_v31  ;;  %v1780_v41 = vpack.c.bf16 %v1388_v42, %v1380_v32  ;;  %v6075_v31 = vld [vmem:[%s7910_s1 + $0x1d8] sm:$0xff]  ;;  %v891_v32 = vunpack.c.0.s8 %v574_v24 }
 0x205   : > { %3618 = vmatpush.bf16.msra.mxu3 %v6075_v31 }
 0x206   : > { %v7047_v54 = vadd.f32 %v3310_v5, %v3142_v11  ;;  %v6067_v5 = vld [vmem:[%s7910_s1 + $0x198] sm:$0xff] }
 0x207   : > { %v2805_v48 = vpop.f32.mrf.mxu2  ;;  %3449 = vmatpush.bf16.msra.mxu2 %v6067_v5 }
 0x208   : > { %v2974_v14 = vpop.f32.mrf.mxu3  ;;  %v2806_v61 = vadd.f32 %v2805_v48, %v6808_v49  ;;  %v572_v49 = vld [vmem:[%s6612_s10 + $0x1e8] sm:$0xff]  ;;  %v892_v48 = vunpack.c.1.s8 %v574_v24 }
 0x209   : > { %v3146_v20 = vpop.f32.mrf.mxu0  ;;  %v883_v40 = vunpack.c.0.s8 %v572_v49  ;;  %v884_v42 = vunpack.c.1.s8 %v572_v49 }
 0x20a   : > { %v2975_v51 = vadd.f32 %v2974_v14, %v2806_v61 }
 0x20b   : > { %v3315_v7 = vpop.f32.mrf.mxu1 }
 0x20c   : > { %v3144_v58 = vadd.f32 %v3143_v34, %v2975_v51  ;;  %2847 = vmatmul.bf16.gmra.mxu2 %v1777_v30  ;;  %3185 = vmatmul.bf16.gmra.mxu0 %v1779_v28  ;;  %v881_v34 = vunpack.c.2.s8 %v6394_v25  ;;  %v1401_v51 = vcvt.s32.f32 %v889_v33  ;;  %v1394_v28 = vcvt.s32.f32 %v882_v1 }
 0x20d   : > { %3016 = vmatmul.bf16.gmra.mxu3 %v1778_v46  ;;  %v1404_v25 = vcvt.s32.f32 %v892_v48  ;;  %v578_v48 = vld [vmem:[%s6612_s10 + $0x218] sm:$0xff] }
 0x20e   : > { %v7053_v6 = vadd.f32 %v3312_v52, %v3144_v58  ;;  %3354 = vmatmul.bf16.gmra.mxu1 %v1780_v41  ;;  %v890_v52 = vunpack.c.3.s8 %v6395_v4  ;;  %v1393_v61 = vcvt.s32.f32 %v881_v34  ;;  %v1395_v58 = vcvt.s32.f32 %v883_v40  ;;  %v576_v40 = vld [vmem:[%s6612_s10 + $0x208] sm:$0xff] }
 0x20f   : > { %v2808_v29 = vpop.f32.mrf.mxu2 }
 0x210   : > { %v2977_v55 = vpop.f32.mrf.mxu3  ;;  %v2809_v11 = vadd.f32 %v2808_v29, %v6824_v12  ;;  %v1402_v41 = vcvt.s32.f32 %v890_v52  ;;  %v1403_v12 = vcvt.s32.f32 %v891_v32  ;;  %v1396_v29 = vcvt.s32.f32 %v884_v42  ;;  %v6396_v32 = vld [vmem:[%s6612_s10 + $0x200] sm:$0xff] }
 0x211   : > { %v3148_v14 = vpop.f32.mrf.mxu0  ;;  %v1785_v49 = vpack.c.bf16 %v1401_v51, %v1393_v61  ;;  %v897_v42 = vunpack.c.2.s8 %v6396_v32 }
 0x212   : > { %v2978_v16 = vadd.f32 %v2977_v55, %v2809_v11  ;;  %v1786_v24 = vpack.c.bf16 %v1402_v41, %v1394_v28  ;;  %v1788_v11 = vpack.c.bf16 %v1404_v25, %v1396_v29  ;;  %v898_v28 = vunpack.c.3.s8 %v6396_v32  ;;  %v6125_v25 = vld [vmem:[%s7914_s5 + $0x28] sm:$0xff] }
 0x213   : > { %v3317_v30 = vpop.f32.mrf.mxu1  ;;  %v900_v29 = vunpack.c.1.s8 %v576_v40  ;;  %4796 = vmatpush.bf16.msra.mxu0 %v6125_v25 }
 0x214   : > { %v3147_v46 = vadd.f32 %v3146_v20, %v2978_v16  ;;  %v1787_v20 = vpack.c.bf16 %v1403_v12, %v1395_v58  ;;  %v899_v58 = vunpack.c.0.s8 %v576_v40  ;;  %v907_v12 = vunpack.c.0.s8 %v578_v48 }
 0x216   : > { %v7063_v5 = vadd.f32 %v3315_v7, %v3147_v46  ;;  %v6397_v46 = vld [vmem:[%s6612_s10 + $0x210] sm:$0xff]  ;;  %v1419_v40 = vcvt.s32.f32 %v907_v12  ;;  %v580_v12 = vld [vmem:[%s6612_s10 + $0x228] sm:$0xff] }
 0x217   : > { %v2810_v4 = vpop.f32.mrf.mxu2  ;;  %v905_v51 = vunpack.c.2.s8 %v6397_v46  ;;  %v906_v41 = vunpack.c.3.s8 %v6397_v46 }
 0x218   : > { %v2979_v31 = vpop.f32.mrf.mxu3  ;;  %v2811_v55 = vadd.f32 %v2810_v4, %v6850_v57  ;;  %v6085_v4 = vld [vmem:[%s7913_s4 + $0x28] sm:$0xff] }
 0x219   : > { %v3151_v33 = vpop.f32.mrf.mxu0  ;;  %5013 = vmatpush.bf16.msra.mxu1 %v6085_v4  ;;  %v582_v4 = vld [vmem:[%s6612_s10 + $0x238] sm:$0xff] }
 0x21a   : > { %v2980_v34 = vadd.f32 %v2979_v31, %v2811_v55  ;;  %v1409_v55 = vcvt.s32.f32 %v897_v42 }
 0x21b   : > { %v3320_v1 = vpop.f32.mrf.mxu1 }
 0x21c   : > { %v3149_v7 = vadd.f32 %v3148_v14, %v2980_v34  ;;  %2852 = vmatmul.bf16.gmra.mxu2 %v1785_v49  ;;  %3190 = vmatmul.bf16.gmra.mxu0 %v1787_v20  ;;  %v1410_v34 = vcvt.s32.f32 %v898_v28  ;;  %v1418_v20 = vcvt.s32.f32 %v906_v41 }
 0x21d   : > { %3021 = vmatmul.bf16.gmra.mxu3 %v1786_v24  ;;  %v1417_v24 = vcvt.s32.f32 %v905_v51 }
 0x21e   : > { %v7066_v52 = vadd.f32 %v3317_v30, %v3149_v7  ;;  %3359 = vmatmul.bf16.gmra.mxu1 %v1788_v11  ;;  %v908_v30 = vunpack.c.1.s8 %v578_v48  ;;  %v1411_v11 = vcvt.s32.f32 %v899_v58  ;;  %v1794_v42 = vpack.c.bf16 %v1418_v20, %v1410_v34 }
 0x21f   : > { %v2813_v16 = vpop.f32.mrf.mxu2  ;;  %v1793_v46 = vpack.c.bf16 %v1417_v24, %v1409_v55 }
 0x220   : > { %v2982_v57 = vpop.f32.mrf.mxu3  ;;  %v2814_v61 = vadd.f32 %v2813_v16, %v6854_v18  ;;  %v1412_v16 = vcvt.s32.f32 %v900_v29  ;;  %v1795_v51 = vpack.c.bf16 %v1419_v40, %v1411_v11  ;;  %v915_v11 = vunpack.c.0.s8 %v580_v12 }
 0x221   : > { %v3153_v31 = vpop.f32.mrf.mxu0  ;;  %v923_v40 = vunpack.c.0.s8 %v582_v4 }
 0x222   : > { %v2983_v14 = vadd.f32 %v2982_v57, %v2814_v61  ;;  %v1420_v57 = vcvt.s32.f32 %v908_v30  ;;  %v6398_v30 = vld [vmem:[%s6612_s10 + $0x220] sm:$0xff] }
 0x223   : > { %v3322_v18 = vpop.f32.mrf.mxu1  ;;  %v913_v25 = vunpack.c.2.s8 %v6398_v30  ;;  %v914_v34 = vunpack.c.3.s8 %v6398_v30 }
 0x224   : > { %v3152_v49 = vadd.f32 %v3151_v33, %v2983_v14  ;;  %v1796_v28 = vpack.c.bf16 %v1420_v57, %v1412_v16  ;;  %v916_v16 = vunpack.c.1.s8 %v580_v12 }
 0x226   : > { %v7079_v7 = vadd.f32 %v3320_v1, %v3152_v49  ;;  %v6399_v49 = vld [vmem:[%s6612_s10 + $0x230] sm:$0xff] }
 0x227   : > { %v2815_v32 = vpop.f32.mrf.mxu2  ;;  %v921_v24 = vunpack.c.2.s8 %v6399_v49  ;;  %v922_v20 = vunpack.c.3.s8 %v6399_v49 }
 0x228   : > { %v2984_v48 = vpop.f32.mrf.mxu3  ;;  %v2816_v61 = vadd.f32 %v2815_v32, %v6862_v53  ;;  %v1425_v32 = vcvt.s32.f32 %v913_v25 }
 0x229   : > { %v3156_v41 = vpop.f32.mrf.mxu0 }
 0x22a   : > { %v2985_v33 = vadd.f32 %v2984_v48, %v2816_v61 }
 0x22b   : > { %v3325_v58 = vpop.f32.mrf.mxu1 }
 0x22c   : > { %v3154_v1 = vadd.f32 %v3153_v31, %v2985_v33  ;;  %2857 = vmatmul.bf16.gmra.mxu2 %v1793_v46  ;;  %3195 = vmatmul.bf16.gmra.mxu0 %v1795_v51  ;;  %v1433_v46 = vcvt.s32.f32 %v921_v24  ;;  %v1434_v33 = vcvt.s32.f32 %v922_v20  ;;  %v1427_v51 = vcvt.s32.f32 %v915_v11  ;;  %v584_v11 = vld [vmem:[%s6612_s10 + $0x248] sm:$0xff] }
 0x22d   : > { %3026 = vmatmul.bf16.gmra.mxu3 %v1794_v42  ;;  %v1426_v42 = vcvt.s32.f32 %v914_v34 }
 0x22e   : > { %v7082_v14 = vadd.f32 %v3322_v18, %v3154_v1  ;;  %3364 = vmatmul.bf16.gmra.mxu1 %v1796_v28  ;;  %v924_v18 = vunpack.c.1.s8 %v582_v4  ;;  %v1428_v1 = vcvt.s32.f32 %v916_v16  ;;  %v1801_v12 = vpack.c.bf16 %v1433_v46, %v1425_v32 }
 0x22f   : > { %v2818_v29 = vpop.f32.mrf.mxu2  ;;  %v1802_v4 = vpack.c.bf16 %v1434_v33, %v1426_v42 }
 0x230   : > { %v2987_v53 = vpop.f32.mrf.mxu3  ;;  %v2819_v55 = vadd.f32 %v2818_v29, %v6866_v19  ;;  %v1435_v19 = vcvt.s32.f32 %v923_v40  ;;  %v1436_v29 = vcvt.s32.f32 %v924_v18  ;;  %v6400_v40 = vld [vmem:[%s6612_s10 + $0x240] sm:$0xff]  ;;  %v586_v18 = vld [vmem:[%s6612_s10 + $0x258] sm:$0xff] }
 0x231   : > { %v3158_v57 = vpop.f32.mrf.mxu0  ;;  %v929_v16 = vunpack.c.2.s8 %v6400_v40  ;;  %v930_v42 = vunpack.c.3.s8 %v6400_v40 }
 0x232   : > { %v2988_v31 = vadd.f32 %v2987_v53, %v2819_v55  ;;  %v1804_v55 = vpack.c.bf16 %v1436_v29, %v1428_v1  ;;  %v932_v1 = vunpack.c.1.s8 %v584_v11 }
 0x233   : > { %v3327_v48 = vpop.f32.mrf.mxu1 }
 0x234   : > { %v3157_v61 = vadd.f32 %v3156_v41, %v2988_v31  ;;  %v1803_v41 = vpack.c.bf16 %v1435_v19, %v1427_v51  ;;  %v931_v51 = vunpack.c.0.s8 %v584_v11  ;;  %v939_v19 = vunpack.c.0.s8 %v586_v18 }
 0x236   : > { %v7089_v28 = vadd.f32 %v3325_v58, %v3157_v61  ;;  %v6401_v61 = vld [vmem:[%s6612_s10 + $0x250] sm:$0xff] }
 0x237   : > { %v2820_v30 = vpop.f32.mrf.mxu2  ;;  %v937_v46 = vunpack.c.2.s8 %v6401_v61  ;;  %v938_v33 = vunpack.c.3.s8 %v6401_v61 }
 0x238   : > { %v2989_v49 = vpop.f32.mrf.mxu3  ;;  %v2821_v53 = vadd.f32 %v2820_v30, %v6874_v59  ;;  %v1441_v30 = vcvt.s32.f32 %v929_v16 }
 0x239   : > { %v3161_v24 = vpop.f32.mrf.mxu0 }
 0x23a   : > { %v2990_v25 = vadd.f32 %v2989_v49, %v2821_v53 }
 0x23b   : > { %v3330_v34 = vpop.f32.mrf.mxu1 }
 0x23c   : > { %v3159_v58 = vadd.f32 %v3158_v57, %v2990_v25  ;;  %2862 = vmatmul.bf16.gmra.mxu2 %v1801_v12  ;;  %3200 = vmatmul.bf16.gmra.mxu0 %v1803_v41  ;;  %v1449_v12 = vcvt.s32.f32 %v937_v46  ;;  %v1450_v25 = vcvt.s32.f32 %v938_v33  ;;  %v1443_v41 = vcvt.s32.f32 %v931_v51 }
 0x23d   : > { %3031 = vmatmul.bf16.gmra.mxu3 %v1802_v4  ;;  %v1442_v4 = vcvt.s32.f32 %v930_v42 }
 0x23e   : > { %v7092_v20 = vadd.f32 %v3327_v48, %v3159_v58  ;;  %3369 = vmatmul.bf16.gmra.mxu1 %v1804_v55  ;;  %v940_v48 = vunpack.c.1.s8 %v586_v18  ;;  %v1444_v58 = vcvt.s32.f32 %v932_v1  ;;  %v1809_v11 = vpack.c.bf16 %v1449_v12, %v1441_v30  ;;  %v590_v30 = vld [vmem:[%s6612_s10 + $0x278] sm:$0xff]  ;;  %v6403_v12 = vld [vmem:[%s6612_s10 + $0x270] sm:$0xff] }
 0x23f   : > { %v2823_v31 = vpop.f32.mrf.mxu2  ;;  %v1810_v18 = vpack.c.bf16 %v1450_v25, %v1442_v4  ;;  %v953_v4 = vunpack.c.2.s8 %v6403_v12 }
 0x240   : > { %v2992_v59 = vpop.f32.mrf.mxu3  ;;  %v2824_v32 = vadd.f32 %v2823_v31, %v6878_v27  ;;  %v1451_v27 = vcvt.s32.f32 %v939_v19  ;;  %v1452_v31 = vcvt.s32.f32 %v940_v48  ;;  %v6402_v48 = vld [vmem:[%s6612_s10 + $0x260] sm:$0xff] }
 0x241   : > { %v3163_v29 = vpop.f32.mrf.mxu0  ;;  %v946_v25 = vunpack.c.3.s8 %v6402_v48 }
 0x242   : > { %v2993_v57 = vadd.f32 %v2992_v59, %v2824_v32  ;;  %v1811_v16 = vpack.c.bf16 %v1451_v27, %v1443_v41 }
 0x243   : > { %v3332_v49 = vpop.f32.mrf.mxu1 }
 0x244   : > { %v3162_v53 = vadd.f32 %v3161_v24, %v2993_v57  ;;  %v1812_v24 = vpack.c.bf16 %v1452_v31, %v1444_v58  ;;  %v6074_v57 = vld [vmem:[%s7910_s1 + $0x1d0] sm:$0xff]  ;;  %v955_v58 = vunpack.c.0.s8 %v590_v30 }
 0x245   : > { %3619 = vmatpush.bf16.msra.mxu3 %v6074_v57 }
 0x246   : > { %v7099_v55 = vadd.f32 %v3330_v34, %v3162_v53  ;;  %v6066_v34 = vld [vmem:[%s7910_s1 + $0x190] sm:$0xff] }
 0x247   : > { %v2825_v40 = vpop.f32.mrf.mxu2  ;;  %3450 = vmatpush.bf16.msra.mxu2 %v6066_v34 }
 0x248   : > { %v2994_v61 = vpop.f32.mrf.mxu3  ;;  %v2826_v59 = vadd.f32 %v2825_v40, %v6886_v13  ;;  %v588_v13 = vld [vmem:[%s6612_s10 + $0x268] sm:$0xff]  ;;  %v956_v40 = vunpack.c.1.s8 %v590_v30 }
 0x249   : > { %v3166_v46 = vpop.f32.mrf.mxu0  ;;  %v947_v41 = vunpack.c.0.s8 %v588_v13  ;;  %v948_v31 = vunpack.c.1.s8 %v588_v13 }
 0x24a   : > { %v2995_v32 = vadd.f32 %v2994_v61, %v2826_v59 }
 0x24b   : > { %v3335_v42 = vpop.f32.mrf.mxu1 }
 0x24c   : > { %v3164_v33 = vadd.f32 %v3163_v29, %v2995_v32  ;;  %2867 = vmatmul.bf16.gmra.mxu2 %v1809_v11  ;;  %3205 = vmatmul.bf16.gmra.mxu0 %v1811_v16  ;;  %v945_v29 = vunpack.c.2.s8 %v6402_v48  ;;  %v1465_v32 = vcvt.s32.f32 %v953_v4  ;;  %v1458_v16 = vcvt.s32.f32 %v946_v25 }
 0x24d   : > { %3036 = vmatmul.bf16.gmra.mxu3 %v1810_v18  ;;  %v1468_v48 = vcvt.s32.f32 %v956_v40  ;;  %v594_v40 = vld [vmem:[%s6612_s10 + $0x298] sm:$0xff] }
 0x24e   : > { %v7105_v51 = vadd.f32 %v3332_v49, %v3164_v33  ;;  %3374 = vmatmul.bf16.gmra.mxu1 %v1812_v24  ;;  %v954_v49 = vunpack.c.3.s8 %v6403_v12  ;;  %v1457_v59 = vcvt.s32.f32 %v945_v29  ;;  %v1459_v33 = vcvt.s32.f32 %v947_v41  ;;  %v592_v41 = vld [vmem:[%s6612_s10 + $0x288] sm:$0xff] }
 0x24f   : > { %v2828_v19 = vpop.f32.mrf.mxu2 }
 0x250   : > { %v2997_v1 = vpop.f32.mrf.mxu3  ;;  %v2829_v53 = vadd.f32 %v2828_v19, %v6890_v47  ;;  %v1466_v24 = vcvt.s32.f32 %v954_v49  ;;  %v1467_v47 = vcvt.s32.f32 %v955_v58  ;;  %v1460_v19 = vcvt.s32.f32 %v948_v31  ;;  %v6404_v58 = vld [vmem:[%s6612_s10 + $0x280] sm:$0xff] }
 0x251   : > { %v3168_v61 = vpop.f32.mrf.mxu0  ;;  %v1817_v13 = vpack.c.bf16 %v1465_v32, %v1457_v59  ;;  %v961_v31 = vunpack.c.2.s8 %v6404_v58 }
 0x252   : > { %v2998_v27 = vadd.f32 %v2997_v1, %v2829_v53  ;;  %v1818_v30 = vpack.c.bf16 %v1466_v24, %v1458_v16  ;;  %v1820_v53 = vpack.c.bf16 %v1468_v48, %v1460_v19  ;;  %v962_v16 = vunpack.c.3.s8 %v6404_v58  ;;  %v6124_v48 = vld [vmem:[%s7914_s5 + $0x20] sm:$0xff] }
 0x253   : > { %v3337_v11 = vpop.f32.mrf.mxu1  ;;  %v964_v19 = vunpack.c.1.s8 %v592_v41  ;;  %4797 = vmatpush.bf16.msra.mxu0 %v6124_v48 }
 0x254   : > { %v3167_v18 = vadd.f32 %v3166_v46, %v2998_v27  ;;  %v1819_v46 = vpack.c.bf16 %v1467_v47, %v1459_v33  ;;  %v963_v33 = vunpack.c.0.s8 %v592_v41  ;;  %v971_v47 = vunpack.c.0.s8 %v594_v40 }
 0x256   : > { %v7115_v34 = vadd.f32 %v3335_v42, %v3167_v18  ;;  %v6405_v18 = vld [vmem:[%s6612_s10 + $0x290] sm:$0xff]  ;;  %v1483_v41 = vcvt.s32.f32 %v971_v47  ;;  %v596_v47 = vld [vmem:[%s6612_s10 + $0x2a8] sm:$0xff] }
 0x257   : > { %v2830_v12 = vpop.f32.mrf.mxu2  ;;  %v969_v32 = vunpack.c.2.s8 %v6405_v18  ;;  %v970_v24 = vunpack.c.3.s8 %v6405_v18 }
 0x258   : > { %v2999_v57 = vpop.f32.mrf.mxu3  ;;  %v2831_v1 = vadd.f32 %v2830_v12, %v6904_v35  ;;  %v6084_v12 = vld [vmem:[%s7913_s4 + $0x20] sm:$0xff] }
 0x259   : > { %v3171_v4 = vpop.f32.mrf.mxu0  ;;  %5014 = vmatpush.bf16.msra.mxu1 %v6084_v12  ;;  %v598_v12 = vld [vmem:[%s6612_s10 + $0x2b8] sm:$0xff] }
 0x25a   : > { %v3000_v29 = vadd.f32 %v2999_v57, %v2831_v1  ;;  %v1473_v1 = vcvt.s32.f32 %v961_v31 }
 0x25b   : > { %v3340_v25 = vpop.f32.mrf.mxu1 }
 0x25c   : > { %v3169_v42 = vadd.f32 %v3168_v61, %v3000_v29  ;;  %2872 = vmatmul.bf16.gmra.mxu2 %v1817_v13  ;;  %3210 = vmatmul.bf16.gmra.mxu0 %v1819_v46  ;;  %v1474_v29 = vcvt.s32.f32 %v962_v16  ;;  %v1482_v46 = vcvt.s32.f32 %v970_v24 }
 0x25d   : > { %3041 = vmatmul.bf16.gmra.mxu3 %v1818_v30  ;;  %v1481_v30 = vcvt.s32.f32 %v969_v32 }
 0x25e   : > { %v7118_v49 = vadd.f32 %v3337_v11, %v3169_v42  ;;  %3379 = vmatmul.bf16.gmra.mxu1 %v1820_v53  ;;  %v972_v11 = vunpack.c.1.s8 %v594_v40  ;;  %v1475_v53 = vcvt.s32.f32 %v963_v33  ;;  %v1826_v31 = vpack.c.bf16 %v1482_v46, %v1474_v29 }
 0x25f   : > { %v2833_v27 = vpop.f32.mrf.mxu2  ;;  %v1825_v18 = vpack.c.bf16 %v1481_v30, %v1473_v1 }
 0x260   : > { %v3002_v35 = vpop.f32.mrf.mxu3  ;;  %v2834_v59 = vadd.f32 %v2833_v27, %v6908_v23  ;;  %v1476_v27 = vcvt.s32.f32 %v964_v19  ;;  %v1827_v32 = vpack.c.bf16 %v1483_v41, %v1475_v53  ;;  %v987_v41 = vunpack.c.0.s8 %v598_v12 }
 0x261   : > { %v3173_v57 = vpop.f32.mrf.mxu0 }
 0x262   : > { %v3003_v61 = vadd.f32 %v3002_v35, %v2834_v59  ;;  %v1484_v35 = vcvt.s32.f32 %v972_v11  ;;  %v6406_v11 = vld [vmem:[%s6612_s10 + $0x2a0] sm:$0xff] }
 0x263   : > { %v3342_v23 = vpop.f32.mrf.mxu1  ;;  %v977_v48 = vunpack.c.2.s8 %v6406_v11  ;;  %v978_v29 = vunpack.c.3.s8 %v6406_v11 }
 0x264   : > { %v3172_v13 = vadd.f32 %v3171_v4, %v3003_v61  ;;  %v1828_v16 = vpack.c.bf16 %v1484_v35, %v1476_v27  ;;  %v988_v27 = vunpack.c.1.s8 %v598_v12  ;;  %v6517_v12 = vmov 0  }
 0x265   : > { %6360 = vset.pattern.permute.xlu0 %v6517_v12  ;;  %6361 = vset.pattern.permute.xlu1 %v6517_v12 }
 0x266   : > { %v7131_v42 = vadd.f32 %v3340_v25, %v3172_v13  ;;  %v6407_v13 = vld [vmem:[%s6612_s10 + $0x2b0] sm:$0xff]  ;;  %6362 = vset.pattern.permute.xlu2 %v6517_v12 }
 0x267   : > { %v2835_v58 = vpop.f32.mrf.mxu2  ;;  %v985_v30 = vunpack.c.2.s8 %v6407_v13  ;;  %v986_v46 = vunpack.c.3.s8 %v6407_v13 }
 0x268   : > { %v3004_v40 = vpop.f32.mrf.mxu3  ;;  %v2836_v59 = vadd.f32 %v2835_v58, %v6916_v8  ;;  %v1489_v58 = vcvt.s32.f32 %v977_v48 }
 0x269   : > { %v3176_v24 = vpop.f32.mrf.mxu0 }
 0x26a   : > { %v3005_v4 = vadd.f32 %v3004_v40, %v2836_v59 }
 0x26b   : > { %v3345_v33 = vpop.f32.mrf.mxu1 }
 0x26c   : > { %v3174_v25 = vadd.f32 %v3173_v57, %v3005_v4  ;;  %2877 = vmatmul.bf16.gmra.mxu2 %v1825_v18  ;;  %3215 = vmatmul.bf16.gmra.mxu0 %v1827_v32  ;;  %v979_v57 = vunpack.c.0.s8 %v596_v47  ;;  %v1497_v18 = vcvt.s32.f32 %v985_v30  ;;  %v1498_v4 = vcvt.s32.f32 %v986_v46 }
 0x26d   : > { %3046 = vmatmul.bf16.gmra.mxu3 %v1826_v31  ;;  %v1490_v31 = vcvt.s32.f32 %v978_v29 }
 0x26e   : > { %v7134_v61 = vadd.f32 %v3342_v23, %v3174_v25  ;;  %3384 = vmatmul.bf16.gmra.mxu1 %v1828_v16  ;;  %v980_v23 = vunpack.c.1.s8 %v596_v47  ;;  %v1491_v32 = vcvt.s32.f32 %v979_v57  ;;  %v1499_v16 = vcvt.s32.f32 %v987_v41 }
 0x26f   : > { %v2838_v8 = vpop.f32.mrf.mxu2  ;;  %v1500_v47 = vcvt.s32.f32 %v988_v27  ;;  %v1834_v48 = vpack.c.bf16 %v1498_v4, %v1490_v31  ;;  %v6408_v27 = vld [vmem:[%s6612_s10 + $0x2c0] sm:$0xff]  ;;  %v6409_v31 = vld [vmem:[%s6612_s10 + $0x2d0] sm:$0xff] }
 0x270   : > { %v3007_v19 = vpop.f32.mrf.mxu3  ;;  %v2839_v1 = vadd.f32 %v2838_v8, %v6920_v50  ;;  %v1492_v25 = vcvt.s32.f32 %v980_v23  ;;  %v1001_v4 = vunpack.c.2.s8 %v6409_v31 }
 0x271   : > { %v3178_v35 = vpop.f32.mrf.mxu0 }
 0x272   : > { %v3008_v53 = vadd.f32 %v3007_v19, %v2839_v1  ;;  %v3914_v1 = vld [vmem:[%s7145_s22] sm:$0xff]  ;;  %v1836_v30 = vpack.c.bf16 %v1500_v47, %v1492_v25 }
 0x273   : > { %v3347_v40 = vpop.f32.mrf.mxu1  ;;  %4044 = vperm.xlu0 %6360, %v3914_v1   ;;  %v1513_v1 = vcvt.s32.f32 %v1001_v4 }
 0x274   : > { %v3177_v59 = vadd.f32 %v3176_v24, %v3008_v53  ;;  %v1833_v24 = vpack.c.bf16 %v1497_v18, %v1489_v58  ;;  %v600_v53 = vld [vmem:[%s6612_s10 + $0x2c8] sm:$0xff]  ;;  %v993_v58 = vunpack.c.2.s8 %v6408_v27 }
 0x275   : > { %v995_v25 = vunpack.c.0.s8 %v600_v53 }
 0x276   : > { %v7147_v50 = vadd.f32 %v3345_v33, %v3177_v59  ;;  %v1835_v33 = vpack.c.bf16 %v1499_v16, %v1491_v32  ;;  %v602_v59 = vld [vmem:[%s6612_s10 + $0x2d8] sm:$0xff]  ;;  %v994_v32 = vunpack.c.3.s8 %v6408_v27  ;;  %v1002_v16 = vunpack.c.3.s8 %v6409_v31 }
 0x277   : > { %v2840_v8 = vpop.f32.mrf.mxu2 }
 0x278   : > { %v3009_v19 = vpop.f32.mrf.mxu3  ;;  %v2841_v11 = vadd.f32 %v2840_v8, %v6928_v38  ;;  %v996_v8 = vunpack.c.1.s8 %v600_v53 }
 0x279   : > { %v3181_v29 = vpop.f32.mrf.mxu0 }
 0x27a   : > { %v3010_v13 = vadd.f32 %v3009_v19, %v2841_v11  ;;  %v1004_v19 = vunpack.c.1.s8 %v602_v59 }
 0x27b   : > { %v3350_v46 = vpop.f32.mrf.mxu1 }
 0x27c   : > { %v3179_v57 = vadd.f32 %v3178_v35, %v3010_v13  ;;  %2882 = vmatmul.bf16.gmra.mxu2 %v1833_v24  ;;  %3220 = vmatmul.bf16.gmra.mxu0 %v1835_v33  ;;  %v3915_v35 = vld [vmem:[%s7145_s22 + $0x8] sm:$0xff]  ;;  %v1505_v24 = vcvt.s32.f32 %v993_v58  ;;  %v1506_v13 = vcvt.s32.f32 %v994_v32  ;;  %v1514_v33 = vcvt.s32.f32 %v1002_v16  ;;  %v3920_v58 = vld [vmem:[%s7145_s22 + $0x30] sm:$0xff] }
 0x27d   : > { %3051 = vmatmul.bf16.gmra.mxu3 %v1834_v48  ;;  %4049 = vperm.xlu0 %6360, %v3915_v35   ;;  %v1516_v27 = vcvt.s32.f32 %v1004_v19 }
 0x27e   : > { %v7151_v38 = vadd.f32 %v3347_v40, %v3179_v57  ;;  %3389 = vmatmul.bf16.gmra.mxu1 %v1836_v30  ;;  %v1003_v40 = vunpack.c.0.s8 %v602_v59  ;;  %v1841_v53 = vpack.c.bf16 %v1513_v1, %v1505_v24  ;;  %v1842_v59 = vpack.c.bf16 %v1514_v33, %v1506_v13  ;;  %v6411_v13 = vld [vmem:[%s6612_s10 + $0x2f0] sm:$0xff] }
 0x27f   : > { %v2843_v41 = vpop.f32.mrf.mxu2 }
 0x280   : > { %v3012_v23 = vpop.f32.mrf.mxu3  ;;  %v2844_v18 = vadd.f32 %v2843_v41, %v6932_v22  ;;  %v1507_v22 = vcvt.s32.f32 %v995_v25  ;;  %v1515_v57 = vcvt.s32.f32 %v1003_v40  ;;  %v1508_v41 = vcvt.s32.f32 %v996_v8  ;;  %v6073_v40 = vld [vmem:[%s7910_s1 + $0x1c8] sm:$0xff] }
 0x281   : > { %v3183_v11 = vpop.f32.mrf.mxu0  ;;  %3620 = vmatpush.bf16.msra.mxu3 %v6073_v40 }
 0x282   : > { %v3013_v47 = vadd.f32 %v3012_v23, %v2844_v18  ;;  %v1844_v4 = vpack.c.bf16 %v1516_v27, %v1508_v41  ;;  %v3923_v41 = vld [vmem:[%s7145_s22 + $0x48] sm:$0xff] }
 0x283   : > { %v3352_v48 = vpop.f32.mrf.mxu1 }
 0x284   : > { %v3182_v12 = vadd.f32 %v3181_v29, %v3013_v47  ;;  %v1843_v29 = vpack.c.bf16 %v1515_v57, %v1507_v22  ;;  %v604_v47 = vld [vmem:[%s6612_s10 + $0x2e8] sm:$0xff]  ;;  %v1018_v22 = vunpack.c.3.s8 %v6411_v13  ;;  %v3916_v57 = vld [vmem:[%s7145_s22 + $0x10] sm:$0xff] }
 0x285   : > { %4074 = vperm.xlu0 %6360, %v3920_v58   ;;  %v1011_v27 = vunpack.c.0.s8 %v604_v47  ;;  %4054 = vperm.xlu1 %6361, %v3916_v57  }
 0x286   : > { %v7159_v30 = vadd.f32 %v3350_v46, %v3182_v12  ;;  %v606_v12 = vld [vmem:[%s6612_s10 + $0x2f8] sm:$0xff] }
 0x287   : > { %v2845_v31 = vpop.f32.mrf.mxu2 }
 0x288   : > { %v3014_v35 = vpop.f32.mrf.mxu3  ;;  %v2846_v23 = vadd.f32 %v2845_v31, %v6940_v9  ;;  %v6065_v9 = vld [vmem:[%s7910_s1 + $0x188] sm:$0xff] }
 0x289   : > { %v3186_v32 = vpop.f32.mrf.mxu0  ;;  %3451 = vmatpush.bf16.msra.mxu2 %v6065_v9  ;;  %v1523_v9 = vcvt.s32.f32 %v1011_v27 }
 0x28a   : > { %v3015_v18 = vadd.f32 %v3014_v35, %v2846_v23  ;;  %v1019_v35 = vunpack.c.0.s8 %v606_v12  ;;  %v1012_v23 = vunpack.c.1.s8 %v604_v47 }
 0x28b   : > { %v3355_v46 = vpop.f32.mrf.mxu1 }
 0x28c   : > { %v3184_v16 = vadd.f32 %v3183_v11, %v3015_v18  ;;  %2887 = vmatmul.bf16.gmra.mxu2 %v1841_v53  ;;  %3225 = vmatmul.bf16.gmra.mxu0 %v1843_v29  ;;  %v6410_v11 = vld [vmem:[%s6612_s10 + $0x2e0] sm:$0xff]  ;;  %v1020_v53 = vunpack.c.1.s8 %v606_v12 }
 0x28d   : > { %3056 = vmatmul.bf16.gmra.mxu3 %v1842_v59  ;;  %v1009_v24 = vunpack.c.2.s8 %v6410_v11  ;;  %v1010_v33 = vunpack.c.3.s8 %v6410_v11  ;;  %4089 = vperm.xlu0 %6360, %v3923_v41   ;;  %v1524_v11 = vcvt.s32.f32 %v1012_v23  ;;  %v3926_v41 = vld [vmem:[%s7145_s22 + $0x60] sm:$0xff] }
 0x28e   : > { %v7166_v25 = vadd.f32 %v3352_v48, %v3184_v16  ;;  %3394 = vmatmul.bf16.gmra.mxu1 %v1844_v4  ;;  %v1017_v48 = vunpack.c.2.s8 %v6411_v13  ;;  %v1530_v16 = vcvt.s32.f32 %v1018_v22  ;;  %v1532_v13 = vcvt.s32.f32 %v1020_v53  ;;  %v6412_v53 = vld [vmem:[%s6612_s10 + $0x300] sm:$0xff] }
 0x28f   : > { %v2848_v8 = vpop.f32.mrf.mxu2  ;;  %v1521_v58 = vcvt.s32.f32 %v1009_v24  ;;  %v1522_v4 = vcvt.s32.f32 %v1010_v33  ;;  %v3917_v24 = vld [vmem:[%s7145_s22 + $0x18] sm:$0xff] }
 0x290   : > { %v3017_v19 = vpop.f32.mrf.mxu3  ;;  %v2849_v1 = vadd.f32 %v2848_v8, %v6944_v45  ;;  %v1529_v29 = vcvt.s32.f32 %v1017_v48  ;;  %v1531_v8 = vcvt.s32.f32 %v1019_v35  ;;  %4059 = vperm.xlu1 %6361, %v3917_v24  }
 0x291   : > { %v3188_v59 = vpop.f32.mrf.mxu0 }
 0x292   : > { %v3018_v31 = vadd.f32 %v3017_v19, %v2849_v1  ;;  %v1849_v12 = vpack.c.bf16 %v1529_v29, %v1521_v58  ;;  %v1850_v1 = vpack.c.bf16 %v1530_v16, %v1522_v4  ;;  %v1851_v48 = vpack.c.bf16 %v1531_v8, %v1523_v9  ;;  %v6413_v4 = vld [vmem:[%s6612_s10 + $0x310] sm:$0xff]  ;;  %v3921_v8 = vld [vmem:[%s7145_s22 + $0x38] sm:$0xff] }
 0x293   : > { %v3357_v18 = vpop.f32.mrf.mxu1  ;;  %v1025_v58 = vunpack.c.2.s8 %v6412_v53  ;;  %v1033_v16 = vunpack.c.2.s8 %v6413_v4  ;;  %v1026_v9 = vunpack.c.3.s8 %v6412_v53 }
 0x294   : > { %v3187_v45 = vadd.f32 %v3186_v32, %v3018_v31  ;;  %v608_v31 = vld [vmem:[%s6612_s10 + $0x308] sm:$0xff] }
 0x295   : > { %4104 = vperm.xlu0 %6360, %v3926_v41   ;;  %v1537_v24 = vcvt.s32.f32 %v1025_v58 }
 0x296   : > { %v7178_v40 = vadd.f32 %v3355_v46, %v3187_v45  ;;  %v1852_v46 = vpack.c.bf16 %v1532_v13, %v1524_v11  ;;  %v610_v45 = vld [vmem:[%s6612_s10 + $0x318] sm:$0xff]  ;;  %v1027_v13 = vunpack.c.0.s8 %v608_v31 }
 0x297   : > { %v2850_v57 = vpop.f32.mrf.mxu2  ;;  %v3929_v11 = vld [vmem:[%s7145_s22 + $0x78] sm:$0xff] }
 0x298   : > { %v3019_v19 = vpop.f32.mrf.mxu3  ;;  %v2851_v47 = vadd.f32 %v2850_v57, %v6958_v63  ;;  %4079 = vperm.xlu1 %6361, %v3921_v8   ;;  %v1035_v57 = vunpack.c.0.s8 %v610_v45 }
 0x299   : > { %v3191_v33 = vpop.f32.mrf.mxu0 }
 0x29a   : > { %v3020_v32 = vadd.f32 %v3019_v19, %v2851_v47  ;;  %v1028_v19 = vunpack.c.1.s8 %v608_v31  ;;  %v1036_v47 = vunpack.c.1.s8 %v610_v45  ;;  %v1539_v31 = vcvt.s32.f32 %v1027_v13 }
 0x29b   : > { %v3360_v22 = vpop.f32.mrf.mxu1 }
 0x29c   : > { %v3189_v27 = vadd.f32 %v3188_v59, %v3020_v32  ;;  %2892 = vmatmul.bf16.gmra.mxu2 %v1849_v12  ;;  %3230 = vmatmul.bf16.gmra.mxu0 %v1851_v48  ;;  %v1034_v59 = vunpack.c.3.s8 %v6413_v4  ;;  %v6123_v12 = vld [vmem:[%s7914_s5 + $0x18] sm:$0xff]  ;;  %v1545_v48 = vcvt.s32.f32 %v1033_v16  ;;  %v1540_v53 = vcvt.s32.f32 %v1028_v19  ;;  %v3932_v16 = vld [vmem:[%s7145_s22 + $0x90] sm:$0xff]  ;;  %v612_v19 = vld [vmem:[%s6612_s10 + $0x328] sm:$0xff] }
 0x29d   : > { %3061 = vmatmul.bf16.gmra.mxu3 %v1850_v1  ;;  %4119 = vperm.xlu0 %6360, %v3929_v11   ;;  %v1548_v45 = vcvt.s32.f32 %v1036_v47 }
 0x29e   : > { %v7183_v63 = vadd.f32 %v3357_v18, %v3189_v27  ;;  %3399 = vmatmul.bf16.gmra.mxu1 %v1852_v46  ;;  %v1538_v46 = vcvt.s32.f32 %v1026_v9  ;;  %v1546_v27 = vcvt.s32.f32 %v1034_v59  ;;  %4798 = vmatpush.bf16.msra.mxu0 %v6123_v12  ;;  %v1857_v58 = vpack.c.bf16 %v1545_v48, %v1537_v24 }
 0x29f   : > { %v2853_v35 = vpop.f32.mrf.mxu2 }
 0x2a0   : > { %v3022_v23 = vpop.f32.mrf.mxu3  ;;  %v2854_v29 = vadd.f32 %v2853_v35, %v6962_v17  ;;  %v6083_v17 = vld [vmem:[%s7913_s4 + $0x18] sm:$0xff]  ;;  %v1858_v11 = vpack.c.bf16 %v1546_v27, %v1538_v46  ;;  %v6415_v46 = vld [vmem:[%s6612_s10 + $0x330] sm:$0xff] }
 0x2a1   : > { %v3193_v1 = vpop.f32.mrf.mxu0  ;;  %5015 = vmatpush.bf16.msra.mxu1 %v6083_v17  ;;  %v6414_v17 = vld [vmem:[%s6612_s10 + $0x320] sm:$0xff]  ;;  %v1049_v27 = vunpack.c.2.s8 %v6415_v46 }
 0x2a2   : > { %v3023_v18 = vadd.f32 %v3022_v23, %v2854_v29  ;;  %v1547_v23 = vcvt.s32.f32 %v1035_v57  ;;  %v1041_v24 = vunpack.c.2.s8 %v6414_v17 }
 0x2a3   : > { %v3362_v41 = vpop.f32.mrf.mxu1 }
 0x2a4   : > { %v3192_v32 = vadd.f32 %v3191_v33, %v3023_v18  ;;  %v3924_v33 = vld [vmem:[%s7145_s22 + $0x50] sm:$0xff]  ;;  %v1859_v59 = vpack.c.bf16 %v1547_v23, %v1539_v31  ;;  %v1042_v31 = vunpack.c.3.s8 %v6414_v17  ;;  %v3927_v23 = vld [vmem:[%s7145_s22 + $0x68] sm:$0xff] }
 0x2a5   : > { %4094 = vperm.xlu1 %6361, %v3924_v33   ;;  %4134 = vperm.xlu0 %6360, %v3932_v16  }
 0x2a6   : > { %v7198_v35 = vadd.f32 %v3360_v22, %v3192_v32  ;;  %v1860_v22 = vpack.c.bf16 %v1548_v45, %v1540_v53  ;;  %v614_v32 = vld [vmem:[%s6612_s10 + $0x338] sm:$0xff]  ;;  %v3935_v53 = vld [vmem:[%s7145_s22 + $0xa8] sm:$0xff]  ;;  %v1043_v45 = vunpack.c.0.s8 %v612_v19 }
 0x2a7   : > { %v2855_v29 = vpop.f32.mrf.mxu2 }
 0x2a8   : > { %v3024_v4 = vpop.f32.mrf.mxu3  ;;  %v2856_v8 = vadd.f32 %v2855_v29, %v6976_v44  ;;  %v1051_v29 = vunpack.c.0.s8 %v614_v32 }
 0x2a9   : > { %v3196_v13 = vpop.f32.mrf.mxu0 }
 0x2aa   : > { %v3025_v9 = vadd.f32 %v3024_v4, %v2856_v8  ;;  %v1044_v4 = vunpack.c.1.s8 %v612_v19  ;;  %v1052_v8 = vunpack.c.1.s8 %v614_v32 }
 0x2ab   : > { %v3365_v18 = vpop.f32.mrf.mxu1 }
 0x2ac   : > { %v3194_v57 = vadd.f32 %v3193_v1, %v3025_v9  ;;  %2897 = vmatmul.bf16.gmra.mxu2 %v1857_v58  ;;  %3235 = vmatmul.bf16.gmra.mxu0 %v1859_v59  ;;  %v1050_v1 = vunpack.c.3.s8 %v6415_v46  ;;  %v1554_v9 = vcvt.s32.f32 %v1042_v31  ;;  %v1556_v17 = vcvt.s32.f32 %v1044_v4 }
 0x2ad   : > { %3066 = vmatmul.bf16.gmra.mxu3 %v1858_v11  ;;  %4109 = vperm.xlu1 %6361, %v3927_v23   ;;  %v1553_v11 = vcvt.s32.f32 %v1041_v24  ;;  %v1564_v46 = vcvt.s32.f32 %v1052_v8  ;;  %v3918_v23 = vld [vmem:[%s7145_s22 + $0x20] sm:$0xff] }
 0x2ae   : > { %v7203_v44 = vadd.f32 %v3362_v41, %v3194_v57  ;;  %3404 = vmatmul.bf16.gmra.mxu1 %v1860_v22  ;;  %4149 = vperm.xlu0 %6360, %v3935_v53   ;;  %v1562_v59 = vcvt.s32.f32 %v1050_v1  ;;  %v1555_v22 = vcvt.s32.f32 %v1043_v45  ;;  %v3930_v53 = vld [vmem:[%s7145_s22 + $0x80] sm:$0xff] }
 0x2af   : > { %v2858_v47 = vpop.f32.mrf.mxu2  ;;  %4064 = vperm.xlu2 %6362, %v3918_v23  }
 0x2b0   : > { %v3027_v12 = vpop.f32.mrf.mxu3  ;;  %v2859_v48 = vadd.f32 %v2858_v47, %v6716_v0  ;;  %v1561_v0 = vcvt.s32.f32 %v1049_v27  ;;  %v1563_v47 = vcvt.s32.f32 %v1051_v29  ;;  %v1866_v24 = vpack.c.bf16 %v1562_v59, %v1554_v9  ;;  %v616_v29 = vld [vmem:[%s6612_s10 + $0x348] sm:$0xff]  ;;  %v6417_v59 = vld [vmem:[%s6612_s10 + $0x350] sm:$0xff] }
 0x2b1   : > { %v3198_v58 = vpop.f32.mrf.mxu0 }
 0x2b2   : > { %v3028_v41 = vadd.f32 %v3027_v12, %v2859_v48  ;;  %v1865_v32 = vpack.c.bf16 %v1561_v0, %v1553_v11  ;;  %v1867_v31 = vpack.c.bf16 %v1563_v47, %v1555_v22  ;;  %v6416_v11 = vld [vmem:[%s6612_s10 + $0x340] sm:$0xff]  ;;  %v618_v0 = vld [vmem:[%s6612_s10 + $0x358] sm:$0xff]  ;;  %v1065_v22 = vunpack.c.2.s8 %v6417_v59 }
 0x2b3   : > { %v3367_v33 = vpop.f32.mrf.mxu1  ;;  %v1066_v47 = vunpack.c.3.s8 %v6417_v59 }
 0x2b4   : > { %v3197_v16 = vadd.f32 %v3196_v13, %v3028_v41  ;;  %v3938_v13 = vld [vmem:[%s7145_s22 + $0xc0] sm:$0xff] }
 0x2b5   : > { %4124 = vperm.xlu1 %6361, %v3930_v53  }
 0x2b6   : > { %v7212_v57 = vadd.f32 %v3365_v18, %v3197_v16  ;;  %v1868_v18 = vpack.c.bf16 %v1564_v46, %v1556_v17  ;;  %4164 = vperm.xlu0 %6360, %v3938_v13   ;;  %v1057_v16 = vunpack.c.2.s8 %v6416_v11  ;;  %v3919_v17 = vld [vmem:[%s7145_s22 + $0x28] sm:$0xff]  ;;  %v3933_v46 = vld [vmem:[%s7145_s22 + $0x98] sm:$0xff] }
 0x2b7   : > { %v2860_v12 = vpop.f32.mrf.mxu2  ;;  %4069 = vperm.xlu2 %6362, %v3919_v17  }
 0x2b8   : > { %v3029_v48 = vpop.f32.mrf.mxu3  ;;  %v2861_v19 = vadd.f32 %v2860_v12, %v6720_v21  ;;  %v3941_v12 = vld [vmem:[%s7145_s22 + $0xd8] sm:$0xff]  ;;  %v1569_v53 = vcvt.s32.f32 %v1057_v16 }
 0x2b9   : > { %v3201_v1 = vpop.f32.mrf.mxu0 }
 0x2ba   : > { %v3030_v27 = vadd.f32 %v3029_v48, %v2861_v19  ;;  %v1067_v19 = vunpack.c.0.s8 %v618_v0 }
 0x2bb   : > { %v3370_v45 = vpop.f32.mrf.mxu1 }
 0x2bc   : > { %v3199_v41 = vadd.f32 %v3198_v58, %v3030_v27  ;;  %2902 = vmatmul.bf16.gmra.mxu2 %v1865_v32  ;;  %3240 = vmatmul.bf16.gmra.mxu0 %v1867_v31  ;;  %v1058_v58 = vunpack.c.3.s8 %v6416_v11  ;;  %v1060_v32 = vunpack.c.1.s8 %v616_v29  ;;  %v1577_v27 = vcvt.s32.f32 %v1065_v22 }
 0x2bd   : > { %3071 = vmatmul.bf16.gmra.mxu3 %v1866_v24  ;;  %4139 = vperm.xlu1 %6361, %v3933_v46   ;;  %v1068_v24 = vunpack.c.1.s8 %v618_v0  ;;  %v1579_v11 = vcvt.s32.f32 %v1067_v19  ;;  %v3922_v46 = vld [vmem:[%s7145_s22 + $0x40] sm:$0xff]  ;;  %v620_v19 = vld [vmem:[%s6612_s10 + $0x368] sm:$0xff] }
 0x2be   : > { %v7218_v21 = vadd.f32 %v3367_v33, %v3199_v41  ;;  %3409 = vmatmul.bf16.gmra.mxu1 %v1868_v18  ;;  %v1059_v33 = vunpack.c.0.s8 %v616_v29  ;;  %4179 = vperm.xlu0 %6360, %v3941_v12   ;;  %v1570_v31 = vcvt.s32.f32 %v1058_v58  ;;  %v1578_v18 = vcvt.s32.f32 %v1066_v47  ;;  %v3936_v12 = vld [vmem:[%s7145_s22 + $0xb0] sm:$0xff] }
 0x2bf   : > { %v2863_v4 = vpop.f32.mrf.mxu2  ;;  %v1572_v59 = vcvt.s32.f32 %v1060_v32  ;;  %v1873_v17 = vpack.c.bf16 %v1577_v27, %v1569_v53  ;;  %4084 = vperm.xlu2 %6362, %v3922_v46   ;;  %v7947_v27 = vld [vmem:[#allocation3_spill] sm:$0xff] }
 0x2c0   : > { %7945 = vst [vmem:[#allocation31_spill] sm:$0xff] %v7218_v21  ;;  %v3032_v8 = vpop.f32.mrf.mxu3  ;;  %v2864_v9 = vadd.f32 %v2863_v4, %v6728_v36  ;;  %v1571_v41 = vcvt.s32.f32 %v1059_v33  ;;  %v1874_v16 = vpack.c.bf16 %v1578_v18, %v1570_v31  ;;  %v3944_v21 = vld [vmem:[%s7145_s22 + $0xf0] sm:$0xff] }
 0x2c1   : > { %v3203_v23 = vpop.f32.mrf.mxu0 }
 0x2c2   : > { %v3033_v48 = vadd.f32 %v3032_v8, %v2864_v9  ;;  %v1580_v8 = vcvt.s32.f32 %v1068_v24  ;;  %v1875_v22 = vpack.c.bf16 %v1579_v11, %v1571_v41 }
 0x2c3   : > { %v3372_v13 = vpop.f32.mrf.mxu1 }
 0x2c4   : > { %v3202_v36 = vadd.f32 %v3201_v1, %v3033_v48 }
 0x2c5   : > { %4154 = vperm.xlu1 %6361, %v3936_v12  }
 0x2c6   : > { %v7228_v4 = vadd.f32 %v3370_v45, %v3202_v36  ;;  %v1876_v45 = vpack.c.bf16 %v1580_v8, %v1572_v59  ;;  %4194 = vperm.xlu0 %6360, %v3944_v21   ;;  %v6072_v21 = vld [vmem:[%s7910_s1 + $0x1c0] sm:$0xff]  ;;  %v622_v36 = vld [vmem:[%s6612_s10 + $0x378] sm:$0xff]  ;;  %v3939_v8 = vld [vmem:[%s7145_s22 + $0xc8] sm:$0xff] }
 0x2c7   : > { %v2865_v9 = vpop.f32.mrf.mxu2  ;;  %3621 = vmatpush.bf16.msra.mxu3 %v6072_v21  ;;  %v3925_v59 = vld [vmem:[%s7145_s22 + $0x58] sm:$0xff]  ;;  %v1084_v46 = vunpack.c.1.s8 %v622_v36 }
 0x2c8   : > { %v3034_v29 = vpop.f32.mrf.mxu3  ;;  %v2866_v0 = vadd.f32 %v2865_v9, %v6738_v60  ;;  %v6064_v60 = vld [vmem:[%s7910_s1 + $0x180] sm:$0xff]  ;;  %v3947_v9 = vld [vmem:[%s7145_s22 + $0x108] sm:$0xff]  ;;  %4099 = vperm.xlu2 %6362, %v3925_v59  }
 0x2c9   : > { %v3206_v58 = vpop.f32.mrf.mxu0  ;;  %3452 = vmatpush.bf16.msra.mxu2 %v6064_v60 }
 0x2ca   : > { %v3035_v1 = vadd.f32 %v3034_v29, %v2866_v0  ;;  %v1075_v29 = vunpack.c.0.s8 %v620_v19 }
 0x2cb   : > { %v3375_v47 = vpop.f32.mrf.mxu1 }
 0x2cc   : > { %v3204_v33 = vadd.f32 %v3203_v23, %v3035_v1  ;;  %2907 = vmatmul.bf16.gmra.mxu2 %v1873_v17  ;;  %3245 = vmatmul.bf16.gmra.mxu0 %v1875_v22  ;;  %v6418_v23 = vld [vmem:[%s6612_s10 + $0x360] sm:$0xff]  ;;  %v1083_v17 = vunpack.c.0.s8 %v622_v36  ;;  %v7948_v36 = vld [vmem:[#allocation4_spill] sm:$0xff] }
 0x2cd   : > { %3076 = vmatmul.bf16.gmra.mxu3 %v1874_v16  ;;  %v1073_v53 = vunpack.c.2.s8 %v6418_v23  ;;  %v1074_v41 = vunpack.c.3.s8 %v6418_v23  ;;  %4169 = vperm.xlu1 %6361, %v3939_v8   ;;  %v1076_v16 = vunpack.c.1.s8 %v620_v19 }
 0x2ce   : > { %v7237_v48 = vadd.f32 %v3372_v13, %v3204_v33  ;;  %3414 = vmatmul.bf16.gmra.mxu1 %v1876_v45  ;;  %v6419_v13 = vld [vmem:[%s6612_s10 + $0x370] sm:$0xff]  ;;  %4209 = vperm.xlu0 %6360, %v3947_v9  }
 0x2cf   : > { %v2868_v32 = vpop.f32.mrf.mxu2  ;;  %v1081_v18 = vunpack.c.2.s8 %v6419_v13  ;;  %v1082_v11 = vunpack.c.3.s8 %v6419_v13  ;;  %v1585_v1 = vcvt.s32.f32 %v1073_v53  ;;  %v1586_v60 = vcvt.s32.f32 %v1074_v41  ;;  %v3928_v9 = vld [vmem:[%s7145_s22 + $0x70] sm:$0xff] }
 0x2d0   : > { %7946 = vst [vmem:[#allocation32_spill] sm:$0xff] %v7237_v48  ;;  %v3037_v24 = vpop.f32.mrf.mxu3  ;;  %v2869_v31 = vadd.f32 %v2868_v32, %v7947_v27  ;;  %v1587_v32 = vcvt.s32.f32 %v1075_v29  ;;  %v1595_v27 = vcvt.s32.f32 %v1083_v17  ;;  %v1588_v13 = vcvt.s32.f32 %v1076_v16  ;;  %v3942_v48 = vld [vmem:[%s7145_s22 + $0xe0] sm:$0xff]  ;;  %4114 = vperm.xlu2 %6362, %v3928_v9   ;;  %v6122_v9 = vld [vmem:[%s7914_s5 + $0x10] sm:$0xff] }
 0x2d1   : > { %v3208_v12 = vpop.f32.mrf.mxu0  ;;  %v1593_v33 = vcvt.s32.f32 %v1081_v18  ;;  %v1594_v21 = vcvt.s32.f32 %v1082_v11  ;;  %4799 = vmatpush.bf16.msra.mxu0 %v6122_v9 }
 0x2d2   : > { %v3038_v0 = vadd.f32 %v3037_v24, %v2869_v31  ;;  %v1596_v24 = vcvt.s32.f32 %v1084_v46  ;;  %v1883_v41 = vpack.c.bf16 %v1595_v27, %v1587_v32  ;;  %v6421_v32 = vld [vmem:[%s6612_s10 + $0x390] sm:$0xff] }
 0x2d3   : > { %v3377_v22 = vpop.f32.mrf.mxu1  ;;  %v1881_v8 = vpack.c.bf16 %v1593_v33, %v1585_v1  ;;  %v1882_v53 = vpack.c.bf16 %v1594_v21, %v1586_v60  ;;  %v6420_v1 = vld [vmem:[%s6612_s10 + $0x380] sm:$0xff]  ;;  %v626_v33 = vld [vmem:[%s6612_s10 + $0x398] sm:$0xff]  ;;  %v7950_v60 = vld [vmem:[#allocation5_spill] sm:$0xff]  ;;  %v1097_v27 = vunpack.c.2.s8 %v6421_v32 }
 0x2d4   : > { %v3207_v45 = vadd.f32 %v3206_v58, %v3038_v0  ;;  %v3950_v58 = vld [vmem:[%s7145_s22 + $0x120] sm:$0xff] }
 0x2d5   : > { %4184 = vperm.xlu1 %6361, %v3942_v48   ;;  %v624_v48 = vld [vmem:[%s6612_s10 + $0x388] sm:$0xff] }
 0x2d6   : > { %v7250_v23 = vadd.f32 %v3375_v47, %v3207_v45  ;;  %v1884_v47 = vpack.c.bf16 %v1596_v24, %v1588_v13  ;;  %4224 = vperm.xlu0 %6360, %v3950_v58   ;;  %v1089_v45 = vunpack.c.2.s8 %v6420_v1  ;;  %v1098_v13 = vunpack.c.3.s8 %v6421_v32  ;;  %v3931_v24 = vld [vmem:[%s7145_s22 + $0x88] sm:$0xff]  ;;  %v6082_v58 = vld [vmem:[%s7913_s4 + $0x10] sm:$0xff] }
 0x2d7   : > { %v2870_v31 = vpop.f32.mrf.mxu2  ;;  %5016 = vmatpush.bf16.msra.mxu1 %v6082_v58  ;;  %v628_v58 = vld [vmem:[%s6612_s10 + $0x3a8] sm:$0xff] }
 0x2d8   : > { %v3039_v19 = vpop.f32.mrf.mxu3  ;;  %v2871_v59 = vadd.f32 %v2870_v31, %v7948_v36  ;;  %v3945_v31 = vld [vmem:[%s7145_s22 + $0xf8] sm:$0xff]  ;;  %4129 = vperm.xlu2 %6362, %v3931_v24  }
 0x2d9   : > { %v3211_v11 = vpop.f32.mrf.mxu0 }
 0x2da   : > { %v3040_v18 = vadd.f32 %v3039_v19, %v2871_v59  ;;  %v3953_v19 = vld [vmem:[%s7145_s22 + $0x138] sm:$0xff]  ;;  %v1099_v59 = vunpack.c.0.s8 %v626_v33 }
 0x2db   : > { %v3380_v29 = vpop.f32.mrf.mxu1 }
 0x2dc   : > { %v3209_v0 = vadd.f32 %v3208_v12, %v3040_v18  ;;  %2912 = vmatmul.bf16.gmra.mxu2 %v1881_v8  ;;  %3250 = vmatmul.bf16.gmra.mxu0 %v1883_v41  ;;  %v1090_v12 = vunpack.c.3.s8 %v6420_v1  ;;  %v1092_v8 = vunpack.c.1.s8 %v624_v48  ;;  %v1601_v41 = vcvt.s32.f32 %v1089_v45 }
 0x2dd   : > { %3081 = vmatmul.bf16.gmra.mxu3 %v1882_v53  ;;  %4199 = vperm.xlu1 %6361, %v3945_v31   ;;  %v1100_v53 = vunpack.c.1.s8 %v626_v33 }
 0x2de   : > { %v7256_v17 = vadd.f32 %v3377_v22, %v3209_v0  ;;  %3419 = vmatmul.bf16.gmra.mxu1 %v1884_v47  ;;  %v1091_v22 = vunpack.c.0.s8 %v624_v48  ;;  %4239 = vperm.xlu0 %6360, %v3953_v19   ;;  %v1610_v48 = vcvt.s32.f32 %v1098_v13  ;;  %v7951_v19 = vld [vmem:[#allocation6_spill] sm:$0xff] }
 0x2df   : > { %v2873_v16 = vpop.f32.mrf.mxu2  ;;  %v1612_v32 = vcvt.s32.f32 %v1100_v53 }
 0x2e0   : > { %7949 = vst [vmem:[#allocation3_spill] sm:$0xff] %v7256_v17  ;;  %v3042_v46 = vpop.f32.mrf.mxu3  ;;  %v2874_v21 = vadd.f32 %v2873_v16, %v7950_v60  ;;  %v1609_v16 = vcvt.s32.f32 %v1097_v27  ;;  %v1603_v1 = vcvt.s32.f32 %v1091_v22  ;;  %v1611_v60 = vcvt.s32.f32 %v1099_v59  ;;  %v3948_v27 = vld [vmem:[%s7145_s22 + $0x110] sm:$0xff] }
 0x2e1   : > { %v3213_v18 = vpop.f32.mrf.mxu0 }
 0x2e2   : > { %v3043_v36 = vadd.f32 %v3042_v46, %v2874_v21  ;;  %v1602_v46 = vcvt.s32.f32 %v1090_v12  ;;  %v1604_v21 = vcvt.s32.f32 %v1092_v8  ;;  %v1889_v17 = vpack.c.bf16 %v1609_v16, %v1601_v41  ;;  %v3956_v12 = vld [vmem:[%s7145_s22 + $0x150] sm:$0xff]  ;;  %v6422_v16 = vld [vmem:[%s6612_s10 + $0x3a0] sm:$0xff] }
 0x2e3   : > { %v3382_v47 = vpop.f32.mrf.mxu1  ;;  %v1891_v22 = vpack.c.bf16 %v1611_v60, %v1603_v1  ;;  %v7953_v1 = vld [vmem:[#allocation7_spill] sm:$0xff] }
 0x2e4   : > { %v3212_v0 = vadd.f32 %v3211_v11, %v3043_v36  ;;  %v1890_v11 = vpack.c.bf16 %v1610_v48, %v1602_v46  ;;  %v3934_v36 = vld [vmem:[%s7145_s22 + $0xa0] sm:$0xff]  ;;  %v1105_v46 = vunpack.c.2.s8 %v6422_v16  ;;  %v630_v48 = vld [vmem:[%s6612_s10 + $0x3b8] sm:$0xff] }
 0x2e5   : > { %4144 = vperm.xlu2 %6362, %v3934_v36   ;;  %4214 = vperm.xlu1 %6361, %v3948_v27   ;;  %v1108_v36 = vunpack.c.1.s8 %v628_v58  ;;  %v1116_v27 = vunpack.c.1.s8 %v630_v48 }
 0x2e6   : > { %v7272_v33 = vadd.f32 %v3380_v29, %v3212_v0  ;;  %v1892_v29 = vpack.c.bf16 %v1612_v32, %v1604_v21  ;;  %4254 = vperm.xlu0 %6360, %v3956_v12   ;;  %v6423_v21 = vld [vmem:[%s6612_s10 + $0x3b0] sm:$0xff] }
 0x2e7   : > { %v2875_v24 = vpop.f32.mrf.mxu2  ;;  %v1113_v32 = vunpack.c.2.s8 %v6423_v21 }
 0x2e8   : > { %v3044_v31 = vpop.f32.mrf.mxu3  ;;  %v2876_v45 = vadd.f32 %v2875_v24, %v7951_v19  ;;  %v3937_v24 = vld [vmem:[%s7145_s22 + $0xb8] sm:$0xff]  ;;  %v3959_v19 = vld [vmem:[%s7145_s22 + $0x168] sm:$0xff] }
 0x2e9   : > { %v3216_v59 = vpop.f32.mrf.mxu0 }
 0x2ea   : > { %v3045_v13 = vadd.f32 %v3044_v31, %v2876_v45  ;;  %v3951_v31 = vld [vmem:[%s7145_s22 + $0x128] sm:$0xff] }
 0x2eb   : > { %v3385_v8 = vpop.f32.mrf.mxu1 }
 0x2ec   : > { %v3214_v53 = vadd.f32 %v3213_v18, %v3045_v13  ;;  %2917 = vmatmul.bf16.gmra.mxu2 %v1889_v17  ;;  %3255 = vmatmul.bf16.gmra.mxu0 %v1891_v22  ;;  %v1106_v18 = vunpack.c.3.s8 %v6422_v16  ;;  %v1114_v17 = vunpack.c.3.s8 %v6423_v21  ;;  %v1617_v13 = vcvt.s32.f32 %v1105_v46 }
 0x2ed   : > { %3086 = vmatmul.bf16.gmra.mxu3 %v1890_v11  ;;  %4159 = vperm.xlu2 %6362, %v3937_v24   ;;  %v1115_v11 = vunpack.c.0.s8 %v630_v48 }
 0x2ee   : > { %v7278_v9 = vadd.f32 %v3382_v47, %v3214_v53  ;;  %3424 = vmatmul.bf16.gmra.mxu1 %v1892_v29  ;;  %v1107_v47 = vunpack.c.0.s8 %v628_v58  ;;  %4229 = vperm.xlu1 %6361, %v3951_v31   ;;  %v1625_v53 = vcvt.s32.f32 %v1113_v32  ;;  %v1626_v16 = vcvt.s32.f32 %v1114_v17  ;;  %v7957_v31 = vld [vmem:[#allocation8_spill] sm:$0xff] }
 0x2ef   : > { %v2878_v41 = vpop.f32.mrf.mxu2  ;;  %4269 = vperm.xlu0 %6360, %v3959_v19   ;;  %v1628_v58 = vcvt.s32.f32 %v1116_v27 }
 0x2f0   : > { %7952 = vst [vmem:[#allocation4_spill] sm:$0xff] %v7278_v9  ;;  %v3047_v0 = vpop.f32.mrf.mxu3  ;;  %v2879_v60 = vadd.f32 %v2878_v41, %v7953_v1  ;;  %v1618_v41 = vcvt.s32.f32 %v1106_v18  ;;  %v1619_v1 = vcvt.s32.f32 %v1107_v47  ;;  %v1897_v46 = vpack.c.bf16 %v1625_v53, %v1617_v13  ;;  %v3954_v9 = vld [vmem:[%s7145_s22 + $0x140] sm:$0xff]  ;;  %v634_v13 = vld [vmem:[%s6612_s10 + $0x3d8] sm:$0xff]  ;;  %v6425_v53 = vld [vmem:[%s6612_s10 + $0x3d0] sm:$0xff] }
 0x2f1   : > { %v7288_v12 = vpop.f32.mrf.mxu0 }
 0x2f2   : > { %v3048_v45 = vadd.f32 %v3047_v0, %v2879_v60  ;;  %7954 = vst [vmem:[#allocation5_spill] sm:$0xff] %v7288_v12  ;;  %v1627_v0 = vcvt.s32.f32 %v1115_v11  ;;  %v1620_v60 = vcvt.s32.f32 %v1108_v36  ;;  %v1898_v12 = vpack.c.bf16 %v1626_v16, %v1618_v41 }
 0x2f3   : > { %v7290_v22 = vpop.f32.mrf.mxu1  ;;  %v1129_v41 = vunpack.c.2.s8 %v6425_v53 }
 0x2f4   : > { %7955 = vst [vmem:[#allocation6_spill] sm:$0xff] %v7290_v22  ;;  %v3217_v29 = vadd.f32 %v3216_v59, %v3048_v45  ;;  %v3940_v22 = vld [vmem:[%s7145_s22 + $0xd0] sm:$0xff]  ;;  %v3962_v59 = vld [vmem:[%s7145_s22 + $0x180] sm:$0xff]  ;;  %v1900_v18 = vpack.c.bf16 %v1628_v58, %v1620_v60  ;;  %v632_v45 = vld [vmem:[%s6612_s10 + $0x3c8] sm:$0xff] }
 0x2f5   : > { %4174 = vperm.xlu2 %6362, %v3940_v22   ;;  %v7959_v22 = vld [vmem:[#allocation9_spill] sm:$0xff]  ;;  %v3957_v60 = vld [vmem:[%s7145_s22 + $0x158] sm:$0xff] }
 0x2f6   : > { %v7292_v21 = vadd.f32 %v3385_v8, %v3217_v29  ;;  %4244 = vperm.xlu1 %6361, %v3954_v9   ;;  %v1899_v8 = vpack.c.bf16 %v1627_v0, %v1619_v1  ;;  %v6424_v9 = vld [vmem:[%s6612_s10 + $0x3c0] sm:$0xff]  ;;  %v1130_v1 = vunpack.c.3.s8 %v6425_v53  ;;  %v3943_v0 = vld [vmem:[%s7145_s22 + $0xe8] sm:$0xff]  ;;  %v3965_v58 = vld [vmem:[%s7145_s22 + $0x198] sm:$0xff] }
 0x2f7   : > { %v2880_v48 = vpop.f32.mrf.mxu2  ;;  %4284 = vperm.xlu0 %6360, %v3962_v59   ;;  %v1121_v27 = vunpack.c.2.s8 %v6424_v9  ;;  %v1122_v16 = vunpack.c.3.s8 %v6424_v9 }
 0x2f8   : > { %7956 = vst [vmem:[#allocation7_spill] sm:$0xff] %v7292_v21  ;;  %v3049_v24 = vpop.f32.mrf.mxu3  ;;  %v2881_v19 = vadd.f32 %v2880_v48, %v7957_v31  ;;  %v1123_v48 = vunpack.c.0.s8 %v632_v45  ;;  %v1124_v31 = vunpack.c.1.s8 %v632_v45 }
 0x2f9   : > { %v3221_v17 = vpop.f32.mrf.mxu0  ;;  %v1633_v59 = vcvt.s32.f32 %v1121_v27  ;;  %v1634_v9 = vcvt.s32.f32 %v1122_v16 }
 0x2fa   : > { %v7298_v32 = vadd.f32 %v3049_v24, %v2881_v19  ;;  %v1131_v24 = vunpack.c.0.s8 %v634_v13  ;;  %v1132_v19 = vunpack.c.1.s8 %v634_v13  ;;  %v1635_v53 = vcvt.s32.f32 %v1123_v48 }
 0x2fb   : > { %v3390_v47 = vpop.f32.mrf.mxu1 }
 0x2fc   : > { %7958 = vst [vmem:[#allocation8_spill] sm:$0xff] %v7298_v32  ;;  %2922 = vmatmul.bf16.gmra.mxu2 %v1897_v46  ;;  %3260 = vmatmul.bf16.gmra.mxu0 %v1899_v8  ;;  %v1644_v45 = vcvt.s32.f32 %v1132_v19  ;;  %v3960_v32 = vld [vmem:[%s7145_s22 + $0x170] sm:$0xff] }
 0x2fd   : > { %3091 = vmatmul.bf16.gmra.mxu3 %v1898_v12  ;;  %4189 = vperm.xlu2 %6362, %v3943_v0  }
 0x2fe   : > { %3429 = vmatmul.bf16.gmra.mxu1 %v1900_v18  ;;  %4259 = vperm.xlu1 %6361, %v3957_v60  }
 0x2ff   : > { %v2883_v11 = vpop.f32.mrf.mxu2  ;;  %4299 = vperm.xlu0 %6360, %v3965_v58   ;;  %v7963_v58 = vld [vmem:[#allocation10_spill] sm:$0xff] }
 0x300   : > { %v3052_v36 = vpop.f32.mrf.mxu3  ;;  %v2884_v29 = vadd.f32 %v2883_v11, %v7959_v22  ;;  %v1641_v11 = vcvt.s32.f32 %v1129_v41  ;;  %v1642_v22 = vcvt.s32.f32 %v1130_v1 }
 0x301   : > { %v7308_v46 = vpop.f32.mrf.mxu0 }
 0x302   : > { %v3053_v12 = vadd.f32 %v3052_v36, %v2884_v29  ;;  %7960 = vst [vmem:[#allocation9_spill] sm:$0xff] %v7308_v46  ;;  %v1643_v36 = vcvt.s32.f32 %v1131_v24  ;;  %v1636_v29 = vcvt.s32.f32 %v1124_v31  ;;  %v1905_v27 = vpack.c.bf16 %v1641_v11, %v1633_v59  ;;  %v7965_v59 = vld [vmem:[#allocation11_spill] sm:$0xff] }
 0x303   : > { %v7310_v8 = vpop.f32.mrf.mxu1  ;;  %v1906_v21 = vpack.c.bf16 %v1642_v22, %v1634_v9 }
 0x304   : > { %7961 = vst [vmem:[#allocation33_spill] sm:$0xff] %v7310_v8  ;;  %v3222_v18 = vadd.f32 %v3221_v17, %v3053_v12  ;;  %v3946_v8 = vld [vmem:[%s7145_s22 + $0x100] sm:$0xff]  ;;  %v3968_v17 = vld [vmem:[%s7145_s22 + $0x1b0] sm:$0xff]  ;;  %v1908_v16 = vpack.c.bf16 %v1644_v45, %v1636_v29  ;;  %v636_v12 = vld [vmem:[%s6612_s10 + $0x3e8] sm:$0xff] }
 0x305   : > { %4204 = vperm.xlu2 %6362, %v3946_v8   ;;  %v3971_v29 = vld [vmem:[%s7145_s22 + $0x1c8] sm:$0xff]  ;;  %v1139_v45 = vunpack.c.0.s8 %v636_v12 }
 0x306   : > { %v7312_v0 = vadd.f32 %v3390_v47, %v3222_v18  ;;  %4274 = vperm.xlu1 %6361, %v3960_v32   ;;  %v1907_v47 = vpack.c.bf16 %v1643_v36, %v1635_v53  ;;  %v6426_v32 = vld [vmem:[%s6612_s10 + $0x3e0] sm:$0xff]  ;;  %v6427_v18 = vld [vmem:[%s6612_s10 + $0x3f0] sm:$0xff]  ;;  %v3949_v53 = vld [vmem:[%s7145_s22 + $0x118] sm:$0xff] }
 0x307   : > { %v2885_v13 = vpop.f32.mrf.mxu2  ;;  %4314 = vperm.xlu0 %6360, %v3968_v17   ;;  %v1137_v19 = vunpack.c.2.s8 %v6426_v32  ;;  %v1145_v11 = vunpack.c.2.s8 %v6427_v18  ;;  %v1138_v9 = vunpack.c.3.s8 %v6426_v32  ;;  %v1146_v22 = vunpack.c.3.s8 %v6427_v18  ;;  %v3963_v36 = vld [vmem:[%s7145_s22 + $0x188] sm:$0xff] }
 0x308   : > { %7962 = vst [vmem:[#allocation34_spill] sm:$0xff] %v7312_v0  ;;  %v3054_v60 = vpop.f32.mrf.mxu3  ;;  %v2886_v46 = vadd.f32 %v2885_v13, %v7963_v58  ;;  %v1651_v18 = vcvt.s32.f32 %v1139_v45 }
 0x309   : > { %v3226_v1 = vpop.f32.mrf.mxu0  ;;  %v1649_v17 = vcvt.s32.f32 %v1137_v19  ;;  %v1650_v32 = vcvt.s32.f32 %v1138_v9 }
 0x30a   : > { %v7318_v41 = vadd.f32 %v3054_v60, %v2886_v46  ;;  %v638_v46 = vld [vmem:[%s6612_s10 + $0x3f8] sm:$0xff]  ;;  %v1140_v60 = vunpack.c.1.s8 %v636_v12 }
 0x30b   : > { %v3395_v48 = vpop.f32.mrf.mxu1  ;;  %v1147_v13 = vunpack.c.0.s8 %v638_v46  ;;  %v1148_v58 = vunpack.c.1.s8 %v638_v46 }
 0x30c   : > { %7964 = vst [vmem:[#allocation10_spill] sm:$0xff] %v7318_v41  ;;  %2927 = vmatmul.bf16.gmra.mxu2 %v1905_v27  ;;  %3265 = vmatmul.bf16.gmra.mxu0 %v1907_v47  ;;  %v3952_v41 = vld [vmem:[%s7145_s22 + $0x130] sm:$0xff] }
 0x30d   : > { %3096 = vmatmul.bf16.gmra.mxu3 %v1906_v21  ;;  %4219 = vperm.xlu2 %6362, %v3949_v53   ;;  %v1660_v12 = vcvt.s32.f32 %v1148_v58  ;;  %v7969_v58 = vld [vmem:[#allocation13_spill] sm:$0xff] }
 0x30e   : > { %3434 = vmatmul.bf16.gmra.mxu1 %v1908_v16  ;;  %4289 = vperm.xlu1 %6361, %v3963_v36  }
 0x30f   : > { %v2888_v24 = vpop.f32.mrf.mxu2  ;;  %4329 = vperm.xlu0 %6360, %v3971_v29   ;;  %v7968_v29 = vld [vmem:[#allocation12_spill] sm:$0xff] }
 0x310   : > { %v3057_v31 = vpop.f32.mrf.mxu3  ;;  %v2889_v8 = vadd.f32 %v2888_v24, %v7965_v59  ;;  %v1657_v24 = vcvt.s32.f32 %v1145_v11  ;;  %v1658_v59 = vcvt.s32.f32 %v1146_v22 }
 0x311   : > { %v7328_v27 = vpop.f32.mrf.mxu0 }
 0x312   : > { %v3058_v21 = vadd.f32 %v3057_v31, %v2889_v8  ;;  %7966 = vst [vmem:[#allocation11_spill] sm:$0xff] %v7328_v27  ;;  %v1659_v31 = vcvt.s32.f32 %v1147_v13  ;;  %v1652_v8 = vcvt.s32.f32 %v1140_v60  ;;  %v1913_v19 = vpack.c.bf16 %v1657_v24, %v1649_v17  ;;  %v6428_v60 = vld [vmem:[%s6612_s10 + $0x8] sm:$0xff] }
 0x313   : > { %v7330_v47 = vpop.f32.mrf.mxu1  ;;  %v1914_v0 = vpack.c.bf16 %v1658_v59, %v1650_v32  ;;  %v3955_v32 = vld [vmem:[%s7145_s22 + $0x148] sm:$0xff]  ;;  %v3969_v59 = vld [vmem:[%s7145_s22 + $0x1b8] sm:$0xff] }
 0x314   : > { %7967 = vst [vmem:[#allocation35_spill] sm:$0xff] %v7330_v47  ;;  %v3227_v16 = vadd.f32 %v3226_v1, %v3058_v21  ;;  %v3966_v47 = vld [vmem:[%s7145_s22 + $0x1a0] sm:$0xff]  ;;  %v1916_v9 = vpack.c.bf16 %v1660_v12, %v1652_v8  ;;  %v6081_v8 = vld [vmem:[%s7913_s4 + $0x8] sm:$0xff] }
 0x315   : > { %v3974_v1 = vld [vmem:[%s7145_s22 + $0x1e0] sm:$0xff]  ;;  %4234 = vperm.xlu2 %6362, %v3952_v41   ;;  %v645_v41 = vunpack.c.2.s8 %v6428_v60  ;;  %5017 = vmatpush.bf16.msra.mxu1 %v6081_v8  ;;  %v6431_v8 = vld [vmem:[%s6612_s10 + $0x38] sm:$0xff] }
 0x316   : > { %v7332_v53 = vadd.f32 %v3395_v48, %v3227_v16  ;;  %4304 = vperm.xlu1 %6361, %v3966_v47   ;;  %v1915_v48 = vpack.c.bf16 %v1659_v31, %v1651_v18  ;;  %v646_v16 = vunpack.c.3.s8 %v6428_v60  ;;  %v3977_v18 = vld [vmem:[%s7145_s22 + $0x1f8] sm:$0xff] }
 0x317   : > { %v2890_v46 = vpop.f32.mrf.mxu2  ;;  %4344 = vperm.xlu0 %6360, %v3974_v1   ;;  %v7972_v60 = vld [vmem:[#allocation14_spill] sm:$0xff] }
 0x318   : > { %v3059_v36 = vpop.f32.mrf.mxu3  ;;  %v2891_v27 = vadd.f32 %v2890_v46, %v7968_v29  ;;  %v1157_v46 = vcvt.s32.f32 %v645_v41  ;;  %v1158_v1 = vcvt.s32.f32 %v646_v16  ;;  %v3972_v41 = vld [vmem:[%s7145_s22 + $0x1d0] sm:$0xff] }
 0x319   : > { %v3231_v22 = vpop.f32.mrf.mxu0 }
 0x31a   : > { %v7338_v11 = vadd.f32 %v3059_v36, %v2891_v27  ;;  %v6429_v27 = vld [vmem:[%s6612_s10 + $0x18] sm:$0xff] }
 0x31b   : > { %v3400_v45 = vpop.f32.mrf.mxu1  ;;  %v653_v47 = vunpack.c.2.s8 %v6429_v27  ;;  %v654_v24 = vunpack.c.3.s8 %v6429_v27 }
 0x31c   : > { %2932 = vmatmul.bf16.gmra.mxu2 %v1913_v19  ;;  %3270 = vmatmul.bf16.gmra.mxu0 %v1915_v48 }
 0x31d   : > { %3101 = vmatmul.bf16.gmra.mxu3 %v1914_v0  ;;  %4249 = vperm.xlu2 %6362, %v3955_v32   ;;  %v6121_v0 = vld [vmem:[%s7914_s5 + $0x8] sm:$0xff]  ;;  %v1165_v19 = vcvt.s32.f32 %v653_v47  ;;  %v1166_v48 = vcvt.s32.f32 %v654_v24  ;;  %v3958_v32 = vld [vmem:[%s7145_s22 + $0x160] sm:$0xff] }
 0x31e   : > { %3439 = vmatmul.bf16.gmra.mxu1 %v1916_v9  ;;  %4319 = vperm.xlu1 %6361, %v3969_v59   ;;  %v6430_v59 = vld [vmem:[%s6612_s10 + $0x28] sm:$0xff] }
 0x31f   : > { %v2893_v21 = vpop.f32.mrf.mxu2  ;;  %4359 = vperm.xlu0 %6360, %v3977_v18   ;;  %4800 = vmatpush.bf16.msra.mxu0 %v6121_v0  ;;  %v1670_v27 = vpack.c.bf16 %v1166_v48, %v1158_v1  ;;  %v661_v18 = vunpack.c.2.s8 %v6430_v59  ;;  %v3961_v1 = vld [vmem:[%s7145_s22 + $0x178] sm:$0xff]  ;;  %v3975_v48 = vld [vmem:[%s7145_s22 + $0x1e8] sm:$0xff] }
 0x320   : > { %v3062_v13 = vpop.f32.mrf.mxu3  ;;  %v2894_v17 = vadd.f32 %v2893_v21, %v7969_v58 }
 0x321   : > { %v7352_v12 = vpop.f32.mrf.mxu0 }
 0x322   : > { %v3063_v31 = vadd.f32 %v3062_v13, %v2894_v17  ;;  %v1669_v17 = vpack.c.bf16 %v1165_v19, %v1157_v46  ;;  %v669_v46 = vunpack.c.2.s8 %v6431_v8  ;;  %v670_v19 = vunpack.c.3.s8 %v6431_v8  ;;  %v7977_v8 = vld [vmem:[#allocation16_spill] sm:$0xff] }
 0x323   : > { %v7354_v36 = vpop.f32.mrf.mxu1 }
 0x324   : > { %7970 = vst [vmem:[#allocation12_spill] sm:$0xff] %v7354_v36  ;;  %v3232_v29 = vadd.f32 %v3231_v22, %v3063_v31  ;;  %v7973_v31 = vld [vmem:[#allocation15_spill] sm:$0xff] }
 0x325   : > { %4264 = vperm.xlu2 %6362, %v3958_v32  }
 0x326   : > { %v7356_v9 = vadd.f32 %v3400_v45, %v3232_v29  ;;  %4334 = vperm.xlu1 %6361, %v3972_v41   ;;  %v662_v29 = vunpack.c.3.s8 %v6430_v59  ;;  %v1182_v41 = vcvt.s32.f32 %v670_v19 }
 0x327   : > { %v2895_v21 = vpop.f32.mrf.mxu2 }
 0x328   : > { %7971 = vst [vmem:[#allocation13_spill] sm:$0xff] %v7356_v9  ;;  %v3064_v13 = vpop.f32.mrf.mxu3  ;;  %v2896_v58 = vadd.f32 %v2895_v21, %v7972_v60  ;;  %v1173_v60 = vcvt.s32.f32 %v661_v18  ;;  %v1174_v32 = vcvt.s32.f32 %v662_v29 }
 0x329   : > { %v3236_v47 = vpop.f32.mrf.mxu0 }
 0x32a   : > { %v7361_v22 = vadd.f32 %v3064_v13, %v2896_v58 }
 0x32b   : > { %v3405_v16 = vpop.f32.mrf.mxu1 }
 0x32c   : > { %3453 = vmatmul.bf16.vlgmr.msra.gmra.mxu2 %v1669_v17 }
 0x32d   : > { %3622 = vmatmul.bf16.vlgmr.msra.gmra.mxu3 %v1670_v27  ;;  %4279 = vperm.xlu2 %6362, %v3961_v1   ;;  %v1181_v27 = vcvt.s32.f32 %v669_v46 }
 0x32e   : > { %4349 = vperm.xlu1 %6361, %v3975_v48   ;;  %v1678_v48 = vpack.c.bf16 %v1182_v41, %v1174_v32 }
 0x32f   : > { %v2898_v45 = vpop.f32.mrf.mxu2  ;;  %v1677_v36 = vpack.c.bf16 %v1181_v27, %v1173_v60  ;;  %v3967_v27 = vld [vmem:[%s7145_s22 + $0x1a8] sm:$0xff] }
 0x330   : > { %v3067_v24 = vpop.f32.mrf.mxu3  ;;  %v2899_v0 = vadd.f32 %v2898_v45, %v7973_v31 }
 0x331   : > { %v7368_v13 = vpop.f32.mrf.mxu0 }
 0x332   : > { %v3068_v21 = vadd.f32 %v3067_v24, %v2899_v0  ;;  %7974 = vst [vmem:[#allocation14_spill] sm:$0xff] %v7368_v13  ;;  %v3964_v24 = vld [vmem:[%s7145_s22 + $0x190] sm:$0xff] }
 0x333   : > { %v7370_v58 = vpop.f32.mrf.mxu1 }
 0x334   : > { %7975 = vst [vmem:[#allocation15_spill] sm:$0xff] %v7370_v58  ;;  %v3237_v17 = vadd.f32 %v3236_v47, %v3068_v21  ;;  %v7979_v21 = vld [vmem:[#allocation17_spill] sm:$0xff]  ;;  %v6433_v58 = vld [vmem:[%s6612_s10 + $0x58] sm:$0xff] }
 0x335   : > { %4294 = vperm.xlu2 %6362, %v3964_v24   ;;  %v686_v60 = vunpack.c.3.s8 %v6433_v58 }
 0x336   : > { %v7372_v45 = vadd.f32 %v3405_v16, %v3237_v17  ;;  %v6432_v16 = vld [vmem:[%s6612_s10 + $0x48] sm:$0xff] }
 0x337   : > { %v2900_v59 = vpop.f32.mrf.mxu2  ;;  %v677_v19 = vunpack.c.2.s8 %v6432_v16  ;;  %v1198_v24 = vcvt.s32.f32 %v686_v60 }
 0x338   : > { %7976 = vst [vmem:[#allocation36_spill] sm:$0xff] %v7372_v45  ;;  %v3069_v31 = vpop.f32.mrf.mxu3  ;;  %v2901_v1 = vadd.f32 %v2900_v59, %v7977_v8  ;;  %v685_v45 = vunpack.c.2.s8 %v6433_v58  ;;  %v678_v59 = vunpack.c.3.s8 %v6432_v16  ;;  %v7983_v16 = vld [vmem:[#allocation18_spill] sm:$0xff] }
 0x339   : > { %v3241_v0 = vpop.f32.mrf.mxu0 }
 0x33a   : > { %v7376_v18 = vadd.f32 %v3069_v31, %v2901_v1  ;;  %v1189_v31 = vcvt.s32.f32 %v677_v19  ;;  %v1197_v1 = vcvt.s32.f32 %v685_v45 }
 0x33b   : > { %v3410_v47 = vpop.f32.mrf.mxu1 }
 0x33c   : > { %7978 = vst [vmem:[#allocation16_spill] sm:$0xff] %v7376_v18  ;;  %3458 = vmatmul.bf16.gmra.mxu2 %v1677_v36  ;;  %v1685_v18 = vpack.c.bf16 %v1197_v1, %v1189_v31  ;;  %v3973_v1 = vld [vmem:[%s7145_s22 + $0x1d8] sm:$0xff] }
 0x33d   : > { %3627 = vmatmul.bf16.gmra.mxu3 %v1678_v48  ;;  %4309 = vperm.xlu2 %6362, %v3967_v27   ;;  %v1190_v48 = vcvt.s32.f32 %v678_v59 }
 0x33f   : > { %v2903_v46 = vpop.f32.mrf.mxu2  ;;  %v1686_v27 = vpack.c.bf16 %v1198_v24, %v1190_v48 }
 0x340   : > { %v3072_v29 = vpop.f32.mrf.mxu3  ;;  %v2904_v17 = vadd.f32 %v2903_v46, %v7979_v21 }
 0x341   : > { %v7382_v41 = vpop.f32.mrf.mxu0 }
 0x342   : > { %v3073_v32 = vadd.f32 %v3072_v29, %v2904_v17  ;;  %7980 = vst [vmem:[#allocation17_spill] sm:$0xff] %v7382_v41  ;;  %v3970_v29 = vld [vmem:[%s7145_s22 + $0x1c0] sm:$0xff] }
 0x343   : > { %v7384_v8 = vpop.f32.mrf.mxu1 }
 0x344   : > { %7981 = vst [vmem:[#allocation37_spill] sm:$0xff] %v7384_v8  ;;  %v3242_v36 = vadd.f32 %v3241_v0, %v3073_v32  ;;  %v7985_v32 = vld [vmem:[#allocation19_spill] sm:$0xff]  ;;  %v6435_v8 = vld [vmem:[%s6612_s10 + $0x78] sm:$0xff] }
 0x345   : > { %4324 = vperm.xlu2 %6362, %v3970_v29   ;;  %v702_v31 = vunpack.c.3.s8 %v6435_v8 }
 0x346   : > { %v7386_v13 = vadd.f32 %v3410_v47, %v3242_v36  ;;  %v6434_v47 = vld [vmem:[%s6612_s10 + $0x68] sm:$0xff] }
 0x347   : > { %v2905_v46 = vpop.f32.mrf.mxu2  ;;  %v693_v60 = vunpack.c.2.s8 %v6434_v47  ;;  %v1214_v29 = vcvt.s32.f32 %v702_v31  ;;  %v7991_v31 = vld [vmem:[#allocation21_spill] sm:$0xff] }
 0x348   : > { %7982 = vst [vmem:[#allocation38_spill] sm:$0xff] %v7386_v13  ;;  %v3074_v21 = vpop.f32.mrf.mxu3  ;;  %v2906_v58 = vadd.f32 %v2905_v46, %v7983_v16  ;;  %v701_v13 = vunpack.c.2.s8 %v6435_v8  ;;  %v694_v46 = vunpack.c.3.s8 %v6434_v47  ;;  %v7989_v47 = vld [vmem:[#allocation20_spill] sm:$0xff] }
 0x349   : > { %v3246_v17 = vpop.f32.mrf.mxu0 }
 0x34a   : > { %v7390_v19 = vadd.f32 %v3074_v21, %v2906_v58  ;;  %v1205_v21 = vcvt.s32.f32 %v693_v60  ;;  %v1213_v58 = vcvt.s32.f32 %v701_v13 }
 0x34b   : > { %v3415_v0 = vpop.f32.mrf.mxu1 }
 0x34c   : > { %7984 = vst [vmem:[#allocation18_spill] sm:$0xff] %v7390_v19  ;;  %3463 = vmatmul.bf16.gmra.mxu2 %v1685_v18  ;;  %v1693_v19 = vpack.c.bf16 %v1213_v58, %v1205_v21  ;;  %v6120_v58 = vld [vmem:[%s7914_s5] sm:$0xff] }
 0x34d   : > { %3632 = vmatmul.bf16.gmra.mxu3 %v1686_v27  ;;  %4339 = vperm.xlu2 %6362, %v3973_v1   ;;  %v1206_v27 = vcvt.s32.f32 %v694_v46  ;;  %v6436_v46 = vld [vmem:[%s6612_s10 + $0x88] sm:$0xff] }
 0x34e   : > { %4801 = vmatpush.bf16.msra.mxu0 %v6120_v58  ;;  %v6439_v58 = vld [vmem:[%s6612_s10 + $0xb8] sm:$0xff] }
 0x34f   : > { %v2908_v45 = vpop.f32.mrf.mxu2  ;;  %v1694_v1 = vpack.c.bf16 %v1214_v29, %v1206_v27 }
 0x350   : > { %v3077_v59 = vpop.f32.mrf.mxu3  ;;  %v2909_v36 = vadd.f32 %v2908_v45, %v7985_v32 }
 0x351   : > { %v7396_v24 = vpop.f32.mrf.mxu0 }
 0x352   : > { %v3078_v48 = vadd.f32 %v3077_v59, %v2909_v36  ;;  %7986 = vst [vmem:[#allocation19_spill] sm:$0xff] %v7396_v24  ;;  %v3976_v59 = vld [vmem:[%s7145_s22 + $0x1f0] sm:$0xff]  ;;  %v710_v24 = vunpack.c.3.s8 %v6436_v46 }
 0x353   : > { %v7398_v16 = vpop.f32.mrf.mxu1 }
 0x354   : > { %7987 = vst [vmem:[#allocation39_spill] sm:$0xff] %v7398_v16  ;;  %v3247_v18 = vadd.f32 %v3246_v17, %v3078_v48 }
 0x355   : > { %4354 = vperm.xlu2 %6362, %v3976_v59  }
 0x356   : > { %v7400_v41 = vadd.f32 %v3415_v0, %v3247_v18  ;;  %v709_v0 = vunpack.c.2.s8 %v6436_v46  ;;  %v6437_v18 = vld [vmem:[%s6612_s10 + $0x98] sm:$0xff] }
 0x357   : > { %v2910_v45 = vpop.f32.mrf.mxu2 }
 0x358   : > { %7988 = vst [vmem:[#allocation40_spill] sm:$0xff] %v7400_v41  ;;  %v3079_v32 = vpop.f32.mrf.mxu3  ;;  %v2911_v8 = vadd.f32 %v2910_v45, %v7989_v47  ;;  %v717_v41 = vunpack.c.2.s8 %v6437_v18  ;;  %v718_v45 = vunpack.c.3.s8 %v6437_v18  ;;  %v1221_v29 = vcvt.s32.f32 %v709_v0 }
 0x359   : > { %v3251_v60 = vpop.f32.mrf.mxu0 }
 0x35a   : > { %v7404_v36 = vadd.f32 %v3079_v32, %v2911_v8  ;;  %v1229_v8 = vcvt.s32.f32 %v717_v41  ;;  %v1230_v59 = vcvt.s32.f32 %v718_v45 }
 0x35b   : > { %v3420_v16 = vpop.f32.mrf.mxu1 }
 0x35c   : > { %7990 = vst [vmem:[#allocation20_spill] sm:$0xff] %v7404_v36  ;;  %3468 = vmatmul.bf16.gmra.mxu2 %v1693_v19  ;;  %v6080_v19 = vld [vmem:[%s7913_s4] sm:$0xff]  ;;  %v1701_v18 = vpack.c.bf16 %v1229_v8, %v1221_v29 }
 0x35d   : > { %3637 = vmatmul.bf16.gmra.mxu3 %v1694_v1  ;;  %v1222_v1 = vcvt.s32.f32 %v710_v24  ;;  %5018 = vmatpush.bf16.msra.mxu1 %v6080_v19  ;;  %v733_v19 = vunpack.c.2.s8 %v6439_v58 }
 0x35f   : > { %v2913_v13 = vpop.f32.mrf.mxu2  ;;  %v1702_v36 = vpack.c.bf16 %v1230_v59, %v1222_v1  ;;  %v1245_v59 = vcvt.s32.f32 %v733_v19  ;;  %v6440_v19 = vld [vmem:[%s6612_s10 + $0xc8] sm:$0xff] }
 0x360   : > { %v3082_v17 = vpop.f32.mrf.mxu3  ;;  %v2914_v48 = vadd.f32 %v2913_v13, %v7991_v31  ;;  %v7995_v31 = vld [vmem:[#allocation22_spill] sm:$0xff] }
 0x361   : > { %v7415_v27 = vpop.f32.mrf.mxu0 }
 0x362   : > { %v3083_v21 = vadd.f32 %v3082_v17, %v2914_v48  ;;  %7992 = vst [vmem:[#allocation21_spill] sm:$0xff] %v7415_v27 }
 0x363   : > { %v7417_v32 = vpop.f32.mrf.mxu1 }
 0x364   : > { %7993 = vst [vmem:[#allocation41_spill] sm:$0xff] %v7417_v32  ;;  %v3252_v47 = vadd.f32 %v3251_v60, %v3083_v21  ;;  %v6438_v60 = vld [vmem:[%s6612_s10 + $0xa8] sm:$0xff]  ;;  %v7997_v21 = vld [vmem:[#allocation23_spill] sm:$0xff] }
 0x365   : > { %v725_v45 = vunpack.c.2.s8 %v6438_v60 }
 0x366   : > { %v7419_v13 = vadd.f32 %v3420_v16, %v3252_v47  ;;  %v726_v47 = vunpack.c.3.s8 %v6438_v60 }
 0x367   : > { %v2915_v17 = vpop.f32.mrf.mxu2  ;;  %v1237_v29 = vcvt.s32.f32 %v725_v45 }
 0x368   : > { %7994 = vst [vmem:[#allocation42_spill] sm:$0xff] %v7419_v13  ;;  %v3084_v46 = vpop.f32.mrf.mxu3  ;;  %v2916_v48 = vadd.f32 %v2915_v17, %v7995_v31  ;;  %v734_v13 = vunpack.c.3.s8 %v6439_v58 }
 0x369   : > { %v3256_v0 = vpop.f32.mrf.mxu0  ;;  %v1709_v60 = vpack.c.bf16 %v1245_v59, %v1237_v29 }
 0x36a   : > { %v7422_v27 = vadd.f32 %v3084_v46, %v2916_v48  ;;  %v1246_v46 = vcvt.s32.f32 %v734_v13  ;;  %v8002_v13 = vld [vmem:[#allocation25_spill] sm:$0xff] }
 0x36b   : > { %v3425_v32 = vpop.f32.mrf.mxu1 }
 0x36c   : > { %7996 = vst [vmem:[#allocation22_spill] sm:$0xff] %v7422_v27  ;;  %3473 = vmatmul.bf16.gmra.mxu2 %v1701_v18 }
 0x36d   : > { %3642 = vmatmul.bf16.gmra.mxu3 %v1702_v36  ;;  %v1238_v36 = vcvt.s32.f32 %v726_v47  ;;  %v741_v47 = vunpack.c.2.s8 %v6440_v19 }
 0x36f   : > { %v2918_v41 = vpop.f32.mrf.mxu2  ;;  %v1710_v58 = vpack.c.bf16 %v1246_v46, %v1238_v36  ;;  %v1253_v29 = vcvt.s32.f32 %v741_v47  ;;  %v8008_v47 = vld [vmem:[#allocation27_spill] sm:$0xff] }
 0x370   : > { %v3087_v24 = vpop.f32.mrf.mxu3  ;;  %v2919_v16 = vadd.f32 %v2918_v41, %v7997_v21  ;;  %v8001_v41 = vld [vmem:[#allocation24_spill] sm:$0xff] }
 0x371   : > { %v7427_v17 = vpop.f32.mrf.mxu0 }
 0x372   : > { %v3088_v9 = vadd.f32 %v3087_v24, %v2919_v16  ;;  %7998 = vst [vmem:[#allocation23_spill] sm:$0xff] %v7427_v17 }
 0x373   : > { %v7429_v8 = vpop.f32.mrf.mxu1 }
 0x374   : > { %7999 = vst [vmem:[#allocation43_spill] sm:$0xff] %v7429_v8  ;;  %v3257_v1 = vadd.f32 %v3256_v0, %v3088_v9 }
 0x376   : > { %v7431_v31 = vadd.f32 %v3425_v32, %v3257_v1  ;;  %v6441_v1 = vld [vmem:[%s6612_s10 + $0xd8] sm:$0xff] }
 0x377   : > { %v2920_v48 = vpop.f32.mrf.mxu2  ;;  %v749_v8 = vunpack.c.2.s8 %v6441_v1  ;;  %v750_v17 = vunpack.c.3.s8 %v6441_v1 }
 0x378   : > { %8000 = vst [vmem:[#allocation44_spill] sm:$0xff] %v7431_v31  ;;  %v3089_v18 = vpop.f32.mrf.mxu3  ;;  %v2921_v21 = vadd.f32 %v2920_v48, %v8001_v41  ;;  %v742_v31 = vunpack.c.3.s8 %v6440_v19 }
 0x379   : > { %v3261_v16 = vpop.f32.mrf.mxu0  ;;  %v1261_v36 = vcvt.s32.f32 %v749_v8 }
 0x37a   : > { %v7434_v24 = vadd.f32 %v3089_v18, %v2921_v21  ;;  %v1254_v46 = vcvt.s32.f32 %v742_v31  ;;  %v1262_v18 = vcvt.s32.f32 %v750_v17 }
 0x37b   : > { %v3430_v45 = vpop.f32.mrf.mxu1  ;;  %v1717_v19 = vpack.c.bf16 %v1261_v36, %v1253_v29 }
 0x37c   : > { %3478 = vmatmul.bf16.gmra.mxu2 %v1709_v60 }
 0x37d   : > { %3647 = vmatmul.bf16.gmra.mxu3 %v1710_v58 }
 0x37f   : > { %v2923_v9 = vpop.f32.mrf.mxu2 }
 0x380   : > { %v3092_v0 = vpop.f32.mrf.mxu3  ;;  %v2924_v32 = vadd.f32 %v2923_v9, %v8002_v13  ;;  %v8006_v9 = vld [vmem:[#allocation26_spill] sm:$0xff] }
 0x381   : > { %v7439_v48 = vpop.f32.mrf.mxu0 }
 0x382   : > { %v3093_v27 = vadd.f32 %v3092_v0, %v2924_v32  ;;  %8003 = vst [vmem:[#allocation24_spill] sm:$0xff] %v7439_v48  ;;  %v1718_v0 = vpack.c.bf16 %v1262_v18, %v1254_v46 }
 0x383   : > { %v7441_v41 = vpop.f32.mrf.mxu1 }
 0x384   : > { %v3262_v59 = vadd.f32 %v3261_v16, %v3093_v27  ;;  %8004 = vst [vmem:[#allocation25_spill] sm:$0xff] %v7441_v41  ;;  %v6442_v16 = vld [vmem:[%s6612_s10 + $0xe8] sm:$0xff] }
 0x386   : > { %v7443_v21 = vadd.f32 %v3430_v45, %v3262_v59  ;;  %v757_v45 = vunpack.c.2.s8 %v6442_v16  ;;  %v6443_v59 = vld [vmem:[%s6612_s10 + $0xf8] sm:$0xff] }
 0x387   : > { %v2925_v60 = vpop.f32.mrf.mxu2  ;;  %v765_v41 = vunpack.c.2.s8 %v6443_v59 }
 0x388   : > { %8005 = vst [vmem:[#allocation45_spill] sm:$0xff] %v7443_v21  ;;  %v3094_v58 = vpop.f32.mrf.mxu3  ;;  %v2926_v13 = vadd.f32 %v2925_v60, %v8006_v9  ;;  %v758_v21 = vunpack.c.3.s8 %v6442_v16  ;;  %v766_v60 = vunpack.c.3.s8 %v6443_v59  ;;  %v1269_v36 = vcvt.s32.f32 %v757_v45  ;;  %v8011_v16 = vld [vmem:[#allocation28_spill] sm:$0xff] }
 0x389   : > { %v3266_v27 = vpop.f32.mrf.mxu0  ;;  %v1277_v18 = vcvt.s32.f32 %v765_v41 }
 0x38a   : > { %v7446_v32 = vadd.f32 %v3094_v58, %v2926_v13  ;;  %v1270_v58 = vcvt.s32.f32 %v758_v21  ;;  %v1278_v9 = vcvt.s32.f32 %v766_v60 }
 0x38b   : > { %v3435_v8 = vpop.f32.mrf.mxu1 }
 0x38c   : > { %8007 = vst [vmem:[#allocation26_spill] sm:$0xff] %v7446_v32  ;;  %3483 = vmatmul.bf16.gmra.mxu2 %v1717_v19 }
 0x38d   : > { %3652 = vmatmul.bf16.gmra.mxu3 %v1718_v0  ;;  %v6088_v0 = vld [vmem:[%s7457_s14] sm:$0xff] }
 0x38e   : > { %4802 = vmatmul.bf16.vlgmr.msra.gmra.mxu0 %v6088_v0 }
 0x38f   : > { %v2928_v17 = vpop.f32.mrf.mxu2 }
 0x390   : > { %v3097_v31 = vpop.f32.mrf.mxu3  ;;  %v2929_v1 = vadd.f32 %v2928_v17, %v8008_v47  ;;  %v1725_v47 = vpack.c.bf16 %v1277_v18, %v1269_v36 }
 0x391   : > { %v7461_v19 = vpop.f32.mrf.mxu0 }
 0x392   : > { %v3098_v29 = vadd.f32 %v3097_v31, %v2929_v1  ;;  %8010 = vst [vmem:[#allocation46_spill] sm:$0xff] %v7461_v19  ;;  %v1726_v1 = vpack.c.bf16 %v1278_v9, %v1270_v58 }
 0x393   : > { %v7465_v59 = vpop.f32.mrf.mxu1 }
 0x394   : > { %v3267_v46 = vadd.f32 %v3266_v27, %v3098_v29  ;;  %8012 = vst [vmem:[#allocation28_spill] sm:$0xff] %v7465_v59  ;;  %v8014_v29 = vld [vmem:[#allocation29_spill] sm:$0xff] }
 0x396   : > { %v7459_v13 = vadd.f32 %v3435_v8, %v3267_v46  ;;  %v6444_v8 = vld [vmem:[%s6612_s10 + $0x108] sm:$0xff] }
 0x397   : > { %v2930_v17 = vpop.f32.mrf.mxu2  ;;  %v773_v60 = vunpack.c.2.s8 %v6444_v8  ;;  %v774_v48 = vunpack.c.3.s8 %v6444_v8 }
 0x398   : > { %8009 = vst [vmem:[#allocation27_spill] sm:$0xff] %v7459_v13  ;;  %v3099_v31 = vpop.f32.mrf.mxu3  ;;  %v2931_v45 = vadd.f32 %v2930_v17, %v8011_v16  ;;  %v6445_v13 = vld [vmem:[%s6612_s10 + $0x118] sm:$0xff] }
 0x399   : > { %v781_v19 = vunpack.c.2.s8 %v6445_v13  ;;  %v782_v17 = vunpack.c.3.s8 %v6445_v13  ;;  %v3271_v36 = vpop.f32.mrf.mxu0  ;;  %v1285_v9 = vcvt.s32.f32 %v773_v60  ;;  %v1286_v16 = vcvt.s32.f32 %v774_v48  ;;  %v6446_v48 = vld [vmem:[%s6612_s10 + $0x128] sm:$0xff] }
 0x39a   : > { %v7467_v27 = vadd.f32 %v3099_v31, %v2931_v45  ;;  %v789_v60 = vunpack.c.2.s8 %v6446_v48 }
 0x39b   : > { %v3440_v58 = vpop.f32.mrf.mxu1  ;;  %v1293_v31 = vcvt.s32.f32 %v781_v19  ;;  %v1294_v45 = vcvt.s32.f32 %v782_v17 }
 0x39c   : > { %8013 = vst [vmem:[#allocation47_spill] sm:$0xff] %v7467_v27  ;;  %3488 = vmatmul.bf16.gmra.mxu2 %v1725_v47 }
 0x39d   : > { %3657 = vmatmul.bf16.gmra.mxu3 %v1726_v1  ;;  %v6089_v1 = vld [vmem:[%s7457_s14 + $0x8] sm:$0xff]  ;;  %v1733_v32 = vpack.c.bf16 %v1293_v31, %v1285_v9  ;;  %v1734_v8 = vpack.c.bf16 %v1294_v45, %v1286_v16 }
 0x39e   : > { %4807 = vmatmul.bf16.gmra.mxu0 %v6089_v1 }
 0x39f   : > { %v2933_v41 = vpop.f32.mrf.mxu2 }
 0x3a0   : > { %v3102_v21 = vpop.f32.mrf.mxu3  ;;  %v2934_v46 = vadd.f32 %v2933_v41, %v8014_v29  ;;  %v8016_v41 = vld [vmem:[#allocation30_spill] sm:$0xff] }
 0x3a2   : > { %v3103_v18 = vadd.f32 %v3102_v21, %v2934_v46  ;;  %v6447_v46 = vld [vmem:[%s6612_s10 + $0x138] sm:$0xff] }
 0x3a3   : > { %v797_v17 = vunpack.c.2.s8 %v6447_v46 }
 0x3a4   : > { %v3272_v0 = vadd.f32 %v3271_v36, %v3103_v18  ;;  %v790_v36 = vunpack.c.3.s8 %v6446_v48  ;;  %v798_v18 = vunpack.c.3.s8 %v6447_v46 }
 0x3a5   : > { %v1309_v9 = vcvt.s32.f32 %v797_v17 }
 0x3a6   : > { %v7472_v47 = vadd.f32 %v3440_v58, %v3272_v0  ;;  %v4045_v58 = vpop.permute.xlu0 %4044  ;;  %v1301_v0 = vcvt.s32.f32 %v789_v60  ;;  %v1302_v31 = vcvt.s32.f32 %v790_v36  ;;  %v1310_v16 = vcvt.s32.f32 %v798_v18  ;;  %v6448_v36 = vld [vmem:[%s6612_s10 + $0x148] sm:$0xff] }
 0x3a7   : > { %v2935_v59 = vpop.f32.mrf.mxu2  ;;  %v805_v18 = vunpack.c.2.s8 %v6448_v36 }
 0x3a8   : > { %8015 = vst [vmem:[#allocation29_spill] sm:$0xff] %v7472_v47  ;;  %v3104_v27 = vpop.f32.mrf.mxu3  ;;  %v2936_v29 = vadd.f32 %v2935_v59, %v8016_v41 }
 0x3aa   : > { %v7476_v13 = vadd.f32 %v3104_v27, %v2936_v29  ;;  %v6090_v27 = vld [vmem:[%s7457_s14 + $0x10] sm:$0xff]  ;;  %v1741_v29 = vpack.c.bf16 %v1309_v9, %v1301_v0  ;;  %v4055_v0 = vpop.permute.xlu1 %4054  ;;  %v1317_v9 = vcvt.s32.f32 %v805_v18 }
 0x3ac   : > { %3493 = vmatmul.bf16.gmra.mxu2 %v1733_v32 }
 0x3ad   : > { %3662 = vmatmul.bf16.gmra.mxu3 %v1734_v8  ;;  %v1742_v8 = vpack.c.bf16 %v1310_v16, %v1302_v31 }
 0x3ae   : > { %4812 = vmatmul.bf16.gmra.mxu0 %v6090_v27  ;;  %v4050_v46 = vpop.permute.xlu0 %4049 }
 0x3af   : > { %v3454_v19 = vpop.f32.mrf.mxu2 }
 0x3b0   : > { %v3623_v21 = vpop.f32.mrf.mxu3  ;;  %v3455_v59 = vadd.f32 %v3454_v19, %v6985_v39 }
 0x3b2   : > { %v3624_v1 = vadd.f32 %v3623_v21, %v3455_v59  ;;  %v6449_v21 = vld [vmem:[%s6612_s10 + $0x158] sm:$0xff] }
 0x3b3   : > { %v813_v59 = vunpack.c.2.s8 %v6449_v21 }
 0x3b4   : > { %v4362_v47 = vmul.f32 %v4045_v58, %v3624_v1 }
 0x3b5   : > { %v1325_v16 = vcvt.s32.f32 %v813_v59 }
 0x3b7   : > { %v3456_v45 = vpop.f32.mrf.mxu2 }
 0x3b8   : > { %v3625_v32 = vpop.f32.mrf.mxu3  ;;  %v3457_v41 = vadd.f32 %v3456_v45, %v6988_v43  ;;  %v806_v43 = vunpack.c.3.s8 %v6448_v36  ;;  %v814_v45 = vunpack.c.3.s8 %v6449_v21  ;;  %v6450_v21 = vld [vmem:[%s6612_s10 + $0x168] sm:$0xff] }
 0x3b9   : > { %v821_v59 = vunpack.c.2.s8 %v6450_v21 }
 0x3ba   : > { %v3626_v48 = vadd.f32 %v3625_v32, %v3457_v41  ;;  %v1318_v58 = vcvt.s32.f32 %v806_v43  ;;  %v1326_v27 = vcvt.s32.f32 %v814_v45  ;;  %v6091_v32 = vld [vmem:[%s7457_s14 + $0x18] sm:$0xff] }
 0x3bc   : > { %v4363_v60 = vmul.f32 %v4050_v46, %v3626_v48  ;;  %3498 = vmatmul.bf16.gmra.mxu2 %v1741_v29  ;;  %v1750_v48 = vpack.c.bf16 %v1326_v27, %v1318_v58 }
 0x3bd   : > { %3667 = vmatmul.bf16.gmra.mxu3 %v1742_v8  ;;  %v1749_v8 = vpack.c.bf16 %v1325_v16, %v1317_v9  ;;  %v4065_v9 = vpop.permute.xlu2 %4064 }
 0x3be   : > { %v4426_v39 = vpack.c.bf16 %v4363_v60, %v4362_v47  ;;  %4817 = vmatmul.bf16.gmra.mxu0 %v6091_v32  ;;  %v4060_v60 = vpop.permute.xlu1 %4059  ;;  %v6092_v32 = vld [vmem:[%s7457_s14 + $0x20] sm:$0xff] }
 0x3bf   : > { %v3459_v19 = vpop.f32.mrf.mxu2 }
 0x3c0   : > { %v3628_v17 = vpop.f32.mrf.mxu3  ;;  %5019 = vmatmul.bf16.vlgmr.msra.gmra.mxu1 %v4426_v39  ;;  %v3460_v31 = vadd.f32 %v3459_v19, %v6995_v26 }
 0x3c2   : > { %v3629_v41 = vadd.f32 %v3628_v17, %v3460_v31  ;;  %v6451_v17 = vld [vmem:[%s6612_s10 + $0x178] sm:$0xff]  ;;  %v1333_v31 = vcvt.s32.f32 %v821_v59 }
 0x3c3   : > { %v829_v43 = vunpack.c.2.s8 %v6451_v17  ;;  %v830_v45 = vunpack.c.3.s8 %v6451_v17 }
 0x3c4   : > { %v4364_v39 = vmul.f32 %v4055_v0, %v3629_v41 }
 0x3c5   : > { %v1341_v58 = vcvt.s32.f32 %v829_v43  ;;  %v1342_v27 = vcvt.s32.f32 %v830_v45 }
 0x3c7   : > { %v3461_v1 = vpop.f32.mrf.mxu2 }
 0x3c8   : > { %v3630_v47 = vpop.f32.mrf.mxu3  ;;  %v3462_v29 = vadd.f32 %v3461_v1, %v7001_v3  ;;  %v822_v3 = vunpack.c.3.s8 %v6450_v21  ;;  %v6452_v21 = vld [vmem:[%s6612_s10 + $0x188] sm:$0xff] }
 0x3c9   : > { %v837_v59 = vunpack.c.2.s8 %v6452_v21 }
 0x3ca   : > { %v3631_v46 = vadd.f32 %v3630_v47, %v3462_v29  ;;  %v1334_v0 = vcvt.s32.f32 %v822_v3 }
 0x3cb   : > { %v1349_v3 = vcvt.s32.f32 %v837_v59 }
 0x3cc   : > { %v4365_v36 = vmul.f32 %v4060_v60, %v3631_v46  ;;  %3503 = vmatmul.bf16.gmra.mxu2 %v1749_v8  ;;  %v1757_v8 = vpack.c.bf16 %v1341_v58, %v1333_v31  ;;  %v4070_v60 = vpop.permute.xlu2 %4069  ;;  %v6093_v58 = vld [vmem:[%s7457_s14 + $0x28] sm:$0xff] }
 0x3cd   : > { %3672 = vmatmul.bf16.gmra.mxu3 %v1750_v48  ;;  %v1758_v48 = vpack.c.bf16 %v1342_v27, %v1334_v0 }
 0x3ce   : > { %v4427_v26 = vpack.c.bf16 %v4365_v36, %v4364_v39  ;;  %4822 = vmatmul.bf16.gmra.mxu0 %v6092_v32 }
 0x3cf   : > { %v3464_v19 = vpop.f32.mrf.mxu2 }
 0x3d0   : > { %v3633_v18 = vpop.f32.mrf.mxu3  ;;  %5024 = vmatmul.bf16.gmra.mxu1 %v4427_v26  ;;  %v3465_v16 = vadd.f32 %v3464_v19, %v7011_v10 }
 0x3d2   : > { %v3634_v41 = vadd.f32 %v3633_v18, %v3465_v16  ;;  %v6453_v18 = vld [vmem:[%s6612_s10 + $0x198] sm:$0xff] }
 0x3d3   : > { %v845_v17 = vunpack.c.2.s8 %v6453_v18  ;;  %v846_v43 = vunpack.c.3.s8 %v6453_v18 }
 0x3d4   : > { %v4366_v39 = vmul.f32 %v4065_v9, %v3634_v41 }
 0x3d5   : > { %v1357_v31 = vcvt.s32.f32 %v845_v17  ;;  %v1358_v9 = vcvt.s32.f32 %v846_v43 }
 0x3d7   : > { %v3466_v1 = vpop.f32.mrf.mxu2 }
 0x3d8   : > { %v3635_v47 = vpop.f32.mrf.mxu3  ;;  %v3467_v29 = vadd.f32 %v3466_v1, %v7014_v62  ;;  %v838_v62 = vunpack.c.3.s8 %v6452_v21 }
 0x3da   : > { %v3636_v46 = vadd.f32 %v3635_v47, %v3467_v29  ;;  %v1350_v16 = vcvt.s32.f32 %v838_v62  ;;  %v1765_v47 = vpack.c.bf16 %v1357_v31, %v1349_v3 }
 0x3dc   : > { %v4367_v36 = vmul.f32 %v4070_v60, %v3636_v46  ;;  %3508 = vmatmul.bf16.gmra.mxu2 %v1757_v8  ;;  %v1766_v41 = vpack.c.bf16 %v1358_v9, %v1350_v16  ;;  %v4075_v8 = vpop.permute.xlu0 %4074 }
 0x3dd   : > { %3677 = vmatmul.bf16.gmra.mxu3 %v1758_v48  ;;  %v4080_v48 = vpop.permute.xlu1 %4079 }
 0x3de   : > { %v4428_v10 = vpack.c.bf16 %v4367_v36, %v4366_v39  ;;  %4827 = vmatmul.bf16.gmra.mxu0 %v6093_v58 }
 0x3df   : > { %v3469_v26 = vpop.f32.mrf.mxu2 }
 0x3e0   : > { %v3638_v19 = vpop.f32.mrf.mxu3  ;;  %5029 = vmatmul.bf16.gmra.mxu1 %v4428_v10  ;;  %v3470_v45 = vadd.f32 %v3469_v26, %v7027_v2  ;;  %v6454_v10 = vld [vmem:[%s6612_s10 + $0x1a8] sm:$0xff] }
 0x3e1   : > { %v853_v26 = vunpack.c.2.s8 %v6454_v10  ;;  %v854_v21 = vunpack.c.3.s8 %v6454_v10 }
 0x3e2   : > { %v3639_v32 = vadd.f32 %v3638_v19, %v3470_v45  ;;  %v6455_v19 = vld [vmem:[%s6612_s10 + $0x1b8] sm:$0xff]  ;;  %v6094_v45 = vld [vmem:[%s7457_s14 + $0x30] sm:$0xff] }
 0x3e3   : > { %v862_v59 = vunpack.c.3.s8 %v6455_v19  ;;  %v1365_v18 = vcvt.s32.f32 %v853_v26  ;;  %v1366_v43 = vcvt.s32.f32 %v854_v21 }
 0x3e4   : > { %v4368_v46 = vmul.f32 %v4075_v8, %v3639_v32 }
 0x3e5   : > { %v1374_v3 = vcvt.s32.f32 %v862_v59  ;;  %v6095_v59 = vld [vmem:[%s7457_s14 + $0x38] sm:$0xff] }
 0x3e7   : > { %v3471_v0 = vpop.f32.mrf.mxu2 }
 0x3e8   : > { %v3640_v27 = vpop.f32.mrf.mxu3  ;;  %v3472_v1 = vadd.f32 %v3471_v0, %v7030_v56  ;;  %v861_v56 = vunpack.c.2.s8 %v6455_v19 }
 0x3ea   : > { %v3641_v29 = vadd.f32 %v3640_v27, %v3472_v1  ;;  %v1373_v62 = vcvt.s32.f32 %v861_v56  ;;  %v1774_v27 = vpack.c.bf16 %v1374_v3, %v1366_v43  ;;  %v4090_v1 = vpop.permute.xlu0 %4089 }
 0x3ec   : > { %v4369_v60 = vmul.f32 %v4080_v48, %v3641_v29  ;;  %3513 = vmatmul.bf16.gmra.mxu2 %v1765_v47  ;;  %v1773_v0 = vpack.c.bf16 %v1373_v62, %v1365_v18  ;;  %v4085_v47 = vpop.permute.xlu2 %4084 }
 0x3ed   : > { %3682 = vmatmul.bf16.gmra.mxu3 %v1766_v41 }
 0x3ee   : > { %v4429_v2 = vpack.c.bf16 %v4369_v60, %v4368_v46  ;;  %4832 = vmatmul.bf16.gmra.mxu0 %v6094_v45  ;;  %v6456_v46 = vld [vmem:[%s6612_s10 + $0x1c8] sm:$0xff] }
 0x3ef   : > { %v3474_v39 = vpop.f32.mrf.mxu2  ;;  %v869_v60 = vunpack.c.2.s8 %v6456_v46 }
 0x3f0   : > { %v3643_v36 = vpop.f32.mrf.mxu3  ;;  %5034 = vmatmul.bf16.gmra.mxu1 %v4429_v2  ;;  %v3475_v17 = vadd.f32 %v3474_v39, %v7037_v37  ;;  %v6457_v2 = vld [vmem:[%s6612_s10 + $0x1d8] sm:$0xff]  ;;  %v870_v39 = vunpack.c.3.s8 %v6456_v46 }
 0x3f1   : > { %v1381_v10 = vcvt.s32.f32 %v869_v60 }
 0x3f2   : > { %v3644_v9 = vadd.f32 %v3643_v36, %v3475_v17  ;;  %v878_v36 = vunpack.c.3.s8 %v6457_v2  ;;  %v1382_v56 = vcvt.s32.f32 %v870_v39 }
 0x3f4   : > { %v4370_v41 = vmul.f32 %v4085_v47, %v3644_v9  ;;  %v1390_v21 = vcvt.s32.f32 %v878_v36  ;;  %v4100_v9 = vpop.permute.xlu2 %4099  ;;  %v6458_v47 = vld [vmem:[%s6612_s10 + $0x1e8] sm:$0xff]  ;;  %v6096_v36 = vld [vmem:[%s7457_s14 + $0x40] sm:$0xff] }
 0x3f6   : > { %v1782_v45 = vpack.c.bf16 %v1390_v21, %v1382_v56 }
 0x3f7   : > { %v3476_v31 = vpop.f32.mrf.mxu2 }
 0x3f8   : > { %v3645_v16 = vpop.f32.mrf.mxu3  ;;  %v3477_v58 = vadd.f32 %v3476_v31, %v7040_v15  ;;  %v877_v15 = vunpack.c.2.s8 %v6457_v2 }
 0x3fa   : > { %v3646_v32 = vadd.f32 %v3645_v16, %v3477_v58  ;;  %v1389_v19 = vcvt.s32.f32 %v877_v15  ;;  %v4095_v16 = vpop.permute.xlu1 %4094 }
 0x3fc   : > { %v4371_v29 = vmul.f32 %v4090_v1, %v3646_v32  ;;  %3518 = vmatmul.bf16.gmra.mxu2 %v1773_v0  ;;  %v1781_v3 = vpack.c.bf16 %v1389_v19, %v1381_v10 }
 0x3fd   : > { %3687 = vmatmul.bf16.gmra.mxu3 %v1774_v27 }
 0x3fe   : > { %v4430_v37 = vpack.c.bf16 %v4371_v29, %v4370_v41  ;;  %4837 = vmatmul.bf16.gmra.mxu0 %v6095_v59  ;;  %v885_v41 = vunpack.c.2.s8 %v6458_v47 }
 0x3ff   : > { %v3479_v8 = vpop.f32.mrf.mxu2 }
 0x400   : > { %v3648_v48 = vpop.f32.mrf.mxu3  ;;  %5039 = vmatmul.bf16.gmra.mxu1 %v4430_v37  ;;  %v3480_v26 = vadd.f32 %v3479_v8, %v7047_v54  ;;  %v7508_v54 = vpop.f32.mrf.mxu0  ;;  %v886_v37 = vunpack.c.3.s8 %v6458_v47 }
 0x402   : > { %v3649_v62 = vadd.f32 %v3648_v48, %v3480_v26  ;;  %v1397_v48 = vcvt.s32.f32 %v885_v41  ;;  %v1398_v2 = vcvt.s32.f32 %v886_v37 }
 0x404   : > { %v4372_v58 = vmul.f32 %v4095_v16, %v3649_v62  ;;  %v4110_v62 = vpop.permute.xlu1 %4109 }
 0x407   : > { %v3481_v18 = vpop.f32.mrf.mxu2 }
 0x408   : > { %v3650_v17 = vpop.f32.mrf.mxu3  ;;  %v3482_v43 = vadd.f32 %v3481_v18, %v7053_v6  ;;  %v6459_v6 = vld [vmem:[%s6612_s10 + $0x1f8] sm:$0xff] }
 0x409   : > { %v893_v29 = vunpack.c.2.s8 %v6459_v6  ;;  %v894_v8 = vunpack.c.3.s8 %v6459_v6 }
 0x40a   : > { %v3651_v31 = vadd.f32 %v3650_v17, %v3482_v43  ;;  %v4105_v17 = vpop.permute.xlu0 %4104 }
 0x40b   : > { %v1405_v60 = vcvt.s32.f32 %v893_v29  ;;  %v1406_v15 = vcvt.s32.f32 %v894_v8  ;;  %v7513_v39 = vpop.f32.mrf.mxu0  ;;  %v6097_v8 = vld [vmem:[%s7457_s14 + $0x48] sm:$0xff] }
 0x40c   : > { %v4373_v0 = vmul.f32 %v4100_v9, %v3651_v31  ;;  %3523 = vmatmul.bf16.gmra.mxu2 %v1781_v3  ;;  %v6460_v9 = vld [vmem:[%s6612_s10 + $0x208] sm:$0xff] }
 0x40d   : > { %3692 = vmatmul.bf16.gmra.mxu3 %v1782_v45  ;;  %v1789_v21 = vpack.c.bf16 %v1405_v60, %v1397_v48  ;;  %v1790_v59 = vpack.c.bf16 %v1406_v15, %v1398_v2 }
 0x40e   : > { %v4431_v27 = vpack.c.bf16 %v4373_v0, %v4372_v58  ;;  %4842 = vmatmul.bf16.gmra.mxu0 %v6096_v36  ;;  %v901_v58 = vunpack.c.2.s8 %v6460_v9 }
 0x40f   : > { %v3484_v32 = vpop.f32.mrf.mxu2 }
 0x410   : > { %v3653_v1 = vpop.f32.mrf.mxu3  ;;  %5044 = vmatmul.bf16.gmra.mxu1 %v4431_v27  ;;  %v3485_v46 = vadd.f32 %v3484_v32, %v7063_v5  ;;  %v902_v27 = vunpack.c.3.s8 %v6460_v9 }
 0x412   : > { %v3654_v19 = vadd.f32 %v3653_v1, %v3485_v46  ;;  %v1413_v1 = vcvt.s32.f32 %v901_v58  ;;  %v1414_v6 = vcvt.s32.f32 %v902_v27  ;;  %v7531_v27 = vpop.f32.mrf.mxu1 }
 0x413   : > { %v7517_v3 = vpop.f32.mrf.mxu0 }
 0x414   : > { %v4374_v5 = vmul.f32 %v4105_v17, %v3654_v19  ;;  %v4115_v19 = vpop.permute.xlu2 %4114 }
 0x417   : > { %v3486_v10 = vpop.f32.mrf.mxu2 }
 0x418   : > { %v3655_v26 = vpop.f32.mrf.mxu3  ;;  %v3487_v56 = vadd.f32 %v3486_v10, %v7066_v52  ;;  %v6461_v52 = vld [vmem:[%s6612_s10 + $0x218] sm:$0xff] }
 0x419   : > { %v909_v0 = vunpack.c.2.s8 %v6461_v52  ;;  %v910_v32 = vunpack.c.3.s8 %v6461_v52 }
 0x41a   : > { %v3656_v18 = vadd.f32 %v3655_v26, %v3487_v56  ;;  %v4120_v26 = vpop.permute.xlu0 %4119 }
 0x41b   : > { %v1421_v41 = vcvt.s32.f32 %v909_v0  ;;  %v1422_v29 = vcvt.s32.f32 %v910_v32  ;;  %v7522_v37 = vpop.f32.mrf.mxu0 }
 0x41c   : > { %v4375_v43 = vmul.f32 %v4110_v62, %v3656_v18  ;;  %3528 = vmatmul.bf16.gmra.mxu2 %v1789_v21  ;;  %v6462_v62 = vld [vmem:[%s6612_s10 + $0x228] sm:$0xff] }
 0x41d   : > { %3697 = vmatmul.bf16.gmra.mxu3 %v1790_v59  ;;  %v1797_v15 = vpack.c.bf16 %v1421_v41, %v1413_v1  ;;  %v1798_v36 = vpack.c.bf16 %v1422_v29, %v1414_v6  ;;  %v6098_v1 = vld [vmem:[%s7457_s14 + $0x50] sm:$0xff] }
 0x41e   : > { %v4432_v45 = vpack.c.bf16 %v4375_v43, %v4374_v5  ;;  %4847 = vmatmul.bf16.gmra.mxu0 %v6097_v8  ;;  %v917_v5 = vunpack.c.2.s8 %v6462_v62 }
 0x41f   : > { %v3489_v31 = vpop.f32.mrf.mxu2 }
 0x420   : > { %v3658_v16 = vpop.f32.mrf.mxu3  ;;  %5049 = vmatmul.bf16.gmra.mxu1 %v4432_v45  ;;  %v3490_v47 = vadd.f32 %v3489_v31, %v7079_v7  ;;  %v918_v45 = vunpack.c.3.s8 %v6462_v62 }
 0x422   : > { %v3659_v60 = vadd.f32 %v3658_v16, %v3490_v47  ;;  %v1429_v16 = vcvt.s32.f32 %v917_v5  ;;  %v1430_v52 = vcvt.s32.f32 %v918_v45 }
 0x423   : > { %v7526_v21 = vpop.f32.mrf.mxu0 }
 0x424   : > { %v4376_v7 = vmul.f32 %v4115_v19, %v3659_v60  ;;  %v4130_v60 = vpop.permute.xlu2 %4129 }
 0x427   : > { %v3491_v48 = vpop.f32.mrf.mxu2 }
 0x428   : > { %v3660_v46 = vpop.f32.mrf.mxu3  ;;  %v3492_v2 = vadd.f32 %v3491_v48, %v7082_v14  ;;  %v6463_v14 = vld [vmem:[%s6612_s10 + $0x238] sm:$0xff] }
 0x429   : > { %v925_v43 = vunpack.c.2.s8 %v6463_v14  ;;  %v926_v31 = vunpack.c.3.s8 %v6463_v14  ;;  %v7545_v14 = vld [vmem:[%s7915_s6] ss:$0 sm:$0xff] }
 0x42a   : > { %v3661_v10 = vadd.f32 %v3660_v46, %v3492_v2 }
 0x42b   : > { %v1437_v58 = vcvt.s32.f32 %v925_v43  ;;  %v1438_v0 = vcvt.s32.f32 %v926_v31  ;;  %v7533_v32 = vpop.f32.mrf.mxu0 }
 0x42c   : > { %v4377_v56 = vmul.f32 %v4120_v26, %v3661_v10  ;;  %3533 = vmatmul.bf16.gmra.mxu2 %v1797_v15 }
 0x42d   : > { %3702 = vmatmul.bf16.gmra.mxu3 %v1798_v36  ;;  %v1805_v8 = vpack.c.bf16 %v1437_v58, %v1429_v16  ;;  %v1806_v48 = vpack.c.bf16 %v1438_v0, %v1430_v52 }
 0x42e   : > { %v4433_v59 = vpack.c.bf16 %v4377_v56, %v4376_v7  ;;  %4852 = vmatmul.bf16.gmra.mxu0 %v6098_v1  ;;  %v6464_v56 = vld [vmem:[%s6612_s10 + $0x248] sm:$0xff] }
 0x42f   : > { %v3494_v18 = vpop.f32.mrf.mxu2 }
 0x430   : > { %v3663_v17 = vpop.f32.mrf.mxu3  ;;  %5054 = vmatmul.bf16.gmra.mxu1 %v4433_v59  ;;  %v3495_v9 = vadd.f32 %v3494_v18, %v7089_v28  ;;  %v4125_v28 = vpop.permute.xlu1 %4124  ;;  %v6465_v59 = vld [vmem:[%s6612_s10 + $0x258] sm:$0xff] }
 0x431   : > { %v941_v18 = vunpack.c.2.s8 %v6465_v59  ;;  %v942_v62 = vunpack.c.3.s8 %v6465_v59  ;;  %v6466_v59 = vld [vmem:[%s6612_s10 + $0x268] sm:$0xff] }
 0x432   : > { %v3664_v6 = vadd.f32 %v3663_v17, %v3495_v9  ;;  %v934_v17 = vunpack.c.3.s8 %v6464_v56 }
 0x433   : > { %v7537_v10 = vpop.f32.mrf.mxu0  ;;  %v1453_v45 = vcvt.s32.f32 %v941_v18  ;;  %v1454_v9 = vcvt.s32.f32 %v942_v62  ;;  %v949_v18 = vunpack.c.2.s8 %v6466_v59 }
 0x434   : > { %v4378_v2 = vmul.f32 %v4125_v28, %v3664_v6  ;;  %v1446_v16 = vcvt.s32.f32 %v934_v17  ;;  %v6467_v17 = vld [vmem:[%s6612_s10 + $0x278] sm:$0xff] }
 0x435   : > { %v957_v62 = vunpack.c.2.s8 %v6467_v17 }
 0x437   : > { %v3496_v47 = vpop.f32.mrf.mxu2 }
 0x438   : > { %v3665_v41 = vpop.f32.mrf.mxu3  ;;  %v3497_v29 = vadd.f32 %v3496_v47, %v7092_v20  ;;  %v933_v20 = vunpack.c.2.s8 %v6464_v56 }
 0x43a   : > { %v3666_v46 = vadd.f32 %v3665_v41, %v3497_v29  ;;  %v1445_v43 = vcvt.s32.f32 %v933_v20 }
 0x43b   : > { %v7548_v52 = vpop.f32.mrf.mxu0 }
 0x43c   : > { %v4379_v15 = vmul.f32 %v4130_v60, %v3666_v46  ;;  %3538 = vmatmul.bf16.gmra.mxu2 %v1805_v8  ;;  %v1813_v6 = vpack.c.bf16 %v1453_v45, %v1445_v43  ;;  %v958_v43 = vunpack.c.3.s8 %v6467_v17  ;;  %v6469_v17 = vld [vmem:[%s6612_s10 + $0x298] sm:$0xff] }
 0x43d   : > { %3707 = vmatmul.bf16.gmra.mxu3 %v1806_v48  ;;  %v5020_v36 = vpop.f32.mrf.mxu1 }
 0x43e   : > { %v4434_v26 = vpack.c.bf16 %v4379_v15, %v4378_v2  ;;  %v5021_v5 = vadd.f32 %v5020_v36, %v7513_v39  ;;  %v6099_v39 = vld [vmem:[%s7457_s14 + $0x58] sm:$0xff]  ;;  %v4135_v2 = vpop.permute.xlu0 %4134  ;;  %v4140_v15 = vpop.permute.xlu1 %4139 }
 0x43f   : > { %v3499_v19 = vpop.f32.mrf.mxu2  ;;  %4857 = vmatmul.bf16.gmra.mxu0 %v6099_v39 }
 0x440   : > { %v3668_v7 = vpop.f32.mrf.mxu3  ;;  %5059 = vmatmul.bf16.gmra.mxu1 %v4434_v26  ;;  %v3500_v31 = vadd.f32 %v3499_v19, %v7099_v55  ;;  %v5184_v0 = vadd.f32 %v7545_v14, %v5021_v5  ;;  %v1814_v55 = vpack.c.bf16 %v1454_v9, %v1446_v16  ;;  %v950_v5 = vunpack.c.3.s8 %v6466_v59  ;;  %v6468_v59 = vld [vmem:[%s6612_s10 + $0x288] sm:$0xff] }
 0x441   : > { %v1469_v16 = vcvt.s32.f32 %v957_v62  ;;  %v973_v62 = vunpack.c.2.s8 %v6469_v17 }
 0x442   : > { %v3669_v29 = vadd.f32 %v3668_v7, %v3500_v31  ;;  %v5248_v46 = vmax.f32 %v5184_v0, 0.0  ;;  %v1461_v31 = vcvt.s32.f32 %v949_v18  ;;  %v1470_v0 = vcvt.s32.f32 %v958_v43 }
 0x443   : > { %v7562_v19 = vpop.f32.mrf.mxu0  ;;  %v965_v18 = vunpack.c.2.s8 %v6468_v59  ;;  %v974_v43 = vunpack.c.3.s8 %v6469_v17 }
 0x445   : > { %v5022_v58 = vpop.f32.mrf.mxu1 }
 0x446   : > { %v5023_v1 = vadd.f32 %v5022_v58, %v7517_v3  ;;  %v4380_v3 = vmul.f32 %v4135_v2, %v3669_v29  ;;  %v1462_v58 = vcvt.s32.f32 %v950_v5  ;;  %v966_v5 = vunpack.c.3.s8 %v6468_v59  ;;  %v6471_v59 = vld [vmem:[%s6612_s10 + $0x2b8] sm:$0xff] }
 0x447   : > { %v3501_v47 = vpop.f32.mrf.mxu2 }
 0x448   : > { %v3670_v41 = vpop.f32.mrf.mxu3  ;;  %v5185_v8 = vadd.f32 %v7545_v14, %v5023_v1  ;;  %v3502_v48 = vadd.f32 %v3501_v47, %v7105_v51 }
 0x44a   : > { %v5249_v28 = vmax.f32 %v5185_v8, 0.0  ;;  %v3671_v60 = vadd.f32 %v3670_v41, %v3502_v48  ;;  %v1821_v48 = vpack.c.bf16 %v1469_v16, %v1461_v31  ;;  %v1477_v31 = vcvt.s32.f32 %v965_v18 }
 0x44b   : > { %v7569_v39 = vpop.f32.mrf.mxu0  ;;  %v1485_v16 = vcvt.s32.f32 %v973_v62  ;;  %v989_v18 = vunpack.c.2.s8 %v6471_v59  ;;  %v990_v62 = vunpack.c.3.s8 %v6471_v59 }
 0x44c   : > { %v6131_v36 = vpack.c.bf16 %v5249_v28, %v5248_v46  ;;  %v4381_v26 = vmul.f32 %v4140_v15, %v3671_v60  ;;  %3543 = vmatmul.bf16.gmra.mxu2 %v1813_v6  ;;  %v6100_v6 = vld [vmem:[%s7457_s14 + $0x60] sm:$0xff]  ;;  %v4150_v15 = vpop.permute.xlu0 %4149 }
 0x44d   : > { %3712 = vmatmul.bf16.gmra.mxu3 %v1814_v55  ;;  %v5025_v51 = vpop.f32.mrf.mxu1 }
 0x44e   : > { %6132 = vst [vmem:[%s7560_s19] sm:$0xff] %v6131_v36   ;;  %v4435_v7 = vpack.c.bf16 %v4381_v26, %v4380_v3  ;;  %v5026_v45 = vadd.f32 %v5025_v51, %v7522_v37  ;;  %v4145_v3 = vpop.permute.xlu2 %4144 }
 0x44f   : > { %v3504_v56 = vpop.f32.mrf.mxu2  ;;  %4862 = vmatmul.bf16.gmra.mxu0 %v6100_v6 }
 0x450   : > { %v3673_v20 = vpop.f32.mrf.mxu3  ;;  %5064 = vmatmul.bf16.gmra.mxu1 %v4435_v7  ;;  %v3505_v9 = vadd.f32 %v3504_v56, %v7115_v34  ;;  %v5186_v47 = vadd.f32 %v7545_v14, %v5026_v45  ;;  %v1822_v34 = vpack.c.bf16 %v1470_v0, %v1462_v58  ;;  %v1478_v58 = vcvt.s32.f32 %v966_v5 }
 0x451   : > { %v1486_v0 = vcvt.s32.f32 %v974_v43 }
 0x452   : > { %v3674_v55 = vadd.f32 %v3673_v20, %v3505_v9  ;;  %v5250_v28 = vmax.f32 %v5186_v47, 0.0 }
 0x453   : > { %v7576_v7 = vpop.f32.mrf.mxu0 }
 0x455   : > { %v5027_v1 = vpop.f32.mrf.mxu1 }
 0x456   : > { %v5028_v41 = vadd.f32 %v5027_v1, %v7526_v21  ;;  %v4382_v21 = vmul.f32 %v4145_v3, %v3674_v55  ;;  %v1829_v55 = vpack.c.bf16 %v1485_v16, %v1477_v31 }
 0x457   : > { %v3506_v29 = vpop.f32.mrf.mxu2 }
 0x458   : > { %v3675_v8 = vpop.f32.mrf.mxu3  ;;  %v5187_v37 = vadd.f32 %v7545_v14, %v5028_v41  ;;  %v3507_v46 = vadd.f32 %v3506_v29, %v7118_v49  ;;  %v6101_v29 = vld [vmem:[%s7457_s14 + $0x68] sm:$0xff] }
 0x45a   : > { %v5251_v60 = vmax.f32 %v5187_v37, 0.0  ;;  %v3676_v2 = vadd.f32 %v3675_v8, %v3507_v46 }
 0x45b   : > { %v7583_v47 = vpop.f32.mrf.mxu0 }
 0x45c   : > { %v6136_v36 = vpack.c.bf16 %v5251_v60, %v5250_v28  ;;  %v4383_v26 = vmul.f32 %v4150_v15, %v3676_v2  ;;  %3548 = vmatmul.bf16.gmra.mxu2 %v1821_v48  ;;  %v4155_v2 = vpop.permute.xlu1 %4154  ;;  %v4160_v15 = vpop.permute.xlu2 %4159 }
 0x45d   : > { %3717 = vmatmul.bf16.gmra.mxu3 %v1822_v34  ;;  %v5030_v51 = vpop.f32.mrf.mxu1 }
 0x45e   : > { %6288 = vst [vmem:[%s7560_s19 + $0x8] sm:$0xff] %v6136_v36   ;;  %v4436_v56 = vpack.c.bf16 %v4383_v26, %v4382_v21  ;;  %v5031_v45 = vadd.f32 %v5030_v51, %v7533_v32 }
 0x45f   : > { %v3509_v49 = vpop.f32.mrf.mxu2  ;;  %4867 = vmatmul.bf16.gmra.mxu0 %v6101_v29 }
 0x460   : > { %v3678_v20 = vpop.f32.mrf.mxu3  ;;  %5069 = vmatmul.bf16.gmra.mxu1 %v4436_v56  ;;  %v3510_v9 = vadd.f32 %v3509_v49, %v7131_v42  ;;  %v5188_v41 = vadd.f32 %v7545_v14, %v5031_v45  ;;  %v1830_v42 = vpack.c.bf16 %v1486_v0, %v1478_v58  ;;  %v6470_v49 = vld [vmem:[%s6612_s10 + $0x2a8] sm:$0xff]  ;;  %v1501_v45 = vcvt.s32.f32 %v989_v18 }
 0x461   : > { %v982_v17 = vunpack.c.3.s8 %v6470_v49 }
 0x462   : > { %v3679_v37 = vadd.f32 %v3678_v20, %v3510_v9  ;;  %v5252_v34 = vmax.f32 %v5188_v41, 0.0  ;;  %v981_v20 = vunpack.c.2.s8 %v6470_v49  ;;  %v1502_v9 = vcvt.s32.f32 %v990_v62 }
 0x463   : > { %v7590_v26 = vpop.f32.mrf.mxu0  ;;  %v1494_v16 = vcvt.s32.f32 %v982_v17 }
 0x464   : > { %v1493_v43 = vcvt.s32.f32 %v981_v20 }
 0x465   : > { %v5032_v1 = vpop.f32.mrf.mxu1 }
 0x466   : > { %v5033_v6 = vadd.f32 %v5032_v1, %v7537_v10  ;;  %v4384_v10 = vmul.f32 %v4155_v2, %v3679_v37 }
 0x467   : > { %v3511_v8 = vpop.f32.mrf.mxu2 }
 0x468   : > { %v3680_v48 = vpop.f32.mrf.mxu3  ;;  %v5189_v32 = vadd.f32 %v7545_v14, %v5033_v6  ;;  %v3512_v46 = vadd.f32 %v3511_v8, %v7134_v61  ;;  %v6102_v6 = vld [vmem:[%s7457_s14 + $0x70] sm:$0xff] }
 0x46a   : > { %v5253_v28 = vmax.f32 %v5189_v32, 0.0  ;;  %v3681_v60 = vadd.f32 %v3680_v48, %v3512_v46  ;;  %v1837_v48 = vpack.c.bf16 %v1501_v45, %v1493_v43 }
 0x46b   : > { %v7597_v0 = vpop.f32.mrf.mxu0 }
 0x46c   : > { %v6141_v3 = vpack.c.bf16 %v5253_v28, %v5252_v34  ;;  %v4385_v21 = vmul.f32 %v4160_v15, %v3681_v60  ;;  %3553 = vmatmul.bf16.gmra.mxu2 %v1829_v55  ;;  %v4165_v34 = vpop.permute.xlu0 %4164  ;;  %v4170_v28 = vpop.permute.xlu1 %4169 }
 0x46d   : > { %3722 = vmatmul.bf16.gmra.mxu3 %v1830_v42  ;;  %v5035_v36 = vpop.f32.mrf.mxu1 }
 0x46e   : > { %6289 = vst [vmem:[%s7560_s19 + $0x10] sm:$0xff] %v6141_v3   ;;  %v4437_v51 = vpack.c.bf16 %v4385_v21, %v4384_v10  ;;  %v5036_v5 = vadd.f32 %v5035_v36, %v7548_v52  ;;  %v6472_v36 = vld [vmem:[%s6612_s10 + $0x2c8] sm:$0xff] }
 0x46f   : > { %v3514_v61 = vpop.f32.mrf.mxu2  ;;  %4872 = vmatmul.bf16.gmra.mxu0 %v6102_v6  ;;  %v998_v49 = vunpack.c.3.s8 %v6472_v36 }
 0x470   : > { %v3683_v56 = vpop.f32.mrf.mxu3  ;;  %5074 = vmatmul.bf16.gmra.mxu1 %v4437_v51  ;;  %v3515_v31 = vadd.f32 %v3514_v61, %v7147_v50  ;;  %v5190_v1 = vadd.f32 %v7545_v14, %v5036_v5  ;;  %v1838_v50 = vpack.c.bf16 %v1502_v9, %v1494_v16  ;;  %v997_v51 = vunpack.c.2.s8 %v6472_v36  ;;  %v6473_v61 = vld [vmem:[%s6612_s10 + $0x2d8] sm:$0xff] }
 0x471   : > { %v1006_v20 = vunpack.c.3.s8 %v6473_v61  ;;  %v1510_v5 = vcvt.s32.f32 %v998_v49 }
 0x472   : > { %v3684_v55 = vadd.f32 %v3683_v56, %v3515_v31  ;;  %v5254_v32 = vmax.f32 %v5190_v1, 0.0  ;;  %v1005_v56 = vunpack.c.2.s8 %v6473_v61  ;;  %v1509_v18 = vcvt.s32.f32 %v997_v51 }
 0x473   : > { %v7604_v10 = vpop.f32.mrf.mxu0  ;;  %v1518_v43 = vcvt.s32.f32 %v1006_v20 }
 0x474   : > { %v1517_v17 = vcvt.s32.f32 %v1005_v56 }
 0x475   : > { %v5037_v58 = vpop.f32.mrf.mxu1 }
 0x476   : > { %v5038_v41 = vadd.f32 %v5037_v58, %v7562_v19  ;;  %v4386_v19 = vmul.f32 %v4165_v34, %v3684_v55  ;;  %v6103_v58 = vld [vmem:[%s7457_s14 + $0x78] sm:$0xff]  ;;  %v1845_v6 = vpack.c.bf16 %v1517_v17, %v1509_v18 }
 0x477   : > { %v3516_v29 = vpop.f32.mrf.mxu2 }
 0x478   : > { %v3685_v8 = vpop.f32.mrf.mxu3  ;;  %v5191_v52 = vadd.f32 %v7545_v14, %v5038_v41  ;;  %v3517_v37 = vadd.f32 %v3516_v29, %v7151_v38 }
 0x47a   : > { %v5255_v46 = vmax.f32 %v5191_v52, 0.0  ;;  %v3686_v42 = vadd.f32 %v3685_v8, %v3517_v37  ;;  %v4180_v37 = vpop.permute.xlu0 %4179 }
 0x47b   : > { %v7611_v31 = vpop.f32.mrf.mxu0 }
 0x47c   : > { %v6146_v60 = vpack.c.bf16 %v5255_v46, %v5254_v32  ;;  %v4387_v2 = vmul.f32 %v4170_v28, %v3686_v42  ;;  %3558 = vmatmul.bf16.gmra.mxu2 %v1837_v48 }
 0x47d   : > { %3727 = vmatmul.bf16.gmra.mxu3 %v1838_v50  ;;  %v5040_v15 = vpop.f32.mrf.mxu1  ;;  %v4175_v50 = vpop.permute.xlu2 %4174 }
 0x47e   : > { %6290 = vst [vmem:[%s7560_s19 + $0x18] sm:$0xff] %v6146_v60   ;;  %v4438_v3 = vpack.c.bf16 %v4387_v2, %v4386_v19  ;;  %v5041_v59 = vadd.f32 %v5040_v15, %v7569_v39  ;;  %v6474_v60 = vld [vmem:[%s6612_s10 + $0x2e8] sm:$0xff]  ;;  %v6475_v15 = vld [vmem:[%s6612_s10 + $0x2f8] sm:$0xff] }
 0x47f   : > { %v3519_v38 = vpop.f32.mrf.mxu2  ;;  %4877 = vmatmul.bf16.gmra.mxu0 %v6103_v58  ;;  %v1013_v2 = vunpack.c.2.s8 %v6474_v60 }
 0x480   : > { %v3688_v21 = vpop.f32.mrf.mxu3  ;;  %5079 = vmatmul.bf16.gmra.mxu1 %v4438_v3  ;;  %v3520_v62 = vadd.f32 %v3519_v38, %v7159_v30  ;;  %v5192_v16 = vadd.f32 %v7545_v14, %v5041_v59  ;;  %v1846_v30 = vpack.c.bf16 %v1518_v43, %v1510_v5  ;;  %v1021_v3 = vunpack.c.2.s8 %v6475_v15  ;;  %v6104_v5 = vld [vmem:[%s7457_s14 + $0x80] sm:$0xff] }
 0x481   : > { %v1014_v38 = vunpack.c.3.s8 %v6474_v60  ;;  %v1525_v51 = vcvt.s32.f32 %v1013_v2 }
 0x482   : > { %v3689_v29 = vadd.f32 %v3688_v21, %v3520_v62  ;;  %v5256_v48 = vmax.f32 %v5192_v16, 0.0  ;;  %v1022_v21 = vunpack.c.3.s8 %v6475_v15  ;;  %v1533_v61 = vcvt.s32.f32 %v1021_v3 }
 0x483   : > { %v7618_v34 = vpop.f32.mrf.mxu0  ;;  %v1526_v49 = vcvt.s32.f32 %v1014_v38 }
 0x484   : > { %v1534_v20 = vcvt.s32.f32 %v1022_v21  ;;  %v1853_v16 = vpack.c.bf16 %v1533_v61, %v1525_v51  ;;  %v6105_v61 = vld [vmem:[%s7457_s14 + $0x88] sm:$0xff] }
 0x485   : > { %v5042_v45 = vpop.f32.mrf.mxu1 }
 0x486   : > { %v5043_v9 = vadd.f32 %v5042_v45, %v7576_v7  ;;  %v4388_v7 = vmul.f32 %v4175_v50, %v3689_v29  ;;  %v4185_v29 = vpop.permute.xlu1 %4184  ;;  %v6476_v50 = vld [vmem:[%s6612_s10 + $0x308] sm:$0xff] }
 0x487   : > { %v3521_v1 = vpop.f32.mrf.mxu2 }
 0x488   : > { %v3690_v41 = vpop.f32.mrf.mxu3  ;;  %v5193_v39 = vadd.f32 %v7545_v14, %v5043_v9  ;;  %v3522_v8 = vadd.f32 %v3521_v1, %v7166_v25 }
 0x48a   : > { %v5257_v55 = vmax.f32 %v5193_v39, 0.0  ;;  %v3691_v52 = vadd.f32 %v3690_v41, %v3522_v8  ;;  %v4190_v39 = vpop.permute.xlu2 %4189 }
 0x48b   : > { %v7625_v18 = vpop.f32.mrf.mxu0 }
 0x48c   : > { %v6151_v32 = vpack.c.bf16 %v5257_v55, %v5256_v48  ;;  %v4389_v46 = vmul.f32 %v4180_v37, %v3691_v52  ;;  %3563 = vmatmul.bf16.gmra.mxu2 %v1845_v6 }
 0x48d   : > { %3732 = vmatmul.bf16.gmra.mxu3 %v1846_v30  ;;  %v5045_v42 = vpop.f32.mrf.mxu1 }
 0x48e   : > { %6291 = vst [vmem:[%s7560_s19 + $0x20] sm:$0xff] %v6151_v32   ;;  %v4439_v28 = vpack.c.bf16 %v4389_v46, %v4388_v7  ;;  %v5046_v36 = vadd.f32 %v5045_v42, %v7583_v47  ;;  %v1029_v7 = vunpack.c.2.s8 %v6476_v50  ;;  %v6477_v32 = vld [vmem:[%s6612_s10 + $0x318] sm:$0xff]  ;;  %v1030_v42 = vunpack.c.3.s8 %v6476_v50 }
 0x48f   : > { %v3524_v25 = vpop.f32.mrf.mxu2  ;;  %4882 = vmatmul.bf16.gmra.mxu0 %v6104_v5  ;;  %v1037_v46 = vunpack.c.2.s8 %v6477_v32 }
 0x490   : > { %v3693_v19 = vpop.f32.mrf.mxu3  ;;  %5084 = vmatmul.bf16.gmra.mxu1 %v4439_v28  ;;  %v3525_v56 = vadd.f32 %v3524_v25, %v7178_v40  ;;  %v5194_v17 = vadd.f32 %v7545_v14, %v5046_v36  ;;  %v1854_v40 = vpack.c.bf16 %v1534_v20, %v1526_v49  ;;  %v1038_v28 = vunpack.c.3.s8 %v6477_v32 }
 0x491   : > { %v1549_v60 = vcvt.s32.f32 %v1037_v46  ;;  %v1542_v15 = vcvt.s32.f32 %v1030_v42 }
 0x492   : > { %v3694_v9 = vadd.f32 %v3693_v19, %v3525_v56  ;;  %v5258_v1 = vmax.f32 %v5194_v17, 0.0  ;;  %v1541_v19 = vcvt.s32.f32 %v1029_v7  ;;  %v1550_v3 = vcvt.s32.f32 %v1038_v28 }
 0x493   : > { %v7632_v55 = vpop.f32.mrf.mxu0 }
 0x494   : > { %v1861_v20 = vpack.c.bf16 %v1549_v60, %v1541_v19 }
 0x495   : > { %v5047_v59 = vpop.f32.mrf.mxu1 }
 0x496   : > { %v5048_v62 = vadd.f32 %v5047_v59, %v7590_v26  ;;  %v4390_v26 = vmul.f32 %v4185_v29, %v3694_v9 }
 0x497   : > { %v3526_v43 = vpop.f32.mrf.mxu2 }
 0x498   : > { %v3695_v45 = vpop.f32.mrf.mxu3  ;;  %v5195_v47 = vadd.f32 %v7545_v14, %v5048_v62  ;;  %v3527_v58 = vadd.f32 %v3526_v43, %v7183_v63 }
 0x49a   : > { %v5259_v41 = vmax.f32 %v5195_v47, 0.0  ;;  %v3696_v6 = vadd.f32 %v3695_v45, %v3527_v58  ;;  %v4195_v45 = vpop.permute.xlu0 %4194 }
 0x49b   : > { %v7639_v21 = vpop.f32.mrf.mxu0 }
 0x49c   : > { %v6156_v8 = vpack.c.bf16 %v5259_v41, %v5258_v1  ;;  %v4391_v30 = vmul.f32 %v4190_v39, %v3696_v6  ;;  %3568 = vmatmul.bf16.gmra.mxu2 %v1853_v16  ;;  %v4200_v16 = vpop.permute.xlu1 %4199  ;;  %v6478_v6 = vld [vmem:[%s6612_s10 + $0x328] sm:$0xff]  ;;  %v6479_v39 = vld [vmem:[%s6612_s10 + $0x338] sm:$0xff] }
 0x49d   : > { %3737 = vmatmul.bf16.gmra.mxu3 %v1854_v40  ;;  %v5050_v48 = vpop.f32.mrf.mxu1  ;;  %v1045_v29 = vunpack.c.2.s8 %v6478_v6 }
 0x49e   : > { %6292 = vst [vmem:[%s7560_s19 + $0x28] sm:$0xff] %v6156_v8   ;;  %v4440_v52 = vpack.c.bf16 %v4391_v30, %v4390_v26  ;;  %v5051_v25 = vadd.f32 %v5050_v48, %v7597_v0  ;;  %v1053_v26 = vunpack.c.2.s8 %v6479_v39  ;;  %v1046_v8 = vunpack.c.3.s8 %v6478_v6 }
 0x49f   : > { %v3529_v63 = vpop.f32.mrf.mxu2  ;;  %4887 = vmatmul.bf16.gmra.mxu0 %v6105_v61  ;;  %v1054_v30 = vunpack.c.3.s8 %v6479_v39 }
 0x4a0   : > { %v3698_v37 = vpop.f32.mrf.mxu3  ;;  %5089 = vmatmul.bf16.gmra.mxu1 %v4440_v52  ;;  %v3530_v2 = vadd.f32 %v3529_v63, %v7198_v35  ;;  %v5196_v36 = vadd.f32 %v7545_v14, %v5051_v25  ;;  %v1862_v35 = vpack.c.bf16 %v1550_v3, %v1542_v15  ;;  %v1557_v52 = vcvt.s32.f32 %v1045_v29  ;;  %v6106_v25 = vld [vmem:[%s7457_s14 + $0x90] sm:$0xff]  ;;  %v8017_v3 = vld [vmem:[#allocation31_spill] sm:$0xff] }
 0x4a1   : > { %v1565_v63 = vcvt.s32.f32 %v1053_v26  ;;  %v1558_v50 = vcvt.s32.f32 %v1046_v8  ;;  %v1566_v7 = vcvt.s32.f32 %v1054_v30 }
 0x4a2   : > { %v3699_v59 = vadd.f32 %v3698_v37, %v3530_v2  ;;  %v5260_v62 = vmax.f32 %v5196_v36, 0.0 }
 0x4a3   : > { %v7646_v40 = vpop.f32.mrf.mxu0  ;;  %v1869_v2 = vpack.c.bf16 %v1565_v63, %v1557_v52 }
 0x4a5   : > { %v5052_v38 = vpop.f32.mrf.mxu1 }
 0x4a6   : > { %v5053_v51 = vadd.f32 %v5052_v38, %v7604_v10  ;;  %v4392_v10 = vmul.f32 %v4195_v45, %v3699_v59 }
 0x4a7   : > { %v3531_v56 = vpop.f32.mrf.mxu2 }
 0x4a8   : > { %v3700_v49 = vpop.f32.mrf.mxu3  ;;  %v5197_v0 = vadd.f32 %v7545_v14, %v5053_v51  ;;  %v3532_v17 = vadd.f32 %v3531_v56, %v7203_v44  ;;  %v4210_v56 = vpop.permute.xlu0 %4209 }
 0x4aa   : > { %v5261_v5 = vmax.f32 %v5197_v0, 0.0  ;;  %v3701_v43 = vadd.f32 %v3700_v49, %v3532_v17  ;;  %v4205_v49 = vpop.permute.xlu2 %4204 }
 0x4ab   : > { %v7653_v46 = vpop.f32.mrf.mxu0 }
 0x4ac   : > { %v6161_v9 = vpack.c.bf16 %v5261_v5, %v5260_v62  ;;  %v4393_v47 = vmul.f32 %v4200_v16, %v3701_v43  ;;  %3573 = vmatmul.bf16.gmra.mxu2 %v1861_v20  ;;  %v6480_v43 = vld [vmem:[%s6612_s10 + $0x348] sm:$0xff]  ;;  %v6481_v16 = vld [vmem:[%s6612_s10 + $0x358] sm:$0xff] }
 0x4ad   : > { %3742 = vmatmul.bf16.gmra.mxu3 %v1862_v35  ;;  %v5055_v58 = vpop.f32.mrf.mxu1  ;;  %v1061_v45 = vunpack.c.2.s8 %v6480_v43 }
 0x4ae   : > { %6293 = vst [vmem:[%s7560_s19 + $0x30] sm:$0xff] %v6161_v9   ;;  %v4441_v1 = vpack.c.bf16 %v4393_v47, %v4392_v10  ;;  %v5056_v48 = vadd.f32 %v5055_v58, %v7611_v31  ;;  %v1069_v10 = vunpack.c.2.s8 %v6481_v16  ;;  %v1062_v9 = vunpack.c.3.s8 %v6480_v43 }
 0x4af   : > { %v3534_v44 = vpop.f32.mrf.mxu2  ;;  %4892 = vmatmul.bf16.gmra.mxu0 %v6106_v25  ;;  %v1070_v47 = vunpack.c.3.s8 %v6481_v16 }
 0x4b0   : > { %v3703_v41 = vpop.f32.mrf.mxu3  ;;  %5094 = vmatmul.bf16.gmra.mxu1 %v4441_v1  ;;  %v3535_v37 = vadd.f32 %v3534_v44, %v7212_v57  ;;  %v5198_v42 = vadd.f32 %v7545_v14, %v5056_v48  ;;  %v1870_v57 = vpack.c.bf16 %v1566_v7, %v1558_v50  ;;  %v1573_v1 = vcvt.s32.f32 %v1061_v45  ;;  %v6107_v48 = vld [vmem:[%s7457_s14 + $0x98] sm:$0xff]  ;;  %v8018_v7 = vld [vmem:[#allocation32_spill] sm:$0xff] }
 0x4b1   : > { %v1581_v44 = vcvt.s32.f32 %v1069_v10  ;;  %v1574_v6 = vcvt.s32.f32 %v1062_v9  ;;  %v1582_v29 = vcvt.s32.f32 %v1070_v47  ;;  %v6108_v47 = vld [vmem:[%s7457_s14 + $0xa0] sm:$0xff] }
 0x4b2   : > { %v3704_v15 = vadd.f32 %v3703_v41, %v3535_v37  ;;  %v5262_v36 = vmax.f32 %v5198_v42, 0.0 }
 0x4b3   : > { %v7660_v17 = vpop.f32.mrf.mxu0  ;;  %v1877_v37 = vpack.c.bf16 %v1581_v44, %v1573_v1 }
 0x4b5   : > { %v5057_v32 = vpop.f32.mrf.mxu1 }
 0x4b6   : > { %v5058_v28 = vadd.f32 %v5057_v32, %v7618_v34  ;;  %v4394_v34 = vmul.f32 %v4205_v49, %v3704_v15 }
 0x4b7   : > { %v3536_v19 = vpop.f32.mrf.mxu2 }
 0x4b8   : > { %v3705_v60 = vpop.f32.mrf.mxu3  ;;  %v5199_v31 = vadd.f32 %v7545_v14, %v5058_v28  ;;  %v3537_v38 = vadd.f32 %v3536_v19, %v8017_v3  ;;  %v4215_v19 = vpop.permute.xlu1 %4214 }
 0x4ba   : > { %v5263_v51 = vmax.f32 %v5199_v31, 0.0  ;;  %v3706_v61 = vadd.f32 %v3705_v60, %v3537_v38  ;;  %v4220_v60 = vpop.permute.xlu2 %4219 }
 0x4bc   : > { %v6166_v20 = vpack.c.bf16 %v5263_v51, %v5262_v36  ;;  %v4395_v59 = vmul.f32 %v4210_v56, %v3706_v61  ;;  %3578 = vmatmul.bf16.gmra.mxu2 %v1869_v2  ;;  %v7667_v26 = vpop.f32.mrf.mxu0  ;;  %v6482_v51 = vld [vmem:[%s6612_s10 + $0x368] sm:$0xff]  ;;  %v6483_v56 = vld [vmem:[%s6612_s10 + $0x378] sm:$0xff] }
 0x4bd   : > { %3747 = vmatmul.bf16.gmra.mxu3 %v1870_v57  ;;  %v5060_v0 = vpop.f32.mrf.mxu1  ;;  %v1077_v61 = vunpack.c.2.s8 %v6482_v51  ;;  %v1085_v49 = vunpack.c.2.s8 %v6483_v56 }
 0x4be   : > { %6294 = vst [vmem:[%s7560_s19 + $0x38] sm:$0xff] %v6166_v20   ;;  %v4442_v35 = vpack.c.bf16 %v4395_v59, %v4394_v34  ;;  %v5061_v58 = vadd.f32 %v5060_v0, %v7625_v18  ;;  %v1078_v34 = vunpack.c.3.s8 %v6482_v51  ;;  %v1086_v20 = vunpack.c.3.s8 %v6483_v56 }
 0x4bf   : > { %v3539_v62 = vpop.f32.mrf.mxu2  ;;  %4897 = vmatmul.bf16.gmra.mxu0 %v6107_v48  ;;  %v1589_v0 = vcvt.s32.f32 %v1077_v61  ;;  %v4225_v48 = vpop.permute.xlu0 %4224 }
 0x4c0   : > { %v3708_v5 = vpop.f32.mrf.mxu3  ;;  %5099 = vmatmul.bf16.gmra.mxu1 %v4442_v35  ;;  %v3540_v41 = vadd.f32 %v3539_v62, %v7228_v4  ;;  %v5200_v8 = vadd.f32 %v7545_v14, %v5061_v58  ;;  %v1878_v4 = vpack.c.bf16 %v1582_v29, %v1574_v6  ;;  %v1597_v35 = vcvt.s32.f32 %v1085_v49  ;;  %v8019_v6 = vld [vmem:[#allocation3_spill] sm:$0xff] }
 0x4c1   : > { %v1598_v43 = vcvt.s32.f32 %v1086_v20 }
 0x4c2   : > { %v3709_v50 = vadd.f32 %v3708_v5, %v3540_v41  ;;  %v5264_v42 = vmax.f32 %v5200_v8, 0.0  ;;  %v1590_v5 = vcvt.s32.f32 %v1078_v34  ;;  %v1885_v44 = vpack.c.bf16 %v1597_v35, %v1589_v0  ;;  %v6109_v34 = vld [vmem:[%s7457_s14 + $0xa8] sm:$0xff] }
 0x4c4   : > { %v7674_v3 = vpop.f32.mrf.mxu0 }
 0x4c5   : > { %v5062_v39 = vpop.f32.mrf.mxu1 }
 0x4c6   : > { %v5063_v30 = vadd.f32 %v5062_v39, %v7632_v55  ;;  %v4396_v55 = vmul.f32 %v4215_v19, %v3709_v50 }
 0x4c7   : > { %v3541_v52 = vpop.f32.mrf.mxu2 }
 0x4c8   : > { %v3710_v63 = vpop.f32.mrf.mxu3  ;;  %v5201_v18 = vadd.f32 %v7545_v14, %v5063_v30  ;;  %v3542_v32 = vadd.f32 %v3541_v52, %v8018_v7  ;;  %v4230_v52 = vpop.permute.xlu1 %4229 }
 0x4ca   : > { %v5265_v28 = vmax.f32 %v5201_v18, 0.0  ;;  %v3711_v25 = vadd.f32 %v3710_v63, %v3542_v32 }
 0x4cc   : > { %v6171_v2 = vpack.c.bf16 %v5265_v28, %v5264_v42  ;;  %v4397_v15 = vmul.f32 %v4220_v60, %v3711_v25  ;;  %3583 = vmatmul.bf16.gmra.mxu2 %v1877_v37  ;;  %v7681_v16 = vpop.f32.mrf.mxu0  ;;  %v6484_v42 = vld [vmem:[%s6612_s10 + $0x388] sm:$0xff]  ;;  %v6485_v25 = vld [vmem:[%s6612_s10 + $0x398] sm:$0xff] }
 0x4cd   : > { %3752 = vmatmul.bf16.gmra.mxu3 %v1878_v4  ;;  %v5065_v31 = vpop.f32.mrf.mxu1  ;;  %v1093_v28 = vunpack.c.2.s8 %v6484_v42  ;;  %v1101_v19 = vunpack.c.2.s8 %v6485_v25  ;;  %v1094_v60 = vunpack.c.3.s8 %v6484_v42 }
 0x4ce   : > { %6295 = vst [vmem:[%s7560_s19 + $0x40] sm:$0xff] %v6171_v2   ;;  %v4443_v38 = vpack.c.bf16 %v4397_v15, %v4396_v55  ;;  %v5066_v59 = vadd.f32 %v5065_v31, %v7639_v21  ;;  %v1102_v55 = vunpack.c.3.s8 %v6485_v25 }
 0x4cf   : > { %v3544_v57 = vpop.f32.mrf.mxu2  ;;  %4902 = vmatmul.bf16.gmra.mxu0 %v6108_v47  ;;  %v1605_v15 = vcvt.s32.f32 %v1093_v28  ;;  %v1613_v31 = vcvt.s32.f32 %v1101_v19  ;;  %v4235_v47 = vpop.permute.xlu2 %4234 }
 0x4d0   : > { %v3713_v36 = vpop.f32.mrf.mxu3  ;;  %5104 = vmatmul.bf16.gmra.mxu1 %v4443_v38  ;;  %v3545_v62 = vadd.f32 %v3544_v57, %v7250_v23  ;;  %v5202_v10 = vadd.f32 %v7545_v14, %v5066_v59  ;;  %v1886_v23 = vpack.c.bf16 %v1598_v43, %v1590_v5  ;;  %v1606_v57 = vcvt.s32.f32 %v1094_v60 }
 0x4d1   : > { %v1893_v0 = vpack.c.bf16 %v1613_v31, %v1605_v15 }
 0x4d2   : > { %v3714_v41 = vadd.f32 %v3713_v36, %v3545_v62  ;;  %v5266_v39 = vmax.f32 %v5202_v10, 0.0  ;;  %v1614_v36 = vcvt.s32.f32 %v1102_v55  ;;  %v8020_v62 = vld [vmem:[#allocation4_spill] sm:$0xff]  ;;  %v8024_v55 = vld [vmem:[#allocation6_spill] sm:$0xff] }
 0x4d4   : > { %v7688_v18 = vpop.f32.mrf.mxu0 }
 0x4d5   : > { %v5067_v45 = vpop.f32.mrf.mxu1 }
 0x4d6   : > { %v5068_v9 = vadd.f32 %v5067_v45, %v7646_v40  ;;  %v4398_v40 = vmul.f32 %v4225_v48, %v3714_v41 }
 0x4d7   : > { %v3546_v58 = vpop.f32.mrf.mxu2 }
 0x4d8   : > { %v3715_v1 = vpop.f32.mrf.mxu3  ;;  %v5203_v21 = vadd.f32 %v7545_v14, %v5068_v9  ;;  %v3547_v29 = vadd.f32 %v3546_v58, %v8019_v6  ;;  %v4240_v9 = vpop.permute.xlu0 %4239 }
 0x4da   : > { %v5267_v8 = vmax.f32 %v5203_v21, 0.0  ;;  %v3716_v30 = vadd.f32 %v3715_v1, %v3547_v29 }
 0x4dc   : > { %v6176_v63 = vpack.c.bf16 %v5267_v8, %v5266_v39  ;;  %v4399_v37 = vmul.f32 %v4230_v52, %v3716_v30  ;;  %3588 = vmatmul.bf16.gmra.mxu2 %v1885_v44  ;;  %v7695_v61 = vpop.f32.mrf.mxu0  ;;  %v6487_v8 = vld [vmem:[%s6612_s10 + $0x3b8] sm:$0xff] }
 0x4dd   : > { %3757 = vmatmul.bf16.gmra.mxu3 %v1886_v23  ;;  %v5070_v50 = vpop.f32.mrf.mxu1  ;;  %v6486_v23 = vld [vmem:[%s6612_s10 + $0x3a8] sm:$0xff]  ;;  %v1117_v30 = vunpack.c.2.s8 %v6487_v8  ;;  %v1118_v52 = vunpack.c.3.s8 %v6487_v8 }
 0x4de   : > { %6296 = vst [vmem:[%s7560_s19 + $0x48] sm:$0xff] %v6176_v63   ;;  %v4444_v7 = vpack.c.bf16 %v4399_v37, %v4398_v40  ;;  %v5071_v2 = vadd.f32 %v5070_v50, %v7653_v46  ;;  %v1109_v39 = vunpack.c.2.s8 %v6486_v23  ;;  %v1110_v48 = vunpack.c.3.s8 %v6486_v23  ;;  %v8021_v40 = vld [vmem:[#allocation8_spill] sm:$0xff]  ;;  %v8022_v63 = vld [vmem:[#allocation5_spill] sm:$0xff] }
 0x4df   : > { %v3549_v32 = vpop.f32.mrf.mxu2  ;;  %4907 = vmatmul.bf16.gmra.mxu0 %v6109_v34  ;;  %v3219_v37 = vadd.f32 %v8022_v63, %v8021_v40  ;;  %v1630_v25 = vcvt.s32.f32 %v1118_v52 }
 0x4e0   : > { %v3718_v4 = vpop.f32.mrf.mxu3  ;;  %5109 = vmatmul.bf16.gmra.mxu1 %v4444_v7  ;;  %v3550_v38 = vadd.f32 %v3549_v32, %v7272_v33  ;;  %v5204_v56 = vadd.f32 %v7545_v14, %v5071_v2  ;;  %v1894_v33 = vpack.c.bf16 %v1614_v36, %v1606_v57  ;;  %v1621_v7 = vcvt.s32.f32 %v1109_v39 }
 0x4e1   : > { %v1629_v32 = vcvt.s32.f32 %v1117_v30  ;;  %v1622_v28 = vcvt.s32.f32 %v1110_v48  ;;  %v3388_v2 = vadd.f32 %v8024_v55, %v3219_v37  ;;  %v8027_v48 = vld [vmem:[#allocation34_spill] sm:$0xff] }
 0x4e2   : > { %v3719_v35 = vadd.f32 %v3718_v4, %v3550_v38  ;;  %v5268_v43 = vmax.f32 %v5204_v56, 0.0  ;;  %v8023_v4 = vld [vmem:[#allocation7_spill] sm:$0xff]  ;;  %v6110_v38 = vld [vmem:[%s7457_s14 + $0xb0] sm:$0xff] }
 0x4e3   : > { %v1902_v34 = vpack.c.bf16 %v1630_v25, %v1622_v28  ;;  %v6111_v28 = vld [vmem:[%s7457_s14 + $0xb8] sm:$0xff] }
 0x4e4   : > { %v7702_v41 = vpop.f32.mrf.mxu0 }
 0x4e5   : > { %v5072_v51 = vpop.f32.mrf.mxu1 }
 0x4e6   : > { %v5073_v49 = vadd.f32 %v5072_v51, %v7660_v17  ;;  %v4400_v17 = vmul.f32 %v4235_v47, %v3719_v35  ;;  %v1901_v51 = vpack.c.bf16 %v1629_v32, %v1621_v7  ;;  %v4245_v35 = vpop.permute.xlu1 %4244  ;;  %v6488_v47 = vld [vmem:[%s6612_s10 + $0x3c8] sm:$0xff]  ;;  %v8028_v7 = vld [vmem:[#allocation33_spill] sm:$0xff] }
 0x4e7   : > { %v3551_v20 = vpop.f32.mrf.mxu2 }
 0x4e8   : > { %v3720_v59 = vpop.f32.mrf.mxu3  ;;  %v5205_v46 = vadd.f32 %v7545_v14, %v5073_v49  ;;  %v3552_v5 = vadd.f32 %v3551_v20, %v8020_v62 }
 0x4ea   : > { %v5269_v45 = vmax.f32 %v5205_v46, 0.0  ;;  %v3721_v10 = vadd.f32 %v3720_v59, %v3552_v5  ;;  %v4250_v46 = vpop.permute.xlu2 %4249 }
 0x4ec   : > { %v6181_v58 = vpack.c.bf16 %v5269_v45, %v5268_v43  ;;  %v4401_v1 = vmul.f32 %v4240_v9, %v3721_v10  ;;  %3593 = vmatmul.bf16.gmra.mxu2 %v1893_v0  ;;  %v7711_v60 = vpop.f32.mrf.mxu0 }
 0x4ed   : > { %3762 = vmatmul.bf16.gmra.mxu3 %v1894_v33  ;;  %v5075_v44 = vpop.f32.mrf.mxu1 }
 0x4ee   : > { %6297 = vst [vmem:[%s7560_s19 + $0x50] sm:$0xff] %v6181_v58   ;;  %v4445_v21 = vpack.c.bf16 %v4401_v1, %v4400_v17  ;;  %v5076_v50 = vadd.f32 %v5075_v44, %v7667_v26  ;;  %v1125_v17 = vunpack.c.2.s8 %v6488_v47  ;;  %v6489_v58 = vld [vmem:[%s6612_s10 + $0x3d8] sm:$0xff]  ;;  %v1126_v44 = vunpack.c.3.s8 %v6488_v47 }
 0x4ef   : > { %v3554_v6 = vpop.f32.mrf.mxu2  ;;  %4912 = vmatmul.bf16.gmra.mxu0 %v6110_v38  ;;  %v1133_v1 = vunpack.c.2.s8 %v6489_v58 }
 0x4f0   : > { %v3723_v29 = vpop.f32.mrf.mxu3  ;;  %5114 = vmatmul.bf16.gmra.mxu1 %v4445_v21  ;;  %v3555_v42 = vadd.f32 %v3554_v6, %v8023_v4  ;;  %v5206_v15 = vadd.f32 %v7545_v14, %v5076_v50  ;;  %v1134_v21 = vunpack.c.3.s8 %v6489_v58  ;;  %v8025_v6 = vld [vmem:[#allocation10_spill] sm:$0xff]  ;;  %v1637_v8 = vcvt.s32.f32 %v1125_v17 }
 0x4f1   : > { %v1645_v30 = vcvt.s32.f32 %v1133_v1  ;;  %v1638_v40 = vcvt.s32.f32 %v1126_v44 }
 0x4f2   : > { %v3724_v26 = vadd.f32 %v3723_v29, %v3555_v42  ;;  %v5270_v20 = vmax.f32 %v5206_v15, 0.0  ;;  %v8026_v29 = vld [vmem:[#allocation9_spill] sm:$0xff]  ;;  %v1646_v63 = vcvt.s32.f32 %v1134_v21 }
 0x4f3   : > { %v3224_v23 = vadd.f32 %v8026_v29, %v8025_v6  ;;  %v1909_v55 = vpack.c.bf16 %v1645_v30, %v1637_v8  ;;  %v8030_v29 = vld [vmem:[#allocation35_spill] sm:$0xff] }
 0x4f4   : > { %v4402_v62 = vmul.f32 %v4245_v35, %v3724_v26  ;;  %v7718_v43 = vpop.f32.mrf.mxu0  ;;  %v4260_v26 = vpop.permute.xlu1 %4259  ;;  %v6490_v35 = vld [vmem:[%s6612_s10 + $0x3e8] sm:$0xff]  ;;  %v6112_v8 = vld [vmem:[%s7457_s14 + $0xc0] sm:$0xff] }
 0x4f5   : > { %v5077_v19 = vpop.f32.mrf.mxu1  ;;  %v3393_v32 = vadd.f32 %v8028_v7, %v3224_v23 }
 0x4f6   : > { %v5078_v31 = vadd.f32 %v5077_v19, %v7674_v3 }
 0x4f7   : > { %v3556_v57 = vpop.f32.mrf.mxu2 }
 0x4f8   : > { %v3725_v36 = vpop.f32.mrf.mxu3  ;;  %v5207_v56 = vadd.f32 %v7545_v14, %v5078_v31  ;;  %v3557_v49 = vadd.f32 %v3556_v57, %v3388_v2  ;;  %v1910_v31 = vpack.c.bf16 %v1646_v63, %v1638_v40 }
 0x4fa   : > { %v5271_v59 = vmax.f32 %v5207_v56, 0.0  ;;  %v3726_v0 = vadd.f32 %v3725_v36, %v3557_v49 }
 0x4fc   : > { %v6186_v3 = vpack.c.bf16 %v5271_v59, %v5270_v20  ;;  %v4403_v5 = vmul.f32 %v4250_v46, %v3726_v0  ;;  %3598 = vmatmul.bf16.gmra.mxu2 %v1901_v51  ;;  %v7727_v50 = vpop.f32.mrf.mxu0  ;;  %v4255_v51 = vpop.permute.xlu0 %4254  ;;  %v1141_v46 = vunpack.c.2.s8 %v6490_v35 }
 0x4fd   : > { %3767 = vmatmul.bf16.gmra.mxu3 %v1902_v34  ;;  %v5080_v33 = vpop.f32.mrf.mxu1 }
 0x4fe   : > { %6298 = vst [vmem:[%s7560_s19 + $0x58] sm:$0xff] %v6186_v3   ;;  %v4446_v45 = vpack.c.bf16 %v4403_v5, %v4402_v62  ;;  %v5081_v39 = vadd.f32 %v5080_v33, %v7681_v16  ;;  %v6491_v62 = vld [vmem:[%s6612_s10 + $0x3f8] sm:$0xff]  ;;  %v1142_v5 = vunpack.c.3.s8 %v6490_v35  ;;  %v1653_v47 = vcvt.s32.f32 %v1141_v46 }
 0x4ff   : > { %v3559_v10 = vpop.f32.mrf.mxu2  ;;  %4917 = vmatmul.bf16.gmra.mxu0 %v6111_v28  ;;  %v1149_v3 = vunpack.c.2.s8 %v6491_v62  ;;  %v1150_v33 = vunpack.c.3.s8 %v6491_v62  ;;  %v4265_v28 = vpop.permute.xlu2 %4264 }
 0x500   : > { %v3728_v9 = vpop.f32.mrf.mxu3  ;;  %5119 = vmatmul.bf16.gmra.mxu1 %v4446_v45  ;;  %v3560_v52 = vadd.f32 %v3559_v10, %v8027_v48  ;;  %v5208_v4 = vadd.f32 %v7545_v14, %v5081_v39  ;;  %v8029_v45 = vld [vmem:[#allocation11_spill] sm:$0xff]  ;;  %v1654_v1 = vcvt.s32.f32 %v1142_v5  ;;  %v4275_v5 = vpop.permute.xlu1 %4274 }
 0x501   : > { %v3229_v10 = vadd.f32 %v8029_v45, %v7338_v11  ;;  %v1661_v17 = vcvt.s32.f32 %v1149_v3  ;;  %v1662_v44 = vcvt.s32.f32 %v1150_v33  ;;  %v7749_v39 = vld [vmem:[%s7915_s6] ss:$0 sm:$0xff] }
 0x502   : > { %v3729_v16 = vadd.f32 %v3728_v9, %v3560_v52  ;;  %v5272_v38 = vmax.f32 %v5208_v4, 0.0 }
 0x503   : > { %v3398_v23 = vadd.f32 %v8030_v29, %v3229_v10 }
 0x504   : > { %v4404_v56 = vmul.f32 %v4255_v51, %v3729_v16  ;;  %v7734_v20 = vpop.f32.mrf.mxu0 }
 0x505   : > { %v5082_v37 = vpop.f32.mrf.mxu1 }
 0x506   : > { %v5083_v42 = vadd.f32 %v5082_v37, %v7688_v18  ;;  %v1918_v37 = vpack.c.bf16 %v1662_v44, %v1654_v1  ;;  %v8033_v44 = vld [vmem:[#allocation16_spill] sm:$0xff] }
 0x507   : > { %v3561_v25 = vpop.f32.mrf.mxu2  ;;  %v4280_v33 = vpop.permute.xlu2 %4279 }
 0x508   : > { %v3730_v19 = vpop.f32.mrf.mxu3  ;;  %v5209_v2 = vadd.f32 %v7545_v14, %v5083_v42  ;;  %v3562_v15 = vadd.f32 %v3561_v25, %v3393_v32  ;;  %v4270_v42 = vpop.permute.xlu0 %4269 }
 0x50a   : > { %v5273_v57 = vmax.f32 %v5209_v2, 0.0  ;;  %v3731_v36 = vadd.f32 %v3730_v19, %v3562_v15 }
 0x50c   : > { %v6191_v18 = vpack.c.bf16 %v5273_v57, %v5272_v38  ;;  %v4405_v49 = vmul.f32 %v4260_v26, %v3731_v36  ;;  %3603 = vmatmul.bf16.gmra.mxu2 %v1909_v55  ;;  %v7743_v6 = vpop.f32.mrf.mxu0  ;;  %v3234_v38 = vadd.f32 %v7352_v12, %v7361_v22  ;;  %v8031_v36 = vld [vmem:[#allocation13_spill] sm:$0xff] }
 0x50d   : > { %3772 = vmatmul.bf16.gmra.mxu3 %v1910_v31  ;;  %v5085_v34 = vpop.f32.mrf.mxu1 }
 0x50e   : > { %6299 = vst [vmem:[%s7560_s19 + $0x60] sm:$0xff] %v6191_v18   ;;  %v4447_v14 = vpack.c.bf16 %v4405_v49, %v4404_v56  ;;  %v5086_v9 = vadd.f32 %v5085_v34, %v7695_v61  ;;  %v8032_v18 = vld [vmem:[#allocation12_spill] sm:$0xff] }
 0x50f   : > { %v3564_v59 = vpop.f32.mrf.mxu2  ;;  %4922 = vmatmul.bf16.gmra.mxu0 %v6112_v8  ;;  %v3403_v49 = vadd.f32 %v8032_v18, %v3234_v38 }
 0x510   : > { %v3733_v0 = vpop.f32.mrf.mxu3  ;;  %5124 = vmatmul.bf16.gmra.mxu1 %v4447_v14  ;;  %v3565_v58 = vadd.f32 %v3564_v59, %v7332_v53  ;;  %v5210_v11 = vadd.f32 %v7749_v39, %v5086_v9  ;;  %v1917_v53 = vpack.c.bf16 %v1661_v17, %v1653_v47  ;;  %v6113_v59 = vld [vmem:[%s7457_s14 + $0xc8] sm:$0xff] }
 0x512   : > { %v3734_v52 = vadd.f32 %v3733_v0, %v3565_v58  ;;  %v5274_v7 = vmax.f32 %v5210_v11, 0.0  ;;  %v8035_v11 = vld [vmem:[#allocation36_spill] sm:$0xff] }
 0x514   : > { %v4406_v25 = vmul.f32 %v4265_v28, %v3734_v52  ;;  %v7755_v16 = vpop.f32.mrf.mxu0 }
 0x515   : > { %v5087_v21 = vpop.f32.mrf.mxu1 }
 0x516   : > { %v5088_v61 = vadd.f32 %v5087_v21, %v7702_v41  ;;  %v8034_v21 = vld [vmem:[#allocation14_spill] sm:$0xff] }
 0x517   : > { %v3566_v30 = vpop.f32.mrf.mxu2  ;;  %v3239_v29 = vadd.f32 %v8034_v21, %v8033_v44 }
 0x518   : > { %v3735_v48 = vpop.f32.mrf.mxu3  ;;  %v5211_v40 = vadd.f32 %v7749_v39, %v5088_v61  ;;  %v3567_v63 = vadd.f32 %v3566_v30, %v3398_v23 }
 0x51a   : > { %v5275_v32 = vmax.f32 %v5211_v40, 0.0  ;;  %v3736_v4 = vadd.f32 %v3735_v48, %v3567_v63  ;;  %v8036_v48 = vld [vmem:[#allocation15_spill] sm:$0xff]  ;;  %v6114_v63 = vld [vmem:[%s7457_s14 + $0xd0] sm:$0xff] }
 0x51c   : > { %v6196_v19 = vpack.c.bf16 %v5275_v32, %v5274_v7  ;;  %v4407_v55 = vmul.f32 %v4270_v42, %v3736_v4  ;;  %3608 = vmatmul.bf16.gmra.mxu2 %v1917_v53  ;;  %v7762_v56 = vpop.f32.mrf.mxu0  ;;  %v3408_v53 = vadd.f32 %v8036_v48, %v3239_v29 }
 0x51d   : > { %3777 = vmatmul.bf16.gmra.mxu3 %v1918_v37  ;;  %v5090_v41 = vpop.f32.mrf.mxu1 }
 0x51e   : > { %6300 = vst [vmem:[%s7560_s19 + $0x68] sm:$0xff] %v6196_v19   ;;  %v4448_v2 = vpack.c.bf16 %v4407_v55, %v4406_v25  ;;  %v5091_v57 = vadd.f32 %v5090_v41, %v7711_v60  ;;  %v4285_v19 = vpop.permute.xlu0 %4284  ;;  %v4290_v55 = vpop.permute.xlu1 %4289 }
 0x51f   : > { %v3569_v15 = vpop.f32.mrf.mxu2  ;;  %4927 = vmatmul.bf16.gmra.mxu0 %v6113_v59 }
 0x520   : > { %v3738_v31 = vpop.f32.mrf.mxu3  ;;  %5129 = vmatmul.bf16.gmra.mxu1 %v4448_v2  ;;  %v3570_v51 = vadd.f32 %v3569_v15, %v8031_v36  ;;  %v5212_v34 = vadd.f32 %v7749_v39, %v5091_v57 }
 0x522   : > { %v3739_v46 = vadd.f32 %v3738_v31, %v3570_v51  ;;  %v5276_v60 = vmax.f32 %v5212_v34, 0.0  ;;  %v8037_v51 = vld [vmem:[#allocation18_spill] sm:$0xff] }
 0x523   : > { %v8039_v34 = vld [vmem:[#allocation38_spill] sm:$0xff] }
 0x524   : > { %v4408_v45 = vmul.f32 %v4275_v5, %v3739_v46 }
 0x525   : > { %v5092_v26 = vpop.f32.mrf.mxu1 }
 0x526   : > { %v5093_v14 = vadd.f32 %v5092_v26, %v7718_v43  ;;  %v7769_v43 = vpop.f32.mrf.mxu0  ;;  %v8038_v26 = vld [vmem:[#allocation17_spill] sm:$0xff] }
 0x527   : > { %v3571_v0 = vpop.f32.mrf.mxu2  ;;  %v3244_v18 = vadd.f32 %v8038_v26, %v8037_v51 }
 0x528   : > { %v3740_v35 = vpop.f32.mrf.mxu3  ;;  %v5213_v12 = vadd.f32 %v7749_v39, %v5093_v14  ;;  %v3572_v22 = vadd.f32 %v3571_v0, %v3403_v49 }
 0x52a   : > { %v5277_v62 = vmax.f32 %v5213_v12, 0.0  ;;  %v3741_v3 = vadd.f32 %v3740_v35, %v3572_v22  ;;  %v8040_v35 = vld [vmem:[#allocation37_spill] sm:$0xff] }
 0x52b   : > { %v3413_v46 = vadd.f32 %v8040_v35, %v3244_v18 }
 0x52c   : > { %v6201_v10 = vpack.c.bf16 %v5277_v62, %v5276_v60  ;;  %v4409_v9 = vmul.f32 %v4280_v33, %v3741_v3  ;;  %v6115_v60 = vld [vmem:[%s7457_s14 + $0xd8] sm:$0xff] }
 0x52d   : > { %v5095_v47 = vpop.f32.mrf.mxu1 }
 0x52e   : > { %6301 = vst [vmem:[%s7560_s19 + $0x70] sm:$0xff] %v6201_v10   ;;  %v4449_v17 = vpack.c.bf16 %v4409_v9, %v4408_v45  ;;  %v5096_v23 = vadd.f32 %v5095_v47, %v7727_v50  ;;  %v7776_v30 = vpop.f32.mrf.mxu0  ;;  %v4300_v47 = vpop.permute.xlu0 %4299 }
 0x52f   : > { %v3574_v58 = vpop.f32.mrf.mxu2  ;;  %4932 = vmatmul.bf16.gmra.mxu0 %v6114_v63 }
 0x530   : > { %v3743_v1 = vpop.f32.mrf.mxu3  ;;  %5134 = vmatmul.bf16.gmra.mxu1 %v4449_v17  ;;  %v3575_v61 = vadd.f32 %v3574_v58, %v8035_v11  ;;  %v5214_v52 = vadd.f32 %v7749_v39, %v5096_v23  ;;  %v4295_v17 = vpop.permute.xlu2 %4294 }
 0x532   : > { %v3744_v32 = vadd.f32 %v3743_v1, %v3575_v61  ;;  %v5278_v50 = vmax.f32 %v5214_v52, 0.0  ;;  %v8041_v61 = vld [vmem:[#allocation20_spill] sm:$0xff] }
 0x533   : > { %v8043_v52 = vld [vmem:[#allocation40_spill] sm:$0xff] }
 0x534   : > { %v4410_v41 = vmul.f32 %v4285_v19, %v3744_v32 }
 0x535   : > { %v5097_v8 = vpop.f32.mrf.mxu1 }
 0x536   : > { %v5098_v40 = vadd.f32 %v5097_v8, %v7734_v20  ;;  %v7783_v20 = vpop.f32.mrf.mxu0  ;;  %v8042_v8 = vld [vmem:[#allocation19_spill] sm:$0xff] }
 0x537   : > { %v3576_v37 = vpop.f32.mrf.mxu2  ;;  %v3249_v48 = vadd.f32 %v8042_v8, %v8041_v61 }
 0x538   : > { %v3745_v7 = vpop.f32.mrf.mxu3  ;;  %v5215_v4 = vadd.f32 %v7749_v39, %v5098_v40  ;;  %v3577_v42 = vadd.f32 %v3576_v37, %v3408_v53 }
 0x53a   : > { %v5279_v28 = vmax.f32 %v5215_v4, 0.0  ;;  %v3746_v25 = vadd.f32 %v3745_v7, %v3577_v42  ;;  %v8044_v7 = vld [vmem:[#allocation39_spill] sm:$0xff] }
 0x53b   : > { %v3418_v32 = vadd.f32 %v8044_v7, %v3249_v48 }
 0x53c   : > { %v6206_v2 = vpack.c.bf16 %v5279_v28, %v5278_v50  ;;  %v4411_v15 = vmul.f32 %v4290_v55, %v3746_v25  ;;  %v6116_v50 = vld [vmem:[%s7457_s14 + $0xe0] sm:$0xff] }
 0x53d   : > { %v5100_v31 = vpop.f32.mrf.mxu1 }
 0x53e   : > { %6302 = vst [vmem:[%s7560_s19 + $0x78] sm:$0xff] %v6206_v2   ;;  %v4450_v38 = vpack.c.bf16 %v4411_v15, %v4410_v41  ;;  %v5101_v49 = vadd.f32 %v5100_v31, %v7743_v6  ;;  %v7790_v0 = vpop.f32.mrf.mxu0  ;;  %v4305_v31 = vpop.permute.xlu1 %4304 }
 0x53f   : > { %v3579_v57 = vpop.f32.mrf.mxu2  ;;  %4937 = vmatmul.bf16.gmra.mxu0 %v6115_v60 }
 0x540   : > { %v3748_v36 = vpop.f32.mrf.mxu3  ;;  %5139 = vmatmul.bf16.gmra.mxu1 %v4450_v38  ;;  %v3580_v14 = vadd.f32 %v3579_v57, %v8039_v34  ;;  %v5216_v12 = vadd.f32 %v7749_v39, %v5101_v49  ;;  %v4310_v38 = vpop.permute.xlu2 %4309 }
 0x542   : > { %v3749_v5 = vadd.f32 %v3748_v36, %v3580_v14  ;;  %v5280_v6 = vmax.f32 %v5216_v12, 0.0  ;;  %v8045_v14 = vld [vmem:[#allocation22_spill] sm:$0xff] }
 0x543   : > { %v8047_v12 = vld [vmem:[#allocation42_spill] sm:$0xff] }
 0x544   : > { %v4412_v58 = vmul.f32 %v4295_v17, %v3749_v5 }
 0x545   : > { %v5102_v59 = vpop.f32.mrf.mxu1 }
 0x546   : > { %v5103_v22 = vadd.f32 %v5102_v59, %v7755_v16  ;;  %v7797_v16 = vpop.f32.mrf.mxu0  ;;  %v8046_v59 = vld [vmem:[#allocation21_spill] sm:$0xff] }
 0x547   : > { %v3581_v62 = vpop.f32.mrf.mxu2  ;;  %v3254_v35 = vadd.f32 %v8046_v59, %v8045_v14 }
 0x548   : > { %v3750_v3 = vpop.f32.mrf.mxu3  ;;  %v5217_v33 = vadd.f32 %v7749_v39, %v5103_v22  ;;  %v3582_v45 = vadd.f32 %v3581_v62, %v3413_v46 }
 0x54a   : > { %v5281_v10 = vmax.f32 %v5217_v33, 0.0  ;;  %v3751_v9 = vadd.f32 %v3750_v3, %v3582_v45  ;;  %v8048_v3 = vld [vmem:[#allocation41_spill] sm:$0xff] }
 0x54b   : > { %v3423_v5 = vadd.f32 %v8048_v3, %v3254_v35  ;;  %v8054_v3 = vld [vmem:[#allocation45_spill] sm:$0xff] }
 0x54c   : > { %v6211_v1 = vpack.c.bf16 %v5281_v10, %v5280_v6  ;;  %v4413_v44 = vmul.f32 %v4300_v47, %v3751_v9  ;;  %v6117_v6 = vld [vmem:[%s7457_s14 + $0xe8] sm:$0xff] }
 0x54d   : > { %v5105_v21 = vpop.f32.mrf.mxu1 }
 0x54e   : > { %6303 = vst [vmem:[%s7560_s19 + $0x80] sm:$0xff] %v6211_v1   ;;  %v4451_v29 = vpack.c.bf16 %v4413_v44, %v4412_v58  ;;  %v5106_v53 = vadd.f32 %v5105_v21, %v7762_v56  ;;  %v7804_v37 = vpop.f32.mrf.mxu0  ;;  %v4315_v21 = vpop.permute.xlu0 %4314 }
 0x54f   : > { %v3584_v23 = vpop.f32.mrf.mxu2  ;;  %4942 = vmatmul.bf16.gmra.mxu0 %v6116_v50  ;;  %v8051_v50 = vld [vmem:[#allocation43_spill] sm:$0xff] }
 0x550   : > { %v3753_v11 = vpop.f32.mrf.mxu3  ;;  %5144 = vmatmul.bf16.gmra.mxu1 %v4451_v29  ;;  %v3585_v40 = vadd.f32 %v3584_v23, %v8043_v52  ;;  %v5218_v4 = vadd.f32 %v7749_v39, %v5106_v53  ;;  %v4320_v29 = vpop.permute.xlu1 %4319 }
 0x552   : > { %v3754_v19 = vadd.f32 %v3753_v11, %v3585_v40  ;;  %v5282_v56 = vmax.f32 %v5218_v4, 0.0  ;;  %v8049_v40 = vld [vmem:[#allocation23_spill] sm:$0xff] }
 0x554   : > { %v4414_v57 = vmul.f32 %v4305_v31, %v3754_v19 }
 0x555   : > { %v5107_v63 = vpop.f32.mrf.mxu1 }
 0x556   : > { %v5108_v42 = vadd.f32 %v5107_v63, %v7769_v43  ;;  %v7811_v43 = vpop.f32.mrf.mxu0  ;;  %v3259_v63 = vadd.f32 %v8049_v40, %v7434_v24 }
 0x557   : > { %v3586_v28 = vpop.f32.mrf.mxu2 }
 0x558   : > { %v3755_v25 = vpop.f32.mrf.mxu3  ;;  %v5219_v55 = vadd.f32 %v7749_v39, %v5108_v42  ;;  %v3587_v41 = vadd.f32 %v3586_v28, %v3418_v32  ;;  %v8050_v32 = vld [vmem:[#allocation44_spill] sm:$0xff]  ;;  %v3428_v28 = vadd.f32 %v8051_v50, %v3259_v63  ;;  %v8058_v50 = vld [vmem:[#allocation27_spill] sm:$0xff] }
 0x55a   : > { %v5283_v2 = vmax.f32 %v5219_v55, 0.0  ;;  %v3756_v15 = vadd.f32 %v3755_v25, %v3587_v41  ;;  %v6118_v41 = vld [vmem:[%s7457_s14 + $0xf0] sm:$0xff] }
 0x55c   : > { %v6216_v36 = vpack.c.bf16 %v5283_v2, %v5282_v56  ;;  %v4415_v51 = vmul.f32 %v4310_v38, %v3756_v15 }
 0x55d   : > { %v5110_v26 = vpop.f32.mrf.mxu1 }
 0x55e   : > { %6304 = vst [vmem:[%s7560_s19 + $0x88] sm:$0xff] %v6216_v36   ;;  %v4452_v18 = vpack.c.bf16 %v4415_v51, %v4414_v57  ;;  %v5111_v46 = vadd.f32 %v5110_v26, %v7776_v30  ;;  %v7818_v62 = vpop.f32.mrf.mxu0  ;;  %v4330_v36 = vpop.permute.xlu0 %4329 }
 0x55f   : > { %v3589_v49 = vpop.f32.mrf.mxu2  ;;  %4947 = vmatmul.bf16.gmra.mxu0 %v6117_v6  ;;  %v4325_v51 = vpop.permute.xlu2 %4324 }
 0x560   : > { %v3758_v34 = vpop.f32.mrf.mxu3  ;;  %5149 = vmatmul.bf16.gmra.mxu1 %v4452_v18  ;;  %v3590_v22 = vadd.f32 %v3589_v49, %v8047_v12  ;;  %v5220_v33 = vadd.f32 %v7749_v39, %v5111_v46  ;;  %v8052_v46 = vld [vmem:[#allocation26_spill] sm:$0xff]  ;;  %v8053_v12 = vld [vmem:[#allocation24_spill] sm:$0xff] }
 0x562   : > { %v3759_v47 = vadd.f32 %v3758_v34, %v3590_v22  ;;  %v5284_v30 = vmax.f32 %v5220_v33, 0.0  ;;  %v3264_v22 = vadd.f32 %v8053_v12, %v8052_v46 }
 0x564   : > { %v4416_v23 = vmul.f32 %v4315_v21, %v3759_v47  ;;  %v6119_v47 = vld [vmem:[%s7457_s14 + $0xf8] sm:$0xff] }
 0x565   : > { %v5112_v60 = vpop.f32.mrf.mxu1 }
 0x566   : > { %v5113_v45 = vadd.f32 %v5112_v60, %v7783_v20  ;;  %v7825_v20 = vpop.f32.mrf.mxu0 }
 0x567   : > { %v3591_v10 = vpop.f32.mrf.mxu2 }
 0x568   : > { %v3760_v9 = vpop.f32.mrf.mxu3  ;;  %v5221_v17 = vadd.f32 %v7749_v39, %v5113_v45  ;;  %v3592_v58 = vadd.f32 %v3591_v10, %v3423_v5  ;;  %v8055_v45 = vld [vmem:[#allocation25_spill] sm:$0xff] }
 0x569   : > { %v3433_v6 = vadd.f32 %v8055_v45, %v3264_v22  ;;  %v3274_v22 = vadd.f32 %v7508_v54, %v7476_v13 }
 0x56a   : > { %v5285_v1 = vmax.f32 %v5221_v17, 0.0  ;;  %v3761_v44 = vadd.f32 %v3760_v9, %v3592_v58 }
 0x56b   : > { %v3443_v45 = vadd.f32 %v7531_v27, %v3274_v22 }
 0x56c   : > { %v6221_v11 = vpack.c.bf16 %v5285_v1, %v5284_v30  ;;  %v4417_v61 = vmul.f32 %v4320_v29, %v3761_v44 }
 0x56d   : > { %v5115_v8 = vpop.f32.mrf.mxu1 }
 0x56e   : > { %6305 = vst [vmem:[%s7560_s19 + $0x90] sm:$0xff] %v6221_v11   ;;  %v4453_v48 = vpack.c.bf16 %v4417_v61, %v4416_v23  ;;  %v5116_v7 = vadd.f32 %v5115_v8, %v7790_v0  ;;  %v7835_v55 = vpop.f32.mrf.mxu0  ;;  %v4335_v11 = vpop.permute.xlu1 %4334 }
 0x56f   : > { %v3594_v53 = vpop.f32.mrf.mxu2  ;;  %4952 = vmatmul.bf16.gmra.mxu0 %v6118_v41  ;;  %v4340_v61 = vpop.permute.xlu2 %4339  ;;  %v8059_v41 = vld [vmem:[#allocation28_spill] sm:$0xff] }
 0x570   : > { %v3763_v52 = vpop.f32.mrf.mxu3  ;;  %5154 = vmatmul.bf16.gmra.mxu1 %v4453_v48  ;;  %v3595_v4 = vadd.f32 %v3594_v53, %v8050_v32  ;;  %v5222_v25 = vadd.f32 %v7749_v39, %v5116_v7  ;;  %v8056_v7 = vld [vmem:[#allocation47_spill] sm:$0xff]  ;;  %v8057_v32 = vld [vmem:[#allocation46_spill] sm:$0xff] }
 0x572   : > { %v3764_v15 = vadd.f32 %v3763_v52, %v3595_v4  ;;  %v5286_v0 = vmax.f32 %v5222_v25, 0.0  ;;  %v3269_v4 = vadd.f32 %v8057_v32, %v8056_v7 }
 0x574   : > { %v4418_v26 = vmul.f32 %v4325_v51, %v3764_v15 }
 0x575   : > { %v5117_v42 = vpop.f32.mrf.mxu1 }
 0x576   : > { %v5118_v19 = vadd.f32 %v5117_v42, %v7797_v16  ;;  %v7840_v35 = vpop.f32.mrf.mxu0 }
 0x577   : > { %v3596_v56 = vpop.f32.mrf.mxu2 }
 0x578   : > { %v3765_v2 = vpop.f32.mrf.mxu3  ;;  %v5223_v24 = vadd.f32 %v7749_v39, %v5118_v19  ;;  %v3597_v31 = vadd.f32 %v3596_v56, %v3428_v28  ;;  %v3438_v56 = vadd.f32 %v8059_v41, %v3269_v4 }
 0x57a   : > { %v5287_v38 = vmax.f32 %v5223_v24, 0.0  ;;  %v3766_v57 = vadd.f32 %v3765_v2, %v3597_v31 }
 0x57c   : > { %v6226_v18 = vpack.c.bf16 %v5287_v38, %v5286_v0  ;;  %v4419_v16 = vmul.f32 %v4330_v36, %v3766_v57 }
 0x57d   : > { %v5120_v49 = vpop.f32.mrf.mxu1 }
 0x57e   : > { %6306 = vst [vmem:[%s7560_s19 + $0x98] sm:$0xff] %v6226_v18   ;;  %v4454_v34 = vpack.c.bf16 %v4419_v16, %v4418_v26  ;;  %v5121_v60 = vadd.f32 %v5120_v49, %v7804_v37  ;;  %v7851_v23 = vpop.f32.mrf.mxu0  ;;  %v4345_v26 = vpop.permute.xlu0 %4344 }
 0x57f   : > { %v3599_v14 = vpop.f32.mrf.mxu2  ;;  %4957 = vmatmul.bf16.gmra.mxu0 %v6119_v47  ;;  %v4350_v18 = vpop.permute.xlu1 %4349 }
 0x580   : > { %v3768_v59 = vpop.f32.mrf.mxu3  ;;  %5159 = vmatmul.bf16.gmra.mxu1 %v4454_v34  ;;  %v3600_v5 = vadd.f32 %v3599_v14, %v8054_v3  ;;  %v5224_v10 = vadd.f32 %v7749_v39, %v5121_v60  ;;  %v8060_v3 = vld [vmem:[#allocation29_spill] sm:$0xff] }
 0x582   : > { %v3769_v30 = vadd.f32 %v3768_v59, %v3600_v5  ;;  %v5288_v21 = vmax.f32 %v5224_v10, 0.0 }
 0x584   : > { %v4420_v8 = vmul.f32 %v4335_v11, %v3769_v30 }
 0x585   : > { %v5122_v33 = vpop.f32.mrf.mxu1 }
 0x586   : > { %v5123_v9 = vadd.f32 %v5122_v33, %v7811_v43  ;;  %v4920_v25 = vpop.f32.mrf.mxu0 }
 0x587   : > { %v3601_v17 = vpop.f32.mrf.mxu2 }
 0x588   : > { %v3770_v58 = vpop.f32.mrf.mxu3  ;;  %v5225_v1 = vadd.f32 %v7749_v39, %v5123_v9  ;;  %v3602_v44 = vadd.f32 %v3601_v17, %v3433_v6 }
 0x58a   : > { %v5289_v37 = vmax.f32 %v5225_v1, 0.0  ;;  %v3771_v29 = vadd.f32 %v3770_v58, %v3602_v44  ;;  %v4360_v44 = vpop.permute.xlu0 %4359 }
 0x58c   : > { %v6231_v48 = vpack.c.bf16 %v5289_v37, %v5288_v21  ;;  %v4421_v53 = vmul.f32 %v4340_v61, %v3771_v29  ;;  %v4355_v21 = vpop.permute.xlu2 %4354 }
 0x58d   : > { %v5125_v43 = vpop.f32.mrf.mxu1 }
 0x58e   : > { %6307 = vst [vmem:[%s7560_s19 + $0xa0] sm:$0xff] %v6231_v48   ;;  %v4455_v52 = vpack.c.bf16 %v4421_v53, %v4420_v8  ;;  %v5126_v42 = vadd.f32 %v5125_v43, %v7818_v62  ;;  %v4923_v46 = vpop.f32.mrf.mxu0 }
 0x58f   : > { %v3604_v40 = vpop.f32.mrf.mxu2 }
 0x590   : > { %v3773_v63 = vpop.f32.mrf.mxu3  ;;  %5164 = vmatmul.bf16.gmra.mxu1 %v4455_v52  ;;  %v3605_v28 = vadd.f32 %v3604_v40, %v8058_v50  ;;  %v5226_v2 = vadd.f32 %v7749_v39, %v5126_v42 }
 0x592   : > { %v3774_v0 = vadd.f32 %v3773_v63, %v3605_v28  ;;  %v5290_v36 = vmax.f32 %v5226_v2, 0.0 }
 0x594   : > { %v4422_v16 = vmul.f32 %v4345_v26, %v3774_v0 }
 0x595   : > { %v5127_v19 = vpop.f32.mrf.mxu1 }
 0x596   : > { %v5128_v15 = vadd.f32 %v5127_v19, %v7825_v20  ;;  %v4925_v1 = vpop.f32.mrf.mxu0 }
 0x597   : > { %v3606_v24 = vpop.f32.mrf.mxu2 }
 0x598   : > { %v3775_v31 = vpop.f32.mrf.mxu3  ;;  %v5227_v38 = vadd.f32 %v7749_v39, %v5128_v15  ;;  %v3607_v57 = vadd.f32 %v3606_v24, %v3438_v56 }
 0x59a   : > { %v5291_v51 = vmax.f32 %v5227_v38, 0.0  ;;  %v3776_v62 = vadd.f32 %v3775_v31, %v3607_v57 }
 0x59c   : > { %v6236_v49 = vpack.c.bf16 %v5291_v51, %v5290_v36  ;;  %v4423_v34 = vmul.f32 %v4350_v18, %v3776_v62 }
 0x59d   : > { %v5130_v14 = vpop.f32.mrf.mxu1 }
 0x59e   : > { %6308 = vst [vmem:[%s7560_s19 + $0xa8] sm:$0xff] %v6236_v49   ;;  %v4456_v59 = vpack.c.bf16 %v4423_v34, %v4422_v16  ;;  %v5131_v60 = vadd.f32 %v5130_v14, %v7835_v55  ;;  %v4928_v8 = vpop.f32.mrf.mxu0 }
 0x59f   : > { %v3609_v12 = vpop.f32.mrf.mxu2 }
 0x5a0   : > { %v3778_v20 = vpop.f32.mrf.mxu3  ;;  %5169 = vmatmul.bf16.gmra.mxu1 %v4456_v59  ;;  %v3610_v5 = vadd.f32 %v3609_v12, %v8060_v3  ;;  %v5228_v6 = vadd.f32 %v7749_v39, %v5131_v60 }
 0x5a2   : > { %v3779_v47 = vadd.f32 %v3778_v20, %v3610_v5  ;;  %v5292_v13 = vmax.f32 %v5228_v6, 0.0 }
 0x5a4   : > { %v4424_v37 = vmul.f32 %v4355_v21, %v3779_v47 }
 0x5a5   : > { %v5132_v33 = vpop.f32.mrf.mxu1 }
 0x5a6   : > { %v5133_v10 = vadd.f32 %v5132_v33, %v7840_v35  ;;  %v4930_v4 = vpop.f32.mrf.mxu0 }
 0x5a7   : > { %v3611_v9 = vpop.f32.mrf.mxu2 }
 0x5a8   : > { %v5229_v17 = vadd.f32 %v7749_v39, %v5133_v10  ;;  %v3612_v58 = vadd.f32 %v3611_v9, %v3443_v45  ;;  %v3780_v30 = vpop.f32.mrf.mxu3 }
 0x5aa   : > { %v5293_v54 = vmax.f32 %v5229_v17, 0.0  ;;  %v3781_v55 = vadd.f32 %v3780_v30, %v3612_v58 }
 0x5ac   : > { %v6241_v29 = vpack.c.bf16 %v5293_v54, %v5292_v13  ;;  %v4425_v27 = vmul.f32 %v4360_v44, %v3781_v55 }
 0x5ad   : > { %v5135_v11 = vpop.f32.mrf.mxu1 }
 0x5ae   : > { %6309 = vst [vmem:[%s7560_s19 + $0xb0] sm:$0xff] %v6241_v29   ;;  %v4457_v35 = vpack.c.bf16 %v4425_v27, %v4424_v37  ;;  %v5136_v61 = vadd.f32 %v5135_v11, %v7851_v23  ;;  %v4933_v23 = vpop.f32.mrf.mxu0 }
 0x5b0   : > { %5174 = vmatmul.bf16.gmra.mxu1 %v4457_v35  ;;  %v5230_v53 = vadd.f32 %v7749_v39, %v5136_v61 }
 0x5b2   : > { %v5294_v40 = vmax.f32 %v5230_v53, 0.0 }
 0x5b5   : > { %v5137_v48 = vpop.f32.mrf.mxu1 }
 0x5b6   : > { %v5138_v43 = vadd.f32 %v5137_v48, %v4920_v25  ;;  %v4935_v24 = vpop.f32.mrf.mxu0 }
 0x5b8   : > { %v5231_v52 = vadd.f32 %v7749_v39, %v5138_v43 }
 0x5ba   : > { %v5295_v63 = vmax.f32 %v5231_v52, 0.0 }
 0x5bc   : > { %v6246_v7 = vpack.c.bf16 %v5295_v63, %v5294_v40 }
 0x5bd   : > { %v5140_v32 = vpop.f32.mrf.mxu1 }
 0x5be   : > { %6310 = vst [vmem:[%s7560_s19 + $0xb8] sm:$0xff] %v6246_v7   ;;  %v5141_v42 = vadd.f32 %v5140_v32, %v4923_v46  ;;  %v4938_v26 = vpop.f32.mrf.mxu0 }
 0x5c0   : > { %v5232_v28 = vadd.f32 %v7749_v39, %v5141_v42 }
 0x5c2   : > { %v5296_v56 = vmax.f32 %v5232_v28, 0.0 }
 0x5c5   : > { %v5142_v50 = vpop.f32.mrf.mxu1 }
 0x5c6   : > { %v5143_v19 = vadd.f32 %v5142_v50, %v4925_v1  ;;  %v4940_v14 = vpop.f32.mrf.mxu0 }
 0x5c8   : > { %v5233_v41 = vadd.f32 %v7749_v39, %v5143_v19 }
 0x5ca   : > { %v5297_v25 = vmax.f32 %v5233_v41, 0.0 }
 0x5cc   : > { %v6251_v2 = vpack.c.bf16 %v5297_v25, %v5296_v56 }
 0x5cd   : > { %v5145_v15 = vpop.f32.mrf.mxu1 }
 0x5ce   : > { %6311 = vst [vmem:[%s7560_s19 + $0xc0] sm:$0xff] %v6251_v2   ;;  %v5146_v31 = vadd.f32 %v5145_v15, %v4928_v8  ;;  %v4943_v5 = vpop.f32.mrf.mxu0 }
 0x5d0   : > { %v5234_v38 = vadd.f32 %v7749_v39, %v5146_v31 }
 0x5d2   : > { %v5298_v51 = vmax.f32 %v5234_v38, 0.0 }
 0x5d5   : > { %v5147_v0 = vpop.f32.mrf.mxu1 }
 0x5d6   : > { %v5148_v57 = vadd.f32 %v5147_v0, %v4930_v4  ;;  %v4945_v47 = vpop.f32.mrf.mxu0 }
 0x5d8   : > { %v5235_v36 = vadd.f32 %v7749_v39, %v5148_v57 }
 0x5da   : > { %v5299_v62 = vmax.f32 %v5235_v36, 0.0 }
 0x5dc   : > { %v6256_v18 = vpack.c.bf16 %v5299_v62, %v5298_v51 }
 0x5dd   : > { %v5150_v16 = vpop.f32.mrf.mxu1 }
 0x5de   : > { %6312 = vst [vmem:[%s7560_s19 + $0xc8] sm:$0xff] %v6256_v18   ;;  %v5151_v49 = vadd.f32 %v5150_v16, %v4933_v23  ;;  %v4948_v54 = vpop.f32.mrf.mxu0 }
 0x5e0   : > { %v5236_v59 = vadd.f32 %v7749_v39, %v5151_v49 }
 0x5e2   : > { %v5300_v20 = vmax.f32 %v5236_v59, 0.0 }
 0x5e5   : > { %v5152_v34 = vpop.f32.mrf.mxu1 }
 0x5e6   : > { %v5153_v46 = vadd.f32 %v5152_v34, %v4935_v24  ;;  %v4950_v35 = vpop.f32.mrf.mxu0 }
 0x5e8   : > { %v5237_v12 = vadd.f32 %v7749_v39, %v5153_v46 }
 0x5ea   : > { %v5301_v22 = vmax.f32 %v5237_v12, 0.0 }
 0x5ec   : > { %v6261_v60 = vpack.c.bf16 %v5301_v22, %v5300_v20 }
 0x5ed   : > { %v5155_v3 = vpop.f32.mrf.mxu1 }
 0x5ee   : > { %6313 = vst [vmem:[%s7560_s19 + $0xd0] sm:$0xff] %v6261_v60   ;;  %v5156_v33 = vadd.f32 %v5155_v3, %v4938_v26  ;;  %v4953_v52 = vpop.f32.mrf.mxu0 }
 0x5f0   : > { %v5238_v6 = vadd.f32 %v7749_v39, %v5156_v33 }
 0x5f2   : > { %v5302_v17 = vmax.f32 %v5238_v6, 0.0 }
 0x5f5   : > { %v5157_v45 = vpop.f32.mrf.mxu1 }
 0x5f6   : > { %v5158_v10 = vadd.f32 %v5157_v45, %v4940_v14  ;;  %v4955_v42 = vpop.f32.mrf.mxu0 }
 0x5f8   : > { %v5239_v9 = vadd.f32 %v7749_v39, %v5158_v10 }
 0x5fa   : > { %v5303_v58 = vmax.f32 %v5239_v9, 0.0 }
 0x5fc   : > { %v6266_v30 = vpack.c.bf16 %v5303_v58, %v5302_v17 }
 0x5fd   : > { %v5160_v1 = vpop.f32.mrf.mxu1 }
 0x5fe   : > { %6314 = vst [vmem:[%s7560_s19 + $0xd8] sm:$0xff] %v6266_v30   ;;  %v5161_v13 = vadd.f32 %v5160_v1, %v4943_v5  ;;  %v4958_v2 = vpop.f32.mrf.mxu0 }
 0x600   : > { %v5240_v44 = vadd.f32 %v7749_v39, %v5161_v13 }
 0x602   : > { %v5304_v29 = vmax.f32 %v5240_v44, 0.0 }
 0x605   : > { %v5162_v55 = vpop.f32.mrf.mxu1 }
 0x606   : > { %v5163_v21 = vadd.f32 %v5162_v55, %v4945_v47  ;;  %v4960_v0 = vpop.f32.mrf.mxu0 }
 0x608   : > { %v5241_v37 = vadd.f32 %v7749_v39, %v5163_v21 }
 0x60a   : > { %v5305_v27 = vmax.f32 %v5241_v37, 0.0 }
 0x60c   : > { %v6271_v11 = vpack.c.bf16 %v5305_v27, %v5304_v29 }
 0x60d   : > { %v5165_v61 = vpop.f32.mrf.mxu1 }
 0x60e   : > { %6315 = vst [vmem:[%s7560_s19 + $0xe0] sm:$0xff] %v6271_v11   ;;  %v5166_v8 = vadd.f32 %v5165_v61, %v4948_v54 }
 0x610   : > { %v5242_v53 = vadd.f32 %v7749_v39, %v5166_v8 }
 0x612   : > { %v5306_v63 = vmax.f32 %v5242_v53, 0.0 }
 0x615   : > { %v5167_v48 = vpop.f32.mrf.mxu1 }
 0x616   : > { %v5168_v43 = vadd.f32 %v5167_v48, %v4950_v35 }
 0x618   : > { %v5243_v40 = vadd.f32 %v7749_v39, %v5168_v43 }
 0x61a   : > { %v5307_v7 = vmax.f32 %v5243_v40, 0.0 }
 0x61c   : > { %v6276_v32 = vpack.c.bf16 %v5307_v7, %v5306_v63 }
 0x61d   : > { %v5170_v4 = vpop.f32.mrf.mxu1 }
 0x61e   : > { %6316 = vst [vmem:[%s7560_s19 + $0xe8] sm:$0xff] %v6276_v32   ;;  %v5171_v50 = vadd.f32 %v5170_v4, %v4953_v52 }
 0x620   : > { %v5244_v19 = vadd.f32 %v7749_v39, %v5171_v50 }
 0x622   : > { %v5308_v56 = vmax.f32 %v5244_v19, 0.0 }
 0x625   : > { %v5172_v28 = vpop.f32.mrf.mxu1 }
 0x626   : > { %v5173_v23 = vadd.f32 %v5172_v28, %v4955_v42 }
 0x628   : > { %v5245_v41 = vadd.f32 %v7749_v39, %v5173_v23 }
 0x62a   : > { %v5309_v25 = vmax.f32 %v5245_v41, 0.0 }
 0x62c   : > { %v6281_v15 = vpack.c.bf16 %v5309_v25, %v5308_v56 }
 0x62d   : > { %v5175_v24 = vpop.f32.mrf.mxu1 }
 0x62e   : > { %6317 = vst [vmem:[%s7560_s19 + $0xf0] sm:$0xff] %v6281_v15   ;;  %v5176_v31 = vadd.f32 %v5175_v24, %v4958_v2 }
 0x630   : > { %v5246_v57 = vadd.f32 %v7749_v39, %v5176_v31 }
 0x632   : > { %v5310_v62 = vmax.f32 %v5246_v57, 0.0 }
 0x635   : > { %v5177_v38 = vpop.f32.mrf.mxu1 }
 0x636   : > { %v5178_v36 = vadd.f32 %v5177_v38, %v4960_v0 }
 0x638   : > { %v5247_v51 = vadd.f32 %v7749_v39, %v5178_v36 }
 0x63a   : > { %v5311_v26 = vmax.f32 %v5247_v51, 0.0 }
 0x63c   : > { %v6286_v18 = vpack.c.bf16 %v5311_v26, %v5310_v62 }
 0x63e   : > { %6318 = vst [vmem:[%s7560_s19 + $0xf8] sm:$0xff] %v6286_v18  }
 0x63f PF: > { %s17_s26 = sadd.s32 1, %s6515_s26   ;;  %s8061_s24 = smov %s6511_s25 }
 0x640   : > { %p14_p5 = scmp.ge.s32.totalorder %s17_s26, 4   ;;  %s8062_s25 = smov %s8064_s27 }
 0x642   :  { %16 = sbr.rel (!%p14_p5) target bundleno = 2 (0x2), region = 95 }

</bundles_post_ra>
